<compile_context>
chip_gen: v7x
topology: tpu7x:2x2x1
jax: 0.10.0
libtpu: 0.0.40
codegen_flags: <defaults>
</compile_context>

<pallas_src>
import functools

import jax
import jax.numpy as jnp
from jax import lax
from jax.experimental import pallas as pl
from jax.experimental.pallas import tpu as pltpu


# --------------------------------- kernel ------------------------------------

def clstm_kernel(x_ref, w0_ref, b0_ref, w_ref, bx_ref, bo_ref, mask_ref,
                 out_ref, cell_sc, hide_sc, tap_sc, *, H, W):
    """One T-block (Tb time steps) of the ConvLSTM for one batch element.

    x_ref   : (1, Tb, C, HW)  f32   raw input frames of this block.
    w0_ref  : (3*ngf, xk)     bf16  LSTM0 x->gate weights, rows [g|o|i].
    b0_ref  : (3*ngf, 1)      f32   LSTM0 gate biases.
    w_ref   : (4*ngf+cp, 9*ngf+xk) bf16  fused weights:
              rows    [gates g|o|i|f ; out-conv (cp rows, >=Cout real)]
              columns [9 hide-taps * ngf ; x-taps (zero-padded to xk)]
              (the out rows have zero x-columns, so the px region of the
               scratch can never leak into the deferred out-conv).
    bx_ref  : (4*ngf, 1)      f32   gate biases (the x-path convs own them).
    bo_ref  : (cp, 1)         f32   out-conv bias (zero-padded rows).
    mask_ref: (9, HW)         f32   'SAME' zero-padding validity per 3x3 tap.
    out_ref : (1, Tb, cp, HW) f32   per-step out-conv result (padded rows).
    cell_sc : (ngf, HW)       f32   carried across the whole sequence.
    hide_sc : (ngf, HW)       f32   hand-off between the t==0 branch & im2col.
    tap_sc  : (9*ngf+xk, HW)  bf16  shared im2col scratch:
              rows [0, 9*ngf)        -> ph(hide_t)  (rewritten every step)
              rows [9*ngf, 9*ngf+xk) -> px(x_t)     (rewritten every step)
    """
    ngf = cell_sc.shape[0]
    HW = H * W
    Tb = out_ref.shape[1]
    cp = out_ref.shape[2]
    n4 = 4 * ngf
    nh = 9 * ngf
    xk = tap_sc.shape[0] - nh
    blk = pl.program_id(1)
    mask = mask_ref[...]                                    # (9, HW) f32

    def taps(src):
        """Yield (k, slab) for the 9 'SAME' 3x3 taps of src (rows, HW), f32."""
        k = 0
        for dy in (-1, 0, 1):
            for dx in (-1, 0, 1):
                off = dy * W + dx
                slab = pltpu.roll(src, shift=(-off) % HW, axis=1) if off else src
                if off:                                     # zero 'SAME' border
                    slab = slab * mask[k:k + 1, :]
                yield k, slab
                k += 1

    for i in range(Tb):                                     # static unroll
        # ----- x-path im2col for step t = blk*Tb + i (tiny: C channels) ------
        xt = x_ref[0, i]                                    # (C, HW) f32
        slabs = [s for _, s in taps(xt)]
        nxc = 9 * xt.shape[0]
        if xk > nxc:                                        # pad to aligned rows
            slabs.append(jnp.zeros((xk - nxc, HW), jnp.float32))
        px = jnp.concatenate(slabs, axis=0).astype(jnp.bfloat16)   # (xk, HW)
        tap_sc[nh:nh + xk, :] = px

        if i == 0:
            @pl.when(blk == 0)
            def _lstm0():                                   # t == 0: x-only gates
                s0 = jnp.dot(w0_ref[...], px,
                             preferred_element_type=jnp.float32) + b0_ref[...]
                g = jnp.tanh(s0[0:ngf])
                o = jax.nn.sigmoid(s0[ngf:2 * ngf])
                ii = jax.nn.sigmoid(s0[2 * ngf:3 * ngf])
                c = jnp.tanh(g * ii)
                cell_sc[...] = c
                hide_sc[...] = o * c

            @pl.when(blk != 0)
            def _carry_step():      # first step of a later block: gates only
                s = jnp.dot(w_ref[0:n4, :], tap_sc[...],
                            preferred_element_type=jnp.float32)     # (4ngf, HW)
                g = jnp.tanh(s[0:ngf] + bx_ref[0:ngf])
                o = jax.nn.sigmoid(s[ngf:2 * ngf] + bx_ref[ngf:2 * ngf])
                ii = jax.nn.sigmoid(s[2 * ngf:3 * ngf] + bx_ref[2 * ngf:3 * ngf])
                f = jax.nn.sigmoid(s[3 * ngf:4 * ngf] + bx_ref[3 * ngf:4 * ngf])
                c = f * cell_sc[...] + ii * g
                cell_sc[...] = c
                hide_sc[...] = o * jnp.tanh(c)

            hide = hide_sc[...]
        else:
            # Fused step: this step's gates AND the deferred out-conv of
            # hide_{t-1} in ONE matmul (both consume the ph written last step).
            s = jnp.dot(w_ref[...], tap_sc[...],
                        preferred_element_type=jnp.float32)   # (4ngf+cp, HW)
            out_ref[0, i - 1] = s[n4:n4 + cp] + bo_ref[...]
            g = jnp.tanh(s[0:ngf] + bx_ref[0:ngf])
            o = jax.nn.sigmoid(s[ngf:2 * ngf] + bx_ref[ngf:2 * ngf])
            ii = jax.nn.sigmoid(s[2 * ngf:3 * ngf] + bx_ref[2 * ngf:3 * ngf])
            f = jax.nn.sigmoid(s[3 * ngf:4 * ngf] + bx_ref[3 * ngf:4 * ngf])
            c = f * cell_sc[...] + ii * g
            cell_sc[...] = c
            hide = o * jnp.tanh(c)

        # ----- h-path im2col of the NEW hide: per-slab bf16 stores -----------
        for k, slab in taps(hide):
            tap_sc[k * ngf:(k + 1) * ngf, :] = slab.astype(jnp.bfloat16)

    # Flush the last step's output of this block (no later fused matmul inside
    # the block uses its ph).  The out rows have zero x-columns, so the stale
    # px region is harmless.
    out_last = jnp.dot(w_ref[n4:n4 + cp, :], tap_sc[...],
                       preferred_element_type=jnp.float32)
    out_ref[0, Tb - 1] = out_last + bo_ref[...]


# --------------------------------- wrapper -----------------------------------

def _conv_nchw(x, w_hwio, b=None):
    y = lax.conv_general_dilated(x, w_hwio, (1, 1), 'SAME',
                                 dimension_numbers=('NCHW', 'HWIO', 'NCHW'))
    if b is not None:
        y = y + b[None, :, None, None]
    return y


def clstm_forward(x, params, Tb=None):
    """x: (B, T, C, H, W)  ->  (B, T, output_nc, H, W)."""
    B, T, C, H, W = x.shape
    ngf = params['w_gh'].shape[-1]
    Cout = params['w_out'].shape[-1]
    HW = H * W
    cp = 8                                     # out rows padded to 8 sublanes
    assert ngf % 8 == 0 and HW % 128 == 0, "layout assumes ngf%8==0, H*W%128==0"
    assert Cout <= cp

    if Tb is None:                             # largest divisor of T, <= 8
        Tb = max(d for d in range(1, min(T, 8) + 1) if T % d == 0)
    assert T % Tb == 0
    n_blk = T // Tb

    # Gate slot order everywhere: [g, o, i, f].
    wx = jnp.concatenate([params['w_gx'], params['w_ox'],
                          params['w_ix'], params['w_fx']], axis=-1)
    bx = jnp.concatenate([params['b_gx'], params['b_ox'],
                          params['b_ix'], params['b_fx']])
    wx0 = jnp.concatenate([params['w_gx0'], params['w_ox0'],
                           params['w_ix0']], axis=-1)
    bx0 = jnp.concatenate([params['b_gx0'], params['b_ox0'],
                           params['b_ix0']])
    wh = jnp.concatenate([params['w_gh'], params['w_oh'],
                          params['w_ih'], params['w_fh']], axis=-1)

    # Flatten the 3x3 taps into the contraction dim (tap-major, channel-minor)
    # and transpose so in-kernel matmuls are (out_ch, K) @ (K, H*W).
    xk = -(-(9 * C) // 16) * 16                # x-tap rows padded for alignment
    xpad = xk - 9 * C
    whT = jnp.transpose(wh.reshape(9 * ngf, 4 * ngf))                # (4ngf, 9ngf)
    wxT = jnp.pad(jnp.transpose(wx.reshape(9 * C, 4 * ngf)),
                  ((0, 0), (0, xpad)))                               # (4ngf, xk)
    w0T = jnp.pad(jnp.transpose(wx0.reshape(9 * C, 3 * ngf)),
                  ((0, 0), (0, xpad))).astype(jnp.bfloat16)          # (3ngf, xk)
    woT = jnp.transpose(params['w_out'].reshape(9 * ngf, Cout))      # (Cout, 9ngf)
    top = jnp.concatenate([whT, wxT], axis=1)                        # gates
    bot = jnp.concatenate(
        [jnp.zeros((cp, 9 * ngf), top.dtype).at[:Cout].set(woT),
         jnp.zeros((cp, xk), top.dtype)], axis=1)                    # out rows
    w_all = jnp.concatenate([top, bot], axis=0).astype(jnp.bfloat16)

    bxT = bx.reshape(4 * ngf, 1).astype(jnp.float32)
    b0T = bx0.reshape(3 * ngf, 1).astype(jnp.float32)
    boT = jnp.zeros((cp, 1), jnp.float32).at[:Cout, 0].set(params['b_out'])

    # Hoisted 'SAME' zero-padding validity masks for the 9 taps.
    ys = jnp.arange(H).reshape(H, 1)
    xs = jnp.arange(W).reshape(1, W)
    rows = []
    for dy in (-1, 0, 1):
        for dx in (-1, 0, 1):
            valid = ((ys + dy >= 0) & (ys + dy < H) &
                     (xs + dx >= 0) & (xs + dx < W))
            rows.append(valid.reshape(1, HW))
    mask = jnp.concatenate(rows, axis=0).astype(jnp.float32)          # (9, HW)

    x_flat = x.reshape(B, T, C, HW).astype(jnp.float32)

    # Explicit VMEM budget (v7x has only 64 MiB of physical VMEM).
    vmem_need = (
        2 * Tb * C * HW * 4                     # x block (double-buffered)
        + 2 * Tb * cp * HW * 4                  # out block
        + 2 * ((4 * ngf + cp) * (9 * ngf + xk) * 2
               + 3 * ngf * xk * 2
               + (7 * ngf + cp) * 128 * 4
               + 16 * HW * 4)                   # resident weights/bias/masks
        + 2 * ngf * HW * 4 + (9 * ngf + xk) * HW * 2)   # scratch
    vmem_limit = int(min(max(2 * vmem_need, 16 * 1024 * 1024),
                         64 * 1024 * 1024))

    kernel = functools.partial(clstm_kernel, H=H, W=W)
    out = pl.pallas_call(
        kernel,
        out_shape=jax.ShapeDtypeStruct((B, T, cp, HW), jnp.float32),
        grid_spec=pltpu.PrefetchScalarGridSpec(
            num_scalar_prefetch=0,
            # NOTE: grid order must stay (B outer, T-blocks inner): the
            # recurrent state lives in VMEM scratch carried along the T axis
            # and is re-initialized at blk == 0.
            grid=(B, n_blk),
            in_specs=[
                pl.BlockSpec((1, Tb, C, HW), lambda b, t: (b, t, 0, 0)),
                pl.BlockSpec((3 * ngf, xk), lambda b, t: (0, 0)),
                pl.BlockSpec((3 * ngf, 1), lambda b, t: (0, 0)),
                pl.BlockSpec((4 * ngf + cp, 9 * ngf + xk), lambda b, t: (0, 0)),
                pl.BlockSpec((4 * ngf, 1), lambda b, t: (0, 0)),
                pl.BlockSpec((cp, 1), lambda b, t: (0, 0)),
                pl.BlockSpec((9, HW), lambda b, t: (0, 0)),
            ],
            out_specs=pl.BlockSpec((1, Tb, cp, HW), lambda b, t: (b, t, 0, 0)),
            scratch_shapes=[
                pltpu.VMEM((ngf, HW), jnp.float32),            # cell_t
                pltpu.VMEM((ngf, HW), jnp.float32),            # hide_t hand-off
                pltpu.VMEM((9 * ngf + xk, HW), jnp.bfloat16),  # [ph ; px] im2col
            ]),
        compiler_params=pltpu.CompilerParams(
            dimension_semantics=("parallel", "arbitrary"),
            vmem_limit_bytes=vmem_limit),
    )(x_flat, w0T, b0T, w_all, bxT, boT, mask)
    return out[:, :, :Cout].reshape(B, T, Cout, H, W)


# ------------------------- pure-JAX reference (check) -------------------------

def clstm_ref(x, p):
    B, T, C, H, W = x.shape
    outs = []
    cell = hide = None
    for t in range(T):
        xt = x[:, t]
        if t == 0:
            g = jnp.tanh(_conv_nchw(xt, p['w_gx0'], p['b_gx0']))
            i = jax.nn.sigmoid(_conv_nchw(xt, p['w_ix0'], p['b_ix0']))
            o = jax.nn.sigmoid(_conv_nchw(xt, p['w_ox0'], p['b_ox0']))
            cell = jnp.tanh(g * i)
            hide = o * cell
        else:
            g = jnp.tanh(_conv_nchw(xt, p['w_gx'], p['b_gx'])
                         + _conv_nchw(hide, p['w_gh']))
            o = jax.nn.sigmoid(_conv_nchw(xt, p['w_ox'], p['b_ox'])
                               + _conv_nchw(hide, p['w_oh']))
            i = jax.nn.sigmoid(_conv_nchw(xt, p['w_ix'], p['b_ix'])
                               + _conv_nchw(hide, p['w_ih']))
            f = jax.nn.sigmoid(_conv_nchw(xt, p['w_fx'], p['b_fx'])
                               + _conv_nchw(hide, p['w_fh']))
            cell = f * cell + i * g
            hide = o * jnp.tanh(cell)
        outs.append(_conv_nchw(hide, p['w_out'], p['b_out']))
    return jnp.stack(outs, axis=1)


# ----------------------------------- main ------------------------------------

if __name__ == "__main__":
    B, T, C, H, W = 2, 8, 1, 16, 16        # output_nc = in_c = 1
    ngf = 32

    keys = iter(jax.random.split(jax.random.PRNGKey(0), 32))

    def rnd(shape, scale=0.1):
        return scale * jax.random.normal(next(keys), shape, jnp.float32)

    params = {
        # LSTM0 (x-only gates, biased)
        'w_gx0': rnd((3, 3, C, ngf)), 'b_gx0': rnd((ngf,)),
        'w_ix0': rnd((3, 3, C, ngf)), 'b_ix0': rnd((ngf,)),
        'w_ox0': rnd((3, 3, C, ngf)), 'b_ox0': rnd((ngf,)),
        # LSTM x-path (biased) and h-path (bias-free) gates
        'w_gx': rnd((3, 3, C, ngf)), 'b_gx': rnd((ngf,)),
        'w_ox': rnd((3, 3, C, ngf)), 'b_ox': rnd((ngf,)),
        'w_ix': rnd((3, 3, C, ngf)), 'b_ix': rnd((ngf,)),
        'w_fx': rnd((3, 3, C, ngf)), 'b_fx': rnd((ngf,)),
        'w_gh': rnd((3, 3, ngf, ngf)),
        'w_oh': rnd((3, 3, ngf, ngf)),
        'w_ih': rnd((3, 3, ngf, ngf)),
        'w_fh': rnd((3, 3, ngf, ngf)),
        # output 3x3 conv
        'w_out': rnd((3, 3, ngf, C)), 'b_out': rnd((C,)),
    }
    x = jax.random.normal(next(keys), (B, T, C, H, W), jnp.float32)

    # Tb=4 with T=8 -> two T-blocks per batch element, exercising the
    # cross-block state carry and the deferred-output flush paths.
    run = jax.jit(functools.partial(clstm_forward, Tb=4))
    y = jax.block_until_ready(run(x, params))

    y_ref = clstm_ref(x, params)
    assert y.shape == (B, T, C, H, W), y.shape
    # bf16 MXU operands on both the x- and h-paths -> slightly loose tolerance.
    assert jnp.allclose(y, y_ref, atol=5e-2, rtol=5e-2), \
        float(jnp.max(jnp.abs(y - y_ref)))

    print("KERNEL_OK")
</pallas_src>

<mosaic_0001>
module attributes {stable_mosaic.version = 11 : i64} {
  func.func @clstm_kernel(%arg0: i32, %arg1: i32, %arg2: memref<1x4x1x256xf32, #tpu.memory_space<vmem>>, %arg3: memref<96x16xbf16, #tpu.memory_space<vmem>>, %arg4: memref<96x1xf32, #tpu.memory_space<vmem>>, %arg5: memref<136x304xbf16, #tpu.memory_space<vmem>>, %arg6: memref<128x1xf32, #tpu.memory_space<vmem>>, %arg7: memref<8x1xf32, #tpu.memory_space<vmem>>, %arg8: memref<9x256xf32, #tpu.memory_space<vmem>>, %arg9: memref<1x4x8x256xf32, #tpu.memory_space<vmem>>, %arg10: memref<32x256xf32, #tpu.memory_space<vmem>>, %arg11: memref<32x256xf32, #tpu.memory_space<vmem>>, %arg12: memref<304x256xbf16, #tpu.memory_space<vmem>>) attributes {dimension_semantics = [#tpu.dimension_semantics<parallel>, #tpu.dimension_semantics<arbitrary>], iteration_bounds = array<i64: 2, 2>, scalar_prefetch = 0 : i64, scratch_operands = 3 : i64, tpu.core_type = #tpu.core_type<tc>, window_params = [{transform_indices = @transform_0, window_bounds = array<i64: 1, 4, 1, 256>}, {pipeline_mode = #tpu.pipeline_mode<synchronous>, transform_indices = @transform_1, window_bounds = array<i64: 96, 16>}, {pipeline_mode = #tpu.pipeline_mode<synchronous>, transform_indices = @transform_2, window_bounds = array<i64: 96, 1>}, {pipeline_mode = #tpu.pipeline_mode<synchronous>, transform_indices = @transform_3, window_bounds = array<i64: 136, 304>}, {pipeline_mode = #tpu.pipeline_mode<synchronous>, transform_indices = @transform_4, window_bounds = array<i64: 128, 1>}, {pipeline_mode = #tpu.pipeline_mode<synchronous>, transform_indices = @transform_5, window_bounds = array<i64: 8, 1>}, {pipeline_mode = #tpu.pipeline_mode<synchronous>, transform_indices = @transform_6, window_bounds = array<i64: 9, 256>}, {transform_indices = @transform_7, window_bounds = array<i64: 1, 4, 8, 256>}]} {
    %c0 = arith.constant 0 : index
    %c0_0 = arith.constant 0 : index
    %0 = vector.load %arg8[%c0, %c0_0] : memref<9x256xf32, #tpu.memory_space<vmem>>, vector<9x256xf32>
    %c0_1 = arith.constant 0 : index
    %c0_2 = arith.constant 0 : index
    %c0_3 = arith.constant 0 : index
    %c0_4 = arith.constant 0 : index
    %1 = vector.load %arg2[%c0_1, %c0_2, %c0_3, %c0_4] : memref<1x4x1x256xf32, #tpu.memory_space<vmem>>, vector<1x1x1x256xf32>
    %2 = vector.shape_cast %1 : vector<1x1x1x256xf32> to vector<1x256xf32>
    %c17_i32 = arith.constant 17 : i32
    %3 = tpu.dynamic_rotate %2 by %c17_i32 dim 1 : vector<1x256xf32>, i32 -> vector<1x256xf32>
    %4 = vector.extract_strided_slice %0 {offsets = [0, 0], sizes = [1, 256], strides = [1, 1]} : vector<9x256xf32> to vector<1x256xf32>
    %5 = arith.mulf %3, %4 : vector<1x256xf32>
    %c16_i32 = arith.constant 16 : i32
    %6 = tpu.dynamic_rotate %2 by %c16_i32 dim 1 : vector<1x256xf32>, i32 -> vector<1x256xf32>
    %7 = vector.extract_strided_slice %0 {offsets = [1, 0], sizes = [1, 256], strides = [1, 1]} : vector<9x256xf32> to vector<1x256xf32>
    %8 = arith.mulf %6, %7 : vector<1x256xf32>
    %c15_i32 = arith.constant 15 : i32
    %9 = tpu.dynamic_rotate %2 by %c15_i32 dim 1 : vector<1x256xf32>, i32 -> vector<1x256xf32>
    %10 = vector.extract_strided_slice %0 {offsets = [2, 0], sizes = [1, 256], strides = [1, 1]} : vector<9x256xf32> to vector<1x256xf32>
    %11 = arith.mulf %9, %10 : vector<1x256xf32>
    %c1_i32 = arith.constant 1 : i32
    %12 = tpu.dynamic_rotate %2 by %c1_i32 dim 1 : vector<1x256xf32>, i32 -> vector<1x256xf32>
    %13 = vector.extract_strided_slice %0 {offsets = [3, 0], sizes = [1, 256], strides = [1, 1]} : vector<9x256xf32> to vector<1x256xf32>
    %14 = arith.mulf %12, %13 : vector<1x256xf32>
    %c255_i32 = arith.constant 255 : i32
    %15 = tpu.dynamic_rotate %2 by %c255_i32 dim 1 : vector<1x256xf32>, i32 -> vector<1x256xf32>
    %16 = vector.extract_strided_slice %0 {offsets = [5, 0], sizes = [1, 256], strides = [1, 1]} : vector<9x256xf32> to vector<1x256xf32>
    %17 = arith.mulf %15, %16 : vector<1x256xf32>
    %c241_i32 = arith.constant 241 : i32
    %18 = tpu.dynamic_rotate %2 by %c241_i32 dim 1 : vector<1x256xf32>, i32 -> vector<1x256xf32>
    %19 = vector.extract_strided_slice %0 {offsets = [6, 0], sizes = [1, 256], strides = [1, 1]} : vector<9x256xf32> to vector<1x256xf32>
    %20 = arith.mulf %18, %19 : vector<1x256xf32>
    %c240_i32 = arith.constant 240 : i32
    %21 = tpu.dynamic_rotate %2 by %c240_i32 dim 1 : vector<1x256xf32>, i32 -> vector<1x256xf32>
    %22 = vector.extract_strided_slice %0 {offsets = [7, 0], sizes = [1, 256], strides = [1, 1]} : vector<9x256xf32> to vector<1x256xf32>
    %23 = arith.mulf %21, %22 : vector<1x256xf32>
    %c239_i32 = arith.constant 239 : i32
    %24 = tpu.dynamic_rotate %2 by %c239_i32 dim 1 : vector<1x256xf32>, i32 -> vector<1x256xf32>
    %25 = vector.extract_strided_slice %0 {offsets = [8, 0], sizes = [1, 256], strides = [1, 1]} : vector<9x256xf32> to vector<1x256xf32>
    %26 = arith.mulf %24, %25 : vector<1x256xf32>
    %cst = arith.constant 0.000000e+00 : f32
    %27 = vector.broadcast %cst : f32 to vector<7x256xf32>
    %28 = tpu.concatenate %5, %8, %11, %14, %2, %17, %20, %23, %26, %27 in 0 : vector<1x256xf32>, vector<1x256xf32>, vector<1x256xf32>, vector<1x256xf32>, vector<1x256xf32>, vector<1x256xf32>, vector<1x256xf32>, vector<1x256xf32>, vector<1x256xf32>, vector<7x256xf32> -> vector<16x256xf32>
    %29 = arith.truncf %28 : vector<16x256xf32> to vector<16x256xbf16>
    %c288 = arith.constant 288 : index
    %c0_5 = arith.constant 0 : index
    %30 = vector.load %arg12[%c288, %c0_5] : memref<304x256xbf16, #tpu.memory_space<vmem>>, vector<16x256xbf16>
    tpu.vector_store %arg12[%c288, %c0_5], %29 {strides = array<i32>} : memref<304x256xbf16, #tpu.memory_space<vmem>>, vector<16x256xbf16>,
    %c0_i32 = arith.constant 0 : i32
    %31 = arith.cmpi eq, %arg1, %c0_i32 : i32
    %32 = arith.extui %31 : i1 to i32
    %c0_i32_6 = arith.constant 0 : i32
    %33 = arith.cmpi ne, %32, %c0_i32_6 : i32
    scf.if %33 {
      %c0_238 = arith.constant 0 : index
      %c0_239 = arith.constant 0 : index
      %484 = vector.load %arg3[%c0_238, %c0_239] : memref<96x16xbf16, #tpu.memory_space<vmem>>, vector<96x16xbf16>
      %cst_240 = arith.constant dense<0.000000e+00> : vector<96x256xf32>
      %485 = tpu.matmul %484, %29, %cst_240 {dimension_numbers = #tpu.dot_dimension_numbers<[1], [0], [0], [1], [0, 0, 1, 1], [], []>} : vector<96x16xbf16>, vector<16x256xbf16>, vector<96x256xf32> -> vector<96x256xf32>
      %c0_241 = arith.constant 0 : index
      %c0_242 = arith.constant 0 : index
      %486 = vector.load %arg4[%c0_241, %c0_242] : memref<96x1xf32, #tpu.memory_space<vmem>>, vector<96x1xf32>
      %487 = vector.broadcast %486 : vector<96x1xf32> to vector<96x256xf32>
      %488 = arith.addf %485, %487 : vector<96x256xf32>
      %489 = vector.extract_strided_slice %488 {offsets = [0, 0], sizes = [32, 256], strides = [1, 1]} : vector<96x256xf32> to vector<32x256xf32>
      %490 = math.tanh %489 : vector<32x256xf32>
      %491 = vector.extract_strided_slice %488 {offsets = [32, 0], sizes = [32, 256], strides = [1, 1]} : vector<96x256xf32> to vector<32x256xf32>
      %492 = arith.negf %491 : vector<32x256xf32>
      %493 = math.exp %492 : vector<32x256xf32>
      %cst_243 = arith.constant 1.000000e+00 : f32
      %494 = vector.broadcast %cst_243 : f32 to vector<32x256xf32>
      %495 = arith.addf %494, %493 : vector<32x256xf32>
      %496 = arith.divf %494, %495 : vector<32x256xf32>
      %497 = vector.extract_strided_slice %488 {offsets = [64, 0], sizes = [32, 256], strides = [1, 1]} : vector<96x256xf32> to vector<32x256xf32>
      %498 = arith.negf %497 : vector<32x256xf32>
      %499 = math.exp %498 : vector<32x256xf32>
      %cst_244 = arith.constant 1.000000e+00 : f32
      %500 = vector.broadcast %cst_244 : f32 to vector<32x256xf32>
      %501 = arith.addf %500, %499 : vector<32x256xf32>
      %502 = arith.divf %500, %501 : vector<32x256xf32>
      %503 = arith.mulf %490, %502 : vector<32x256xf32>
      %504 = math.tanh %503 : vector<32x256xf32>
      %c0_245 = arith.constant 0 : index
      %c0_246 = arith.constant 0 : index
      %505 = vector.load %arg10[%c0_245, %c0_246] : memref<32x256xf32, #tpu.memory_space<vmem>>, vector<32x256xf32>
      tpu.vector_store %arg10[%c0_245, %c0_246], %504 {strides = array<i32>} : memref<32x256xf32, #tpu.memory_space<vmem>>, vector<32x256xf32>,
      %506 = arith.mulf %496, %504 : vector<32x256xf32>
      %c0_247 = arith.constant 0 : index
      %c0_248 = arith.constant 0 : index
      %507 = vector.load %arg11[%c0_247, %c0_248] : memref<32x256xf32, #tpu.memory_space<vmem>>, vector<32x256xf32>
      tpu.vector_store %arg11[%c0_247, %c0_248], %506 {strides = array<i32>} : memref<32x256xf32, #tpu.memory_space<vmem>>, vector<32x256xf32>,
    } else {
    }
    %c0_i32_7 = arith.constant 0 : i32
    %34 = arith.cmpi ne, %arg1, %c0_i32_7 : i32
    %35 = arith.extui %34 : i1 to i32
    %c0_i32_8 = arith.constant 0 : i32
    %36 = arith.cmpi ne, %35, %c0_i32_8 : i32
    scf.if %36 {
      %c0_238 = arith.constant 0 : index
      %c0_239 = arith.constant 0 : index
      %484 = vector.load %arg5[%c0_238, %c0_239] : memref<136x304xbf16, #tpu.memory_space<vmem>>, vector<128x304xbf16>
      %c0_240 = arith.constant 0 : index
      %c0_241 = arith.constant 0 : index
      %485 = vector.load %arg12[%c0_240, %c0_241] : memref<304x256xbf16, #tpu.memory_space<vmem>>, vector<304x256xbf16>
      %cst_242 = arith.constant dense<0.000000e+00> : vector<128x256xf32>
      %486 = tpu.matmul %484, %485, %cst_242 {dimension_numbers = #tpu.dot_dimension_numbers<[1], [0], [0], [1], [0, 0, 1, 1], [], []>} : vector<128x304xbf16>, vector<304x256xbf16>, vector<128x256xf32> -> vector<128x256xf32>
      %487 = vector.extract_strided_slice %486 {offsets = [0, 0], sizes = [32, 256], strides = [1, 1]} : vector<128x256xf32> to vector<32x256xf32>
      %c0_243 = arith.constant 0 : index
      %c0_244 = arith.constant 0 : index
      %488 = vector.load %arg6[%c0_243, %c0_244] : memref<128x1xf32, #tpu.memory_space<vmem>>, vector<32x1xf32>
      %489 = vector.broadcast %488 : vector<32x1xf32> to vector<32x256xf32>
      %490 = arith.addf %487, %489 : vector<32x256xf32>
      %491 = math.tanh %490 : vector<32x256xf32>
      %492 = vector.extract_strided_slice %486 {offsets = [32, 0], sizes = [32, 256], strides = [1, 1]} : vector<128x256xf32> to vector<32x256xf32>
      %c32_245 = arith.constant 32 : index
      %c0_246 = arith.constant 0 : index
      %493 = vector.load %arg6[%c32_245, %c0_246] : memref<128x1xf32, #tpu.memory_space<vmem>>, vector<32x1xf32>
      %494 = vector.broadcast %493 : vector<32x1xf32> to vector<32x256xf32>
      %495 = arith.addf %492, %494 : vector<32x256xf32>
      %496 = arith.negf %495 : vector<32x256xf32>
      %497 = math.exp %496 : vector<32x256xf32>
      %cst_247 = arith.constant 1.000000e+00 : f32
      %498 = vector.broadcast %cst_247 : f32 to vector<32x256xf32>
      %499 = arith.addf %498, %497 : vector<32x256xf32>
      %500 = arith.divf %498, %499 : vector<32x256xf32>
      %501 = vector.extract_strided_slice %486 {offsets = [64, 0], sizes = [32, 256], strides = [1, 1]} : vector<128x256xf32> to vector<32x256xf32>
      %c64_248 = arith.constant 64 : index
      %c0_249 = arith.constant 0 : index
      %502 = vector.load %arg6[%c64_248, %c0_249] : memref<128x1xf32, #tpu.memory_space<vmem>>, vector<32x1xf32>
      %503 = vector.broadcast %502 : vector<32x1xf32> to vector<32x256xf32>
      %504 = arith.addf %501, %503 : vector<32x256xf32>
      %505 = arith.negf %504 : vector<32x256xf32>
      %506 = math.exp %505 : vector<32x256xf32>
      %cst_250 = arith.constant 1.000000e+00 : f32
      %507 = vector.broadcast %cst_250 : f32 to vector<32x256xf32>
      %508 = arith.addf %507, %506 : vector<32x256xf32>
      %509 = arith.divf %507, %508 : vector<32x256xf32>
      %510 = vector.extract_strided_slice %486 {offsets = [96, 0], sizes = [32, 256], strides = [1, 1]} : vector<128x256xf32> to vector<32x256xf32>
      %c96_251 = arith.constant 96 : index
      %c0_252 = arith.constant 0 : index
      %511 = vector.load %arg6[%c96_251, %c0_252] : memref<128x1xf32, #tpu.memory_space<vmem>>, vector<32x1xf32>
      %512 = vector.broadcast %511 : vector<32x1xf32> to vector<32x256xf32>
      %513 = arith.addf %510, %512 : vector<32x256xf32>
      %514 = arith.negf %513 : vector<32x256xf32>
      %515 = math.exp %514 : vector<32x256xf32>
      %cst_253 = arith.constant 1.000000e+00 : f32
      %516 = vector.broadcast %cst_253 : f32 to vector<32x256xf32>
      %517 = arith.addf %516, %515 : vector<32x256xf32>
      %518 = arith.divf %516, %517 : vector<32x256xf32>
      %c0_254 = arith.constant 0 : index
      %c0_255 = arith.constant 0 : index
      %519 = vector.load %arg10[%c0_254, %c0_255] : memref<32x256xf32, #tpu.memory_space<vmem>>, vector<32x256xf32>
      %520 = arith.mulf %518, %519 : vector<32x256xf32>
      %521 = arith.mulf %509, %491 : vector<32x256xf32>
      %522 = arith.addf %520, %521 : vector<32x256xf32>
      %c0_256 = arith.constant 0 : index
      %c0_257 = arith.constant 0 : index
      %523 = vector.load %arg10[%c0_256, %c0_257] : memref<32x256xf32, #tpu.memory_space<vmem>>, vector<32x256xf32>
      tpu.vector_store %arg10[%c0_256, %c0_257], %522 {strides = array<i32>} : memref<32x256xf32, #tpu.memory_space<vmem>>, vector<32x256xf32>,
      %524 = math.tanh %522 : vector<32x256xf32>
      %525 = arith.mulf %500, %524 : vector<32x256xf32>
      %c0_258 = arith.constant 0 : index
      %c0_259 = arith.constant 0 : index
      %526 = vector.load %arg11[%c0_258, %c0_259] : memref<32x256xf32, #tpu.memory_space<vmem>>, vector<32x256xf32>
      tpu.vector_store %arg11[%c0_258, %c0_259], %525 {strides = array<i32>} : memref<32x256xf32, #tpu.memory_space<vmem>>, vector<32x256xf32>,
    } else {
    }
    %c0_9 = arith.constant 0 : index
    %c0_10 = arith.constant 0 : index
    %37 = vector.load %arg11[%c0_9, %c0_10] : memref<32x256xf32, #tpu.memory_space<vmem>>, vector<32x256xf32>
    %c17_i32_11 = arith.constant 17 : i32
    %38 = tpu.dynamic_rotate %37 by %c17_i32_11 dim 1 : vector<32x256xf32>, i32 -> vector<32x256xf32>
    %39 = vector.extract_strided_slice %0 {offsets = [0, 0], sizes = [1, 256], strides = [1, 1]} : vector<9x256xf32> to vector<1x256xf32>
    %40 = vector.broadcast %39 : vector<1x256xf32> to vector<32x256xf32>
    %41 = arith.mulf %38, %40 : vector<32x256xf32>
    %42 = arith.truncf %41 : vector<32x256xf32> to vector<32x256xbf16>
    %c0_12 = arith.constant 0 : index
    %c0_13 = arith.constant 0 : index
    %43 = vector.load %arg12[%c0_12, %c0_13] : memref<304x256xbf16, #tpu.memory_space<vmem>>, vector<32x256xbf16>
    tpu.vector_store %arg12[%c0_12, %c0_13], %42 {strides = array<i32>} : memref<304x256xbf16, #tpu.memory_space<vmem>>, vector<32x256xbf16>,
    %c16_i32_14 = arith.constant 16 : i32
    %44 = tpu.dynamic_rotate %37 by %c16_i32_14 dim 1 : vector<32x256xf32>, i32 -> vector<32x256xf32>
    %45 = vector.extract_strided_slice %0 {offsets = [1, 0], sizes = [1, 256], strides = [1, 1]} : vector<9x256xf32> to vector<1x256xf32>
    %46 = vector.broadcast %45 : vector<1x256xf32> to vector<32x256xf32>
    %47 = arith.mulf %44, %46 : vector<32x256xf32>
    %48 = arith.truncf %47 : vector<32x256xf32> to vector<32x256xbf16>
    %c32 = arith.constant 32 : index
    %c0_15 = arith.constant 0 : index
    %49 = vector.load %arg12[%c32, %c0_15] : memref<304x256xbf16, #tpu.memory_space<vmem>>, vector<32x256xbf16>
    tpu.vector_store %arg12[%c32, %c0_15], %48 {strides = array<i32>} : memref<304x256xbf16, #tpu.memory_space<vmem>>, vector<32x256xbf16>,
    %c15_i32_16 = arith.constant 15 : i32
    %50 = tpu.dynamic_rotate %37 by %c15_i32_16 dim 1 : vector<32x256xf32>, i32 -> vector<32x256xf32>
    %51 = vector.extract_strided_slice %0 {offsets = [2, 0], sizes = [1, 256], strides = [1, 1]} : vector<9x256xf32> to vector<1x256xf32>
    %52 = vector.broadcast %51 : vector<1x256xf32> to vector<32x256xf32>
    %53 = arith.mulf %50, %52 : vector<32x256xf32>
    %54 = arith.truncf %53 : vector<32x256xf32> to vector<32x256xbf16>
    %c64 = arith.constant 64 : index
    %c0_17 = arith.constant 0 : index
    %55 = vector.load %arg12[%c64, %c0_17] : memref<304x256xbf16, #tpu.memory_space<vmem>>, vector<32x256xbf16>
    tpu.vector_store %arg12[%c64, %c0_17], %54 {strides = array<i32>} : memref<304x256xbf16, #tpu.memory_space<vmem>>, vector<32x256xbf16>,
    %c1_i32_18 = arith.constant 1 : i32
    %56 = tpu.dynamic_rotate %37 by %c1_i32_18 dim 1 : vector<32x256xf32>, i32 -> vector<32x256xf32>
    %57 = vector.extract_strided_slice %0 {offsets = [3, 0], sizes = [1, 256], strides = [1, 1]} : vector<9x256xf32> to vector<1x256xf32>
    %58 = vector.broadcast %57 : vector<1x256xf32> to vector<32x256xf32>
    %59 = arith.mulf %56, %58 : vector<32x256xf32>
    %60 = arith.truncf %59 : vector<32x256xf32> to vector<32x256xbf16>
    %c96 = arith.constant 96 : index
    %c0_19 = arith.constant 0 : index
    %61 = vector.load %arg12[%c96, %c0_19] : memref<304x256xbf16, #tpu.memory_space<vmem>>, vector<32x256xbf16>
    tpu.vector_store %arg12[%c96, %c0_19], %60 {strides = array<i32>} : memref<304x256xbf16, #tpu.memory_space<vmem>>, vector<32x256xbf16>,
    %62 = arith.truncf %37 : vector<32x256xf32> to vector<32x256xbf16>
    %c128 = arith.constant 128 : index
    %c0_20 = arith.constant 0 : index
    %63 = vector.load %arg12[%c128, %c0_20] : memref<304x256xbf16, #tpu.memory_space<vmem>>, vector<32x256xbf16>
    tpu.vector_store %arg12[%c128, %c0_20], %62 {strides = array<i32>} : memref<304x256xbf16, #tpu.memory_space<vmem>>, vector<32x256xbf16>,
    %c255_i32_21 = arith.constant 255 : i32
    %64 = tpu.dynamic_rotate %37 by %c255_i32_21 dim 1 : vector<32x256xf32>, i32 -> vector<32x256xf32>
    %65 = vector.extract_strided_slice %0 {offsets = [5, 0], sizes = [1, 256], strides = [1, 1]} : vector<9x256xf32> to vector<1x256xf32>
    %66 = vector.broadcast %65 : vector<1x256xf32> to vector<32x256xf32>
    %67 = arith.mulf %64, %66 : vector<32x256xf32>
    %68 = arith.truncf %67 : vector<32x256xf32> to vector<32x256xbf16>
    %c160 = arith.constant 160 : index
    %c0_22 = arith.constant 0 : index
    %69 = vector.load %arg12[%c160, %c0_22] : memref<304x256xbf16, #tpu.memory_space<vmem>>, vector<32x256xbf16>
    tpu.vector_store %arg12[%c160, %c0_22], %68 {strides = array<i32>} : memref<304x256xbf16, #tpu.memory_space<vmem>>, vector<32x256xbf16>,
    %c241_i32_23 = arith.constant 241 : i32
    %70 = tpu.dynamic_rotate %37 by %c241_i32_23 dim 1 : vector<32x256xf32>, i32 -> vector<32x256xf32>
    %71 = vector.extract_strided_slice %0 {offsets = [6, 0], sizes = [1, 256], strides = [1, 1]} : vector<9x256xf32> to vector<1x256xf32>
    %72 = vector.broadcast %71 : vector<1x256xf32> to vector<32x256xf32>
    %73 = arith.mulf %70, %72 : vector<32x256xf32>
    %74 = arith.truncf %73 : vector<32x256xf32> to vector<32x256xbf16>
    %c192 = arith.constant 192 : index
    %c0_24 = arith.constant 0 : index
    %75 = vector.load %arg12[%c192, %c0_24] : memref<304x256xbf16, #tpu.memory_space<vmem>>, vector<32x256xbf16>
    tpu.vector_store %arg12[%c192, %c0_24], %74 {strides = array<i32>} : memref<304x256xbf16, #tpu.memory_space<vmem>>, vector<32x256xbf16>,
    %c240_i32_25 = arith.constant 240 : i32
    %76 = tpu.dynamic_rotate %37 by %c240_i32_25 dim 1 : vector<32x256xf32>, i32 -> vector<32x256xf32>
    %77 = vector.extract_strided_slice %0 {offsets = [7, 0], sizes = [1, 256], strides = [1, 1]} : vector<9x256xf32> to vector<1x256xf32>
    %78 = vector.broadcast %77 : vector<1x256xf32> to vector<32x256xf32>
    %79 = arith.mulf %76, %78 : vector<32x256xf32>
    %80 = arith.truncf %79 : vector<32x256xf32> to vector<32x256xbf16>
    %c224 = arith.constant 224 : index
    %c0_26 = arith.constant 0 : index
    %81 = vector.load %arg12[%c224, %c0_26] : memref<304x256xbf16, #tpu.memory_space<vmem>>, vector<32x256xbf16>
    tpu.vector_store %arg12[%c224, %c0_26], %80 {strides = array<i32>} : memref<304x256xbf16, #tpu.memory_space<vmem>>, vector<32x256xbf16>,
    %c239_i32_27 = arith.constant 239 : i32
    %82 = tpu.dynamic_rotate %37 by %c239_i32_27 dim 1 : vector<32x256xf32>, i32 -> vector<32x256xf32>
    %83 = vector.extract_strided_slice %0 {offsets = [8, 0], sizes = [1, 256], strides = [1, 1]} : vector<9x256xf32> to vector<1x256xf32>
    %84 = vector.broadcast %83 : vector<1x256xf32> to vector<32x256xf32>
    %85 = arith.mulf %82, %84 : vector<32x256xf32>
    %86 = arith.truncf %85 : vector<32x256xf32> to vector<32x256xbf16>
    %c256 = arith.constant 256 : index
    %c0_28 = arith.constant 0 : index
    %87 = vector.load %arg12[%c256, %c0_28] : memref<304x256xbf16, #tpu.memory_space<vmem>>, vector<32x256xbf16>
    tpu.vector_store %arg12[%c256, %c0_28], %86 {strides = array<i32>} : memref<304x256xbf16, #tpu.memory_space<vmem>>, vector<32x256xbf16>,
    %c0_29 = arith.constant 0 : index
    %c1 = arith.constant 1 : index
    %c0_30 = arith.constant 0 : index
    %c0_31 = arith.constant 0 : index
    %88 = vector.load %arg2[%c0_29, %c1, %c0_30, %c0_31] : memref<1x4x1x256xf32, #tpu.memory_space<vmem>>, vector<1x1x1x256xf32>
    %89 = vector.shape_cast %88 : vector<1x1x1x256xf32> to vector<1x256xf32>
    %c17_i32_32 = arith.constant 17 : i32
    %90 = tpu.dynamic_rotate %89 by %c17_i32_32 dim 1 : vector<1x256xf32>, i32 -> vector<1x256xf32>
    %91 = vector.extract_strided_slice %0 {offsets = [0, 0], sizes = [1, 256], strides = [1, 1]} : vector<9x256xf32> to vector<1x256xf32>
    %92 = arith.mulf %90, %91 : vector<1x256xf32>
    %c16_i32_33 = arith.constant 16 : i32
    %93 = tpu.dynamic_rotate %89 by %c16_i32_33 dim 1 : vector<1x256xf32>, i32 -> vector<1x256xf32>
    %94 = vector.extract_strided_slice %0 {offsets = [1, 0], sizes = [1, 256], strides = [1, 1]} : vector<9x256xf32> to vector<1x256xf32>
    %95 = arith.mulf %93, %94 : vector<1x256xf32>
    %c15_i32_34 = arith.constant 15 : i32
    %96 = tpu.dynamic_rotate %89 by %c15_i32_34 dim 1 : vector<1x256xf32>, i32 -> vector<1x256xf32>
    %97 = vector.extract_strided_slice %0 {offsets = [2, 0], sizes = [1, 256], strides = [1, 1]} : vector<9x256xf32> to vector<1x256xf32>
    %98 = arith.mulf %96, %97 : vector<1x256xf32>
    %c1_i32_35 = arith.constant 1 : i32
    %99 = tpu.dynamic_rotate %89 by %c1_i32_35 dim 1 : vector<1x256xf32>, i32 -> vector<1x256xf32>
    %100 = vector.extract_strided_slice %0 {offsets = [3, 0], sizes = [1, 256], strides = [1, 1]} : vector<9x256xf32> to vector<1x256xf32>
    %101 = arith.mulf %99, %100 : vector<1x256xf32>
    %c255_i32_36 = arith.constant 255 : i32
    %102 = tpu.dynamic_rotate %89 by %c255_i32_36 dim 1 : vector<1x256xf32>, i32 -> vector<1x256xf32>
    %103 = vector.extract_strided_slice %0 {offsets = [5, 0], sizes = [1, 256], strides = [1, 1]} : vector<9x256xf32> to vector<1x256xf32>
    %104 = arith.mulf %102, %103 : vector<1x256xf32>
    %c241_i32_37 = arith.constant 241 : i32
    %105 = tpu.dynamic_rotate %89 by %c241_i32_37 dim 1 : vector<1x256xf32>, i32 -> vector<1x256xf32>
    %106 = vector.extract_strided_slice %0 {offsets = [6, 0], sizes = [1, 256], strides = [1, 1]} : vector<9x256xf32> to vector<1x256xf32>
    %107 = arith.mulf %105, %106 : vector<1x256xf32>
    %c240_i32_38 = arith.constant 240 : i32
    %108 = tpu.dynamic_rotate %89 by %c240_i32_38 dim 1 : vector<1x256xf32>, i32 -> vector<1x256xf32>
    %109 = vector.extract_strided_slice %0 {offsets = [7, 0], sizes = [1, 256], strides = [1, 1]} : vector<9x256xf32> to vector<1x256xf32>
    %110 = arith.mulf %108, %109 : vector<1x256xf32>
    %c239_i32_39 = arith.constant 239 : i32
    %111 = tpu.dynamic_rotate %89 by %c239_i32_39 dim 1 : vector<1x256xf32>, i32 -> vector<1x256xf32>
    %112 = vector.extract_strided_slice %0 {offsets = [8, 0], sizes = [1, 256], strides = [1, 1]} : vector<9x256xf32> to vector<1x256xf32>
    %113 = arith.mulf %111, %112 : vector<1x256xf32>
    %cst_40 = arith.constant 0.000000e+00 : f32
    %114 = vector.broadcast %cst_40 : f32 to vector<7x256xf32>
    %115 = tpu.concatenate %92, %95, %98, %101, %89, %104, %107, %110, %113, %114 in 0 : vector<1x256xf32>, vector<1x256xf32>, vector<1x256xf32>, vector<1x256xf32>, vector<1x256xf32>, vector<1x256xf32>, vector<1x256xf32>, vector<1x256xf32>, vector<1x256xf32>, vector<7x256xf32> -> vector<16x256xf32>
    %116 = arith.truncf %115 : vector<16x256xf32> to vector<16x256xbf16>
    %c288_41 = arith.constant 288 : index
    %c0_42 = arith.constant 0 : index
    %117 = vector.load %arg12[%c288_41, %c0_42] : memref<304x256xbf16, #tpu.memory_space<vmem>>, vector<16x256xbf16>
    tpu.vector_store %arg12[%c288_41, %c0_42], %116 {strides = array<i32>} : memref<304x256xbf16, #tpu.memory_space<vmem>>, vector<16x256xbf16>,
    %c0_43 = arith.constant 0 : index
    %c0_44 = arith.constant 0 : index
    %118 = vector.load %arg5[%c0_43, %c0_44] : memref<136x304xbf16, #tpu.memory_space<vmem>>, vector<136x304xbf16>
    %c0_45 = arith.constant 0 : index
    %c0_46 = arith.constant 0 : index
    %119 = vector.load %arg12[%c0_45, %c0_46] : memref<304x256xbf16, #tpu.memory_space<vmem>>, vector<304x256xbf16>
    %cst_47 = arith.constant dense<0.000000e+00> : vector<136x256xf32>
    %120 = tpu.matmul %118, %119, %cst_47 {dimension_numbers = #tpu.dot_dimension_numbers<[1], [0], [0], [1], [0, 0, 1, 1], [], []>} : vector<136x304xbf16>, vector<304x256xbf16>, vector<136x256xf32> -> vector<136x256xf32>
    %121 = vector.extract_strided_slice %120 {offsets = [128, 0], sizes = [8, 256], strides = [1, 1]} : vector<136x256xf32> to vector<8x256xf32>
    %c0_48 = arith.constant 0 : index
    %c0_49 = arith.constant 0 : index
    %122 = vector.load %arg7[%c0_48, %c0_49] : memref<8x1xf32, #tpu.memory_space<vmem>>, vector<8x1xf32>
    %123 = vector.broadcast %122 : vector<8x1xf32> to vector<8x256xf32>
    %124 = arith.addf %121, %123 : vector<8x256xf32>
    %c0_50 = arith.constant 0 : index
    %c0_51 = arith.constant 0 : index
    %c0_52 = arith.constant 0 : index
    %c0_53 = arith.constant 0 : index
    %125 = vector.load %arg9[%c0_50, %c0_51, %c0_52, %c0_53] : memref<1x4x8x256xf32, #tpu.memory_space<vmem>>, vector<1x1x8x256xf32>
    %126 = vector.shape_cast %125 : vector<1x1x8x256xf32> to vector<8x256xf32>
    %127 = vector.shape_cast %124 : vector<8x256xf32> to vector<1x1x8x256xf32>
    tpu.vector_store %arg9[%c0_50, %c0_51, %c0_52, %c0_53], %127 {strides = array<i32>} : memref<1x4x8x256xf32, #tpu.memory_space<vmem>>, vector<1x1x8x256xf32>,
    %128 = vector.extract_strided_slice %120 {offsets = [0, 0], sizes = [32, 256], strides = [1, 1]} : vector<136x256xf32> to vector<32x256xf32>
    %c0_54 = arith.constant 0 : index
    %c0_55 = arith.constant 0 : index
    %129 = vector.load %arg6[%c0_54, %c0_55] : memref<128x1xf32, #tpu.memory_space<vmem>>, vector<32x1xf32>
    %130 = vector.broadcast %129 : vector<32x1xf32> to vector<32x256xf32>
    %131 = arith.addf %128, %130 : vector<32x256xf32>
    %132 = math.tanh %131 : vector<32x256xf32>
    %133 = vector.extract_strided_slice %120 {offsets = [32, 0], sizes = [32, 256], strides = [1, 1]} : vector<136x256xf32> to vector<32x256xf32>
    %c32_56 = arith.constant 32 : index
    %c0_57 = arith.constant 0 : index
    %134 = vector.load %arg6[%c32_56, %c0_57] : memref<128x1xf32, #tpu.memory_space<vmem>>, vector<32x1xf32>
    %135 = vector.broadcast %134 : vector<32x1xf32> to vector<32x256xf32>
    %136 = arith.addf %133, %135 : vector<32x256xf32>
    %137 = arith.negf %136 : vector<32x256xf32>
    %138 = math.exp %137 : vector<32x256xf32>
    %cst_58 = arith.constant 1.000000e+00 : f32
    %139 = vector.broadcast %cst_58 : f32 to vector<32x256xf32>
    %140 = arith.addf %139, %138 : vector<32x256xf32>
    %141 = arith.divf %139, %140 : vector<32x256xf32>
    %142 = vector.extract_strided_slice %120 {offsets = [64, 0], sizes = [32, 256], strides = [1, 1]} : vector<136x256xf32> to vector<32x256xf32>
    %c64_59 = arith.constant 64 : index
    %c0_60 = arith.constant 0 : index
    %143 = vector.load %arg6[%c64_59, %c0_60] : memref<128x1xf32, #tpu.memory_space<vmem>>, vector<32x1xf32>
    %144 = vector.broadcast %143 : vector<32x1xf32> to vector<32x256xf32>
    %145 = arith.addf %142, %144 : vector<32x256xf32>
    %146 = arith.negf %145 : vector<32x256xf32>
    %147 = math.exp %146 : vector<32x256xf32>
    %cst_61 = arith.constant 1.000000e+00 : f32
    %148 = vector.broadcast %cst_61 : f32 to vector<32x256xf32>
    %149 = arith.addf %148, %147 : vector<32x256xf32>
    %150 = arith.divf %148, %149 : vector<32x256xf32>
    %151 = vector.extract_strided_slice %120 {offsets = [96, 0], sizes = [32, 256], strides = [1, 1]} : vector<136x256xf32> to vector<32x256xf32>
    %c96_62 = arith.constant 96 : index
    %c0_63 = arith.constant 0 : index
    %152 = vector.load %arg6[%c96_62, %c0_63] : memref<128x1xf32, #tpu.memory_space<vmem>>, vector<32x1xf32>
    %153 = vector.broadcast %152 : vector<32x1xf32> to vector<32x256xf32>
    %154 = arith.addf %151, %153 : vector<32x256xf32>
    %155 = arith.negf %154 : vector<32x256xf32>
    %156 = math.exp %155 : vector<32x256xf32>
    %cst_64 = arith.constant 1.000000e+00 : f32
    %157 = vector.broadcast %cst_64 : f32 to vector<32x256xf32>
    %158 = arith.addf %157, %156 : vector<32x256xf32>
    %159 = arith.divf %157, %158 : vector<32x256xf32>
    %c0_65 = arith.constant 0 : index
    %c0_66 = arith.constant 0 : index
    %160 = vector.load %arg10[%c0_65, %c0_66] : memref<32x256xf32, #tpu.memory_space<vmem>>, vector<32x256xf32>
    %161 = arith.mulf %159, %160 : vector<32x256xf32>
    %162 = arith.mulf %150, %132 : vector<32x256xf32>
    %163 = arith.addf %161, %162 : vector<32x256xf32>
    %c0_67 = arith.constant 0 : index
    %c0_68 = arith.constant 0 : index
    %164 = vector.load %arg10[%c0_67, %c0_68] : memref<32x256xf32, #tpu.memory_space<vmem>>, vector<32x256xf32>
    tpu.vector_store %arg10[%c0_67, %c0_68], %163 {strides = array<i32>} : memref<32x256xf32, #tpu.memory_space<vmem>>, vector<32x256xf32>,
    %165 = math.tanh %163 : vector<32x256xf32>
    %166 = arith.mulf %141, %165 : vector<32x256xf32>
    %c17_i32_69 = arith.constant 17 : i32
    %167 = tpu.dynamic_rotate %166 by %c17_i32_69 dim 1 : vector<32x256xf32>, i32 -> vector<32x256xf32>
    %168 = vector.extract_strided_slice %0 {offsets = [0, 0], sizes = [1, 256], strides = [1, 1]} : vector<9x256xf32> to vector<1x256xf32>
    %169 = vector.broadcast %168 : vector<1x256xf32> to vector<32x256xf32>
    %170 = arith.mulf %167, %169 : vector<32x256xf32>
    %171 = arith.truncf %170 : vector<32x256xf32> to vector<32x256xbf16>
    %c0_70 = arith.constant 0 : index
    %c0_71 = arith.constant 0 : index
    %172 = vector.load %arg12[%c0_70, %c0_71] : memref<304x256xbf16, #tpu.memory_space<vmem>>, vector<32x256xbf16>
    tpu.vector_store %arg12[%c0_70, %c0_71], %171 {strides = array<i32>} : memref<304x256xbf16, #tpu.memory_space<vmem>>, vector<32x256xbf16>,
    %c16_i32_72 = arith.constant 16 : i32
    %173 = tpu.dynamic_rotate %166 by %c16_i32_72 dim 1 : vector<32x256xf32>, i32 -> vector<32x256xf32>
    %174 = vector.extract_strided_slice %0 {offsets = [1, 0], sizes = [1, 256], strides = [1, 1]} : vector<9x256xf32> to vector<1x256xf32>
    %175 = vector.broadcast %174 : vector<1x256xf32> to vector<32x256xf32>
    %176 = arith.mulf %173, %175 : vector<32x256xf32>
    %177 = arith.truncf %176 : vector<32x256xf32> to vector<32x256xbf16>
    %c32_73 = arith.constant 32 : index
    %c0_74 = arith.constant 0 : index
    %178 = vector.load %arg12[%c32_73, %c0_74] : memref<304x256xbf16, #tpu.memory_space<vmem>>, vector<32x256xbf16>
    tpu.vector_store %arg12[%c32_73, %c0_74], %177 {strides = array<i32>} : memref<304x256xbf16, #tpu.memory_space<vmem>>, vector<32x256xbf16>,
    %c15_i32_75 = arith.constant 15 : i32
    %179 = tpu.dynamic_rotate %166 by %c15_i32_75 dim 1 : vector<32x256xf32>, i32 -> vector<32x256xf32>
    %180 = vector.extract_strided_slice %0 {offsets = [2, 0], sizes = [1, 256], strides = [1, 1]} : vector<9x256xf32> to vector<1x256xf32>
    %181 = vector.broadcast %180 : vector<1x256xf32> to vector<32x256xf32>
    %182 = arith.mulf %179, %181 : vector<32x256xf32>
    %183 = arith.truncf %182 : vector<32x256xf32> to vector<32x256xbf16>
    %c64_76 = arith.constant 64 : index
    %c0_77 = arith.constant 0 : index
    %184 = vector.load %arg12[%c64_76, %c0_77] : memref<304x256xbf16, #tpu.memory_space<vmem>>, vector<32x256xbf16>
    tpu.vector_store %arg12[%c64_76, %c0_77], %183 {strides = array<i32>} : memref<304x256xbf16, #tpu.memory_space<vmem>>, vector<32x256xbf16>,
    %c1_i32_78 = arith.constant 1 : i32
    %185 = tpu.dynamic_rotate %166 by %c1_i32_78 dim 1 : vector<32x256xf32>, i32 -> vector<32x256xf32>
    %186 = vector.extract_strided_slice %0 {offsets = [3, 0], sizes = [1, 256], strides = [1, 1]} : vector<9x256xf32> to vector<1x256xf32>
    %187 = vector.broadcast %186 : vector<1x256xf32> to vector<32x256xf32>
    %188 = arith.mulf %185, %187 : vector<32x256xf32>
    %189 = arith.truncf %188 : vector<32x256xf32> to vector<32x256xbf16>
    %c96_79 = arith.constant 96 : index
    %c0_80 = arith.constant 0 : index
    %190 = vector.load %arg12[%c96_79, %c0_80] : memref<304x256xbf16, #tpu.memory_space<vmem>>, vector<32x256xbf16>
    tpu.vector_store %arg12[%c96_79, %c0_80], %189 {strides = array<i32>} : memref<304x256xbf16, #tpu.memory_space<vmem>>, vector<32x256xbf16>,
    %191 = arith.truncf %166 : vector<32x256xf32> to vector<32x256xbf16>
    %c128_81 = arith.constant 128 : index
    %c0_82 = arith.constant 0 : index
    %192 = vector.load %arg12[%c128_81, %c0_82] : memref<304x256xbf16, #tpu.memory_space<vmem>>, vector<32x256xbf16>
    tpu.vector_store %arg12[%c128_81, %c0_82], %191 {strides = array<i32>} : memref<304x256xbf16, #tpu.memory_space<vmem>>, vector<32x256xbf16>,
    %c255_i32_83 = arith.constant 255 : i32
    %193 = tpu.dynamic_rotate %166 by %c255_i32_83 dim 1 : vector<32x256xf32>, i32 -> vector<32x256xf32>
    %194 = vector.extract_strided_slice %0 {offsets = [5, 0], sizes = [1, 256], strides = [1, 1]} : vector<9x256xf32> to vector<1x256xf32>
    %195 = vector.broadcast %194 : vector<1x256xf32> to vector<32x256xf32>
    %196 = arith.mulf %193, %195 : vector<32x256xf32>
    %197 = arith.truncf %196 : vector<32x256xf32> to vector<32x256xbf16>
    %c160_84 = arith.constant 160 : index
    %c0_85 = arith.constant 0 : index
    %198 = vector.load %arg12[%c160_84, %c0_85] : memref<304x256xbf16, #tpu.memory_space<vmem>>, vector<32x256xbf16>
    tpu.vector_store %arg12[%c160_84, %c0_85], %197 {strides = array<i32>} : memref<304x256xbf16, #tpu.memory_space<vmem>>, vector<32x256xbf16>,
    %c241_i32_86 = arith.constant 241 : i32
    %199 = tpu.dynamic_rotate %166 by %c241_i32_86 dim 1 : vector<32x256xf32>, i32 -> vector<32x256xf32>
    %200 = vector.extract_strided_slice %0 {offsets = [6, 0], sizes = [1, 256], strides = [1, 1]} : vector<9x256xf32> to vector<1x256xf32>
    %201 = vector.broadcast %200 : vector<1x256xf32> to vector<32x256xf32>
    %202 = arith.mulf %199, %201 : vector<32x256xf32>
    %203 = arith.truncf %202 : vector<32x256xf32> to vector<32x256xbf16>
    %c192_87 = arith.constant 192 : index
    %c0_88 = arith.constant 0 : index
    %204 = vector.load %arg12[%c192_87, %c0_88] : memref<304x256xbf16, #tpu.memory_space<vmem>>, vector<32x256xbf16>
    tpu.vector_store %arg12[%c192_87, %c0_88], %203 {strides = array<i32>} : memref<304x256xbf16, #tpu.memory_space<vmem>>, vector<32x256xbf16>,
    %c240_i32_89 = arith.constant 240 : i32
    %205 = tpu.dynamic_rotate %166 by %c240_i32_89 dim 1 : vector<32x256xf32>, i32 -> vector<32x256xf32>
    %206 = vector.extract_strided_slice %0 {offsets = [7, 0], sizes = [1, 256], strides = [1, 1]} : vector<9x256xf32> to vector<1x256xf32>
    %207 = vector.broadcast %206 : vector<1x256xf32> to vector<32x256xf32>
    %208 = arith.mulf %205, %207 : vector<32x256xf32>
    %209 = arith.truncf %208 : vector<32x256xf32> to vector<32x256xbf16>
    %c224_90 = arith.constant 224 : index
    %c0_91 = arith.constant 0 : index
    %210 = vector.load %arg12[%c224_90, %c0_91] : memref<304x256xbf16, #tpu.memory_space<vmem>>, vector<32x256xbf16>
    tpu.vector_store %arg12[%c224_90, %c0_91], %209 {strides = array<i32>} : memref<304x256xbf16, #tpu.memory_space<vmem>>, vector<32x256xbf16>,
    %c239_i32_92 = arith.constant 239 : i32
    %211 = tpu.dynamic_rotate %166 by %c239_i32_92 dim 1 : vector<32x256xf32>, i32 -> vector<32x256xf32>
    %212 = vector.extract_strided_slice %0 {offsets = [8, 0], sizes = [1, 256], strides = [1, 1]} : vector<9x256xf32> to vector<1x256xf32>
    %213 = vector.broadcast %212 : vector<1x256xf32> to vector<32x256xf32>
    %214 = arith.mulf %211, %213 : vector<32x256xf32>
    %215 = arith.truncf %214 : vector<32x256xf32> to vector<32x256xbf16>
    %c256_93 = arith.constant 256 : index
    %c0_94 = arith.constant 0 : index
    %216 = vector.load %arg12[%c256_93, %c0_94] : memref<304x256xbf16, #tpu.memory_space<vmem>>, vector<32x256xbf16>
    tpu.vector_store %arg12[%c256_93, %c0_94], %215 {strides = array<i32>} : memref<304x256xbf16, #tpu.memory_space<vmem>>, vector<32x256xbf16>,
    %c0_95 = arith.constant 0 : index
    %c2 = arith.constant 2 : index
    %c0_96 = arith.constant 0 : index
    %c0_97 = arith.constant 0 : index
    %217 = vector.load %arg2[%c0_95, %c2, %c0_96, %c0_97] : memref<1x4x1x256xf32, #tpu.memory_space<vmem>>, vector<1x1x1x256xf32>
    %218 = vector.shape_cast %217 : vector<1x1x1x256xf32> to vector<1x256xf32>
    %c17_i32_98 = arith.constant 17 : i32
    %219 = tpu.dynamic_rotate %218 by %c17_i32_98 dim 1 : vector<1x256xf32>, i32 -> vector<1x256xf32>
    %220 = vector.extract_strided_slice %0 {offsets = [0, 0], sizes = [1, 256], strides = [1, 1]} : vector<9x256xf32> to vector<1x256xf32>
    %221 = arith.mulf %219, %220 : vector<1x256xf32>
    %c16_i32_99 = arith.constant 16 : i32
    %222 = tpu.dynamic_rotate %218 by %c16_i32_99 dim 1 : vector<1x256xf32>, i32 -> vector<1x256xf32>
    %223 = vector.extract_strided_slice %0 {offsets = [1, 0], sizes = [1, 256], strides = [1, 1]} : vector<9x256xf32> to vector<1x256xf32>
    %224 = arith.mulf %222, %223 : vector<1x256xf32>
    %c15_i32_100 = arith.constant 15 : i32
    %225 = tpu.dynamic_rotate %218 by %c15_i32_100 dim 1 : vector<1x256xf32>, i32 -> vector<1x256xf32>
    %226 = vector.extract_strided_slice %0 {offsets = [2, 0], sizes = [1, 256], strides = [1, 1]} : vector<9x256xf32> to vector<1x256xf32>
    %227 = arith.mulf %225, %226 : vector<1x256xf32>
    %c1_i32_101 = arith.constant 1 : i32
    %228 = tpu.dynamic_rotate %218 by %c1_i32_101 dim 1 : vector<1x256xf32>, i32 -> vector<1x256xf32>
    %229 = vector.extract_strided_slice %0 {offsets = [3, 0], sizes = [1, 256], strides = [1, 1]} : vector<9x256xf32> to vector<1x256xf32>
    %230 = arith.mulf %228, %229 : vector<1x256xf32>
    %c255_i32_102 = arith.constant 255 : i32
    %231 = tpu.dynamic_rotate %218 by %c255_i32_102 dim 1 : vector<1x256xf32>, i32 -> vector<1x256xf32>
    %232 = vector.extract_strided_slice %0 {offsets = [5, 0], sizes = [1, 256], strides = [1, 1]} : vector<9x256xf32> to vector<1x256xf32>
    %233 = arith.mulf %231, %232 : vector<1x256xf32>
    %c241_i32_103 = arith.constant 241 : i32
    %234 = tpu.dynamic_rotate %218 by %c241_i32_103 dim 1 : vector<1x256xf32>, i32 -> vector<1x256xf32>
    %235 = vector.extract_strided_slice %0 {offsets = [6, 0], sizes = [1, 256], strides = [1, 1]} : vector<9x256xf32> to vector<1x256xf32>
    %236 = arith.mulf %234, %235 : vector<1x256xf32>
    %c240_i32_104 = arith.constant 240 : i32
    %237 = tpu.dynamic_rotate %218 by %c240_i32_104 dim 1 : vector<1x256xf32>, i32 -> vector<1x256xf32>
    %238 = vector.extract_strided_slice %0 {offsets = [7, 0], sizes = [1, 256], strides = [1, 1]} : vector<9x256xf32> to vector<1x256xf32>
    %239 = arith.mulf %237, %238 : vector<1x256xf32>
    %c239_i32_105 = arith.constant 239 : i32
    %240 = tpu.dynamic_rotate %218 by %c239_i32_105 dim 1 : vector<1x256xf32>, i32 -> vector<1x256xf32>
    %241 = vector.extract_strided_slice %0 {offsets = [8, 0], sizes = [1, 256], strides = [1, 1]} : vector<9x256xf32> to vector<1x256xf32>
    %242 = arith.mulf %240, %241 : vector<1x256xf32>
    %cst_106 = arith.constant 0.000000e+00 : f32
    %243 = vector.broadcast %cst_106 : f32 to vector<7x256xf32>
    %244 = tpu.concatenate %221, %224, %227, %230, %218, %233, %236, %239, %242, %243 in 0 : vector<1x256xf32>, vector<1x256xf32>, vector<1x256xf32>, vector<1x256xf32>, vector<1x256xf32>, vector<1x256xf32>, vector<1x256xf32>, vector<1x256xf32>, vector<1x256xf32>, vector<7x256xf32> -> vector<16x256xf32>
    %245 = arith.truncf %244 : vector<16x256xf32> to vector<16x256xbf16>
    %c288_107 = arith.constant 288 : index
    %c0_108 = arith.constant 0 : index
    %246 = vector.load %arg12[%c288_107, %c0_108] : memref<304x256xbf16, #tpu.memory_space<vmem>>, vector<16x256xbf16>
    tpu.vector_store %arg12[%c288_107, %c0_108], %245 {strides = array<i32>} : memref<304x256xbf16, #tpu.memory_space<vmem>>, vector<16x256xbf16>,
    %c0_109 = arith.constant 0 : index
    %c0_110 = arith.constant 0 : index
    %247 = vector.load %arg5[%c0_109, %c0_110] : memref<136x304xbf16, #tpu.memory_space<vmem>>, vector<136x304xbf16>
    %c0_111 = arith.constant 0 : index
    %c0_112 = arith.constant 0 : index
    %248 = vector.load %arg12[%c0_111, %c0_112] : memref<304x256xbf16, #tpu.memory_space<vmem>>, vector<304x256xbf16>
    %cst_113 = arith.constant dense<0.000000e+00> : vector<136x256xf32>
    %249 = tpu.matmul %247, %248, %cst_113 {dimension_numbers = #tpu.dot_dimension_numbers<[1], [0], [0], [1], [0, 0, 1, 1], [], []>} : vector<136x304xbf16>, vector<304x256xbf16>, vector<136x256xf32> -> vector<136x256xf32>
    %250 = vector.extract_strided_slice %249 {offsets = [128, 0], sizes = [8, 256], strides = [1, 1]} : vector<136x256xf32> to vector<8x256xf32>
    %c0_114 = arith.constant 0 : index
    %c0_115 = arith.constant 0 : index
    %251 = vector.load %arg7[%c0_114, %c0_115] : memref<8x1xf32, #tpu.memory_space<vmem>>, vector<8x1xf32>
    %252 = vector.broadcast %251 : vector<8x1xf32> to vector<8x256xf32>
    %253 = arith.addf %250, %252 : vector<8x256xf32>
    %c0_116 = arith.constant 0 : index
    %c1_117 = arith.constant 1 : index
    %c0_118 = arith.constant 0 : index
    %c0_119 = arith.constant 0 : index
    %254 = vector.load %arg9[%c0_116, %c1_117, %c0_118, %c0_119] : memref<1x4x8x256xf32, #tpu.memory_space<vmem>>, vector<1x1x8x256xf32>
    %255 = vector.shape_cast %254 : vector<1x1x8x256xf32> to vector<8x256xf32>
    %256 = vector.shape_cast %253 : vector<8x256xf32> to vector<1x1x8x256xf32>
    tpu.vector_store %arg9[%c0_116, %c1_117, %c0_118, %c0_119], %256 {strides = array<i32>} : memref<1x4x8x256xf32, #tpu.memory_space<vmem>>, vector<1x1x8x256xf32>,
    %257 = vector.extract_strided_slice %249 {offsets = [0, 0], sizes = [32, 256], strides = [1, 1]} : vector<136x256xf32> to vector<32x256xf32>
    %c0_120 = arith.constant 0 : index
    %c0_121 = arith.constant 0 : index
    %258 = vector.load %arg6[%c0_120, %c0_121] : memref<128x1xf32, #tpu.memory_space<vmem>>, vector<32x1xf32>
    %259 = vector.broadcast %258 : vector<32x1xf32> to vector<32x256xf32>
    %260 = arith.addf %257, %259 : vector<32x256xf32>
    %261 = math.tanh %260 : vector<32x256xf32>
    %262 = vector.extract_strided_slice %249 {offsets = [32, 0], sizes = [32, 256], strides = [1, 1]} : vector<136x256xf32> to vector<32x256xf32>
    %c32_122 = arith.constant 32 : index
    %c0_123 = arith.constant 0 : index
    %263 = vector.load %arg6[%c32_122, %c0_123] : memref<128x1xf32, #tpu.memory_space<vmem>>, vector<32x1xf32>
    %264 = vector.broadcast %263 : vector<32x1xf32> to vector<32x256xf32>
    %265 = arith.addf %262, %264 : vector<32x256xf32>
    %266 = arith.negf %265 : vector<32x256xf32>
    %267 = math.exp %266 : vector<32x256xf32>
    %cst_124 = arith.constant 1.000000e+00 : f32
    %268 = vector.broadcast %cst_124 : f32 to vector<32x256xf32>
    %269 = arith.addf %268, %267 : vector<32x256xf32>
    %270 = arith.divf %268, %269 : vector<32x256xf32>
    %271 = vector.extract_strided_slice %249 {offsets = [64, 0], sizes = [32, 256], strides = [1, 1]} : vector<136x256xf32> to vector<32x256xf32>
    %c64_125 = arith.constant 64 : index
    %c0_126 = arith.constant 0 : index
    %272 = vector.load %arg6[%c64_125, %c0_126] : memref<128x1xf32, #tpu.memory_space<vmem>>, vector<32x1xf32>
    %273 = vector.broadcast %272 : vector<32x1xf32> to vector<32x256xf32>
    %274 = arith.addf %271, %273 : vector<32x256xf32>
    %275 = arith.negf %274 : vector<32x256xf32>
    %276 = math.exp %275 : vector<32x256xf32>
    %cst_127 = arith.constant 1.000000e+00 : f32
    %277 = vector.broadcast %cst_127 : f32 to vector<32x256xf32>
    %278 = arith.addf %277, %276 : vector<32x256xf32>
    %279 = arith.divf %277, %278 : vector<32x256xf32>
    %280 = vector.extract_strided_slice %249 {offsets = [96, 0], sizes = [32, 256], strides = [1, 1]} : vector<136x256xf32> to vector<32x256xf32>
    %c96_128 = arith.constant 96 : index
    %c0_129 = arith.constant 0 : index
    %281 = vector.load %arg6[%c96_128, %c0_129] : memref<128x1xf32, #tpu.memory_space<vmem>>, vector<32x1xf32>
    %282 = vector.broadcast %281 : vector<32x1xf32> to vector<32x256xf32>
    %283 = arith.addf %280, %282 : vector<32x256xf32>
    %284 = arith.negf %283 : vector<32x256xf32>
    %285 = math.exp %284 : vector<32x256xf32>
    %cst_130 = arith.constant 1.000000e+00 : f32
    %286 = vector.broadcast %cst_130 : f32 to vector<32x256xf32>
    %287 = arith.addf %286, %285 : vector<32x256xf32>
    %288 = arith.divf %286, %287 : vector<32x256xf32>
    %c0_131 = arith.constant 0 : index
    %c0_132 = arith.constant 0 : index
    %289 = vector.load %arg10[%c0_131, %c0_132] : memref<32x256xf32, #tpu.memory_space<vmem>>, vector<32x256xf32>
    %290 = arith.mulf %288, %289 : vector<32x256xf32>
    %291 = arith.mulf %279, %261 : vector<32x256xf32>
    %292 = arith.addf %290, %291 : vector<32x256xf32>
    %c0_133 = arith.constant 0 : index
    %c0_134 = arith.constant 0 : index
    %293 = vector.load %arg10[%c0_133, %c0_134] : memref<32x256xf32, #tpu.memory_space<vmem>>, vector<32x256xf32>
    tpu.vector_store %arg10[%c0_133, %c0_134], %292 {strides = array<i32>} : memref<32x256xf32, #tpu.memory_space<vmem>>, vector<32x256xf32>,
    %294 = math.tanh %292 : vector<32x256xf32>
    %295 = arith.mulf %270, %294 : vector<32x256xf32>
    %c17_i32_135 = arith.constant 17 : i32
    %296 = tpu.dynamic_rotate %295 by %c17_i32_135 dim 1 : vector<32x256xf32>, i32 -> vector<32x256xf32>
    %297 = vector.extract_strided_slice %0 {offsets = [0, 0], sizes = [1, 256], strides = [1, 1]} : vector<9x256xf32> to vector<1x256xf32>
    %298 = vector.broadcast %297 : vector<1x256xf32> to vector<32x256xf32>
    %299 = arith.mulf %296, %298 : vector<32x256xf32>
    %300 = arith.truncf %299 : vector<32x256xf32> to vector<32x256xbf16>
    %c0_136 = arith.constant 0 : index
    %c0_137 = arith.constant 0 : index
    %301 = vector.load %arg12[%c0_136, %c0_137] : memref<304x256xbf16, #tpu.memory_space<vmem>>, vector<32x256xbf16>
    tpu.vector_store %arg12[%c0_136, %c0_137], %300 {strides = array<i32>} : memref<304x256xbf16, #tpu.memory_space<vmem>>, vector<32x256xbf16>,
    %c16_i32_138 = arith.constant 16 : i32
    %302 = tpu.dynamic_rotate %295 by %c16_i32_138 dim 1 : vector<32x256xf32>, i32 -> vector<32x256xf32>
    %303 = vector.extract_strided_slice %0 {offsets = [1, 0], sizes = [1, 256], strides = [1, 1]} : vector<9x256xf32> to vector<1x256xf32>
    %304 = vector.broadcast %303 : vector<1x256xf32> to vector<32x256xf32>
    %305 = arith.mulf %302, %304 : vector<32x256xf32>
    %306 = arith.truncf %305 : vector<32x256xf32> to vector<32x256xbf16>
    %c32_139 = arith.constant 32 : index
    %c0_140 = arith.constant 0 : index
    %307 = vector.load %arg12[%c32_139, %c0_140] : memref<304x256xbf16, #tpu.memory_space<vmem>>, vector<32x256xbf16>
    tpu.vector_store %arg12[%c32_139, %c0_140], %306 {strides = array<i32>} : memref<304x256xbf16, #tpu.memory_space<vmem>>, vector<32x256xbf16>,
    %c15_i32_141 = arith.constant 15 : i32
    %308 = tpu.dynamic_rotate %295 by %c15_i32_141 dim 1 : vector<32x256xf32>, i32 -> vector<32x256xf32>
    %309 = vector.extract_strided_slice %0 {offsets = [2, 0], sizes = [1, 256], strides = [1, 1]} : vector<9x256xf32> to vector<1x256xf32>
    %310 = vector.broadcast %309 : vector<1x256xf32> to vector<32x256xf32>
    %311 = arith.mulf %308, %310 : vector<32x256xf32>
    %312 = arith.truncf %311 : vector<32x256xf32> to vector<32x256xbf16>
    %c64_142 = arith.constant 64 : index
    %c0_143 = arith.constant 0 : index
    %313 = vector.load %arg12[%c64_142, %c0_143] : memref<304x256xbf16, #tpu.memory_space<vmem>>, vector<32x256xbf16>
    tpu.vector_store %arg12[%c64_142, %c0_143], %312 {strides = array<i32>} : memref<304x256xbf16, #tpu.memory_space<vmem>>, vector<32x256xbf16>,
    %c1_i32_144 = arith.constant 1 : i32
    %314 = tpu.dynamic_rotate %295 by %c1_i32_144 dim 1 : vector<32x256xf32>, i32 -> vector<32x256xf32>
    %315 = vector.extract_strided_slice %0 {offsets = [3, 0], sizes = [1, 256], strides = [1, 1]} : vector<9x256xf32> to vector<1x256xf32>
    %316 = vector.broadcast %315 : vector<1x256xf32> to vector<32x256xf32>
    %317 = arith.mulf %314, %316 : vector<32x256xf32>
    %318 = arith.truncf %317 : vector<32x256xf32> to vector<32x256xbf16>
    %c96_145 = arith.constant 96 : index
    %c0_146 = arith.constant 0 : index
    %319 = vector.load %arg12[%c96_145, %c0_146] : memref<304x256xbf16, #tpu.memory_space<vmem>>, vector<32x256xbf16>
    tpu.vector_store %arg12[%c96_145, %c0_146], %318 {strides = array<i32>} : memref<304x256xbf16, #tpu.memory_space<vmem>>, vector<32x256xbf16>,
    %320 = arith.truncf %295 : vector<32x256xf32> to vector<32x256xbf16>
    %c128_147 = arith.constant 128 : index
    %c0_148 = arith.constant 0 : index
    %321 = vector.load %arg12[%c128_147, %c0_148] : memref<304x256xbf16, #tpu.memory_space<vmem>>, vector<32x256xbf16>
    tpu.vector_store %arg12[%c128_147, %c0_148], %320 {strides = array<i32>} : memref<304x256xbf16, #tpu.memory_space<vmem>>, vector<32x256xbf16>,
    %c255_i32_149 = arith.constant 255 : i32
    %322 = tpu.dynamic_rotate %295 by %c255_i32_149 dim 1 : vector<32x256xf32>, i32 -> vector<32x256xf32>
    %323 = vector.extract_strided_slice %0 {offsets = [5, 0], sizes = [1, 256], strides = [1, 1]} : vector<9x256xf32> to vector<1x256xf32>
    %324 = vector.broadcast %323 : vector<1x256xf32> to vector<32x256xf32>
    %325 = arith.mulf %322, %324 : vector<32x256xf32>
    %326 = arith.truncf %325 : vector<32x256xf32> to vector<32x256xbf16>
    %c160_150 = arith.constant 160 : index
    %c0_151 = arith.constant 0 : index
    %327 = vector.load %arg12[%c160_150, %c0_151] : memref<304x256xbf16, #tpu.memory_space<vmem>>, vector<32x256xbf16>
    tpu.vector_store %arg12[%c160_150, %c0_151], %326 {strides = array<i32>} : memref<304x256xbf16, #tpu.memory_space<vmem>>, vector<32x256xbf16>,
    %c241_i32_152 = arith.constant 241 : i32
    %328 = tpu.dynamic_rotate %295 by %c241_i32_152 dim 1 : vector<32x256xf32>, i32 -> vector<32x256xf32>
    %329 = vector.extract_strided_slice %0 {offsets = [6, 0], sizes = [1, 256], strides = [1, 1]} : vector<9x256xf32> to vector<1x256xf32>
    %330 = vector.broadcast %329 : vector<1x256xf32> to vector<32x256xf32>
    %331 = arith.mulf %328, %330 : vector<32x256xf32>
    %332 = arith.truncf %331 : vector<32x256xf32> to vector<32x256xbf16>
    %c192_153 = arith.constant 192 : index
    %c0_154 = arith.constant 0 : index
    %333 = vector.load %arg12[%c192_153, %c0_154] : memref<304x256xbf16, #tpu.memory_space<vmem>>, vector<32x256xbf16>
    tpu.vector_store %arg12[%c192_153, %c0_154], %332 {strides = array<i32>} : memref<304x256xbf16, #tpu.memory_space<vmem>>, vector<32x256xbf16>,
    %c240_i32_155 = arith.constant 240 : i32
    %334 = tpu.dynamic_rotate %295 by %c240_i32_155 dim 1 : vector<32x256xf32>, i32 -> vector<32x256xf32>
    %335 = vector.extract_strided_slice %0 {offsets = [7, 0], sizes = [1, 256], strides = [1, 1]} : vector<9x256xf32> to vector<1x256xf32>
    %336 = vector.broadcast %335 : vector<1x256xf32> to vector<32x256xf32>
    %337 = arith.mulf %334, %336 : vector<32x256xf32>
    %338 = arith.truncf %337 : vector<32x256xf32> to vector<32x256xbf16>
    %c224_156 = arith.constant 224 : index
    %c0_157 = arith.constant 0 : index
    %339 = vector.load %arg12[%c224_156, %c0_157] : memref<304x256xbf16, #tpu.memory_space<vmem>>, vector<32x256xbf16>
    tpu.vector_store %arg12[%c224_156, %c0_157], %338 {strides = array<i32>} : memref<304x256xbf16, #tpu.memory_space<vmem>>, vector<32x256xbf16>,
    %c239_i32_158 = arith.constant 239 : i32
    %340 = tpu.dynamic_rotate %295 by %c239_i32_158 dim 1 : vector<32x256xf32>, i32 -> vector<32x256xf32>
    %341 = vector.extract_strided_slice %0 {offsets = [8, 0], sizes = [1, 256], strides = [1, 1]} : vector<9x256xf32> to vector<1x256xf32>
    %342 = vector.broadcast %341 : vector<1x256xf32> to vector<32x256xf32>
    %343 = arith.mulf %340, %342 : vector<32x256xf32>
    %344 = arith.truncf %343 : vector<32x256xf32> to vector<32x256xbf16>
    %c256_159 = arith.constant 256 : index
    %c0_160 = arith.constant 0 : index
    %345 = vector.load %arg12[%c256_159, %c0_160] : memref<304x256xbf16, #tpu.memory_space<vmem>>, vector<32x256xbf16>
    tpu.vector_store %arg12[%c256_159, %c0_160], %344 {strides = array<i32>} : memref<304x256xbf16, #tpu.memory_space<vmem>>, vector<32x256xbf16>,
    %c0_161 = arith.constant 0 : index
    %c3 = arith.constant 3 : index
    %c0_162 = arith.constant 0 : index
    %c0_163 = arith.constant 0 : index
    %346 = vector.load %arg2[%c0_161, %c3, %c0_162, %c0_163] : memref<1x4x1x256xf32, #tpu.memory_space<vmem>>, vector<1x1x1x256xf32>
    %347 = vector.shape_cast %346 : vector<1x1x1x256xf32> to vector<1x256xf32>
    %c17_i32_164 = arith.constant 17 : i32
    %348 = tpu.dynamic_rotate %347 by %c17_i32_164 dim 1 : vector<1x256xf32>, i32 -> vector<1x256xf32>
    %349 = vector.extract_strided_slice %0 {offsets = [0, 0], sizes = [1, 256], strides = [1, 1]} : vector<9x256xf32> to vector<1x256xf32>
    %350 = arith.mulf %348, %349 : vector<1x256xf32>
    %c16_i32_165 = arith.constant 16 : i32
    %351 = tpu.dynamic_rotate %347 by %c16_i32_165 dim 1 : vector<1x256xf32>, i32 -> vector<1x256xf32>
    %352 = vector.extract_strided_slice %0 {offsets = [1, 0], sizes = [1, 256], strides = [1, 1]} : vector<9x256xf32> to vector<1x256xf32>
    %353 = arith.mulf %351, %352 : vector<1x256xf32>
    %c15_i32_166 = arith.constant 15 : i32
    %354 = tpu.dynamic_rotate %347 by %c15_i32_166 dim 1 : vector<1x256xf32>, i32 -> vector<1x256xf32>
    %355 = vector.extract_strided_slice %0 {offsets = [2, 0], sizes = [1, 256], strides = [1, 1]} : vector<9x256xf32> to vector<1x256xf32>
    %356 = arith.mulf %354, %355 : vector<1x256xf32>
    %c1_i32_167 = arith.constant 1 : i32
    %357 = tpu.dynamic_rotate %347 by %c1_i32_167 dim 1 : vector<1x256xf32>, i32 -> vector<1x256xf32>
    %358 = vector.extract_strided_slice %0 {offsets = [3, 0], sizes = [1, 256], strides = [1, 1]} : vector<9x256xf32> to vector<1x256xf32>
    %359 = arith.mulf %357, %358 : vector<1x256xf32>
    %c255_i32_168 = arith.constant 255 : i32
    %360 = tpu.dynamic_rotate %347 by %c255_i32_168 dim 1 : vector<1x256xf32>, i32 -> vector<1x256xf32>
    %361 = vector.extract_strided_slice %0 {offsets = [5, 0], sizes = [1, 256], strides = [1, 1]} : vector<9x256xf32> to vector<1x256xf32>
    %362 = arith.mulf %360, %361 : vector<1x256xf32>
    %c241_i32_169 = arith.constant 241 : i32
    %363 = tpu.dynamic_rotate %347 by %c241_i32_169 dim 1 : vector<1x256xf32>, i32 -> vector<1x256xf32>
    %364 = vector.extract_strided_slice %0 {offsets = [6, 0], sizes = [1, 256], strides = [1, 1]} : vector<9x256xf32> to vector<1x256xf32>
    %365 = arith.mulf %363, %364 : vector<1x256xf32>
    %c240_i32_170 = arith.constant 240 : i32
    %366 = tpu.dynamic_rotate %347 by %c240_i32_170 dim 1 : vector<1x256xf32>, i32 -> vector<1x256xf32>
    %367 = vector.extract_strided_slice %0 {offsets = [7, 0], sizes = [1, 256], strides = [1, 1]} : vector<9x256xf32> to vector<1x256xf32>
    %368 = arith.mulf %366, %367 : vector<1x256xf32>
    %c239_i32_171 = arith.constant 239 : i32
    %369 = tpu.dynamic_rotate %347 by %c239_i32_171 dim 1 : vector<1x256xf32>, i32 -> vector<1x256xf32>
    %370 = vector.extract_strided_slice %0 {offsets = [8, 0], sizes = [1, 256], strides = [1, 1]} : vector<9x256xf32> to vector<1x256xf32>
    %371 = arith.mulf %369, %370 : vector<1x256xf32>
    %cst_172 = arith.constant 0.000000e+00 : f32
    %372 = vector.broadcast %cst_172 : f32 to vector<7x256xf32>
    %373 = tpu.concatenate %350, %353, %356, %359, %347, %362, %365, %368, %371, %372 in 0 : vector<1x256xf32>, vector<1x256xf32>, vector<1x256xf32>, vector<1x256xf32>, vector<1x256xf32>, vector<1x256xf32>, vector<1x256xf32>, vector<1x256xf32>, vector<1x256xf32>, vector<7x256xf32> -> vector<16x256xf32>
    %374 = arith.truncf %373 : vector<16x256xf32> to vector<16x256xbf16>
    %c288_173 = arith.constant 288 : index
    %c0_174 = arith.constant 0 : index
    %375 = vector.load %arg12[%c288_173, %c0_174] : memref<304x256xbf16, #tpu.memory_space<vmem>>, vector<16x256xbf16>
    tpu.vector_store %arg12[%c288_173, %c0_174], %374 {strides = array<i32>} : memref<304x256xbf16, #tpu.memory_space<vmem>>, vector<16x256xbf16>,
    %c0_175 = arith.constant 0 : index
    %c0_176 = arith.constant 0 : index
    %376 = vector.load %arg5[%c0_175, %c0_176] : memref<136x304xbf16, #tpu.memory_space<vmem>>, vector<136x304xbf16>
    %c0_177 = arith.constant 0 : index
    %c0_178 = arith.constant 0 : index
    %377 = vector.load %arg12[%c0_177, %c0_178] : memref<304x256xbf16, #tpu.memory_space<vmem>>, vector<304x256xbf16>
    %cst_179 = arith.constant dense<0.000000e+00> : vector<136x256xf32>
    %378 = tpu.matmul %376, %377, %cst_179 {dimension_numbers = #tpu.dot_dimension_numbers<[1], [0], [0], [1], [0, 0, 1, 1], [], []>} : vector<136x304xbf16>, vector<304x256xbf16>, vector<136x256xf32> -> vector<136x256xf32>
    %379 = vector.extract_strided_slice %378 {offsets = [128, 0], sizes = [8, 256], strides = [1, 1]} : vector<136x256xf32> to vector<8x256xf32>
    %c0_180 = arith.constant 0 : index
    %c0_181 = arith.constant 0 : index
    %380 = vector.load %arg7[%c0_180, %c0_181] : memref<8x1xf32, #tpu.memory_space<vmem>>, vector<8x1xf32>
    %381 = vector.broadcast %380 : vector<8x1xf32> to vector<8x256xf32>
    %382 = arith.addf %379, %381 : vector<8x256xf32>
    %c0_182 = arith.constant 0 : index
    %c2_183 = arith.constant 2 : index
    %c0_184 = arith.constant 0 : index
    %c0_185 = arith.constant 0 : index
    %383 = vector.load %arg9[%c0_182, %c2_183, %c0_184, %c0_185] : memref<1x4x8x256xf32, #tpu.memory_space<vmem>>, vector<1x1x8x256xf32>
    %384 = vector.shape_cast %383 : vector<1x1x8x256xf32> to vector<8x256xf32>
    %385 = vector.shape_cast %382 : vector<8x256xf32> to vector<1x1x8x256xf32>
    tpu.vector_store %arg9[%c0_182, %c2_183, %c0_184, %c0_185], %385 {strides = array<i32>} : memref<1x4x8x256xf32, #tpu.memory_space<vmem>>, vector<1x1x8x256xf32>,
    %386 = vector.extract_strided_slice %378 {offsets = [0, 0], sizes = [32, 256], strides = [1, 1]} : vector<136x256xf32> to vector<32x256xf32>
    %c0_186 = arith.constant 0 : index
    %c0_187 = arith.constant 0 : index
    %387 = vector.load %arg6[%c0_186, %c0_187] : memref<128x1xf32, #tpu.memory_space<vmem>>, vector<32x1xf32>
    %388 = vector.broadcast %387 : vector<32x1xf32> to vector<32x256xf32>
    %389 = arith.addf %386, %388 : vector<32x256xf32>
    %390 = math.tanh %389 : vector<32x256xf32>
    %391 = vector.extract_strided_slice %378 {offsets = [32, 0], sizes = [32, 256], strides = [1, 1]} : vector<136x256xf32> to vector<32x256xf32>
    %c32_188 = arith.constant 32 : index
    %c0_189 = arith.constant 0 : index
    %392 = vector.load %arg6[%c32_188, %c0_189] : memref<128x1xf32, #tpu.memory_space<vmem>>, vector<32x1xf32>
    %393 = vector.broadcast %392 : vector<32x1xf32> to vector<32x256xf32>
    %394 = arith.addf %391, %393 : vector<32x256xf32>
    %395 = arith.negf %394 : vector<32x256xf32>
    %396 = math.exp %395 : vector<32x256xf32>
    %cst_190 = arith.constant 1.000000e+00 : f32
    %397 = vector.broadcast %cst_190 : f32 to vector<32x256xf32>
    %398 = arith.addf %397, %396 : vector<32x256xf32>
    %399 = arith.divf %397, %398 : vector<32x256xf32>
    %400 = vector.extract_strided_slice %378 {offsets = [64, 0], sizes = [32, 256], strides = [1, 1]} : vector<136x256xf32> to vector<32x256xf32>
    %c64_191 = arith.constant 64 : index
    %c0_192 = arith.constant 0 : index
    %401 = vector.load %arg6[%c64_191, %c0_192] : memref<128x1xf32, #tpu.memory_space<vmem>>, vector<32x1xf32>
    %402 = vector.broadcast %401 : vector<32x1xf32> to vector<32x256xf32>
    %403 = arith.addf %400, %402 : vector<32x256xf32>
    %404 = arith.negf %403 : vector<32x256xf32>
    %405 = math.exp %404 : vector<32x256xf32>
    %cst_193 = arith.constant 1.000000e+00 : f32
    %406 = vector.broadcast %cst_193 : f32 to vector<32x256xf32>
    %407 = arith.addf %406, %405 : vector<32x256xf32>
    %408 = arith.divf %406, %407 : vector<32x256xf32>
    %409 = vector.extract_strided_slice %378 {offsets = [96, 0], sizes = [32, 256], strides = [1, 1]} : vector<136x256xf32> to vector<32x256xf32>
    %c96_194 = arith.constant 96 : index
    %c0_195 = arith.constant 0 : index
    %410 = vector.load %arg6[%c96_194, %c0_195] : memref<128x1xf32, #tpu.memory_space<vmem>>, vector<32x1xf32>
    %411 = vector.broadcast %410 : vector<32x1xf32> to vector<32x256xf32>
    %412 = arith.addf %409, %411 : vector<32x256xf32>
    %413 = arith.negf %412 : vector<32x256xf32>
    %414 = math.exp %413 : vector<32x256xf32>
    %cst_196 = arith.constant 1.000000e+00 : f32
    %415 = vector.broadcast %cst_196 : f32 to vector<32x256xf32>
    %416 = arith.addf %415, %414 : vector<32x256xf32>
    %417 = arith.divf %415, %416 : vector<32x256xf32>
    %c0_197 = arith.constant 0 : index
    %c0_198 = arith.constant 0 : index
    %418 = vector.load %arg10[%c0_197, %c0_198] : memref<32x256xf32, #tpu.memory_space<vmem>>, vector<32x256xf32>
    %419 = arith.mulf %417, %418 : vector<32x256xf32>
    %420 = arith.mulf %408, %390 : vector<32x256xf32>
    %421 = arith.addf %419, %420 : vector<32x256xf32>
    %c0_199 = arith.constant 0 : index
    %c0_200 = arith.constant 0 : index
    %422 = vector.load %arg10[%c0_199, %c0_200] : memref<32x256xf32, #tpu.memory_space<vmem>>, vector<32x256xf32>
    tpu.vector_store %arg10[%c0_199, %c0_200], %421 {strides = array<i32>} : memref<32x256xf32, #tpu.memory_space<vmem>>, vector<32x256xf32>,
    %423 = math.tanh %421 : vector<32x256xf32>
    %424 = arith.mulf %399, %423 : vector<32x256xf32>
    %c17_i32_201 = arith.constant 17 : i32
    %425 = tpu.dynamic_rotate %424 by %c17_i32_201 dim 1 : vector<32x256xf32>, i32 -> vector<32x256xf32>
    %426 = vector.extract_strided_slice %0 {offsets = [0, 0], sizes = [1, 256], strides = [1, 1]} : vector<9x256xf32> to vector<1x256xf32>
    %427 = vector.broadcast %426 : vector<1x256xf32> to vector<32x256xf32>
    %428 = arith.mulf %425, %427 : vector<32x256xf32>
    %429 = arith.truncf %428 : vector<32x256xf32> to vector<32x256xbf16>
    %c0_202 = arith.constant 0 : index
    %c0_203 = arith.constant 0 : index
    %430 = vector.load %arg12[%c0_202, %c0_203] : memref<304x256xbf16, #tpu.memory_space<vmem>>, vector<32x256xbf16>
    tpu.vector_store %arg12[%c0_202, %c0_203], %429 {strides = array<i32>} : memref<304x256xbf16, #tpu.memory_space<vmem>>, vector<32x256xbf16>,
    %c16_i32_204 = arith.constant 16 : i32
    %431 = tpu.dynamic_rotate %424 by %c16_i32_204 dim 1 : vector<32x256xf32>, i32 -> vector<32x256xf32>
    %432 = vector.extract_strided_slice %0 {offsets = [1, 0], sizes = [1, 256], strides = [1, 1]} : vector<9x256xf32> to vector<1x256xf32>
    %433 = vector.broadcast %432 : vector<1x256xf32> to vector<32x256xf32>
    %434 = arith.mulf %431, %433 : vector<32x256xf32>
    %435 = arith.truncf %434 : vector<32x256xf32> to vector<32x256xbf16>
    %c32_205 = arith.constant 32 : index
    %c0_206 = arith.constant 0 : index
    %436 = vector.load %arg12[%c32_205, %c0_206] : memref<304x256xbf16, #tpu.memory_space<vmem>>, vector<32x256xbf16>
    tpu.vector_store %arg12[%c32_205, %c0_206], %435 {strides = array<i32>} : memref<304x256xbf16, #tpu.memory_space<vmem>>, vector<32x256xbf16>,
    %c15_i32_207 = arith.constant 15 : i32
    %437 = tpu.dynamic_rotate %424 by %c15_i32_207 dim 1 : vector<32x256xf32>, i32 -> vector<32x256xf32>
    %438 = vector.extract_strided_slice %0 {offsets = [2, 0], sizes = [1, 256], strides = [1, 1]} : vector<9x256xf32> to vector<1x256xf32>
    %439 = vector.broadcast %438 : vector<1x256xf32> to vector<32x256xf32>
    %440 = arith.mulf %437, %439 : vector<32x256xf32>
    %441 = arith.truncf %440 : vector<32x256xf32> to vector<32x256xbf16>
    %c64_208 = arith.constant 64 : index
    %c0_209 = arith.constant 0 : index
    %442 = vector.load %arg12[%c64_208, %c0_209] : memref<304x256xbf16, #tpu.memory_space<vmem>>, vector<32x256xbf16>
    tpu.vector_store %arg12[%c64_208, %c0_209], %441 {strides = array<i32>} : memref<304x256xbf16, #tpu.memory_space<vmem>>, vector<32x256xbf16>,
    %c1_i32_210 = arith.constant 1 : i32
    %443 = tpu.dynamic_rotate %424 by %c1_i32_210 dim 1 : vector<32x256xf32>, i32 -> vector<32x256xf32>
    %444 = vector.extract_strided_slice %0 {offsets = [3, 0], sizes = [1, 256], strides = [1, 1]} : vector<9x256xf32> to vector<1x256xf32>
    %445 = vector.broadcast %444 : vector<1x256xf32> to vector<32x256xf32>
    %446 = arith.mulf %443, %445 : vector<32x256xf32>
    %447 = arith.truncf %446 : vector<32x256xf32> to vector<32x256xbf16>
    %c96_211 = arith.constant 96 : index
    %c0_212 = arith.constant 0 : index
    %448 = vector.load %arg12[%c96_211, %c0_212] : memref<304x256xbf16, #tpu.memory_space<vmem>>, vector<32x256xbf16>
    tpu.vector_store %arg12[%c96_211, %c0_212], %447 {strides = array<i32>} : memref<304x256xbf16, #tpu.memory_space<vmem>>, vector<32x256xbf16>,
    %449 = arith.truncf %424 : vector<32x256xf32> to vector<32x256xbf16>
    %c128_213 = arith.constant 128 : index
    %c0_214 = arith.constant 0 : index
    %450 = vector.load %arg12[%c128_213, %c0_214] : memref<304x256xbf16, #tpu.memory_space<vmem>>, vector<32x256xbf16>
    tpu.vector_store %arg12[%c128_213, %c0_214], %449 {strides = array<i32>} : memref<304x256xbf16, #tpu.memory_space<vmem>>, vector<32x256xbf16>,
    %c255_i32_215 = arith.constant 255 : i32
    %451 = tpu.dynamic_rotate %424 by %c255_i32_215 dim 1 : vector<32x256xf32>, i32 -> vector<32x256xf32>
    %452 = vector.extract_strided_slice %0 {offsets = [5, 0], sizes = [1, 256], strides = [1, 1]} : vector<9x256xf32> to vector<1x256xf32>
    %453 = vector.broadcast %452 : vector<1x256xf32> to vector<32x256xf32>
    %454 = arith.mulf %451, %453 : vector<32x256xf32>
    %455 = arith.truncf %454 : vector<32x256xf32> to vector<32x256xbf16>
    %c160_216 = arith.constant 160 : index
    %c0_217 = arith.constant 0 : index
    %456 = vector.load %arg12[%c160_216, %c0_217] : memref<304x256xbf16, #tpu.memory_space<vmem>>, vector<32x256xbf16>
    tpu.vector_store %arg12[%c160_216, %c0_217], %455 {strides = array<i32>} : memref<304x256xbf16, #tpu.memory_space<vmem>>, vector<32x256xbf16>,
    %c241_i32_218 = arith.constant 241 : i32
    %457 = tpu.dynamic_rotate %424 by %c241_i32_218 dim 1 : vector<32x256xf32>, i32 -> vector<32x256xf32>
    %458 = vector.extract_strided_slice %0 {offsets = [6, 0], sizes = [1, 256], strides = [1, 1]} : vector<9x256xf32> to vector<1x256xf32>
    %459 = vector.broadcast %458 : vector<1x256xf32> to vector<32x256xf32>
    %460 = arith.mulf %457, %459 : vector<32x256xf32>
    %461 = arith.truncf %460 : vector<32x256xf32> to vector<32x256xbf16>
    %c192_219 = arith.constant 192 : index
    %c0_220 = arith.constant 0 : index
    %462 = vector.load %arg12[%c192_219, %c0_220] : memref<304x256xbf16, #tpu.memory_space<vmem>>, vector<32x256xbf16>
    tpu.vector_store %arg12[%c192_219, %c0_220], %461 {strides = array<i32>} : memref<304x256xbf16, #tpu.memory_space<vmem>>, vector<32x256xbf16>,
    %c240_i32_221 = arith.constant 240 : i32
    %463 = tpu.dynamic_rotate %424 by %c240_i32_221 dim 1 : vector<32x256xf32>, i32 -> vector<32x256xf32>
    %464 = vector.extract_strided_slice %0 {offsets = [7, 0], sizes = [1, 256], strides = [1, 1]} : vector<9x256xf32> to vector<1x256xf32>
    %465 = vector.broadcast %464 : vector<1x256xf32> to vector<32x256xf32>
    %466 = arith.mulf %463, %465 : vector<32x256xf32>
    %467 = arith.truncf %466 : vector<32x256xf32> to vector<32x256xbf16>
    %c224_222 = arith.constant 224 : index
    %c0_223 = arith.constant 0 : index
    %468 = vector.load %arg12[%c224_222, %c0_223] : memref<304x256xbf16, #tpu.memory_space<vmem>>, vector<32x256xbf16>
    tpu.vector_store %arg12[%c224_222, %c0_223], %467 {strides = array<i32>} : memref<304x256xbf16, #tpu.memory_space<vmem>>, vector<32x256xbf16>,
    %c239_i32_224 = arith.constant 239 : i32
    %469 = tpu.dynamic_rotate %424 by %c239_i32_224 dim 1 : vector<32x256xf32>, i32 -> vector<32x256xf32>
    %470 = vector.extract_strided_slice %0 {offsets = [8, 0], sizes = [1, 256], strides = [1, 1]} : vector<9x256xf32> to vector<1x256xf32>
    %471 = vector.broadcast %470 : vector<1x256xf32> to vector<32x256xf32>
    %472 = arith.mulf %469, %471 : vector<32x256xf32>
    %473 = arith.truncf %472 : vector<32x256xf32> to vector<32x256xbf16>
    %c256_225 = arith.constant 256 : index
    %c0_226 = arith.constant 0 : index
    %474 = vector.load %arg12[%c256_225, %c0_226] : memref<304x256xbf16, #tpu.memory_space<vmem>>, vector<32x256xbf16>
    tpu.vector_store %arg12[%c256_225, %c0_226], %473 {strides = array<i32>} : memref<304x256xbf16, #tpu.memory_space<vmem>>, vector<32x256xbf16>,
    %c128_227 = arith.constant 128 : index
    %c0_228 = arith.constant 0 : index
    %475 = vector.load %arg5[%c128_227, %c0_228] : memref<136x304xbf16, #tpu.memory_space<vmem>>, vector<8x304xbf16>
    %c0_229 = arith.constant 0 : index
    %c0_230 = arith.constant 0 : index
    %476 = vector.load %arg12[%c0_229, %c0_230] : memref<304x256xbf16, #tpu.memory_space<vmem>>, vector<304x256xbf16>
    %cst_231 = arith.constant dense<0.000000e+00> : vector<8x256xf32>
    %477 = tpu.matmul %475, %476, %cst_231 {dimension_numbers = #tpu.dot_dimension_numbers<[1], [0], [0], [1], [0, 0, 1, 1], [], []>} : vector<8x304xbf16>, vector<304x256xbf16>, vector<8x256xf32> -> vector<8x256xf32>
    %c0_232 = arith.constant 0 : index
    %c0_233 = arith.constant 0 : index
    %478 = vector.load %arg7[%c0_232, %c0_233] : memref<8x1xf32, #tpu.memory_space<vmem>>, vector<8x1xf32>
    %479 = vector.broadcast %478 : vector<8x1xf32> to vector<8x256xf32>
    %480 = arith.addf %477, %479 : vector<8x256xf32>
    %c0_234 = arith.constant 0 : index
    %c3_235 = arith.constant 3 : index
    %c0_236 = arith.constant 0 : index
    %c0_237 = arith.constant 0 : index
    %481 = vector.load %arg9[%c0_234, %c3_235, %c0_236, %c0_237] : memref<1x4x8x256xf32, #tpu.memory_space<vmem>>, vector<1x1x8x256xf32>
    %482 = vector.shape_cast %481 : vector<1x1x8x256xf32> to vector<8x256xf32>
    %483 = vector.shape_cast %480 : vector<8x256xf32> to vector<1x1x8x256xf32>
    tpu.vector_store %arg9[%c0_234, %c3_235, %c0_236, %c0_237], %483 {strides = array<i32>} : memref<1x4x8x256xf32, #tpu.memory_space<vmem>>, vector<1x1x8x256xf32>,
    return
  }
  func.func @transform_0(%arg0: i32, %arg1: i32) -> (i32, i32, i32, i32) {
    %c0_i32 = arith.constant 0 : i32
    %c0_i32_0 = arith.constant 0 : i32
    %c0_i32_1 = arith.constant 0 : i32
    return %arg0, %arg1, %c0_i32, %c0_i32_0 : i32, i32, i32, i32
  }
  func.func @transform_1(%arg0: i32, %arg1: i32) -> (i32, i32) {
    %c0_i32 = arith.constant 0 : i32
    %c0_i32_0 = arith.constant 0 : i32
    %c0_i32_1 = arith.constant 0 : i32
    return %c0_i32, %c0_i32_0 : i32, i32
  }
  func.func @transform_2(%arg0: i32, %arg1: i32) -> (i32, i32) {
    %c0_i32 = arith.constant 0 : i32
    %c0_i32_0 = arith.constant 0 : i32
    %c0_i32_1 = arith.constant 0 : i32
    return %c0_i32, %c0_i32_0 : i32, i32
  }
  func.func @transform_3(%arg0: i32, %arg1: i32) -> (i32, i32) {
    %c0_i32 = arith.constant 0 : i32
    %c0_i32_0 = arith.constant 0 : i32
    %c0_i32_1 = arith.constant 0 : i32
    return %c0_i32, %c0_i32_0 : i32, i32
  }
  func.func @transform_4(%arg0: i32, %arg1: i32) -> (i32, i32) {
    %c0_i32 = arith.constant 0 : i32
    %c0_i32_0 = arith.constant 0 : i32
    %c0_i32_1 = arith.constant 0 : i32
    return %c0_i32, %c0_i32_0 : i32, i32
  }
  func.func @transform_5(%arg0: i32, %arg1: i32) -> (i32, i32) {
    %c0_i32 = arith.constant 0 : i32
    %c0_i32_0 = arith.constant 0 : i32
    %c0_i32_1 = arith.constant 0 : i32
    return %c0_i32, %c0_i32_0 : i32, i32
  }
  func.func @transform_6(%arg0: i32, %arg1: i32) -> (i32, i32) {
    %c0_i32 = arith.constant 0 : i32
    %c0_i32_0 = arith.constant 0 : i32
    %c0_i32_1 = arith.constant 0 : i32
    return %c0_i32, %c0_i32_0 : i32, i32
  }
  func.func @transform_7(%arg0: i32, %arg1: i32) -> (i32, i32, i32, i32) {
    %c0_i32 = arith.constant 0 : i32
    %c0_i32_0 = arith.constant 0 : i32
    %c0_i32_1 = arith.constant 0 : i32
    return %arg0, %arg1, %c0_i32, %c0_i32_0 : i32, i32, i32, i32
  }
}

</mosaic_0001>

<bundles_post_ra>
// kernel: clstm_forward.1
= control target key start
LH: loop header
LB: loop body
LE: loop exit
PB: predicated region body
PF: predicated region fallthrough
CT: control target
= control target key end

     0   :  { %s7501_s24 = smov 0   ;;  %s7503_s25 = smov 0   ;;  %s10953_s0 = inlined_call_operand.vmem [shape: f32[2,8,1,256], index: 0, kind: input, shape index: {}]   ;;  %s10954_s1 = inlined_call_operand.vmem [shape: bf16[96,16], index: 1, kind: input, shape index: {}]   ;;  %s10955_s2 = inlined_call_operand.vmem [shape: f32[96,1], index: 2, kind: input, shape index: {}]   ;;  %s10956_s3 = inlined_call_operand.vmem [shape: bf16[136,304], index: 3, kind: input, shape index: {}]   ;;  %s10957_s4 = inlined_call_operand.vmem [shape: f32[128,1], index: 4, kind: input, shape index: {}]   ;;  %s10958_s5 = inlined_call_operand.vmem [shape: f32[8,1], index: 5, kind: input, shape index: {}]   ;;  %s10959_s6 = inlined_call_operand.vmem [shape: f32[9,256], index: 6, kind: input, shape index: {}]   ;;  %s10960_s7 = inlined_call_operand.vmem [shape: f32[2,8,8,256], index: 7, kind: output, shape index: {}]  }
   0x1   :  { %s7505_s26 = smov 0   ;;  %s7507_s27 = smov 0  }
   0x2   :  { %s7509_s28 = smov 0  }
   0x3 LB: > { %s26_s29 = sadd.s32 1, %s7438_s26  ;;  %s29_s30 = sadd.s32 1, %s7442_s27  ;;  %s7446_s28 = sphi %s7509_s28, %s17_s28   ;;  %s7442_s27 = sphi %s7507_s27, %s11130_s27   ;;  %s7438_s26 = sphi %s7505_s26, %s11129_s26   ;;  %s7434_s25 = sphi %s7503_s25, %s11128_s25   ;;  %s7430_s24 = sphi %s7501_s24, %s11127_s24  }
   0x4   : > { %p27_p0 = scmp.ge.s32.totalorder %s26_s29, 2  ;;  %p6144_p1 = scmp.ge.s32.totalorder %s7446_s28, 1 }
   0x5   : > { %p258_p2 = scmp.lt.s32.totalorder %s7446_s28, 5 }
   0x6   : > { %s11132_s29 = smov (%p27_p0, %s26_s29), 0  ;;  %s11134_s30 = smov (!%p27_p0, %s29_s30), %s7442_s27 }
   0x7   : > { %p259_p3 = pnand %p6144_p1, %p258_p2  ;;  %p31_p4 = scmp.ge.s32.totalorder %s11134_s30, 2 }
   0x9   : > { %s11136_s30 = smov (%p31_p4, %s11134_s30), 0  ;;  %262 = sbr.rel (%p259_p3) target bundleno = 3134 (0xc3e), region = 48 }
  0x10   : > { %s6145_s8 = sshll.u32 %s7430_s24, 2  ;;  %p300_p5 = scmp.lt.s32.totalorder %s7434_s25, 1  ;;  %v327_v0 = vlaneseq  ;;  %v7596_v12 = vld [vmem:[%s10959_s6] sm:$0xff]  ;;  %v7601_v13 = vld [vmem:[%s10959_s6 + $0x8] sm:$0xff]  ;;  %vm473_vm4 = vcmask 1040384   ;;  %vm10999_vm5 = vcmask 1041408  }
  0x11   : > { %p302_p6 = scmp.lt.s32.totalorder %s6145_s8, 7  ;;  %s7448_s19 = smov 15   ;;  %11018 = vst [vmem:[#allocation5_spill] sm:$0xff] %v7596_v12  ;;  %11019 = vst [vmem:[#allocation6_spill] sm:$0xff] %v7601_v13  ;;  %v7605_v16 = vrot.slane %v7596_v12, 1  ;;  %v7608_v17 = vrot.slane %v7601_v13, 1 }
  0x12   : > { %s11138_s25 = smov (!%p300_p5, %s7434_s25), 1  ;;  %v7534_v1 = vshrl.u32 %v327_v0, 7  ;;  %s7449_s20 = smov 16   ;;  %v7591_v9 = vand.u32 127, %v327_v0  ;;  %v7618_v20 = vrot.slane %v7596_v12, 2  ;;  %v7621_v21 = vrot.slane %v7601_v13, 2 }
  0x13   : > { %s11140_s8 = smov (!%p302_p6, %s6145_s8), 7  ;;  %s6147_s9 = sshll.u32 %s11138_s25, 4  ;;  %11020 = vst [vmem:[#allocation7_spill] sm:$0xff] %v7605_v16  ;;  %11021 = vst [vmem:[#allocation8_spill] sm:$0xff] %v7608_v17  ;;  %v7628_v26 = vrot.slane %v7596_v12, 3  ;;  %v7631_v27 = vrot.slane %v7601_v13, 3 }
  0x14   : > { %s6146_s10 = sshll.u32 %s11140_s8, 1  ;;  %v7537_v2 = vsub.s32 0, %v7534_v1  ;;  %v7545_v3 = vsub.s32 1, %v7534_v1  ;;  %s7450_s21 = smov 17   ;;  %vm352_vm0 = vcmp.lt.s32.totalorder %v7591_v9, 16  ;;  %vm343_vm1 = vcmp.lt.s32.totalorder %v7591_v9, 17 }
  0x15   : > { %s306_s11 = sadd.s32 %s6147_s9, %s6146_s10  ;;  %s7451_s22 = smov 1   ;;  %vm380_vm2 = vcmp.lt.s32.totalorder %v7591_v9, 1  ;;  %vm367_vm3 = vcmp.lt.s32.totalorder %v7591_v9, 15  ;;  %11022 = vst [vmem:[#allocation9_spill] sm:$0xff] %v7618_v20  ;;  %11023 = vst [vmem:[#allocation10_spill] sm:$0xff] %v7621_v21  ;;  %vm10998_vm6 = vcmask 1042432  }
  0x16   : > { %s7542_s14 = scalar_lea.vmem %s10953_s0, %s306_s11  ;;  %s6151_s15 = sshll.u32 %s306_s11, 3  ;;  %11024 = vst [vmem:[#allocation11_spill] sm:$0xff] %v7628_v26  ;;  %11025 = vst [vmem:[#allocation12_spill] sm:$0xff] %v7631_v27  ;;  %vm393_vm7 = vcmp.lt.s32.totalorder %v7591_v9, 127  ;;  %v7647_v37 = vrot.slane %v7596_v12, 5  ;;  %v7650_v38 = vrot.slane %v7601_v13, 5 }
  0x17   : > { %s7550_s18 = scalar_lea.vmem %s10960_s7, %s6151_s15  ;;  %v325_v4 = vld [vmem:[%s7542_s14] sm:$0x3]  ;;  %s7452_s23 = smov 127   ;;  %vm406_vm8 = vcmp.lt.s32.totalorder %v7591_v9, 113  ;;  %v7656_v42 = vrot.slane %v7596_v12, 6  ;;  %v7665_v49 = vrot.slane %v7601_v13, 6 }
  0x18   : > { %v7554_v5 = vrot.slane %v325_v4, %v7537_v2  ;;  %v7561_v6 = vrot.slane %v325_v4, %v7545_v3  ;;  %s10967_s25 = smov 113   ;;  %s10963_s8 = smov 112   ;;  %11026 = vst [vmem:[#allocation13_spill] sm:$0xff] %v7647_v37  ;;  %11027 = vst [vmem:[#allocation14_spill] sm:$0xff] %v7650_v38  ;;  %vm419_vm9 = vcmp.lt.s32.totalorder %v7591_v9, 112  ;;  %v7671_v54 = vrot.slane %v7596_v12, 7 }
  0x19   : > { %s10965_s9 = smov 111   ;;  %11028 = vst [vmem:[#allocation15_spill] sm:$0xff] %v7656_v42  ;;  %11029 = vst [vmem:[#allocation16_spill] sm:$0xff] %v7665_v49  ;;  %v7674_v55 = vrot.slane %v7601_v13, 7  ;;  %vm10997_vm10 = vcmask 1043456   ;;  %vm485_vm11 = vcmask 1044480  }
  0x1a   : > { %363 = vrot.lane.b32.xlu1 %v7554_v5, %s7448_s19  ;;  %348 = vrot.lane.b32.xlu0 %v7554_v5, %s7449_s20  ;;  %11030 = vst [vmem:[#allocation17_spill] sm:$0xff] %v7671_v54  ;;  %vm432_vm12 = vcmp.lt.s32.totalorder %v7591_v9, 111  ;;  %vm10961_vm13 = vcmask 1045504   ;;  %vm10962_vm14 = vcmask 1046528   ;;  %p6152_p7 = scmp.ne.s32.totalorder %s7430_s24, 0 }
  0x1b   : > { %11031 = vst [vmem:[#allocation18_spill] sm:$0xff] %v7674_v55  ;;  %vm7456_vm15 = vmmov (!%p6152_p7), 1  }
  0x1e   : > { %365 = vrot.lane.b32.xlu1 %v7561_v6, %s7448_s19  ;;  %350 = vrot.lane.b32.xlu0 %v7561_v6, %s7449_s20 }
  0x22   : > { %339 = vrot.lane.b32.xlu1 %v7561_v6, %s7450_s21  ;;  %337 = vrot.lane.b32.xlu0 %v7554_v5, %s7450_s21 }
  0x26   : > { %378 = vrot.lane.b32.xlu1 %v7561_v6, %s7451_s22  ;;  %376 = vrot.lane.b32.xlu0 %v7554_v5, %s7451_s22 }
  0x2a   : > { %391 = vrot.lane.b32.xlu1 %v7561_v6, %s7452_s23  ;;  %389 = vrot.lane.b32.xlu0 %v7554_v5, %s7452_s23 }
  0x2e   : > { %404 = vrot.lane.b32.xlu1 %v7561_v6, %s10967_s25  ;;  %402 = vrot.lane.b32.xlu0 %v7554_v5, %s10967_s25 }
  0x32   : > { %417 = vrot.lane.b32.xlu1 %v7561_v6, %s10963_s8  ;;  %415 = vrot.lane.b32.xlu0 %v7554_v5, %s10963_s8 }
  0x36   : > { %430 = vrot.lane.b32.xlu1 %v7561_v6, %s10965_s9  ;;  %428 = vrot.lane.b32.xlu0 %v7554_v5, %s10965_s9 }
  0x8c   : > { %v364_v7 = vpop.permute.xlu1 %363  ;;  %v349_v8 = vpop.permute.xlu0 %348 }
  0x90   : > { %v366_v10 = vpop.permute.xlu1 %365  ;;  %v351_v11 = vpop.permute.xlu0 %350 }
  0x91   : > { %v353_v18 = vsel %vm352_vm0, %v349_v8, %v351_v11  ;;  %v354_v19 = vsel %vm352_vm0, %v351_v11, %v349_v8  ;;  %v368_v32 = vsel %vm367_vm3, %v364_v7, %v366_v10  ;;  %v369_v33 = vsel %vm367_vm3, %v366_v10, %v364_v7 }
  0x92   : > { %v361_v28 = vmul.f32 %v7605_v16, %v354_v19  ;;  %v362_v29 = vmul.f32 %v7608_v17, %v353_v18  ;;  %v374_v43 = vmul.f32 %v7618_v20, %v369_v33  ;;  %v375_v44 = vmul.f32 %v7621_v21, %v368_v32 }
  0x94   : > { %v340_v14 = vpop.permute.xlu1 %339  ;;  %v338_v15 = vpop.permute.xlu0 %337  ;;  %v439_v45 = vrot.slane %v361_v28, 7  ;;  %v440_v46 = vrot.slane %v362_v29, 7  ;;  %v445_v60 = vrot.slane %v374_v43, 6  ;;  %v446_v61 = vrot.slane %v375_v44, 6 }
  0x95   : > { %v344_v24 = vsel %vm343_vm1, %v338_v15, %v340_v14  ;;  %v345_v25 = vsel %vm343_vm1, %v340_v14, %v338_v15 }
  0x96   : > { %v346_v34 = vmul.f32 %v345_v25, %v7596_v12  ;;  %v347_v35 = vmul.f32 %v344_v24, %v7601_v13 }
  0x98   : > { %v379_v22 = vpop.permute.xlu1 %378  ;;  %v377_v23 = vpop.permute.xlu0 %376  ;;  %v474_v50 = vsel %vm473_vm4, %v346_v34, %v439_v45  ;;  %v475_v51 = vsel %vm473_vm4, %v347_v35, %v440_v46 }
  0x99   : > { %v381_v30 = vsel %vm380_vm2, %v377_v23, %v379_v22  ;;  %v382_v31 = vsel %vm380_vm2, %v379_v22, %v377_v23  ;;  %v477_v7 = vsel %vm10999_vm5, %v474_v50, %v445_v60  ;;  %v478_v8 = vsel %vm10999_vm5, %v475_v51, %v446_v61  ;;  %v6630_v60 = vld [vmem:[%s10954_s1 + $0x18] sm:$0xff] (!%p6152_p7)   ;;  %v524_v61 = vld [vmem:[%s10955_s2 + $0x40] sm:$0xff] (!%p6152_p7) }
  0x9a   : > { %v387_v40 = vmul.f32 %v7628_v26, %v382_v31  ;;  %v388_v41 = vmul.f32 %v7631_v27, %v381_v30  ;;  %v7698_v30 = vld [vmem:[%s10959_s6 + $0x10] sm:$0x1]  ;;  %v7703_v31 = vld [vmem:[%s10959_s6 + $0x18] sm:$0x1] }
  0x9b   : > { %11032 = vst [vmem:[#allocation19_spill] sm:$0xff] %v7698_v30  ;;  %11033 = vst [vmem:[#allocation20_spill] sm:$0xff] %v7703_v31 }
  0x9c   : > { %v392_v36 = vpop.permute.xlu1 %391  ;;  %v390_v39 = vpop.permute.xlu0 %389  ;;  %v451_v56 = vrot.slane %v387_v40, 5  ;;  %v452_v57 = vrot.slane %v388_v41, 5 }
  0x9d   : > { %v394_v47 = vsel %vm393_vm7, %v390_v39, %v392_v36  ;;  %v395_v48 = vsel %vm393_vm7, %v392_v36, %v390_v39 }
  0x9e   : > { %v400_v62 = vmul.f32 %v7647_v37, %v394_v47  ;;  %v401_v63 = vmul.f32 %v7650_v38, %v395_v48  ;;  %v480_v14 = vsel %vm10998_vm6, %v477_v7, %v451_v56  ;;  %v481_v15 = vsel %vm10998_vm6, %v478_v8, %v452_v57  ;;  %v6632_v7 = vld [vmem:[%s10954_s1 + $0x20] sm:$0xff] (!%p6152_p7)  }
  0x9f   : > { %v483_v36 = vsel %vm10997_vm10, %v480_v14, %v7554_v5  ;;  %v484_v39 = vsel %vm10997_vm10, %v481_v15, %v7561_v6  ;;  %v520_v8 = vld [vmem:[%s10955_s2 + $0x20] sm:$0xff] (!%p6152_p7)  ;;  %v523_v14 = vld [vmem:[%s10955_s2 + $0x38] sm:$0xff] (!%p6152_p7)  ;;  %v6633_v15 = vld [vmem:[%s10954_s1 + $0x10] sm:$0xff] (!%p6152_p7)  }
  0xa0   : > { %v405_v52 = vpop.permute.xlu1 %404  ;;  %v403_v53 = vpop.permute.xlu0 %402  ;;  %v457_v22 = vrot.slane %v400_v62, 3  ;;  %v458_v23 = vrot.slane %v401_v63, 3  ;;  %v526_v62 = vld [vmem:[%s10955_s2 + $0x50] sm:$0xff] (!%p6152_p7)  ;;  %v525_v63 = vld [vmem:[%s10955_s2 + $0x48] sm:$0xff] (!%p6152_p7) }
  0xa1   : > { %v407_v58 = vsel %vm406_vm8, %v403_v53, %v405_v52  ;;  %v408_v59 = vsel %vm406_vm8, %v405_v52, %v403_v53 }
  0xa2   : > { %v413_v0 = vmul.f32 %v7656_v42, %v407_v58  ;;  %v414_v4 = vmul.f32 %v7665_v49, %v408_v59  ;;  %v486_v43 = vsel %vm485_vm11, %v483_v36, %v457_v22  ;;  %v487_v44 = vsel %vm485_vm11, %v484_v39, %v458_v23  ;;  %v6629_v59 = vld [vmem:[%s10954_s1] sm:$0xff] (!%p6152_p7)   ;;  %v519_v23 = vld [vmem:[%s10955_s2 + $0x18] sm:$0xff] (!%p6152_p7) }
  0xa3   : > { %v7457_v58 = vmov (!%p6152_p7), 0   ;;  %v516_v22 = vld [vmem:[%s10955_s2] sm:$0xff] (!%p6152_p7) }
  0xa4   : > { %v418_v10 = vpop.permute.xlu1 %417  ;;  %v416_v11 = vpop.permute.xlu0 %415  ;;  %v463_v28 = vrot.slane %v413_v0, 2  ;;  %v464_v29 = vrot.slane %v414_v4, 2  ;;  %669 = vmatprep.mubr.bf16.mxu0 (!%p6152_p7), %v7457_v58  ;;  %699 = vmatprep.mubr.bf16.mxu1 (!%p6152_p7), %v7457_v58  ;;  %v527_v0 = vld [vmem:[%s10955_s2 + $0x58] sm:$0xff] (!%p6152_p7)  ;;  %v6631_v4 = vld [vmem:[%s10954_s1 + $0x8] sm:$0xff] (!%p6152_p7)  }
  0xa5   : > { %v420_v18 = vsel %vm419_vm9, %v416_v11, %v418_v10  ;;  %v421_v19 = vsel %vm419_vm9, %v418_v10, %v416_v11  ;;  %6627 = vset.pattern.permute.xlu0 (!%p6152_p7), %v7457_v58  ;;  %6628 = vset.pattern.permute.xlu1 (!%p6152_p7), %v7457_v58  ;;  %v521_v10 = vld [vmem:[%s10955_s2 + $0x28] sm:$0xff] (!%p6152_p7)  ;;  %v522_v11 = vld [vmem:[%s10955_s2 + $0x30] sm:$0xff] (!%p6152_p7) }
  0xa6   : > { %v426_v24 = vmul.f32 %v7671_v54, %v420_v18  ;;  %v427_v25 = vmul.f32 %v7674_v55, %v421_v19  ;;  %v489_v47 = vsel %vm10961_vm13, %v486_v43, %v463_v28  ;;  %v490_v5 = vsel %vm10961_vm13, %v487_v44, %v464_v29  ;;  %vm6159_vm13 = vmpackc.low (!%p6152_p7), %vm473_vm4, %vm7456_vm15  ;;  %570 = vperm.xlu0 (!%p6152_p7), %6627, %v524_v61   ;;  %v6634_v18 = vld [vmem:[%s10954_s1 + $0x28] sm:$0xff] (!%p6152_p7)  }
  0xa7   : > { %580 = vperm.xlu1 (!%p6152_p7), %6628, %v526_v62   ;;  %v517_v19 = vld [vmem:[%s10955_s2 + $0x8] sm:$0xff] (!%p6152_p7) }
  0xa8   : > { %v469_v32 = vrot.slane %v426_v24, 1  ;;  %v470_v33 = vrot.slane %v427_v25, 1  ;;  %v431_v34 = vpop.permute.xlu1 %430  ;;  %v429_v35 = vpop.permute.xlu0 %428  ;;  %v518_v24 = vld [vmem:[%s10955_s2 + $0x10] sm:$0xff] (!%p6152_p7) }
  0xa9   : > { %v433_v40 = vsel %vm432_vm12, %v429_v35, %v431_v34  ;;  %v434_v41 = vsel %vm432_vm12, %v431_v34, %v429_v35  ;;  %503 = sbr.rel (%p6152_p7) target bundleno = 463 (0x1cf), region = 52 }
  0xaa   : > { %v435_v45 = vmul.f32 %v433_v40, %v7698_v30  ;;  %v436_v46 = vmul.f32 %v434_v41, %v7703_v31  ;;  %v492_v6 = vsel %vm10962_vm14, %v489_v47, %v469_v32  ;;  %v493_v48 = vsel %vm10962_vm14, %v490_v5, %v470_v33  ;;  %575 = vperm.xlu0 (!%p6152_p7), %6627, %v525_v63  }
  0xab   : > { %vm618_vm14 = vcmask (!%p6152_p7), 130048   ;;  %585 = vperm.xlu1 (!%p6152_p7), %6628, %v527_v0  }
  0xac   : > { %v494_v50 = vsel %vm473_vm4, %v435_v45, 0.0  ;;  %v495_v51 = vsel %vm473_vm4, %v436_v46, 0.0  ;;  %v6160_v56 = vpack.c.bf16 (!%p6152_p7), %v436_v46, %v493_v48  ;;  %v6163_v57 = vpack.c.bf16 (!%p6152_p7), %v435_v45, %v492_v6 }
  0xad   : > { %v496_v52 = vpack.c.bf16 %v494_v50, %v492_v6  ;;  %v497_v53 = vpack.c.bf16 %v495_v51, %v493_v48 }
  0xae   : > { %6161 = vmatprep.subr.msk.bf16.mxu0 (!%p6152_p7), %vm6159_vm13, %v6160_v56  ;;  %6439 = vmatprep.subr.msk.bf16.mxu1 (!%p6152_p7), %vm6159_vm13, %v6160_v56 }
  0xaf   : > { %498 = vst [vmem:[#allocation4 + $0x120] sm:$0xff] %v496_v52  ;;  %499 = vst [vmem:[#allocation4 + $0x128] sm:$0xff] %v497_v53  ;;  %6164 = vmatpush1.bf16.msk.msra.mxu0 (!%p6152_p7), %vm6159_vm13, %v6163_v57  ;;  %6440 = vmatpush1.bf16.msk.msra.mxu1 (!%p6152_p7), %vm6159_vm13, %v6163_v57 }
  0xb0   : > { %550 = vperm.xlu0 %6627, %v520_v8   ;;  %555 = vperm.xlu1 %6628, %v521_v10  }
  0xb2   : > { %6165 = vmatmul.mubr.msk.bf16.vlgmr.msra.gmra.mrb[0].mxu0 %vm618_vm14, %v6629_v59  ;;  %6168 = vmatmul.mubr.msk.bf16.vlgmr.msra.gmra.mrb[0].mxu1 %vm618_vm14, %v6630_v60 }
  0xb3   : > { %679 = vmatprep.mubr.bf16.mxu0 %v7457_v58  ;;  %709 = vmatprep.mubr.bf16.mxu1 %v7457_v58 }
  0xb4   : > { %560 = vperm.xlu0 %6627, %v522_v11   ;;  %565 = vperm.xlu1 %6628, %v523_v14  }
  0xb8   : > { %535 = vperm.xlu1 %6628, %v517_v19   ;;  %530 = vperm.xlu0 %6627, %v516_v22  }
  0xba   : > { %6166 = vmatmul.mubr.msk.bf16.gmra.mrb[4].mxu0 %vm618_vm14, %v6631_v4  ;;  %6169 = vmatmul.mubr.msk.bf16.gmra.mrb[4].mxu1 %vm618_vm14, %v6632_v7 }
  0xbb   : > { %689 = vmatprep.mubr.bf16.mxu0 %v7457_v58  ;;  %719 = vmatprep.mubr.bf16.mxu1 %v7457_v58 }
  0xbc   : > { %545 = vperm.xlu1 %6628, %v519_v23   ;;  %540 = vperm.xlu0 %6627, %v518_v24  }
  0xc2   : > { %6167 = vmatmul.mubr.msk.bf16.gmra.mrb[8].mxu0 %vm618_vm14, %v6633_v15  ;;  %6170 = vmatmul.mubr.msk.bf16.gmra.mrb[8].mxu1 %vm618_vm14, %v6634_v18 }
 0x125   : > { %v571_v25 = vpop.permute.xlu0 %570 }
 0x126   : > { %v7785_v28 = vpop.permute.xlu1 %580 }
 0x129   : > { %v576_v29 = vpop.permute.xlu0 %575 }
 0x12a   : > { %v7787_v32 = vpop.permute.xlu1 %585 }
 0x12f   : > { %v7789_v33 = vpop.permute.xlu0 %550  ;;  %v7791_v34 = vpop.permute.xlu1 %555 }
 0x133   : > { %v561_v35 = vpop.permute.xlu0 %560  ;;  %v566_v36 = vpop.permute.xlu1 %565 }
 0x137   : > { %v531_v39 = vpop.permute.xlu0 %530  ;;  %v536_v57 = vpop.permute.xlu1 %535 }
 0x13b   : > { %v541_v24 = vpop.permute.xlu0 %540 }
 0x185   : > { %v701_v40 = vpop.f32.mrb[0].mxu1  ;;  %v671_v41 = vpop.f32.mrb[0].mxu0 }
 0x186   : > { %v703_v43 = vpop.f32.mrb[1].mxu1  ;;  %v673_v44 = vpop.f32.mrb[1].mxu0  ;;  %v702_v45 = vadd.f32 %v701_v40, %v561_v35  ;;  %v672_v51 = vadd.f32 %v671_v41, %v531_v39 }
 0x187   : > { %v705_v46 = vpop.f32.mrb[2].mxu1  ;;  %v675_v47 = vpop.f32.mrb[2].mxu0  ;;  %v704_v5 = vadd.f32 %v703_v43, %v561_v35  ;;  %v674_v52 = vadd.f32 %v673_v44, %v531_v39 }
 0x188   : > { %v707_v6 = vpop.f32.mrb[3].mxu1  ;;  %v677_v48 = vpop.f32.mrb[3].mxu0  ;;  %v706_v50 = vadd.f32 %v705_v46, %v566_v36  ;;  %v6175_v53 = vmul.f32 -1.442695, %v702_v45  ;;  %6635 = vtanh.f32 %v672_v51  ;;  %v676_v35 = vadd.f32 %v675_v47, %v536_v57 }
 0x189   : > { %v6176_v56 = vmul.f32 -1.442695, %v704_v5  ;;  %v708_v61 = vadd.f32 %v707_v6, %v566_v36  ;;  %6637 = vtanh.f32 %v674_v52  ;;  %v678_v39 = vadd.f32 %v677_v48, %v536_v57 }
 0x18a   : > { %v6177_v58 = vmul.f32 -1.442695, %v706_v50  ;;  %6639 = vpow2.f32 %v6175_v53 }
 0x18b   : > { %6641 = vpow2.f32 %v6176_v56  ;;  %v6178_v22 = vmul.f32 -1.442695, %v708_v61 }
 0x18c   : > { %6643 = vpow2.f32 %v6177_v58 }
 0x18d   : > { %v711_v59 = vpop.f32.mrb[4].mxu1  ;;  %v681_v60 = vpop.f32.mrb[4].mxu0 }
 0x18e   : > { %v712_v62 = vadd.f32 %v711_v59, %v571_v25  ;;  %v713_v63 = vpop.f32.mrb[5].mxu1  ;;  %v683_v0 = vpop.f32.mrb[5].mxu0  ;;  %v682_v40 = vadd.f32 %v681_v60, %v541_v24 }
 0x18f   : > { %v714_v4 = vadd.f32 %v713_v63, %v571_v25  ;;  %v715_v7 = vpop.f32.mrb[6].mxu1  ;;  %v685_v8 = vpop.f32.mrb[6].mxu0  ;;  %v684_v44 = vadd.f32 %v683_v0, %v541_v24 }
 0x190   : > { %v6179_v10 = vmul.f32 -1.442695, %v712_v62  ;;  %v716_v11 = vadd.f32 %v715_v7, %v576_v29  ;;  %v717_v14 = vpop.f32.mrb[7].mxu1  ;;  %v7793_v15 = vpop.f32.mrb[7].mxu0 }
 0x191   : > { %v6180_v18 = vmul.f32 -1.442695, %v714_v4  ;;  %v718_v19 = vadd.f32 %v717_v14, %v576_v29  ;;  %v546_v25 = vpop.permute.xlu1 %545 }
 0x192   : > { %6645 = vpow2.f32 %v6179_v10  ;;  %v6181_v23 = vmul.f32 -1.442695, %v716_v11  ;;  %v7797_v6 = vpop.eup %6635  ;;  %v686_v47 = vadd.f32 %v685_v8, %v546_v25 }
 0x193   : > { %6647 = vpow2.f32 %v6180_v18  ;;  %v6182_v36 = vmul.f32 -1.442695, %v718_v19  ;;  %v7800_v52 = vpop.eup %6637 }
 0x194   : > { %6649 = vpow2.f32 %v6181_v23  ;;  %v7802_v57 = vpop.eup %6639 }
 0x195   : > { %6651 = vpow2.f32 %v6182_v36  ;;  %v691_v41 = vpop.f32.mrb[8].mxu0  ;;  %v721_v43 = vpop.f32.mrb[8].mxu1 }
 0x196   : > { %6653 = vpow2.f32 %v6178_v22  ;;  %v692_v45 = vadd.f32 %v691_v41, %v7789_v33  ;;  %v722_v29 = vadd.f32 %v721_v43, %v7785_v28  ;;  %v693_v46 = vpop.f32.mrb[9].mxu0  ;;  %v723_v5 = vpop.f32.mrb[9].mxu1 }
 0x197   : > { %6655 = vtanh.f32 %v676_v35  ;;  %v694_v48 = vadd.f32 %v693_v46, %v7789_v33  ;;  %v695_v50 = vpop.f32.mrb[10].mxu0  ;;  %v725_v51 = vpop.f32.mrb[10].mxu1  ;;  %v724_v33 = vadd.f32 %v723_v5, %v7785_v28 }
 0x198   : > { %6657 = vtanh.f32 %v678_v39  ;;  %v6171_v53 = vmul.f32 -1.442695, %v692_v45  ;;  %v697_v56 = vpop.f32.mrb[11].mxu0  ;;  %v6183_v58 = vmul.f32 -1.442695, %v722_v29  ;;  %v727_v59 = vpop.f32.mrb[11].mxu1  ;;  %v696_v0 = vadd.f32 %v695_v50, %v7791_v34 }
 0x199   : > { %6659 = vtanh.f32 %v682_v40  ;;  %v7804_v60 = vpop.eup %6641  ;;  %v6172_v61 = vmul.f32 -1.442695, %v694_v48  ;;  %v726_v8 = vadd.f32 %v725_v51, %v7787_v32  ;;  %v698_v14 = vadd.f32 %v697_v56, %v7791_v34 }
 0x19a   : > { %6661 = vtanh.f32 %v684_v44  ;;  %v7806_v62 = vpop.eup %6643  ;;  %v6184_v22 = vmul.f32 -1.442695, %v724_v33  ;;  %v728_v28 = vadd.f32 %v727_v59, %v7787_v32  ;;  %v6173_v35 = vmul.f32 -1.442695, %v696_v0 }
 0x19b   : > { %6663 = vtanh.f32 %v686_v47  ;;  %v6185_v39 = vmul.f32 -1.442695, %v726_v8  ;;  %v6174_v41 = vmul.f32 -1.442695, %v698_v14  ;;  %v688_v45 = vadd.f32 %v7793_v15, %v546_v25 }
 0x19c   : > { %v6646_v63 = vpop.eup %6645  ;;  %6665 = vpow2.f32 %v6171_v53  ;;  %v6186_v34 = vmul.f32 -1.442695, %v728_v28  ;;  %v766_v14 = vadd.f32 1.0, %v7802_v57 }
 0x19d   : > { %v6648_v4 = vpop.eup %6647  ;;  %v810_v7 = vadd.f32 1.0, %v6646_v63  ;;  %6667 = vpow2.f32 %v6183_v58 }
 0x19e   : > { %v6650_v10 = vpop.eup %6649  ;;  %v811_v11 = vadd.f32 1.0, %v6648_v4  ;;  %6669 = vpow2.f32 %v6172_v61 }
 0x19f   : > { %v6652_v18 = vpop.eup %6651  ;;  %6671 = vrcp.f32 %v810_v7  ;;  %v812_v19 = vadd.f32 1.0, %v6650_v10 }
 0x1a0   : > { %v7813_v23 = vpop.eup %6653  ;;  %6673 = vrcp.f32 %v811_v11  ;;  %v813_v24 = vadd.f32 1.0, %v6652_v18 }
 0x1a1   : > { %v6656_v36 = vpop.eup %6655  ;;  %6675 = vrcp.f32 %v812_v19 }
 0x1a2   : > { %v6658_v40 = vpop.eup %6657  ;;  %6677 = vrcp.f32 %v813_v24 }
 0x1a3   : > { %v6660_v43 = vpop.eup %6659  ;;  %6679 = vpow2.f32 %v6184_v22 }
 0x1a4   : > { %v7815_v44 = vpop.eup %6661  ;;  %6681 = vpow2.f32 %v6173_v35 }
 0x1a5   : > { %v7818_v32 = vpop.eup %6663  ;;  %6683 = vpow2.f32 %v6185_v39 }
 0x1a6   : > { %v6666_v29 = vpop.eup %6665  ;;  %6685 = vpow2.f32 %v6174_v41  ;;  %v767_v41 = vadd.f32 1.0, %v7804_v60 }
 0x1a7   : > { %v6668_v46 = vpop.eup %6667  ;;  %v762_v5 = vadd.f32 1.0, %v6666_v29  ;;  %6687 = vpow2.f32 %v6186_v34  ;;  %v768_v29 = vadd.f32 1.0, %v7806_v62 }
 0x1a8   : > { %v6670_v47 = vpop.eup %6669  ;;  %6689 = vtanh.f32 %v688_v45  ;;  %v814_v48 = vadd.f32 1.0, %v6668_v46 }
 0x1a9   : > { %v6672_v50 = vpop.eup %6671  ;;  %6691 = vrcp.f32 %v762_v5  ;;  %v763_v51 = vadd.f32 1.0, %v6670_v47  ;;  %v769_v47 = vadd.f32 1.0, %v7813_v23 }
 0x1aa   : > { %v6674_v53 = vpop.eup %6673  ;;  %v834_v56 = vmul.f32 %v6672_v50, %v7797_v6  ;;  %6693 = vrcp.f32 %v814_v48 }
 0x1ab   : > { %v6676_v15 = vpop.eup %6675  ;;  %v835_v25 = vmul.f32 %v6674_v53, %v7800_v52  ;;  %6695 = vrcp.f32 %v763_v51 }
 0x1ac   : > { %v6678_v58 = vpop.eup %6677  ;;  %6697 = vtanh.f32 %v834_v56  ;;  %v836_v59 = vmul.f32 %v6676_v15, %v6656_v36 }
 0x1ad   : > { %v6680_v61 = vpop.eup %6679  ;;  %6699 = vtanh.f32 %v835_v25  ;;  %v837_v33 = vmul.f32 %v6678_v58, %v6658_v40 }
 0x1ae   : > { %v6682_v63 = vpop.eup %6681  ;;  %6701 = vtanh.f32 %v836_v59  ;;  %v815_v0 = vadd.f32 1.0, %v6680_v61 }
 0x1af   : > { %v6684_v4 = vpop.eup %6683  ;;  %6703 = vtanh.f32 %v837_v33  ;;  %v764_v7 = vadd.f32 1.0, %v6682_v63 }
 0x1b0   : > { %v6686_v8 = vpop.eup %6685  ;;  %6705 = vrcp.f32 %v815_v0  ;;  %v816_v6 = vadd.f32 1.0, %v6684_v4 }
 0x1b1   : > { %v6688_v10 = vpop.eup %6687  ;;  %6707 = vrcp.f32 %v764_v7  ;;  %v765_v11 = vadd.f32 1.0, %v6686_v8 }
 0x1b2   : > { %v6690_v52 = vpop.eup %6689  ;;  %6709 = vrcp.f32 %v816_v6  ;;  %v817_v18 = vadd.f32 1.0, %v6688_v10 }
 0x1b3   : > { %v6692_v19 = vpop.eup %6691  ;;  %6711 = vrcp.f32 %v765_v11 }
 0x1b4   : > { %v6694_v22 = vpop.eup %6693  ;;  %6713 = vrcp.f32 %v817_v18 }
 0x1b5   : > { %v6696_v28 = vpop.eup %6695  ;;  %v838_v24 = vmul.f32 %v6694_v22, %v6660_v43  ;;  %6715 = vrcp.f32 %v766_v14 }
 0x1b6   : > { %v6698_v35 = vpop.eup %6697 }
 0x1b7   : > { %v6700_v36 = vpop.eup %6699  ;;  %850 = vst [vmem:[#allocation2] sm:$0xff] %v6698_v35  ;;  %v858_v39 = vmul.f32 %v6698_v35, %v6692_v19  ;;  %6717 = vtanh.f32 %v838_v24 }
 0x1b8   : > { %v6702_v40 = vpop.eup %6701  ;;  %851 = vst [vmem:[#allocation2 + $0x8] sm:$0xff] %v6700_v36  ;;  %v859_v34 = vmul.f32 %v6700_v36, %v6696_v28  ;;  %6719 = vrcp.f32 %v767_v41 }
 0x1b9   : > { %v6704_v57 = vpop.eup %6703  ;;  %852 = vst [vmem:[#allocation2 + $0x10] sm:$0xff] %v6702_v40  ;;  %866 = vst [vmem:[#allocation3] sm:$0xff] %v858_v39 }
 0x1ba   : > { %v6706_v45 = vpop.eup %6705  ;;  %853 = vst [vmem:[#allocation2 + $0x18] sm:$0xff] %v6704_v57  ;;  %867 = vst [vmem:[#allocation3 + $0x8] sm:$0xff] %v859_v34 }
 0x1bb   : > { %v6708_v43 = vpop.eup %6707  ;;  %v839_v46 = vmul.f32 %v6706_v45, %v7815_v44 }
 0x1bc   : > { %v6710_v5 = vpop.eup %6709  ;;  %v860_v48 = vmul.f32 %v6708_v43, %v6702_v40 }
 0x1bd   : > { %v6712_v50 = vpop.eup %6711  ;;  %6721 = vtanh.f32 %v839_v46  ;;  %v840_v60 = vmul.f32 %v6710_v5, %v7818_v32 }
 0x1be   : > { %v6714_v51 = vpop.eup %6713  ;;  %6723 = vrcp.f32 %v768_v29  ;;  %868 = vst [vmem:[#allocation3 + $0x10] sm:$0xff] %v860_v48  ;;  %v861_v53 = vmul.f32 %v6712_v50, %v6704_v57 }
 0x1bf   : > { %6725 = vtanh.f32 %v840_v60  ;;  %v841_v62 = vmul.f32 %v6714_v51, %v6690_v52  ;;  %v6716_v56 = vpop.eup %6715 }
 0x1c0   : > { %6727 = vrcp.f32 %v769_v47  ;;  %869 = vst [vmem:[#allocation3 + $0x18] sm:$0xff] %v861_v53 }
 0x1c1   : > { %v6718_v15 = vpop.eup %6717  ;;  %6729 = vtanh.f32 %v841_v62 }
 0x1c2   : > { %854 = vst [vmem:[#allocation2 + $0x20] sm:$0xff] %v6718_v15  ;;  %v862_v44 = vmul.f32 %v6718_v15, %v6716_v56  ;;  %v6720_v23 = vpop.eup %6719 }
 0x1c4   : > { %870 = vst [vmem:[#allocation3 + $0x20] sm:$0xff] %v862_v44 }
 0x1c7   : > { %v6722_v25 = vpop.eup %6721 }
 0x1c8   : > { %v6724_v58 = vpop.eup %6723  ;;  %855 = vst [vmem:[#allocation2 + $0x28] sm:$0xff] %v6722_v25  ;;  %v863_v59 = vmul.f32 %v6722_v25, %v6720_v23 }
 0x1c9   : > { %v6726_v32 = vpop.eup %6725 }
 0x1ca   : > { %v6728_v61 = vpop.eup %6727  ;;  %871 = vst [vmem:[#allocation3 + $0x28] sm:$0xff] %v863_v59  ;;  %856 = vst [vmem:[#allocation2 + $0x30] sm:$0xff] %v6726_v32  ;;  %v864_v33 = vmul.f32 %v6726_v32, %v6724_v58 }
 0x1cb   : > { %v6730_v63 = vpop.eup %6729 }
 0x1cc   : > { %872 = vst [vmem:[#allocation3 + $0x30] sm:$0xff] %v864_v33  ;;  %857 = vst [vmem:[#allocation2 + $0x38] sm:$0xff] %v6730_v63  ;;  %v865_v0 = vmul.f32 %v6730_v63, %v6728_v61 }
 0x1ce   : > { %873 = vst [vmem:[#allocation3 + $0x38] sm:$0xff] %v865_v0 }
 0x1cf PF: > { %p6187_p8 = scmp.eq.s32.totalorder %s7430_s24, 0 }
 0x1d0   : > { %v911_v4 = vld [vmem:[#allocation4 + $0x8] sm:$0xff] (!%p6187_p8)  ;;  %v910_v7 = vld [vmem:[#allocation4] sm:$0xff] (!%p6187_p8)  ;;  %v913_v8 = vld [vmem:[#allocation4 + $0x18] sm:$0xff] (!%p6187_p8)  ;;  %v7458_v6 = vmov (!%p6187_p8), 0   ;;  %vm1068_vm13 = vcmask (!%p6187_p8), 392192  }
 0x1d1   : > { %877 = sbr.rel (%p6187_p8) target bundleno = 849 (0x351), region = 56  ;;  %1093 = vmatprep.subr.bf16.mxu1 (!%p6187_p8), %v911_v4  ;;  %1238 = vmatprep.mubr.bf16.mxu0 (!%p6187_p8), %v7458_v6  ;;  %v912_v10 = vld [vmem:[#allocation4 + $0x10] sm:$0xff] (!%p6187_p8)  ;;  %v915_v11 = vld [vmem:[#allocation4 + $0x28] sm:$0xff] (!%p6187_p8)  ;;  %v914_v52 = vld [vmem:[#allocation4 + $0x20] sm:$0xff] (!%p6187_p8) }
 0x1d2   : > { %1094 = vmatpush1.bf16.msra.mxu1 (!%p6187_p8), %v910_v7  ;;  %6731 = vset.pattern.permute.xlu0 (!%p6187_p8), %v7458_v6  ;;  %v917_v14 = vld [vmem:[#allocation4 + $0x38] sm:$0xff] (!%p6187_p8)  ;;  %v943_v18 = vld [vmem:[#allocation4 + $0x108] sm:$0xff] (!%p6187_p8)  ;;  %v942_v19 = vld [vmem:[#allocation4 + $0x100] sm:$0xff] (!%p6187_p8) }
 0x1d3   : > { %1095 = vmatprep.subr.bf16.mxu1 (!%p6187_p8), %v913_v8  ;;  %6732 = vset.pattern.permute.xlu1 (!%p6187_p8), %v7458_v6  ;;  %v945_v22 = vld [vmem:[#allocation4 + $0x118] sm:$0xff] (!%p6187_p8)  ;;  %v916_v28 = vld [vmem:[#allocation4 + $0x30] sm:$0xff] (!%p6187_p8)  ;;  %v919_v35 = vld [vmem:[#allocation4 + $0x48] sm:$0xff] (!%p6187_p8) }
 0x1d4   : > { %1206 = vmatprep.subr.bf16.mxu0 (!%p6187_p8), %v943_v18  ;;  %v944_v24 = vld [vmem:[#allocation4 + $0x110] sm:$0xff] (!%p6187_p8)  ;;  %v918_v39 = vld [vmem:[#allocation4 + $0x40] sm:$0xff] (!%p6187_p8)  ;;  %v921_v34 = vld [vmem:[#allocation4 + $0x58] sm:$0xff] (!%p6187_p8) }
 0x1d5   : > { %1207 = vmatpush1.bf16.msra.mxu0 (!%p6187_p8), %v942_v19  ;;  %v947_v36 = vld [vmem:[#allocation4 + $0x128] sm:$0xff] (!%p6187_p8)  ;;  %v6736_v40 = vld [vmem:[%s10956_s3 + $0x4] ss:$12 sps:$4 sm:$0xff] (!%p6187_p8)   ;;  %v925_v46 = vld [vmem:[#allocation4 + $0x78] sm:$0xff] (!%p6187_p8) }
 0x1d6   : > { %1096 = vmatpush1.bf16.msra.mxu1 (!%p6187_p8), %v912_v10  ;;  %1208 = vmatprep.subr.bf16.mxu0 (!%p6187_p8), %v945_v22  ;;  %v946_v41 = vld [vmem:[#allocation4 + $0x120] sm:$0xff] (!%p6187_p8)  ;;  %v6733_v57 = vld [vmem:[%s10956_s3 + $0x8] ss:$12 sps:$4 sm:$0xff] (!%p6187_p8)   ;;  %v929_v53 = vld [vmem:[#allocation4 + $0x98] sm:$0xff] (!%p6187_p8) }
 0x1d7   : > { %1097 = vmatprep.subr.bf16.mxu1 (!%p6187_p8), %v915_v11  ;;  %1125 = vmatprep.mubr.bf16.mxu1 (!%p6187_p8), %v6736_v40  ;;  %v920_v45 = vld [vmem:[#allocation4 + $0x50] sm:$0xff] (!%p6187_p8)  ;;  %v923_v29 = vld [vmem:[#allocation4 + $0x68] sm:$0xff] (!%p6187_p8)  ;;  %v922_v43 = vld [vmem:[#allocation4 + $0x60] sm:$0xff] (!%p6187_p8) }
 0x1d8   : > { %v6737_v5 = vld [vmem:[%s10956_s3 + $0x20] ss:$12 sps:$4 sm:$0xff]   ;;  %v924_v47 = vld [vmem:[#allocation4 + $0x70] sm:$0xff]  ;;  %v6741_v62 = vld [vmem:[%s10956_s3 + $0x38] ss:$12 sps:$4 sm:$0xff]  }
 0x1d9   : > { %1209 = vmatpush1.bf16.msra.mxu0 %v944_v24  ;;  %v927_v48 = vld [vmem:[#allocation4 + $0x88] sm:$0xff]  ;;  %v926_v50 = vld [vmem:[#allocation4 + $0x80] sm:$0xff]  ;;  %v1441_v51 = vld [vmem:[%s10957_s4 + $0x50] sm:$0xff] }
 0x1da   : > { %1098 = vmatpush1.bf16.msra.mxu1 %v914_v52  ;;  %1210 = vmatprep.subr.bf16.mxu0 %v947_v36  ;;  %v1439_v60 = vld [vmem:[%s10957_s4 + $0x40] sm:$0xff]  ;;  %v1440_v56 = vld [vmem:[%s10957_s4 + $0x48] sm:$0xff]  ;;  %v1442_v15 = vld [vmem:[%s10957_s4 + $0x58] sm:$0xff] }
 0x1db   : > { %1099 = vmatprep.subr.bf16.mxu1 %v917_v14  ;;  %1445 = vperm.xlu0 %6731, %v1439_v60   ;;  %v928_v44 = vld [vmem:[#allocation4 + $0x90] sm:$0xff]  ;;  %v931_v23 = vld [vmem:[#allocation4 + $0xa8] sm:$0xff]  ;;  %v1519_v25 = vld [vmem:[%s10957_s4 + $0x60] sm:$0xff] }
 0x1dc   : > { %1455 = vperm.xlu1 %6732, %v1441_v51   ;;  %v1520_v58 = vld [vmem:[%s10957_s4 + $0x68] sm:$0xff]  ;;  %v930_v59 = vld [vmem:[#allocation4 + $0xa0] sm:$0xff]  ;;  %v933_v32 = vld [vmem:[#allocation4 + $0xb8] sm:$0xff] }
 0x1dd   : > { %1211 = vmatpush1.bf16.msra.mxu0 %v946_v41  ;;  %v6745_v61 = vld [vmem:[%s10956_s3 + $0x50] ss:$12 sps:$4 sm:$0xff]   ;;  %v935_v4 = vld [vmem:[#allocation4 + $0xc8] sm:$0xff]  ;;  %v1319_v7 = vld [vmem:[%s10957_s4] sm:$0xff] }
 0x1de   : > { %1100 = vmatpush1.bf16.msra.mxu1 %v916_v28  ;;  %v1521_v33 = vld [vmem:[%s10957_s4 + $0x70] sm:$0xff]  ;;  %v1522_v63 = vld [vmem:[%s10957_s4 + $0x78] sm:$0xff]  ;;  %v1320_v8 = vld [vmem:[%s10957_s4 + $0x8] sm:$0xff] }
 0x1df   : > { %1101 = vmatprep.subr.bf16.mxu1 %v919_v35  ;;  %1450 = vperm.xlu0 %6731, %v1440_v56   ;;  %v932_v0 = vld [vmem:[#allocation4 + $0xb0] sm:$0xff]  ;;  %v934_v10 = vld [vmem:[#allocation4 + $0xc0] sm:$0xff]  ;;  %v937_v11 = vld [vmem:[#allocation4 + $0xd8] sm:$0xff] }
 0x1e0   : > { %6212 = vmatmul.mubr.msk.bf16.vlgmr.msra.gmra.mrb[0].mxu0 %vm1068_vm13, %v6733_v57  ;;  %1460 = vperm.xlu1 %6732, %v1442_v15   ;;  %v6749_v52 = vld [vmem:[%s10956_s3 + $0x68] ss:$12 sps:$4 sm:$0xff]   ;;  %v1322_v18 = vld [vmem:[%s10957_s4 + $0x18] sm:$0xff]  ;;  %v1359_v28 = vld [vmem:[%s10957_s4 + $0x20] sm:$0xff] }
 0x1e1   : > { %1248 = vmatprep.mubr.bf16.mxu0 %v7458_v6  ;;  %v1321_v14 = vld [vmem:[%s10957_s4 + $0x10] sm:$0xff]  ;;  %v939_v22 = vld [vmem:[#allocation4 + $0xe8] sm:$0xff]  ;;  %v938_v35 = vld [vmem:[#allocation4 + $0xe0] sm:$0xff] }
 0x1e2   : > { %1102 = vmatpush1.bf16.msra.mxu1 %v918_v39  ;;  %v936_v19 = vld [vmem:[#allocation4 + $0xd0] sm:$0xff]  ;;  %v1360_v24 = vld [vmem:[%s10957_s4 + $0x28] sm:$0xff]  ;;  %v941_v36 = vld [vmem:[#allocation4 + $0xf8] sm:$0xff] }
 0x1e3   : > { %1103 = vmatprep.subr.bf16.mxu1 %v921_v34  ;;  %1525 = vperm.xlu0 %6731, %v1519_v25   ;;  %v6753_v39 = vld [vmem:[%s10956_s3 + $0x80] ss:$12 sps:$4 sm:$0xff]   ;;  %v1361_v40 = vld [vmem:[%s10957_s4 + $0x30] sm:$0xff]  ;;  %v1362_v41 = vld [vmem:[%s10957_s4 + $0x38] sm:$0xff] }
 0x1e4   : > { %1530 = vperm.xlu1 %6732, %v1520_v58   ;;  %v940_v34 = vld [vmem:[#allocation4 + $0xf0] sm:$0xff]  ;;  %v6734_v57 = vld [vmem:[%s10956_s3] ss:$12 sps:$4 sm:$0xff]   ;;  %v6754_v51 = vld [vmem:[%s10956_s3 + $0x7c] ss:$12 sps:$4 sm:$0xff]  }
 0x1e5   : > { %v6752_v60 = vld [vmem:[%s10956_s3 + $0x60] ss:$12 sps:$4 sm:$0xff]   ;;  %v6760_v56 = vld [vmem:[%s10956_s3 + $0x90] ss:$12 sps:$4 sm:$0xff]  }
 0x1e6   : > { %1104 = vmatpush1.bf16.msra.mxu1 %v920_v45  ;;  %v6738_v45 = vld [vmem:[%s10956_s3 + $0x1c] ss:$12 sps:$4 sm:$0xff]   ;;  %v6762_v15 = vld [vmem:[%s10956_s3 + $0xac] ss:$12 sps:$4 sm:$0xff]  }
 0x1e7   : > { %1105 = vmatprep.subr.bf16.mxu1 %v923_v29  ;;  %1535 = vperm.xlu0 %6731, %v1521_v33   ;;  %v6757_v29 = vld [vmem:[%s10956_s3 + $0x98] ss:$12 sps:$4 sm:$0xff]  }
 0x1e8   : > { %6213 = vmatmul.mubr.msk.bf16.gmra.mrb[4].mxu0 %vm1068_vm13, %v6737_v5  ;;  %1540 = vperm.xlu1 %6732, %v1522_v63   ;;  %v6761_v5 = vld [vmem:[%s10956_s3 + $0xb0] ss:$12 sps:$4 sm:$0xff]  }
 0x1e9   : > { %1258 = vmatprep.mubr.bf16.mxu0 %v7458_v6 }
 0x1ea   : > { %1106 = vmatpush1.bf16.msra.mxu1 %v922_v43  ;;  %v6740_v43 = vld [vmem:[%s10956_s3 + $0x18] ss:$12 sps:$4 sm:$0xff]  }
 0x1eb   : > { %1107 = vmatprep.subr.bf16.mxu1 %v925_v46  ;;  %1325 = vperm.xlu0 %6731, %v1319_v7   ;;  %v6742_v46 = vld [vmem:[%s10956_s3 + $0x34] ss:$12 sps:$4 sm:$0xff]  }
 0x1ec   : > { %1330 = vperm.xlu1 %6732, %v1320_v8  }
 0x1ee   : > { %1108 = vmatpush1.bf16.msra.mxu1 %v924_v47  ;;  %v6744_v47 = vld [vmem:[%s10956_s3 + $0x30] ss:$12 sps:$4 sm:$0xff]  }
 0x1ef   : > { %1109 = vmatprep.subr.bf16.mxu1 %v927_v48  ;;  %1335 = vperm.xlu0 %6731, %v1321_v14   ;;  %v6746_v48 = vld [vmem:[%s10956_s3 + $0x4c] ss:$12 sps:$4 sm:$0xff]  }
 0x1f0   : > { %6214 = vmatmul.mubr.msk.bf16.gmra.mrb[8].mxu0 %vm1068_vm13, %v6741_v62  ;;  %1340 = vperm.xlu1 %6732, %v1322_v18   ;;  %v6758_v62 = vld [vmem:[%s10956_s3 + $0x94] ss:$12 sps:$4 sm:$0xff]  }
 0x1f1   : > { %1268 = vmatprep.mubr.bf16.mxu0 %v7458_v6 }
 0x1f2   : > { %1110 = vmatpush1.bf16.msra.mxu1 %v926_v50  ;;  %v6750_v50 = vld [vmem:[%s10956_s3 + $0x64] ss:$12 sps:$4 sm:$0xff]  }
 0x1f3   : > { %1111 = vmatprep.subr.bf16.mxu1 %v929_v53  ;;  %1365 = vperm.xlu0 %6731, %v1359_v28   ;;  %v6756_v53 = vld [vmem:[%s10956_s3 + $0x78] ss:$12 sps:$4 sm:$0xff]  }
 0x1f4   : > { %1370 = vperm.xlu1 %6732, %v1360_v24  }
 0x1f6   : > { %1112 = vmatpush1.bf16.msra.mxu1 %v928_v44  ;;  %v6764_v44 = vld [vmem:[%s10956_s3 + $0xa8] ss:$12 sps:$4 sm:$0xff]  }
 0x1f7   : > { %1113 = vmatprep.subr.bf16.mxu1 %v931_v23  ;;  %1375 = vperm.xlu0 %6731, %v1361_v40  }
 0x1f8   : > { %6215 = vmatmul.mubr.msk.bf16.gmra.mrb[12].mxu0 %vm1068_vm13, %v6745_v61  ;;  %1380 = vperm.xlu1 %6732, %v1362_v41  }
 0x1f9   : > { %1278 = vmatprep.mubr.bf16.mxu0 %v7458_v6 }
 0x1fa   : > { %1114 = vmatpush1.bf16.msra.mxu1 %v930_v59 }
 0x1fb   : > { %1115 = vmatprep.subr.bf16.mxu1 %v933_v32 }
 0x1fe   : > { %1116 = vmatpush1.bf16.msra.mxu1 %v932_v0 }
 0x1ff   : > { %1117 = vmatprep.subr.bf16.mxu1 %v935_v4 }
 0x200   : > { %6216 = vmatmul.mubr.msk.bf16.gmra.mrb[16].mxu0 %vm1068_vm13, %v6749_v52 }
 0x201   : > { %1288 = vmatprep.mubr.bf16.mxu0 %v7458_v6 }
 0x202   : > { %1118 = vmatpush1.bf16.msra.mxu1 %v934_v10 }
 0x203   : > { %1119 = vmatprep.subr.bf16.mxu1 %v937_v11 }
 0x206   : > { %1120 = vmatpush1.bf16.msra.mxu1 %v936_v19 }
 0x207   : > { %1121 = vmatprep.subr.bf16.mxu1 %v939_v22 }
 0x208   : > { %6217 = vmatmul.mubr.msk.bf16.gmra.mrb[20].mxu0 %vm1068_vm13, %v6753_v39 }
 0x209   : > { %1298 = vmatprep.mubr.bf16.mxu0 %v7458_v6 }
 0x20a   : > { %1122 = vmatpush1.bf16.msra.mxu1 %v938_v35 }
 0x20b   : > { %1123 = vmatprep.subr.bf16.mxu1 %v941_v36 }
 0x20e   : > { %1124 = vmatpush1.bf16.msra.mxu1 %v940_v34 }
 0x210   : > { %6218 = vmatmul.mubr.msk.bf16.gmra.mrb[24].mxu0 %vm1068_vm13, %v6757_v29 }
 0x211   : > { %1126 = vmatmul.mubr.bf16.vlgmr.msra.gmra.mrb[0].mxu1 %v6734_v57  ;;  %1308 = vmatprep.mubr.bf16.mxu0 %v7458_v6  ;;  %v6748_v6 = vld [vmem:[%s10956_s3 + $0x48] ss:$12 sps:$4 sm:$0xff]  }
 0x212   : > { %1135 = vmatprep.mubr.bf16.mxu1 %v6738_v45 }
 0x218   : > { %6219 = vmatmul.mubr.msk.bf16.gmra.mrb[28].mxu0 %vm1068_vm13, %v6761_v5 }
 0x219   : > { %1136 = vmatmul.mubr.bf16.gmra.mrb[4].mxu1 %v6740_v43 }
 0x21a   : > { %1145 = vmatprep.mubr.bf16.mxu1 %v6742_v46 }
 0x221   : > { %1146 = vmatmul.mubr.bf16.gmra.mrb[8].mxu1 %v6744_v47 }
 0x222   : > { %1155 = vmatprep.mubr.bf16.mxu1 %v6746_v48 }
 0x229   : > { %1156 = vmatmul.mubr.bf16.gmra.mrb[12].mxu1 %v6748_v6 }
 0x22a   : > { %1165 = vmatprep.mubr.bf16.mxu1 %v6750_v50 }
 0x231   : > { %1166 = vmatmul.mubr.bf16.gmra.mrb[16].mxu1 %v6752_v60 }
 0x232   : > { %1175 = vmatprep.mubr.bf16.mxu1 %v6754_v51 }
 0x239   : > { %1176 = vmatmul.mubr.bf16.gmra.mrb[20].mxu1 %v6756_v53 }
 0x23a   : > { %1185 = vmatprep.mubr.bf16.mxu1 %v6758_v62 }
 0x241   : > { %1186 = vmatmul.mubr.bf16.gmra.mrb[24].mxu1 %v6760_v56 }
 0x242   : > { %1195 = vmatprep.mubr.bf16.mxu1 %v6762_v15 }
 0x249   : > { %1196 = vmatmul.mubr.bf16.gmra.mrb[28].mxu1 %v6764_v44 }
 0x25a   : > { %v7983_v41 = vpop.permute.xlu0 %1445 }
 0x25b   : > { %v7985_v43 = vpop.permute.xlu1 %1455 }
 0x25e   : > { %v7993_v60 = vpop.permute.xlu0 %1450 }
 0x25f   : > { %v7997_v62 = vpop.permute.xlu1 %1460 }
 0x263   : > { %v8007_v55 = vpop.permute.xlu1 %1530 }
 0x267   : > { %v8013_v42 = vpop.permute.xlu1 %1540 }
 0x26b   : > { %v1331_v17 = vpop.permute.xlu1 %1330 }
 0x26f   : > { %v1341_v16 = vpop.permute.xlu1 %1340 }
 0x2b3   : > { %v1240_v23 = vpop.f32.mrb[0].mxu0 }
 0x2b4   : > { %v1242_v25 = vpop.f32.mrb[1].mxu0 }
 0x2b5   : > { %v1244_v58 = vpop.f32.mrb[2].mxu0 }
 0x2b6   : > { %v1246_v59 = vpop.f32.mrb[3].mxu0 }
 0x2bb   : > { %v1250_v32 = vpop.f32.mrb[4].mxu0 }
 0x2bc   : > { %v1252_v61 = vpop.f32.mrb[5].mxu0 }
 0x2bd   : > { %v1254_v33 = vpop.f32.mrb[6].mxu0 }
 0x2be   : > { %v1256_v63 = vpop.f32.mrb[7].mxu0 }
 0x2c3   : > { %v1260_v0 = vpop.f32.mrb[8].mxu0 }
 0x2c4   : > { %v1262_v4 = vpop.f32.mrb[9].mxu0 }
 0x2c5   : > { %v1264_v7 = vpop.f32.mrb[10].mxu0 }
 0x2c6   : > { %v1266_v8 = vpop.f32.mrb[11].mxu0 }
 0x2cb   : > { %v1270_v10 = vpop.f32.mrb[12].mxu0 }
 0x2cc   : > { %v1272_v11 = vpop.f32.mrb[13].mxu0 }
 0x2cd   : > { %v1274_v52 = vpop.f32.mrb[14].mxu0 }
 0x2ce   : > { %v1276_v14 = vpop.f32.mrb[15].mxu0 }
 0x2d3   : > { %v7967_v18 = vpop.f32.mrb[16].mxu0 }
 0x2d4   : > { %v7969_v19 = vpop.f32.mrb[17].mxu0 }
 0x2d5   : > { %v7971_v22 = vpop.f32.mrb[18].mxu0 }
 0x2d6   : > { %v7973_v28 = vpop.f32.mrb[19].mxu0 }
 0x2db   : > { %v7975_v24 = vpop.f32.mrb[20].mxu0 }
 0x2dc   : > { %v7977_v35 = vpop.f32.mrb[21].mxu0 }
 0x2dd   : > { %v7979_v36 = vpop.f32.mrb[22].mxu0 }
 0x2de   : > { %v7981_v39 = vpop.f32.mrb[23].mxu0 }
 0x2e3   : > { %v7987_v48 = vpop.f32.mrb[24].mxu0 }
 0x2e4   : > { %v1127_v40 = vpop.f32.mrb[0].mxu1  ;;  %v7989_v6 = vpop.f32.mrb[25].mxu0 }
 0x2e5   : > { %v1241_v34 = vadd.f32 %v1240_v23, %v1127_v40  ;;  %v1129_v57 = vpop.f32.mrb[1].mxu1  ;;  %v7991_v50 = vpop.f32.mrb[26].mxu0 }
 0x2e6   : > { %v1243_v45 = vadd.f32 %v1242_v25, %v1129_v57  ;;  %v1131_v29 = vpop.f32.mrb[2].mxu1  ;;  %v7995_v51 = vpop.f32.mrb[27].mxu0 }
 0x2e7   : > { %v1245_v46 = vadd.f32 %v1244_v58, %v1131_v29  ;;  %v1133_v5 = vpop.f32.mrb[3].mxu1  ;;  %v8001_v57 = vpop.permute.xlu0 %1525 }
 0x2e8   : > { %v1247_v47 = vadd.f32 %v1246_v59, %v1133_v5 }
 0x2eb   : > { %v7999_v40 = vpop.f32.mrb[28].mxu0 }
 0x2ec   : > { %v1137_v53 = vpop.f32.mrb[4].mxu1  ;;  %v8003_v29 = vpop.f32.mrb[29].mxu0 }
 0x2ed   : > { %v1251_v56 = vadd.f32 %v1250_v32, %v1137_v53  ;;  %v1139_v15 = vpop.f32.mrb[5].mxu1  ;;  %v8005_v5 = vpop.f32.mrb[30].mxu0 }
 0x2ee   : > { %v1253_v44 = vadd.f32 %v1252_v61, %v1139_v15  ;;  %v1141_v23 = vpop.f32.mrb[6].mxu1  ;;  %v8009_v54 = vpop.f32.mrb[31].mxu0 }
 0x2ef   : > { %v1255_v25 = vadd.f32 %v1254_v33, %v1141_v23  ;;  %v1143_v58 = vpop.f32.mrb[7].mxu1  ;;  %v8011_v33 = vpop.permute.xlu0 %1535 }
 0x2f0   : > { %v1257_v59 = vadd.f32 %v1256_v63, %v1143_v58 }
 0x2f3   : > { %v1326_v37 = vpop.permute.xlu0 %1325 }
 0x2f4   : > { %v1147_v49 = vpop.f32.mrb[8].mxu1 }
 0x2f5   : > { %v1261_v32 = vadd.f32 %v1260_v0, %v1147_v49  ;;  %v1149_v53 = vpop.f32.mrb[9].mxu1 }
 0x2f6   : > { %v1263_v61 = vadd.f32 %v1262_v4, %v1149_v53  ;;  %v1151_v15 = vpop.f32.mrb[10].mxu1  ;;  %v1343_v4 = vadd.f32 %v1326_v37, %v1241_v34  ;;  %v1371_v34 = vpop.permute.xlu1 %1370 }
 0x2f7   : > { %v1265_v63 = vadd.f32 %v1264_v7, %v1151_v15  ;;  %v1153_v23 = vpop.f32.mrb[11].mxu1  ;;  %v1344_v7 = vadd.f32 %v1326_v37, %v1243_v45  ;;  %v1336_v15 = vpop.permute.xlu0 %1335  ;;  %v1350_v37 = vadd.f32 %v1341_v16, %v1257_v59 }
 0x2f8   : > { %v1267_v58 = vadd.f32 %v1266_v8, %v1153_v23  ;;  %v1345_v8 = vadd.f32 %v1331_v17, %v1245_v46  ;;  %v1346_v23 = vadd.f32 %v1331_v17, %v1247_v47  ;;  %6765 = vtanh.f32 %v1343_v4 }
 0x2f9   : > { %v1347_v31 = vadd.f32 %v1336_v15, %v1251_v56  ;;  %6767 = vtanh.f32 %v1344_v7 }
 0x2fa   : > { %6769 = vtanh.f32 %v1345_v8 }
 0x2fb   : > { %6771 = vtanh.f32 %v1346_v23 }
 0x2fc   : > { %v1157_v38 = vpop.f32.mrb[12].mxu1  ;;  %6773 = vtanh.f32 %v1347_v31 }
 0x2fd   : > { %v8015_v21 = vadd.f32 %v1270_v10, %v1157_v38  ;;  %v1159_v20 = vpop.f32.mrb[13].mxu1  ;;  %v1348_v10 = vadd.f32 %v1336_v15, %v1253_v44 }
 0x2fe   : > { %v8017_v27 = vadd.f32 %v1272_v11, %v1159_v20  ;;  %v1161_v26 = vpop.f32.mrb[14].mxu1  ;;  %v1366_v20 = vpop.permute.xlu0 %1365 }
 0x2ff   : > { %v8019_v49 = vadd.f32 %v1274_v52, %v1161_v26  ;;  %v1163_v0 = vpop.f32.mrb[15].mxu1  ;;  %v1349_v26 = vadd.f32 %v1341_v16, %v1255_v25  ;;  %v1383_v47 = vadd.f32 %v1366_v20, %v1261_v32  ;;  %6775 = vtanh.f32 %v1348_v10 }
 0x300   : > { %v8021_v53 = vadd.f32 %v1276_v14, %v1163_v0  ;;  %v1384_v44 = vadd.f32 %v1366_v20, %v1263_v61  ;;  %v1386_v0 = vadd.f32 %v1371_v34, %v1267_v58 }
 0x301   : > { %6777 = vtanh.f32 %v1349_v26  ;;  %v6220_v4 = vmul.f32 -1.442695, %v1383_v47 }
 0x302   : > { %6779 = vtanh.f32 %v1350_v37  ;;  %v8031_v7 = vpop.permute.xlu0 %1375  ;;  %v8034_v15 = vpop.eup %6765  ;;  %v6223_v23 = vmul.f32 -1.442695, %v1386_v0 }
 0x303   : > { %v8037_v58 = vpop.eup %6767 }
 0x304   : > { %v1167_v38 = vpop.f32.mrb[16].mxu1 }
 0x305   : > { %v1281_v11 = vadd.f32 %v7967_v18, %v1167_v38  ;;  %v1169_v30 = vpop.f32.mrb[17].mxu1 }
 0x306   : > { %v1283_v52 = vadd.f32 %v7969_v19, %v1169_v30  ;;  %v1171_v14 = vpop.f32.mrb[18].mxu1  ;;  %v1385_v19 = vadd.f32 %v1371_v34, %v1265_v63 }
 0x307   : > { %v1463_v17 = vadd.f32 %v7983_v41, %v1281_v11  ;;  %v1285_v45 = vadd.f32 %v7971_v22, %v1171_v14  ;;  %v1173_v46 = vpop.f32.mrb[19].mxu1  ;;  %v8041_v11 = vpop.eup %6769 }
 0x308   : > { %v1464_v56 = vadd.f32 %v7983_v41, %v1283_v52  ;;  %v1287_v18 = vadd.f32 %v7973_v28, %v1173_v46  ;;  %v6221_v41 = vmul.f32 -1.442695, %v1384_v44  ;;  %v6222_v63 = vmul.f32 -1.442695, %v1385_v19  ;;  %v8047_v52 = vpop.eup %6771 }
 0x309   : > { %v6228_v25 = vmul.f32 -1.442695, %v1463_v17  ;;  %v1465_v30 = vadd.f32 %v7993_v60, %v1285_v45  ;;  %v8050_v34 = vpop.eup %6773 }
 0x30a   : > { %v6229_v16 = vmul.f32 -1.442695, %v1464_v56  ;;  %v1466_v59 = vadd.f32 %v7993_v60, %v1287_v18  ;;  %v8053_v45 = vpop.eup %6775 }
 0x30b   : > { %v6230_v22 = vmul.f32 -1.442695, %v1465_v30  ;;  %6781 = vpow2.f32 %v6228_v25  ;;  %v8055_v46 = vpop.eup %6777 }
 0x30c   : > { %v6231_v31 = vmul.f32 -1.442695, %v1466_v59  ;;  %v1177_v32 = vpop.f32.mrb[20].mxu1  ;;  %6783 = vpow2.f32 %v6229_v16  ;;  %v8057_v56 = vpop.eup %6779 }
 0x30d   : > { %v1291_v28 = vadd.f32 %v7975_v24, %v1177_v32  ;;  %v1179_v61 = vpop.f32.mrb[21].mxu1  ;;  %6785 = vpow2.f32 %v6230_v22  ;;  %v1387_v24 = vadd.f32 %v8031_v7, %v8015_v21 }
 0x30e   : > { %v1293_v60 = vadd.f32 %v7977_v35, %v1179_v61  ;;  %v1181_v8 = vpop.f32.mrb[22].mxu1  ;;  %6787 = vpow2.f32 %v6231_v31 }
 0x30f   : > { %v1467_v38 = vadd.f32 %v7985_v43, %v1291_v28  ;;  %v1295_v10 = vadd.f32 %v7979_v36, %v1181_v8  ;;  %v1183_v20 = vpop.f32.mrb[23].mxu1  ;;  %6789 = vpow2.f32 %v6220_v4 }
 0x310   : > { %v1468_v26 = vadd.f32 %v7985_v43, %v1293_v60  ;;  %v1297_v35 = vadd.f32 %v7981_v39, %v1183_v20  ;;  %6791 = vpow2.f32 %v6221_v41  ;;  %v6224_v43 = vmul.f32 -1.442695, %v1387_v24 }
 0x311   : > { %v6232_v14 = vmul.f32 -1.442695, %v1467_v38  ;;  %v1469_v37 = vadd.f32 %v7997_v62, %v1295_v10  ;;  %6793 = vpow2.f32 %v6222_v63 }
 0x312   : > { %v6233_v36 = vmul.f32 -1.442695, %v1468_v26  ;;  %v1470_v17 = vadd.f32 %v7997_v62, %v1297_v35  ;;  %6795 = vpow2.f32 %v6223_v23 }
 0x313   : > { %v6234_v21 = vmul.f32 -1.442695, %v1469_v37  ;;  %6797 = vpow2.f32 %v6232_v14  ;;  %v1388_v14 = vadd.f32 %v8031_v7, %v8017_v27 }
 0x314   : > { %v6235_v39 = vmul.f32 -1.442695, %v1470_v17  ;;  %v1187_v47 = vpop.f32.mrb[24].mxu1  ;;  %6799 = vpow2.f32 %v6233_v36 }
 0x315   : > { %v1301_v18 = vadd.f32 %v7987_v48, %v1187_v47  ;;  %v1189_v44 = vpop.f32.mrb[25].mxu1  ;;  %v6782_v25 = vpop.eup %6781  ;;  %6801 = vpow2.f32 %v6234_v21 }
 0x316   : > { %v1303_v62 = vadd.f32 %v7989_v6, %v1189_v44  ;;  %v1191_v30 = vpop.f32.mrb[26].mxu1  ;;  %v6784_v19 = vpop.eup %6783  ;;  %v1495_v16 = vadd.f32 1.0, %v6782_v25  ;;  %6803 = vpow2.f32 %v6235_v39 }
 0x317   : > { %v1543_v59 = vadd.f32 %v8001_v57, %v1301_v18  ;;  %v1305_v0 = vadd.f32 %v7991_v50, %v1191_v30  ;;  %v1193_v22 = vpop.f32.mrb[27].mxu1  ;;  %v6786_v4 = vpop.eup %6785  ;;  %6805 = vpow2.f32 %v6224_v43  ;;  %v1496_v31 = vadd.f32 1.0, %v6784_v19 }
 0x318   : > { %v1544_v32 = vadd.f32 %v8001_v57, %v1303_v62  ;;  %v1307_v48 = vadd.f32 %v7995_v51, %v1193_v22  ;;  %v6788_v41 = vpop.eup %6787  ;;  %6807 = vrcp.f32 %v1495_v16  ;;  %v1497_v28 = vadd.f32 1.0, %v6786_v4 }
 0x319   : > { %v6236_v6 = vmul.f32 -1.442695, %v1543_v59  ;;  %v1545_v61 = vadd.f32 %v8007_v55, %v1305_v0  ;;  %v8066_v63 = vpop.eup %6789  ;;  %6809 = vrcp.f32 %v1496_v31  ;;  %v1498_v60 = vadd.f32 1.0, %v6788_v41  ;;  %v1381_v59 = vpop.permute.xlu1 %1380 }
 0x31a   : > { %v6237_v8 = vmul.f32 -1.442695, %v1544_v32  ;;  %v1546_v50 = vadd.f32 %v8007_v55, %v1307_v48  ;;  %v8069_v23 = vpop.eup %6791  ;;  %6811 = vrcp.f32 %v1497_v28  ;;  %v6225_v31 = vmul.f32 -1.442695, %v1388_v14 }
 0x31b   : > { %v6238_v38 = vmul.f32 -1.442695, %v1545_v61  ;;  %v8071_v57 = vpop.eup %6793  ;;  %6813 = vrcp.f32 %v1498_v60  ;;  %v1389_v41 = vadd.f32 %v1381_v59, %v8019_v49 }
 0x31c   : > { %v6239_v51 = vmul.f32 -1.442695, %v1546_v50  ;;  %v1197_v10 = vpop.f32.mrb[28].mxu1  ;;  %v8073_v20 = vpop.eup %6795  ;;  %6815 = vpow2.f32 %v6236_v6  ;;  %v1390_v6 = vadd.f32 %v1381_v59, %v8021_v53 }
 0x31d   : > { %v1311_v24 = vadd.f32 %v7999_v40, %v1197_v10  ;;  %v1199_v26 = vpop.f32.mrb[29].mxu1  ;;  %v6798_v35 = vpop.eup %6797  ;;  %6817 = vpow2.f32 %v6237_v8 }
 0x31e   : > { %v1313_v55 = vadd.f32 %v8003_v29, %v1199_v26  ;;  %v1201_v37 = vpop.f32.mrb[30].mxu1  ;;  %v6800_v36 = vpop.eup %6799  ;;  %v1499_v17 = vadd.f32 1.0, %v6798_v35  ;;  %6819 = vpow2.f32 %v6238_v38  ;;  %v6226_v38 = vmul.f32 -1.442695, %v1389_v41  ;;  %v1603_v41 = vld [vmem:[#allocation2 + $0x20] sm:$0xff] }
 0x31f   : > { %v1547_v21 = vadd.f32 %v8011_v33, %v1311_v24  ;;  %v1315_v43 = vadd.f32 %v8005_v5, %v1201_v37  ;;  %v1203_v39 = vpop.f32.mrb[31].mxu1  ;;  %v6802_v47 = vpop.eup %6801  ;;  %v1500_v18 = vadd.f32 1.0, %v6800_v36  ;;  %6821 = vpow2.f32 %v6239_v51 }
 0x320   : > { %v1548_v40 = vadd.f32 %v8011_v33, %v1313_v55  ;;  %v1317_v44 = vadd.f32 %v8009_v54, %v1203_v39  ;;  %v6804_v27 = vpop.eup %6803  ;;  %6823 = vrcp.f32 %v1499_v17  ;;  %v1501_v7 = vadd.f32 1.0, %v6802_v47  ;;  %v1599_v39 = vld [vmem:[#allocation2] sm:$0xff] }
 0x321   : > { %v6240_v29 = vmul.f32 -1.442695, %v1547_v21  ;;  %v1549_v25 = vadd.f32 %v8013_v42, %v1315_v43  ;;  %v8084_v62 = vpop.eup %6805  ;;  %6825 = vrcp.f32 %v1500_v18  ;;  %v1502_v30 = vadd.f32 1.0, %v6804_v27 }
 0x322   : > { %v6241_v19 = vmul.f32 -1.442695, %v1548_v40  ;;  %v1550_v5 = vadd.f32 %v8013_v42, %v1317_v44  ;;  %v6808_v16 = vpop.eup %6807  ;;  %6827 = vrcp.f32 %v1501_v7  ;;  %v6227_v51 = vmul.f32 -1.442695, %v1390_v6  ;;  %v1600_v40 = vld [vmem:[#allocation2 + $0x8] sm:$0xff]  ;;  %v1601_v7 = vld [vmem:[#allocation2 + $0x10] sm:$0xff] }
 0x323   : > { %v6242_v0 = vmul.f32 -1.442695, %v1549_v25  ;;  %v6810_v33 = vpop.eup %6809  ;;  %v8088_v54 = vmul.f32 %v6808_v16, %v8034_v15  ;;  %6829 = vrcp.f32 %v1502_v30  ;;  %v1415_v26 = vadd.f32 1.0, %v8066_v63  ;;  %v1602_v30 = vld [vmem:[#allocation2 + $0x18] sm:$0xff]  ;;  %v1604_v6 = vld [vmem:[#allocation2 + $0x28] sm:$0xff] }
 0x324   : > { %v6243_v22 = vmul.f32 -1.442695, %v1550_v5  ;;  %v6812_v4 = vpop.eup %6811  ;;  %v8091_v32 = vmul.f32 %v6810_v33, %v8037_v58  ;;  %6831 = vpow2.f32 %v6240_v29 }
 0x325   : > { %v6814_v48 = vpop.eup %6813  ;;  %v8095_v42 = vmul.f32 %v6812_v4, %v8041_v11  ;;  %6833 = vpow2.f32 %v6241_v19 }
 0x326   : > { %v6816_v28 = vpop.eup %6815  ;;  %v8099_v15 = vmul.f32 %v6814_v48, %v8047_v52  ;;  %6835 = vpow2.f32 %v6242_v0 }
 0x327   : > { %v6818_v61 = vpop.eup %6817  ;;  %v1575_v60 = vadd.f32 1.0, %v6816_v28  ;;  %6837 = vpow2.f32 %v6243_v22  ;;  %v1419_v22 = vadd.f32 1.0, %v8084_v62  ;;  %v1605_v62 = vld [vmem:[#allocation2 + $0x30] sm:$0xff] }
 0x328   : > { %v6820_v58 = vpop.eup %6819  ;;  %6839 = vpow2.f32 %v6225_v31  ;;  %v1576_v8 = vadd.f32 1.0, %v6818_v61 }
 0x329   : > { %v6822_v50 = vpop.eup %6821  ;;  %6841 = vrcp.f32 %v1575_v60  ;;  %v1577_v49 = vadd.f32 1.0, %v6820_v58 }
 0x32a   : > { %v6824_v11 = vpop.eup %6823  ;;  %6843 = vrcp.f32 %v1576_v8  ;;  %v1578_v10 = vadd.f32 1.0, %v6822_v50 }
 0x32b   : > { %v6826_v24 = vpop.eup %6825  ;;  %v8102_v53 = vmul.f32 %v6824_v11, %v8050_v34  ;;  %6845 = vrcp.f32 %v1577_v49 }
 0x32c   : > { %v6828_v52 = vpop.eup %6827  ;;  %v8106_v35 = vmul.f32 %v6826_v24, %v8053_v45  ;;  %6847 = vrcp.f32 %v1578_v10  ;;  %v1416_v45 = vadd.f32 1.0, %v8069_v23 }
 0x32d   : > { %v6830_v14 = vpop.eup %6829  ;;  %6849 = vpow2.f32 %v6226_v38  ;;  %v8109_v55 = vmul.f32 %v6828_v52, %v8055_v46  ;;  %v1417_v46 = vadd.f32 1.0, %v8071_v57 }
 0x32e   : > { %v6832_v37 = vpop.eup %6831  ;;  %6851 = vpow2.f32 %v6227_v51  ;;  %v8112_v36 = vmul.f32 %v6830_v14, %v8057_v56  ;;  %v1418_v56 = vadd.f32 1.0, %v8073_v20 }
 0x32f   : > { %v6834_v34 = vpop.eup %6833  ;;  %v1579_v17 = vadd.f32 1.0, %v6832_v37  ;;  %6853 = vrcp.f32 %v1415_v26 }
 0x330   : > { %v6836_v21 = vpop.eup %6835  ;;  %v1580_v43 = vadd.f32 1.0, %v6834_v34 }
 0x331   : > { %v6838_v63 = vpop.eup %6837  ;;  %6855 = vrcp.f32 %v1579_v17  ;;  %v1581_v47 = vadd.f32 1.0, %v6836_v21 }
 0x332   : > { %v6840_v18 = vpop.eup %6839  ;;  %6857 = vrcp.f32 %v1580_v43  ;;  %v1582_v44 = vadd.f32 1.0, %v6838_v63 }
 0x333   : > { %v6842_v27 = vpop.eup %6841  ;;  %6859 = vrcp.f32 %v1581_v47  ;;  %v1420_v31 = vadd.f32 1.0, %v6840_v18 }
 0x334   : > { %v6844_v29 = vpop.eup %6843  ;;  %v1607_v25 = vmul.f32 %v6842_v27, %v1599_v39  ;;  %6861 = vrcp.f32 %v1582_v44 }
 0x335   : > { %v6846_v19 = vpop.eup %6845  ;;  %6863 = vrcp.f32 %v1416_v45  ;;  %v1608_v23 = vmul.f32 %v6844_v29, %v1600_v40 }
 0x336   : > { %v6848_v5 = vpop.eup %6847  ;;  %6865 = vrcp.f32 %v1417_v46  ;;  %v1623_v16 = vadd.f32 %v8088_v54, %v1607_v25  ;;  %v1609_v57 = vmul.f32 %v6846_v19, %v1601_v7 }
 0x337   : > { %v6850_v59 = vpop.eup %6849  ;;  %6867 = vrcp.f32 %v1418_v56  ;;  %v1624_v0 = vadd.f32 %v8091_v32, %v1608_v23  ;;  %v1610_v33 = vmul.f32 %v6848_v5, %v1602_v30 }
 0x338   : > { %v6852_v20 = vpop.eup %6851  ;;  %1631 = vst [vmem:[#allocation2] sm:$0xff] %v1623_v16  ;;  %6869 = vtanh.f32 %v1623_v16  ;;  %v1625_v4 = vadd.f32 %v8095_v42, %v1609_v57  ;;  %v1421_v28 = vadd.f32 1.0, %v6850_v59  ;;  %v1606_v42 = vld [vmem:[#allocation2 + $0x38] sm:$0xff] }
 0x339   : > { %1632 = vst [vmem:[#allocation2 + $0x8] sm:$0xff] %v1624_v0  ;;  %6871 = vtanh.f32 %v1624_v0  ;;  %v1626_v48 = vadd.f32 %v8099_v15, %v1610_v33  ;;  %v6854_v54 = vpop.eup %6853  ;;  %v1422_v61 = vadd.f32 1.0, %v6852_v20 }
 0x33a   : > { %1633 = vst [vmem:[#allocation2 + $0x10] sm:$0xff] %v1625_v4  ;;  %6873 = vtanh.f32 %v1625_v4 }
 0x33b   : > { %v6856_v32 = vpop.eup %6855  ;;  %1634 = vst [vmem:[#allocation2 + $0x18] sm:$0xff] %v1626_v48  ;;  %6875 = vtanh.f32 %v1626_v48 }
 0x33c   : > { %v6858_v60 = vpop.eup %6857  ;;  %6877 = vrcp.f32 %v1419_v22  ;;  %v1611_v58 = vmul.f32 %v6856_v32, %v1603_v41 }
 0x33d   : > { %v6860_v8 = vpop.eup %6859  ;;  %6879 = vrcp.f32 %v1420_v31  ;;  %v1612_v50 = vmul.f32 %v6858_v60, %v1604_v6 }
 0x33e   : > { %v6862_v38 = vpop.eup %6861  ;;  %6881 = vrcp.f32 %v1421_v28  ;;  %v1627_v15 = vadd.f32 %v8102_v53, %v1611_v58  ;;  %v1613_v49 = vmul.f32 %v6860_v8, %v1605_v62 }
 0x33f   : > { %v6864_v11 = vpop.eup %6863  ;;  %6883 = vrcp.f32 %v1422_v61  ;;  %v1628_v51 = vadd.f32 %v8106_v35, %v1612_v50  ;;  %v1614_v10 = vmul.f32 %v6862_v38, %v1606_v42 }
 0x340   : > { %v6866_v24 = vpop.eup %6865  ;;  %1635 = vst [vmem:[#allocation2 + $0x20] sm:$0xff] %v1627_v15  ;;  %6885 = vtanh.f32 %v1627_v15  ;;  %v1629_v52 = vadd.f32 %v8109_v55, %v1613_v49 }
 0x341   : > { %v6868_v26 = vpop.eup %6867  ;;  %1636 = vst [vmem:[#allocation2 + $0x28] sm:$0xff] %v1628_v51  ;;  %6887 = vtanh.f32 %v1628_v51  ;;  %v1630_v14 = vadd.f32 %v8112_v36, %v1614_v10 }
 0x342   : > { %v6870_v37 = vpop.eup %6869  ;;  %1637 = vst [vmem:[#allocation2 + $0x30] sm:$0xff] %v1629_v52  ;;  %6889 = vtanh.f32 %v1629_v52 }
 0x343   : > { %v6872_v53 = vpop.eup %6871  ;;  %v1647_v34 = vmul.f32 %v6870_v37, %v6854_v54  ;;  %1638 = vst [vmem:[#allocation2 + $0x38] sm:$0xff] %v1630_v14  ;;  %6891 = vtanh.f32 %v1630_v14 }
 0x344   : > { %v6874_v17 = vpop.eup %6873  ;;  %v1648_v35 = vmul.f32 %v6872_v53, %v6864_v11 }
 0x345   : > { %v6876_v21 = vpop.eup %6875  ;;  %1655 = vst [vmem:[#allocation3] sm:$0xff] %v1647_v34  ;;  %v1649_v43 = vmul.f32 %v6874_v17, %v6866_v24 }
 0x346   : > { %v6878_v63 = vpop.eup %6877  ;;  %1656 = vst [vmem:[#allocation3 + $0x8] sm:$0xff] %v1648_v35  ;;  %v1650_v55 = vmul.f32 %v6876_v21, %v6868_v26 }
 0x347   : > { %v6880_v45 = vpop.eup %6879  ;;  %1657 = vst [vmem:[#allocation3 + $0x10] sm:$0xff] %v1649_v43 }
 0x348   : > { %v6882_v39 = vpop.eup %6881  ;;  %1658 = vst [vmem:[#allocation3 + $0x18] sm:$0xff] %v1650_v55 }
 0x349   : > { %v6884_v36 = vpop.eup %6883 }
 0x34a   : > { %v6886_v47 = vpop.eup %6885 }
 0x34b   : > { %v6888_v18 = vpop.eup %6887  ;;  %v1651_v46 = vmul.f32 %v6886_v47, %v6878_v63 }
 0x34c   : > { %v6890_v40 = vpop.eup %6889  ;;  %v1652_v44 = vmul.f32 %v6888_v18, %v6880_v45 }
 0x34d   : > { %v6892_v27 = vpop.eup %6891  ;;  %1659 = vst [vmem:[#allocation3 + $0x20] sm:$0xff] %v1651_v46  ;;  %v1653_v56 = vmul.f32 %v6890_v40, %v6882_v39 }
 0x34e   : > { %1660 = vst [vmem:[#allocation3 + $0x28] sm:$0xff] %v1652_v44  ;;  %v1654_v7 = vmul.f32 %v6892_v27, %v6884_v36 }
 0x34f   : > { %1661 = vst [vmem:[#allocation3 + $0x30] sm:$0xff] %v1653_v56 }
 0x350   : > { %1662 = vst [vmem:[#allocation3 + $0x38] sm:$0xff] %v1654_v7 }
 0x351 PF: > { %v8126_v29 = vld [vmem:[#allocation3 + $0x8] sm:$0xff]  ;;  %v8128_v25 = vld [vmem:[#allocation3] sm:$0xff]  ;;  %v8134_v30 = vld [vmem:[#allocation3 + $0x18] sm:$0xff]  ;;  %s11034_s12 = smov 113   ;;  %s11035_s13 = smov 111   ;;  %v8267_v4 = vrot.slane %v7596_v12, %v7537_v2  ;;  %v8271_v31 = vrot.slane %v7601_v13, %v7537_v2  ;;  %v8317_v21 = vrot.slane %v7596_v12, %v7545_v3  ;;  %v8321_v43 = vrot.slane %v7601_v13, %v7545_v3 }
 0x352   : > { %1679 = vrot.lane.b32.xlu1 %v8126_v29, %s7450_s21  ;;  %1671 = vrot.lane.b32.xlu0 %v8128_v25, %s7450_s21  ;;  %v8136_v19 = vld [vmem:[#allocation3 + $0x10] sm:$0xff]  ;;  %v6244_v59 = vld [vmem:[%s7542_s14 + $0x2] sm:$0x3]  ;;  %s11036_s25 = smov 112   ;;  %vm11054_vm14 = vcmask 1045504   ;;  %vm11056_vm13 = vcmask 1046528  }
 0x353   : > { %v8232_v0 = vrot.slane %v6244_v59, %v7545_v3  ;;  %v8235_v33 = vrot.slane %v6244_v59, %v7537_v2  ;;  %vm11055_vm15 = vmmov %vm11054_vm14 }
 0x354   : > { %v8144_v5 = vld [vmem:[#allocation3 + $0x20] sm:$0xff] }
 0x355   : > { %v8152_v57 = vld [vmem:[#allocation3 + $0x28] sm:$0xff] }
 0x356   : > { %v8138_v23 = vld [vmem:[#allocation3 + $0x30] sm:$0xff]  ;;  %1681 = vrot.lane.b32.xlu1 %v8134_v30, %s7450_s21  ;;  %1673 = vrot.lane.b32.xlu0 %v8136_v19, %s7450_s21 }
 0x357   : > { %v8146_v16 = vld [vmem:[#allocation3 + $0x38] sm:$0xff] }
 0x35a   : > { %1677 = vrot.lane.b32.xlu1 %v8138_v23, %s7450_s21  ;;  %1675 = vrot.lane.b32.xlu0 %v8144_v5, %s7450_s21 }
 0x35e   : > { %1685 = vrot.lane.b32.xlu1 %v8146_v16, %s7450_s21  ;;  %1683 = vrot.lane.b32.xlu0 %v8152_v57, %s7450_s21 }
 0x362   : > { %1721 = vrot.lane.b32.xlu1 %v8136_v19, %s7449_s20  ;;  %1719 = vrot.lane.b32.xlu0 %v8128_v25, %s7449_s20 }
 0x366   : > { %1729 = vrot.lane.b32.xlu1 %v8134_v30, %s7449_s20  ;;  %1727 = vrot.lane.b32.xlu0 %v8126_v29, %s7449_s20 }
 0x36a   : > { %1725 = vrot.lane.b32.xlu1 %v8138_v23, %s7449_s20  ;;  %1723 = vrot.lane.b32.xlu0 %v8144_v5, %s7449_s20 }
 0x36e   : > { %1733 = vrot.lane.b32.xlu1 %v8146_v16, %s7449_s20  ;;  %1731 = vrot.lane.b32.xlu0 %v8152_v57, %s7449_s20 }
 0x372   : > { %1769 = vrot.lane.b32.xlu1 %v8136_v19, %s7448_s19  ;;  %1767 = vrot.lane.b32.xlu0 %v8128_v25, %s7448_s19 }
 0x376   : > { %1777 = vrot.lane.b32.xlu1 %v8134_v30, %s7448_s19  ;;  %1775 = vrot.lane.b32.xlu0 %v8126_v29, %s7448_s19 }
 0x37a   : > { %1773 = vrot.lane.b32.xlu1 %v8138_v23, %s7448_s19  ;;  %1771 = vrot.lane.b32.xlu0 %v8144_v5, %s7448_s19 }
 0x37e   : > { %1781 = vrot.lane.b32.xlu1 %v8146_v16, %s7448_s19  ;;  %1779 = vrot.lane.b32.xlu0 %v8152_v57, %s7448_s19 }
 0x382   : > { %1817 = vrot.lane.b32.xlu1 %v8136_v19, %s7451_s22  ;;  %1815 = vrot.lane.b32.xlu0 %v8128_v25, %s7451_s22 }
 0x386   : > { %1825 = vrot.lane.b32.xlu1 %v8134_v30, %s7451_s22  ;;  %1823 = vrot.lane.b32.xlu0 %v8126_v29, %s7451_s22 }
 0x38a   : > { %1821 = vrot.lane.b32.xlu1 %v8138_v23, %s7451_s22  ;;  %1819 = vrot.lane.b32.xlu0 %v8144_v5, %s7451_s22 }
 0x38e   : > { %1829 = vrot.lane.b32.xlu1 %v8146_v16, %s7451_s22  ;;  %1827 = vrot.lane.b32.xlu0 %v8152_v57, %s7451_s22 }
 0x392   : > { %1873 = vrot.lane.b32.xlu1 %v8136_v19, %s7452_s23  ;;  %1871 = vrot.lane.b32.xlu0 %v8128_v25, %s7452_s23 }
 0x396   : > { %1881 = vrot.lane.b32.xlu1 %v8134_v30, %s7452_s23  ;;  %1879 = vrot.lane.b32.xlu0 %v8126_v29, %s7452_s23 }
 0x39a   : > { %1877 = vrot.lane.b32.xlu1 %v8138_v23, %s7452_s23  ;;  %1875 = vrot.lane.b32.xlu0 %v8144_v5, %s7452_s23 }
 0x39e   : > { %1885 = vrot.lane.b32.xlu1 %v8146_v16, %s7452_s23  ;;  %1883 = vrot.lane.b32.xlu0 %v8152_v57, %s7452_s23 }
 0x3a2   : > { %1921 = vrot.lane.b32.xlu1 %v8136_v19, %s11034_s12  ;;  %1919 = vrot.lane.b32.xlu0 %v8128_v25, %s11034_s12 }
 0x3a6   : > { %1929 = vrot.lane.b32.xlu1 %v8134_v30, %s11034_s12  ;;  %1927 = vrot.lane.b32.xlu0 %v8126_v29, %s11034_s12 }
 0x3aa   : > { %2086 = vrot.lane.b32.xlu1 %v8232_v0, %s7449_s20  ;;  %2084 = vrot.lane.b32.xlu0 %v8235_v33, %s7449_s20 }
 0x3ae   : > { %1925 = vrot.lane.b32.xlu1 %v8138_v23, %s11034_s12  ;;  %1923 = vrot.lane.b32.xlu0 %v8144_v5, %s11034_s12 }
 0x3b2   : > { %1933 = vrot.lane.b32.xlu1 %v8146_v16, %s11034_s12  ;;  %1931 = vrot.lane.b32.xlu0 %v8152_v57, %s11034_s12 }
 0x3b6   : > { %2017 = vrot.lane.b32.xlu1 %v8136_v19, %s11035_s13  ;;  %2015 = vrot.lane.b32.xlu0 %v8128_v25, %s11035_s13 }
 0x3ba   : > { %2025 = vrot.lane.b32.xlu1 %v8134_v30, %s11035_s13  ;;  %2023 = vrot.lane.b32.xlu0 %v8126_v29, %s11035_s13 }
 0x3be   : > { %2094 = vrot.lane.b32.xlu1 %v8232_v0, %s7448_s19  ;;  %2092 = vrot.lane.b32.xlu0 %v8235_v33, %s7448_s19 }
 0x3c2   : > { %2078 = vrot.lane.b32.xlu1 %v8232_v0, %s7450_s21  ;;  %2076 = vrot.lane.b32.xlu0 %v8235_v33, %s7450_s21 }
 0x3c4   : > { %v1680_v20 = vpop.permute.xlu1 %1679  ;;  %v1672_v22 = vpop.permute.xlu0 %1671 }
 0x3c5   : > { %v1691_v48 = vsel %vm343_vm1, %v1680_v20, %v1672_v22  ;;  %v1687_v41 = vsel %vm343_vm1, %v1672_v22, %v1680_v20 }
 0x3c6   : > { %2102 = vrot.lane.b32.xlu1 %v8232_v0, %s7451_s22  ;;  %2100 = vrot.lane.b32.xlu0 %v8235_v33, %s7451_s22  ;;  %v1703_v6 = vmul.f32 %v8267_v4, %v1691_v48  ;;  %v1704_v62 = vmul.f32 %v8271_v31, %v1687_v41  ;;  %v1793_v48 = vsub.s32 2, %v7534_v1 }
 0x3c8   : > { %v1682_v54 = vpop.permute.xlu1 %1681  ;;  %v1674_v28 = vpop.permute.xlu0 %1673 }
 0x3c9   : > { %v1688_v32 = vsel %vm343_vm1, %v1674_v28, %v1682_v54  ;;  %v1692_v61 = vsel %vm343_vm1, %v1682_v54, %v1674_v28 }
 0x3ca   : > { %v1705_v60 = vmul.f32 %v8267_v4, %v1692_v61  ;;  %v1706_v58 = vmul.f32 %v8271_v31, %v1688_v32  ;;  %2110 = vrot.lane.b32.xlu1 %v8232_v0, %s7452_s23  ;;  %2108 = vrot.lane.b32.xlu0 %v8235_v33, %s7452_s23 }
 0x3cc   : > { %v1711_v42 = vpack.c.bf16 %v1705_v60, %v1703_v6  ;;  %v1712_v8 = vpack.c.bf16 %v1706_v58, %v1704_v62  ;;  %v1678_v50 = vpop.permute.xlu1 %1677  ;;  %v1676_v38 = vpop.permute.xlu0 %1675 }
 0x3ce   : > { %1969 = vrot.lane.b32.xlu1 %v8136_v19, %s11036_s25  ;;  %1967 = vrot.lane.b32.xlu0 %v8128_v25, %s11036_s25 }
 0x3cf   : > { %2426 = vmatprep.subr.bf16.mxu0 %v1712_v8 }
 0x3d0   : > { %v1686_v15 = vpop.permute.xlu1 %1685  ;;  %v1684_v49 = vpop.permute.xlu0 %1683  ;;  %2427 = vmatpush1.bf16.msra.mxu0 %v1711_v42 }
 0x3d1   : > { %v1690_v11 = vsel %vm343_vm1, %v1678_v50, %v1686_v15  ;;  %v1694_v51 = vsel %vm343_vm1, %v1686_v15, %v1678_v50  ;;  %v1689_v10 = vsel %vm343_vm1, %v1676_v38, %v1684_v49  ;;  %v1693_v24 = vsel %vm343_vm1, %v1684_v49, %v1676_v38 }
 0x3d2   : > { %v1709_v52 = vmul.f32 %v8267_v4, %v1694_v51  ;;  %v1710_v26 = vmul.f32 %v8271_v31, %v1690_v11  ;;  %v1707_v14 = vmul.f32 %v8267_v4, %v1693_v24  ;;  %v1708_v37 = vmul.f32 %v8271_v31, %v1689_v10  ;;  %1977 = vrot.lane.b32.xlu1 %v8134_v30, %s11036_s25  ;;  %v6898_v10 = vld [vmem:[%s10956_s3 + $0x4] ss:$12 sps:$4 sm:$0xff]  }
 0x3d3   : > { %1975 = vrot.lane.b32.xlu0 %v8126_v29, %s11036_s25  ;;  %v8365_v38 = vrot.slane %v7596_v12, %v1793_v48  ;;  %v8368_v15 = vrot.slane %v7601_v13, %v1793_v48  ;;  %v11000_v51 = vmov 0   ;;  %2458 = vmatprep.mubr.bf16.mxu0 %v6898_v10 }
 0x3d4   : > { %v1713_v53 = vpack.c.bf16 %v1709_v52, %v1707_v14  ;;  %v1714_v34 = vpack.c.bf16 %v1710_v26, %v1708_v37  ;;  %v1722_v17 = vpop.permute.xlu1 %1721  ;;  %v1720_v35 = vpop.permute.xlu0 %1719  ;;  %2579 = vmatprep.mubr.bf16.mxu1 %v11000_v51  ;;  %6894 = vset.pattern.permute.xlu1 %v11000_v51 }
 0x3d5   : > { %6893 = vset.pattern.permute.xlu0 %v11000_v51 }
 0x3d6   : > { %2021 = vrot.lane.b32.xlu1 %v8138_v23, %s11035_s13  ;;  %2428 = vmatprep.subr.bf16.mxu0 %v1714_v34 }
 0x3d7   : > { %2019 = vrot.lane.b32.xlu0 %v8144_v5, %s11035_s13  ;;  %2429 = vmatpush1.bf16.msra.mxu0 %v1713_v53 }
 0x3d8   : > { %v1730_v63 = vpop.permute.xlu1 %1729  ;;  %v1728_v55 = vpop.permute.xlu0 %1727 }
 0x3d9   : > { %v1736_v45 = vsel %vm352_vm0, %v1722_v17, %v1730_v63  ;;  %v1740_v39 = vsel %vm352_vm0, %v1730_v63, %v1722_v17  ;;  %v1735_v36 = vsel %vm352_vm0, %v1720_v35, %v1728_v55  ;;  %v1739_v47 = vsel %vm352_vm0, %v1728_v55, %v1720_v35 }
 0x3da   : > { %v1753_v18 = vmul.f32 %v8317_v21, %v1740_v39  ;;  %v1754_v46 = vmul.f32 %v8321_v43, %v1736_v45  ;;  %v1751_v40 = vmul.f32 %v8317_v21, %v1739_v47  ;;  %v1752_v44 = vmul.f32 %v8321_v43, %v1735_v36  ;;  %2029 = vrot.lane.b32.xlu1 %v8146_v16, %s11035_s13 }
 0x3db   : > { %2027 = vrot.lane.b32.xlu0 %v8152_v57, %s11035_s13  ;;  %v1841_v47 = vsub.s32 3, %v7534_v1 }
 0x3dc   : > { %v1759_v27 = vpack.c.bf16 %v1753_v18, %v1751_v40  ;;  %v1760_v56 = vpack.c.bf16 %v1754_v46, %v1752_v44  ;;  %v1726_v7 = vpop.permute.xlu1 %1725  ;;  %v1724_v59 = vpop.permute.xlu0 %1723 }
 0x3de   : > { %2118 = vrot.lane.b32.xlu1 %v8232_v0, %s11034_s12  ;;  %2430 = vmatprep.subr.bf16.mxu0 %v1760_v56 }
 0x3df   : > { %2116 = vrot.lane.b32.xlu0 %v8235_v33, %s11034_s12  ;;  %2431 = vmatpush1.bf16.msra.mxu0 %v1759_v27 }
 0x3e0   : > { %v1734_v20 = vpop.permute.xlu1 %1733  ;;  %v1732_v22 = vpop.permute.xlu0 %1731 }
 0x3e1   : > { %v1738_v41 = vsel %vm352_vm0, %v1726_v7, %v1734_v20  ;;  %v1742_v54 = vsel %vm352_vm0, %v1734_v20, %v1726_v7  ;;  %v1737_v28 = vsel %vm352_vm0, %v1724_v59, %v1732_v22  ;;  %v1741_v6 = vsel %vm352_vm0, %v1732_v22, %v1724_v59 }
 0x3e2   : > { %v1757_v32 = vmul.f32 %v8317_v21, %v1742_v54  ;;  %v1758_v61 = vmul.f32 %v8321_v43, %v1738_v41  ;;  %v1755_v62 = vmul.f32 %v8317_v21, %v1741_v6  ;;  %v1756_v60 = vmul.f32 %v8321_v43, %v1737_v28  ;;  %2126 = vrot.lane.b32.xlu1 %v8232_v0, %s11036_s25 }
 0x3e3   : > { %2124 = vrot.lane.b32.xlu0 %v8235_v33, %s11036_s25  ;;  %v8412_v54 = vrot.slane %v7596_v12, %v1841_v47  ;;  %v8415_v28 = vrot.slane %v7601_v13, %v1841_v47 }
 0x3e4   : > { %v1761_v58 = vpack.c.bf16 %v1757_v32, %v1755_v62  ;;  %v1762_v42 = vpack.c.bf16 %v1758_v61, %v1756_v60  ;;  %v1770_v8 = vpop.permute.xlu1 %1769  ;;  %v1768_v50 = vpop.permute.xlu0 %1767 }
 0x3e6   : > { %2134 = vrot.lane.b32.xlu1 %v8232_v0, %s11035_s13  ;;  %2432 = vmatprep.subr.bf16.mxu0 %v1762_v42 }
 0x3e7   : > { %2132 = vrot.lane.b32.xlu0 %v8235_v33, %s11035_s13  ;;  %2433 = vmatpush1.bf16.msra.mxu0 %v1761_v58 }
 0x3e8   : > { %v1778_v49 = vpop.permute.xlu1 %1777  ;;  %v1776_v11 = vpop.permute.xlu0 %1775 }
 0x3e9   : > { %v1784_v24 = vsel %vm367_vm3, %v1770_v8, %v1778_v49  ;;  %v1788_v52 = vsel %vm367_vm3, %v1778_v49, %v1770_v8  ;;  %v1783_v26 = vsel %vm367_vm3, %v1768_v50, %v1776_v11  ;;  %v1787_v14 = vsel %vm367_vm3, %v1776_v11, %v1768_v50 }
 0x3ea   : > { %v1801_v37 = vmul.f32 %v8365_v38, %v1788_v52  ;;  %v1802_v53 = vmul.f32 %v8368_v15, %v1784_v24  ;;  %v1799_v34 = vmul.f32 %v8365_v38, %v1787_v14  ;;  %v1800_v17 = vmul.f32 %v8368_v15, %v1783_v26  ;;  %1973 = vrot.lane.b32.xlu1 %v8138_v23, %s11036_s25 }
 0x3eb   : > { %1971 = vrot.lane.b32.xlu0 %v8144_v5, %s11036_s25 }
 0x3ec   : > { %v1807_v35 = vpack.c.bf16 %v1801_v37, %v1799_v34  ;;  %v1808_v63 = vpack.c.bf16 %v1802_v53, %v1800_v17  ;;  %v1774_v55 = vpop.permute.xlu1 %1773  ;;  %v1772_v45 = vpop.permute.xlu0 %1771  ;;  %v1897_v37 = vsub.s32 5, %v7534_v1 }
 0x3ee   : > { %1981 = vrot.lane.b32.xlu1 %v8146_v16, %s11036_s25  ;;  %2434 = vmatprep.subr.bf16.mxu0 %v1808_v63 }
 0x3ef   : > { %1979 = vrot.lane.b32.xlu0 %v8152_v57, %s11036_s25  ;;  %2435 = vmatpush1.bf16.msra.mxu0 %v1807_v35 }
 0x3f0   : > { %v1782_v39 = vpop.permute.xlu1 %1781  ;;  %v1780_v36 = vpop.permute.xlu0 %1779 }
 0x3f1   : > { %v1786_v18 = vsel %vm367_vm3, %v1774_v55, %v1782_v39  ;;  %v1790_v46 = vsel %vm367_vm3, %v1782_v39, %v1774_v55  ;;  %v1785_v40 = vsel %vm367_vm3, %v1772_v45, %v1780_v36  ;;  %v1789_v44 = vsel %vm367_vm3, %v1780_v36, %v1772_v45 }
 0x3f2   : > { %v1805_v27 = vmul.f32 %v8365_v38, %v1790_v46  ;;  %v1806_v56 = vmul.f32 %v8368_v15, %v1786_v18  ;;  %v1803_v7 = vmul.f32 %v8365_v38, %v1789_v44  ;;  %v1804_v59 = vmul.f32 %v8368_v15, %v1785_v40 }
 0x3f3   : > { %v1864_v40 = vpack.c.bf16 %v8134_v30, %v8126_v29  ;;  %v8445_v44 = vrot.slane %v7601_v13, %v1897_v37 }
 0x3f4   : > { %v1809_v20 = vpack.c.bf16 %v1805_v27, %v1803_v7  ;;  %v1810_v22 = vpack.c.bf16 %v1806_v56, %v1804_v59  ;;  %v1818_v48 = vpop.permute.xlu1 %1817  ;;  %v1816_v41 = vpop.permute.xlu0 %1815  ;;  %v1863_v27 = vpack.c.bf16 %v8136_v19, %v8128_v25  ;;  %v8450_v56 = vrot.slane %v7596_v12, %v1897_v37 }
 0x3f6   : > { %2436 = vmatprep.subr.bf16.mxu0 %v1810_v22 }
 0x3f7   : > { %2437 = vmatpush1.bf16.msra.mxu0 %v1809_v20  ;;  %v1866_v20 = vpack.c.bf16 %v8146_v16, %v8152_v57  ;;  %v1865_v16 = vpack.c.bf16 %v8138_v23, %v8144_v5 }
 0x3f8   : > { %v1826_v6 = vpop.permute.xlu1 %1825  ;;  %v1824_v32 = vpop.permute.xlu0 %1823 }
 0x3f9   : > { %v1832_v61 = vsel %vm380_vm2, %v1818_v48, %v1826_v6  ;;  %v1836_v62 = vsel %vm380_vm2, %v1826_v6, %v1818_v48  ;;  %v1831_v60 = vsel %vm380_vm2, %v1816_v41, %v1824_v32  ;;  %v1835_v58 = vsel %vm380_vm2, %v1824_v32, %v1816_v41 }
 0x3fa   : > { %v1849_v42 = vmul.f32 %v8412_v54, %v1836_v62  ;;  %v1850_v8 = vmul.f32 %v8415_v28, %v1832_v61  ;;  %v1847_v50 = vmul.f32 %v8412_v54, %v1835_v58  ;;  %v1848_v49 = vmul.f32 %v8415_v28, %v1831_v60 }
 0x3fc   : > { %v1855_v11 = vpack.c.bf16 %v1849_v42, %v1847_v50  ;;  %v1856_v10 = vpack.c.bf16 %v1850_v8, %v1848_v49  ;;  %v1822_v24 = vpop.permute.xlu1 %1821  ;;  %v1820_v52 = vpop.permute.xlu0 %1819  ;;  %v1945_v42 = vsub.s32 6, %v7534_v1 }
 0x3fe   : > { %2438 = vmatprep.subr.bf16.mxu0 %v1856_v10 }
 0x3ff   : > { %2439 = vmatpush1.bf16.msra.mxu0 %v1855_v11 }
 0x400   : > { %v1830_v26 = vpop.permute.xlu1 %1829  ;;  %v1828_v14 = vpop.permute.xlu0 %1827 }
 0x401   : > { %v1834_v53 = vsel %vm380_vm2, %v1822_v24, %v1830_v26  ;;  %v1838_v34 = vsel %vm380_vm2, %v1830_v26, %v1822_v24  ;;  %v1833_v17 = vsel %vm380_vm2, %v1820_v52, %v1828_v14  ;;  %v1837_v35 = vsel %vm380_vm2, %v1828_v14, %v1820_v52 }
 0x402   : > { %v1853_v63 = vmul.f32 %v8412_v54, %v1838_v34  ;;  %v1854_v55 = vmul.f32 %v8415_v28, %v1834_v53  ;;  %v1851_v45 = vmul.f32 %v8412_v54, %v1837_v35  ;;  %v1852_v39 = vmul.f32 %v8415_v28, %v1833_v17 }
 0x403   : > { %v8482_v53 = vrot.slane %v7596_v12, %v1945_v42  ;;  %v8485_v34 = vrot.slane %v7601_v13, %v1945_v42 }
 0x404   : > { %v1857_v36 = vpack.c.bf16 %v1853_v63, %v1851_v45  ;;  %v1858_v47 = vpack.c.bf16 %v1854_v55, %v1852_v39  ;;  %v1874_v18 = vpop.permute.xlu1 %1873  ;;  %v1872_v46 = vpop.permute.xlu0 %1871 }
 0x406   : > { %2440 = vmatprep.subr.bf16.mxu0 %v1858_v47 }
 0x407   : > { %2441 = vmatpush1.bf16.msra.mxu0 %v1857_v36 }
 0x408   : > { %v1882_v7 = vpop.permute.xlu1 %1881  ;;  %v1880_v59 = vpop.permute.xlu0 %1879  ;;  %2442 = vmatprep.subr.bf16.mxu0 %v1864_v40 }
 0x409   : > { %v1888_v29 = vsel %vm393_vm7, %v1874_v18, %v1882_v7  ;;  %v1892_v30 = vsel %vm393_vm7, %v1882_v7, %v1874_v18  ;;  %v1887_v22 = vsel %vm393_vm7, %v1872_v46, %v1880_v59  ;;  %v1891_v25 = vsel %vm393_vm7, %v1880_v59, %v1872_v46 }
 0x40a   : > { %v1906_v19 = vmul.f32 %v8445_v44, %v1892_v30  ;;  %v1904_v48 = vmul.f32 %v8445_v44, %v1891_v25  ;;  %v1905_v57 = vmul.f32 %v8450_v56, %v1888_v29  ;;  %v1903_v41 = vmul.f32 %v8450_v56, %v1887_v22  ;;  %v2799_v30 = vld [vmem:[%s10957_s4 + $0x48] sm:$0xff]  ;;  %v2798_v22 = vld [vmem:[%s10957_s4 + $0x40] sm:$0xff] }
 0x40b   : > { %2443 = vmatpush1.bf16.msra.mxu0 %v1863_v27  ;;  %2809 = vperm.xlu1 %6894, %v2799_v30   ;;  %v2679_v30 = vld [vmem:[%s10957_s4 + $0x8] sm:$0xff] }
 0x40c   : > { %v1878_v6 = vpop.permute.xlu1 %1877  ;;  %v1876_v32 = vpop.permute.xlu0 %1875  ;;  %2444 = vmatprep.subr.bf16.mxu0 %v1866_v20  ;;  %v1912_v61 = vpack.c.bf16 %v1906_v19, %v1904_v48  ;;  %v1911_v62 = vpack.c.bf16 %v1905_v57, %v1903_v41  ;;  %2804 = vperm.xlu0 %6893, %v2798_v22  }
 0x40f   : > { %2445 = vmatpush1.bf16.msra.mxu0 %v1865_v16 }
 0x410   : > { %v1886_v60 = vpop.permute.xlu1 %1885  ;;  %v1884_v58 = vpop.permute.xlu0 %1883  ;;  %2446 = vmatprep.subr.bf16.mxu0 %v1912_v61 }
 0x411   : > { %v1890_v8 = vsel %vm393_vm7, %v1878_v6, %v1886_v60  ;;  %v1894_v23 = vsel %vm393_vm7, %v1886_v60, %v1878_v6  ;;  %v1889_v5 = vsel %vm393_vm7, %v1876_v32, %v1884_v58  ;;  %v1893_v50 = vsel %vm393_vm7, %v1884_v58, %v1876_v32  ;;  %v2878_v6 = vld [vmem:[%s10957_s4 + $0x60] sm:$0xff]  ;;  %v2879_v32 = vld [vmem:[%s10957_s4 + $0x68] sm:$0xff] }
 0x412   : > { %v1909_v49 = vmul.f32 %v8450_v56, %v1890_v8  ;;  %v1910_v11 = vmul.f32 %v8445_v44, %v1894_v23  ;;  %v1907_v10 = vmul.f32 %v8450_v56, %v1889_v5  ;;  %v1908_v24 = vmul.f32 %v8445_v44, %v1893_v50  ;;  %2884 = vperm.xlu1 %6894, %v2878_v6   ;;  %v2800_v50 = vld [vmem:[%s10957_s4 + $0x50] sm:$0xff]  ;;  %v2681_v6 = vld [vmem:[%s10957_s4 + $0x18] sm:$0xff] }
 0x413   : > { %2447 = vmatpush1.bf16.msra.mxu0 %v1911_v62  ;;  %2889 = vperm.xlu0 %6893, %v2879_v32  }
 0x414   : > { %v1913_v52 = vpack.c.bf16 %v1909_v49, %v1907_v10  ;;  %v1914_v26 = vpack.c.bf16 %v1910_v11, %v1908_v24  ;;  %v1922_v14 = vpop.permute.xlu1 %1921  ;;  %v1920_v37 = vpop.permute.xlu0 %1919  ;;  %v2801_v49 = vld [vmem:[%s10957_s4 + $0x58] sm:$0xff]  ;;  %v11037_v11 = vld [vmem:[#allocation19_spill] sm:$0xff]  ;;  %v11039_v24 = vld [vmem:[#allocation20_spill] sm:$0xff] }
 0x415   : > { %v8535_v10 = vrot.slane %v11037_v11, %v7537_v2 }
 0x416   : > { %2448 = vmatprep.subr.bf16.mxu0 %v1914_v26  ;;  %2814 = vperm.xlu1 %6894, %v2800_v50  }
 0x417   : > { %2449 = vmatpush1.bf16.msra.mxu0 %v1913_v52  ;;  %11038 = vst [vmem:[#allocation21_spill] sm:$0xff] %v8535_v10  ;;  %v8539_v52 = vrot.slane %v11039_v24, %v7537_v2  ;;  %2819 = vperm.xlu0 %6893, %v2801_v49  }
 0x418   : > { %v1930_v17 = vpop.permute.xlu1 %1929  ;;  %v1928_v35 = vpop.permute.xlu0 %1927 }
 0x419   : > { %v1936_v63 = vsel %vm406_vm8, %v1922_v14, %v1930_v17  ;;  %v1940_v55 = vsel %vm406_vm8, %v1930_v17, %v1922_v14  ;;  %v1935_v45 = vsel %vm406_vm8, %v1920_v37, %v1928_v35  ;;  %v1939_v39 = vsel %vm406_vm8, %v1928_v35, %v1920_v37  ;;  %11040 = vst [vmem:[#allocation22_spill] sm:$0xff] %v8539_v52 }
 0x41a   : > { %v1953_v36 = vmul.f32 %v8482_v53, %v1936_v63  ;;  %v1954_v47 = vmul.f32 %v8485_v34, %v1940_v55  ;;  %v1951_v18 = vmul.f32 %v8482_v53, %v1935_v45  ;;  %v1952_v46 = vmul.f32 %v8485_v34, %v1939_v39  ;;  %v2880_v55 = vld [vmem:[%s10957_s4 + $0x70] sm:$0xff]  ;;  %v2881_v45 = vld [vmem:[%s10957_s4 + $0x78] sm:$0xff] }
 0x41b   : > { %2894 = vperm.xlu1 %6894, %v2880_v55   ;;  %2899 = vperm.xlu0 %6893, %v2881_v45   ;;  %v11042_v45 = vld [vmem:[#allocation7_spill] sm:$0xff] }
 0x41c   : > { %v1959_v40 = vpack.c.bf16 %v1953_v36, %v1951_v18  ;;  %v1960_v27 = vpack.c.bf16 %v1954_v47, %v1952_v46  ;;  %v8499_v7 = vpop.permute.xlu1 %2086  ;;  %v8501_v59 = vpop.permute.xlu0 %2084 }
 0x41d   : > { %v2088_v50 = vsel %vm352_vm0, %v8501_v59, %v8499_v7 }
 0x41e   : > { %2450 = vmatprep.subr.bf16.mxu0 %v1960_v27 }
 0x41f   : > { %2451 = vmatpush1.bf16.msra.mxu0 %v1959_v40  ;;  %2689 = vperm.xlu0 %6893, %v2679_v30  }
 0x420   : > { %v1926_v20 = vpop.permute.xlu1 %1925  ;;  %v1924_v29 = vpop.permute.xlu0 %1923 }
 0x424   : > { %v1934_v25 = vpop.permute.xlu1 %1933  ;;  %v1932_v19 = vpop.permute.xlu0 %1931 }
 0x425   : > { %v1938_v48 = vsel %vm406_vm8, %v1926_v20, %v1934_v25  ;;  %v1942_v16 = vsel %vm406_vm8, %v1934_v25, %v1926_v20  ;;  %v1937_v57 = vsel %vm406_vm8, %v1924_v29, %v1932_v19  ;;  %v1941_v41 = vsel %vm406_vm8, %v1932_v19, %v1924_v29  ;;  %v2678_v29 = vld [vmem:[%s10957_s4] sm:$0xff] }
 0x426   : > { %v1957_v61 = vmul.f32 %v8482_v53, %v1938_v48  ;;  %v1958_v62 = vmul.f32 %v8485_v34, %v1942_v16  ;;  %v1955_v60 = vmul.f32 %v8482_v53, %v1937_v57  ;;  %v1956_v58 = vmul.f32 %v8485_v34, %v1941_v41  ;;  %2684 = vperm.xlu1 %6894, %v2678_v29   ;;  %v2718_v19 = vld [vmem:[%s10957_s4 + $0x20] sm:$0xff]  ;;  %v2719_v48 = vld [vmem:[%s10957_s4 + $0x28] sm:$0xff]  ;;  %v2680_v41 = vld [vmem:[%s10957_s4 + $0x10] sm:$0xff] }
 0x427   : > { %2729 = vperm.xlu0 %6893, %v2719_v48  }
 0x428   : > { %v1961_v42 = vpack.c.bf16 %v1957_v61, %v1955_v60  ;;  %v1962_v8 = vpack.c.bf16 %v1958_v62, %v1956_v58  ;;  %v2018_v23 = vpop.permute.xlu1 %2017  ;;  %v2016_v5 = vpop.permute.xlu0 %2015  ;;  %v2720_v62 = vld [vmem:[%s10957_s4 + $0x30] sm:$0xff]  ;;  %v2721_v60 = vld [vmem:[%s10957_s4 + $0x38] sm:$0xff]  ;;  %v1993_v58 = vsub.s32 7, %v7534_v1  ;;  %v2089_v1 = vsel %vm352_vm0, %v8499_v7, %v8501_v59  ;;  %v11043_v59 = vld [vmem:[#allocation8_spill] sm:$0xff] }
 0x429   : > { %v2090_v7 = vmul.f32 %v2089_v1, %v11042_v45  ;;  %v11045_v1 = vld [vmem:[#allocation12_spill] sm:$0xff] }
 0x42a   : > { %2452 = vmatprep.subr.bf16.mxu0 %v1962_v8  ;;  %2724 = vperm.xlu1 %6894, %v2718_v19  }
 0x42b   : > { %2453 = vmatpush1.bf16.msra.mxu0 %v1961_v42  ;;  %2699 = vperm.xlu0 %6893, %v2681_v6   ;;  %v2142_v6 = vrot.slane %v2090_v7, 7 }
 0x42c   : > { %v2026_v26 = vpop.permute.xlu1 %2025  ;;  %v2024_v14 = vpop.permute.xlu0 %2023 }
 0x42d   : > { %v2032_v37 = vsel %vm432_vm12, %v2018_v23, %v2026_v26  ;;  %v2036_v17 = vsel %vm432_vm12, %v2026_v26, %v2018_v23  ;;  %v2031_v35 = vsel %vm432_vm12, %v2016_v5, %v2024_v14  ;;  %v2035_v63 = vsel %vm432_vm12, %v2024_v14, %v2016_v5 }
 0x42e   : > { %v2049_v39 = vmul.f32 %v8535_v10, %v2032_v37  ;;  %v2050_v36 = vmul.f32 %v8539_v52, %v2036_v17  ;;  %v2047_v47 = vmul.f32 %v8535_v10, %v2031_v35  ;;  %v2048_v18 = vmul.f32 %v8539_v52, %v2035_v63  ;;  %2694 = vperm.xlu1 %6894, %v2680_v41  }
 0x42f   : > { %2739 = vperm.xlu0 %6893, %v2721_v60   ;;  %v8585_v23 = vrot.slane %v7596_v12, %v1993_v58  ;;  %v8588_v5 = vrot.slane %v7601_v13, %v1993_v58 }
 0x430   : > { %v2055_v46 = vpack.c.bf16 %v2049_v39, %v2047_v47  ;;  %v2056_v40 = vpack.c.bf16 %v2050_v36, %v2048_v18  ;;  %v2095_v27 = vpop.permute.xlu1 %2094  ;;  %v2093_v20 = vpop.permute.xlu0 %2092  ;;  %v2091_v39 = vmul.f32 %v2088_v50, %v11043_v59 }
 0x431   : > { %11041 = vst [vmem:[#allocation23_spill] sm:$0xff] %v8585_v23  ;;  %v2096_v60 = vsel %vm367_vm3, %v2093_v20, %v2095_v27  ;;  %v2097_v58 = vsel %vm367_vm3, %v2095_v27, %v2093_v20 }
 0x432   : > { %2547 = vmatprep.subr.bf16.mxu1 %v2056_v40  ;;  %2734 = vperm.xlu1 %6894, %v2720_v62   ;;  %v2143_v62 = vrot.slane %v2091_v39, 7 }
 0x433   : > { %2548 = vmatpush1.bf16.msra.mxu1 %v2055_v46 }
 0x434   : > { %v2079_v22 = vpop.permute.xlu1 %2078  ;;  %v2077_v25 = vpop.permute.xlu0 %2076 }
 0x435   : > { %v2080_v46 = vsel %vm343_vm1, %v2077_v25, %v2079_v22  ;;  %v2081_v40 = vsel %vm343_vm1, %v2079_v22, %v2077_v25 }
 0x436   : > { %v2082_v22 = vmul.f32 %v2081_v40, %v7596_v12  ;;  %v2083_v25 = vmul.f32 %v2080_v46, %v7601_v13 }
 0x438   : > { %v2103_v16 = vpop.permute.xlu1 %2102  ;;  %v2101_v57 = vpop.permute.xlu0 %2100  ;;  %v2176_v46 = vsel %vm473_vm4, %v2082_v22, %v2142_v6  ;;  %v2177_v40 = vsel %vm473_vm4, %v2083_v25, %v2143_v62  ;;  %v11050_v6 = vld [vmem:[#allocation15_spill] sm:$0xff]  ;;  %v11051_v22 = vld [vmem:[#allocation16_spill] sm:$0xff] }
 0x439   : > { %v2104_v48 = vsel %vm380_vm2, %v2101_v57, %v2103_v16  ;;  %v2105_v41 = vsel %vm380_vm2, %v2103_v16, %v2101_v57 }
 0x43c   : > { %v2111_v32 = vpop.permute.xlu1 %2110  ;;  %v2109_v61 = vpop.permute.xlu0 %2108 }
 0x440   : > { %v1970_v42 = vpop.permute.xlu1 %1969  ;;  %v1968_v8 = vpop.permute.xlu0 %1967 }
 0x444   : > { %v1978_v49 = vpop.permute.xlu1 %1977 }
 0x445   : > { %v1984_v26 = vsel %vm419_vm9, %v1970_v42, %v1978_v49  ;;  %v1988_v14 = vsel %vm419_vm9, %v1978_v49, %v1970_v42  ;;  %v1976_v37 = vpop.permute.xlu0 %1975  ;;  %v2107_v49 = vmul.f32 %v2104_v48, %v11045_v1 }
 0x446   : > { %v2001_v17 = vmul.f32 %v8585_v23, %v1984_v26  ;;  %v2002_v35 = vmul.f32 %v8588_v5, %v1988_v14  ;;  %v1983_v63 = vsel %vm419_vm9, %v1968_v8, %v1976_v37  ;;  %v1987_v55 = vsel %vm419_vm9, %v1976_v37, %v1968_v8  ;;  %v11044_v8 = vld [vmem:[#allocation11_spill] sm:$0xff] }
 0x447   : > { %v1999_v36 = vmul.f32 %v8585_v23, %v1983_v63  ;;  %v2000_v47 = vmul.f32 %v8588_v5, %v1987_v55  ;;  %v2106_v50 = vmul.f32 %v2105_v41, %v11044_v8  ;;  %v11047_v63 = vld [vmem:[#allocation10_spill] sm:$0xff]  ;;  %v2155_v41 = vrot.slane %v2107_v49, 5 }
 0x448   : > { %v2022_v18 = vpop.permute.xlu1 %2021  ;;  %v2099_v55 = vmul.f32 %v2096_v60, %v11047_v63 }
 0x449   : > { %v2007_v29 = vpack.c.bf16 %v2001_v17, %v1999_v36  ;;  %v2008_v30 = vpack.c.bf16 %v2002_v35, %v2000_v47  ;;  %v2020_v19 = vpop.permute.xlu0 %2019  ;;  %v11046_v17 = vld [vmem:[#allocation9_spill] sm:$0xff]  ;;  %v2112_v36 = vsel %vm393_vm7, %v2109_v61, %v2111_v32  ;;  %v2113_v47 = vsel %vm393_vm7, %v2111_v32, %v2109_v61  ;;  %v11049_v61 = vld [vmem:[#allocation14_spill] sm:$0xff] }
 0x44a   : > { %v2098_v35 = vmul.f32 %v2097_v58, %v11046_v17  ;;  %v2154_v48 = vrot.slane %v2106_v50, 5 }
 0x44b   : > { %2454 = vmatprep.subr.bf16.mxu0 %v2008_v30 }
 0x44c   : > { %v2030_v42 = vpop.permute.xlu1 %2029  ;;  %2455 = vmatpush1.bf16.msra.mxu0 %v2007_v29 }
 0x44d   : > { %v2034_v16 = vsel %vm432_vm12, %v2022_v18, %v2030_v42  ;;  %v2038_v57 = vsel %vm432_vm12, %v2030_v42, %v2022_v18  ;;  %v2028_v26 = vpop.permute.xlu0 %2027  ;;  %v2148_v42 = vrot.slane %v2098_v35, 6 }
 0x44e   : > { %v2053_v14 = vmul.f32 %v8535_v10, %v2034_v16  ;;  %v2054_v27 = vmul.f32 %v8539_v52, %v2038_v57  ;;  %v2033_v20 = vsel %vm432_vm12, %v2020_v19, %v2028_v26  ;;  %v2037_v37 = vsel %vm432_vm12, %v2028_v26, %v2020_v19  ;;  %v11048_v57 = vld [vmem:[#allocation13_spill] sm:$0xff] }
 0x44f   : > { %v2051_v7 = vmul.f32 %v8535_v10, %v2033_v20  ;;  %v2052_v39 = vmul.f32 %v8539_v52, %v2037_v37  ;;  %v2149_v16 = vrot.slane %v2099_v55, 6  ;;  %v2114_v32 = vmul.f32 %v2112_v36, %v11048_v57  ;;  %v11052_v36 = vld [vmem:[#allocation17_spill] sm:$0xff] }
 0x450   : > { %v2119_v18 = vpop.permute.xlu1 %2118  ;;  %v2115_v26 = vmul.f32 %v2113_v47, %v11049_v61  ;;  %v2178_v50 = vsel %vm10999_vm5, %v2176_v46, %v2148_v42 }
 0x451   : > { %v2057_v29 = vpack.c.bf16 %v2053_v14, %v2051_v7  ;;  %v2058_v30 = vpack.c.bf16 %v2054_v27, %v2052_v39  ;;  %v2117_v19 = vpop.permute.xlu0 %2116  ;;  %v2179_v49 = vsel %vm10999_vm5, %v2177_v40, %v2149_v16  ;;  %v2180_v20 = vsel %vm10998_vm6, %v2178_v50, %v2154_v48 }
 0x452   : > { %v2120_v60 = vsel %vm406_vm8, %v2117_v19, %v2119_v18  ;;  %v2121_v58 = vsel %vm406_vm8, %v2119_v18, %v2117_v19  ;;  %v2181_v37 = vsel %vm10998_vm6, %v2179_v49, %v2155_v41  ;;  %v2160_v7 = vrot.slane %v2114_v32, 3  ;;  %v11053_v18 = vld [vmem:[#allocation18_spill] sm:$0xff] }
 0x453   : > { %2549 = vmatprep.subr.bf16.mxu1 %v2058_v30  ;;  %v2122_v62 = vmul.f32 %v2120_v60, %v11050_v6  ;;  %v2123_v25 = vmul.f32 %v2121_v58, %v11051_v22  ;;  %v2161_v39 = vrot.slane %v2115_v26, 3  ;;  %v2182_v41 = vsel %vm10997_vm10, %v2180_v20, %v8235_v33 }
 0x454   : > { %v2127_v14 = vpop.permute.xlu1 %2126  ;;  %2550 = vmatpush1.bf16.msra.mxu1 %v2057_v29  ;;  %v2183_v58 = vsel %vm10997_vm10, %v2181_v37, %v8232_v0  ;;  %v2184_v32 = vsel %vm485_vm11, %v2182_v41, %v2160_v7  ;;  %vm11057_vm10 = vmmov %vm11056_vm13  ;;  %vm7460_vm6 = vmmov 1   ;;  %v11058_v37 = vmov 0 }
 0x455   : > { %v2125_v27 = vpop.permute.xlu0 %2124  ;;  %v2166_v46 = vrot.slane %v2122_v62, 2  ;;  %v2167_v30 = vrot.slane %v2123_v25, 2  ;;  %v2185_v26 = vsel %vm485_vm11, %v2183_v58, %v2161_v39  ;;  %vm8683_vm5 = vmpackc.low %vm473_vm4, %vm7460_vm6  ;;  %vm2398_vm6 = vcmask 392192  }
 0x456   : > { %v2128_v35 = vsel %vm419_vm9, %v2125_v27, %v2127_v14  ;;  %v2129_v55 = vsel %vm419_vm9, %v2127_v14, %v2125_v27  ;;  %v11059_v37 = vsel %vm8683_vm5, 4294967295, %v11058_v37 }
 0x457   : > { %v2130_v47 = vmul.f32 %v2128_v35, %v11052_v36  ;;  %v2131_v29 = vmul.f32 %v2129_v55, %v11053_v18  ;;  %v2186_v14 = vsel %vm11054_vm14, %v2184_v32, %v2166_v46  ;;  %v2187_v33 = vsel %vm11055_vm15, %v2185_v26, %v2167_v30  ;;  %11060 = vst [vmem:[#allocation24_spill] sm:$0xff] %v11059_v37  ;;  %v6895_v55 = vld [vmem:[%s10956_s3 + $0x8] ss:$12 sps:$4 sm:$0xff]   ;;  %v6902_v26 = vld [vmem:[%s10956_s3 + $0x18] ss:$12 sps:$4 sm:$0xff]  }
 0x458   : > { %v2135_v40 = vpop.permute.xlu1 %2134  ;;  %v6900_v32 = vld [vmem:[%s10956_s3 + $0x1c] ss:$12 sps:$4 sm:$0xff]   ;;  %vm11074_vm15 = vcmask 1042432  }
 0x459   : > { %v2172_v19 = vrot.slane %v2130_v47, 1  ;;  %v2173_v60 = vrot.slane %v2131_v29, 1  ;;  %v2133_v48 = vpop.permute.xlu0 %2132 }
 0x45a   : > { %v2136_v42 = vsel %vm432_vm12, %v2133_v48, %v2135_v40  ;;  %v2137_v16 = vsel %vm432_vm12, %v2135_v40, %v2133_v48 }
 0x45b   : > { %v2138_v62 = vmul.f32 %v2136_v42, %v11037_v11  ;;  %v2139_v25 = vmul.f32 %v2137_v16, %v11039_v24  ;;  %v2188_v0 = vsel %vm11056_vm13, %v2186_v14, %v2172_v19  ;;  %v2189_v49 = vsel %vm11057_vm10, %v2187_v33, %v2173_v60  ;;  %v6896_v42 = vld [vmem:[%s10956_s3] ss:$12 sps:$4 sm:$0xff]   ;;  %v6906_v14 = vld [vmem:[%s10956_s3 + $0x30] ss:$12 sps:$4 sm:$0xff]   ;;  %vm11079_vm13 = vmmov %vm11074_vm15 }
 0x45c   : > { %v1974_v50 = vpop.permute.xlu1 %1973  ;;  %v6899_v16 = vld [vmem:[%s10956_s3 + $0x20] ss:$12 sps:$4 sm:$0xff]   ;;  %v6907_v33 = vld [vmem:[%s10956_s3 + $0x50] ss:$12 sps:$4 sm:$0xff]   ;;  %vm11072_vm10 = vcmask 1041408  }
 0x45d   : > { %v1972_v27 = vpop.permute.xlu0 %1971  ;;  %v7391_v35 = vpack.c.bf16 %v2139_v25, %v2189_v49  ;;  %v7394_v29 = vpack.c.bf16 %v2138_v62, %v2188_v0  ;;  %v6903_v62 = vld [vmem:[%s10956_s3 + $0x38] ss:$12 sps:$4 sm:$0xff]   ;;  %v6904_v25 = vld [vmem:[%s10956_s3 + $0x34] ss:$12 sps:$4 sm:$0xff]   ;;  %vm11073_vm14 = vmmov %vm11072_vm10 }
 0x45e   : > { %v6910_v0 = vld [vmem:[%s10956_s3 + $0x48] ss:$12 sps:$4 sm:$0xff]  }
 0x45f   : > { %7392 = vmatprep.subr.msk.bf16.mxu1 %vm8683_vm5, %v7391_v35  ;;  %v6911_v49 = vld [vmem:[%s10956_s3 + $0x68] ss:$12 sps:$4 sm:$0xff]   ;;  %v6915_v35 = vld [vmem:[%s10956_s3 + $0x80] ss:$12 sps:$4 sm:$0xff]  }
 0x460   : > { %v1982_v20 = vpop.permute.xlu1 %1981  ;;  %7395 = vmatpush1.bf16.msk.msra.mxu1 %vm8683_vm5, %v7394_v29  ;;  %v6922_v29 = vld [vmem:[%s10956_s3 + $0x90] ss:$12 sps:$4 sm:$0xff]  }
 0x461   : > { %v1986_v7 = vsel %vm419_vm9, %v1974_v50, %v1982_v20  ;;  %v1990_v39 = vsel %vm419_vm9, %v1982_v20, %v1974_v50  ;;  %v1980_v47 = vpop.permute.xlu0 %1979  ;;  %v6908_v50 = vld [vmem:[%s10956_s3 + $0x4c] ss:$12 sps:$4 sm:$0xff]  }
 0x462   : > { %v2005_v46 = vmul.f32 %v8585_v23, %v1986_v7  ;;  %v2006_v30 = vmul.f32 %v8588_v5, %v1990_v39  ;;  %v1985_v40 = vsel %vm419_vm9, %v1972_v27, %v1980_v47  ;;  %v1989_v19 = vsel %vm419_vm9, %v1980_v47, %v1972_v27  ;;  %v6912_v27 = vld [vmem:[%s10956_s3 + $0x64] ss:$12 sps:$4 sm:$0xff]   ;;  %v6914_v20 = vld [vmem:[%s10956_s3 + $0x60] ss:$12 sps:$4 sm:$0xff]  }
 0x463   : > { %v2003_v60 = vmul.f32 %v8585_v23, %v1985_v40  ;;  %v2004_v48 = vmul.f32 %v8588_v5, %v1989_v19  ;;  %6272 = vmatmul.mubr.msk.bf16.vlgmr.msra.gmra.mrb[0].mxu1 %vm2398_vm6, %v6895_v55  ;;  %v6916_v55 = vld [vmem:[%s10956_s3 + $0x7c] ss:$12 sps:$4 sm:$0xff]   ;;  %v6918_v7 = vld [vmem:[%s10956_s3 + $0x78] ss:$12 sps:$4 sm:$0xff]   ;;  %v6920_v47 = vld [vmem:[%s10956_s3 + $0x94] ss:$12 sps:$4 sm:$0xff]  }
 0x464   : > { %2589 = vmatprep.mubr.bf16.mxu1 %v11000_v51  ;;  %v6919_v39 = vld [vmem:[%s10956_s3 + $0x98] ss:$12 sps:$4 sm:$0xff]   ;;  %v6925_v40 = vld [vmem:[%s10956_s3 + $0xa8] ss:$12 sps:$4 sm:$0xff]  }
 0x465   : > { %v2009_v41 = vpack.c.bf16 %v2005_v46, %v2003_v60  ;;  %v2010_v58 = vpack.c.bf16 %v2006_v30, %v2004_v48  ;;  %v6923_v46 = vld [vmem:[%s10956_s3 + $0xac] ss:$12 sps:$4 sm:$0xff]   ;;  %v6926_v30 = vld [vmem:[%s10956_s3 + $0xb0] ss:$12 sps:$4 sm:$0xff]  }
 0x467   : > { %2456 = vmatprep.subr.bf16.mxu0 %v2010_v58 }
 0x468   : > { %2457 = vmatpush1.bf16.msra.mxu0 %v2009_v41 }
 0x46b   : > { %2459 = vmatmul.mubr.bf16.vlgmr.msra.gmra.mrb[0].mxu0 %v6896_v42  ;;  %6273 = vmatmul.mubr.msk.bf16.gmra.mrb[4].mxu1 %vm2398_vm6, %v6899_v16 }
 0x46c   : > { %2468 = vmatprep.mubr.bf16.mxu0 %v6900_v32  ;;  %2599 = vmatprep.mubr.bf16.mxu1 %v11000_v51 }
 0x473   : > { %2469 = vmatmul.mubr.bf16.gmra.mrb[4].mxu0 %v6902_v26  ;;  %6274 = vmatmul.mubr.msk.bf16.gmra.mrb[8].mxu1 %vm2398_vm6, %v6903_v62 }
 0x474   : > { %2478 = vmatprep.mubr.bf16.mxu0 %v6904_v25  ;;  %2609 = vmatprep.mubr.bf16.mxu1 %v11000_v51 }
 0x47b   : > { %2479 = vmatmul.mubr.bf16.gmra.mrb[8].mxu0 %v6906_v14  ;;  %6275 = vmatmul.mubr.msk.bf16.gmra.mrb[12].mxu1 %vm2398_vm6, %v6907_v33 }
 0x47c   : > { %2488 = vmatprep.mubr.bf16.mxu0 %v6908_v50  ;;  %2619 = vmatprep.mubr.bf16.mxu1 %v11000_v51 }
 0x483   : > { %2489 = vmatmul.mubr.bf16.gmra.mrb[12].mxu0 %v6910_v0  ;;  %6276 = vmatmul.mubr.msk.bf16.gmra.mrb[16].mxu1 %vm2398_vm6, %v6911_v49 }
 0x484   : > { %2498 = vmatprep.mubr.bf16.mxu0 %v6912_v27  ;;  %2629 = vmatprep.mubr.bf16.mxu1 %v11000_v51 }
 0x48a   : > { %v8788_v19 = vpop.permute.xlu1 %2809 }
 0x48b   : > { %2499 = vmatmul.mubr.bf16.gmra.mrb[16].mxu0 %v6914_v20  ;;  %6277 = vmatmul.mubr.msk.bf16.gmra.mrb[20].mxu1 %vm2398_vm6, %v6915_v35  ;;  %v8790_v60 = vpop.permute.xlu0 %2804 }
 0x48c   : > { %2508 = vmatprep.mubr.bf16.mxu0 %v6916_v55  ;;  %2639 = vmatprep.mubr.bf16.mxu1 %v11000_v51 }
 0x491   : > { %v8792_v48 = vpop.permute.xlu1 %2884 }
 0x492   : > { %v8794_v58 = vpop.permute.xlu0 %2889 }
 0x493   : > { %2509 = vmatmul.mubr.bf16.gmra.mrb[20].mxu0 %v6918_v7  ;;  %6278 = vmatmul.mubr.msk.bf16.gmra.mrb[24].mxu1 %vm2398_vm6, %v6919_v39 }
 0x494   : > { %2518 = vmatprep.mubr.bf16.mxu0 %v6920_v47  ;;  %2649 = vmatprep.mubr.bf16.mxu1 %v11000_v51 }
 0x495   : > { %v8796_v26 = vpop.permute.xlu1 %2814 }
 0x496   : > { %v8798_v62 = vpop.permute.xlu0 %2819 }
 0x49a   : > { %v8800_v47 = vpop.permute.xlu1 %2894 }
 0x49b   : > { %2519 = vmatmul.mubr.bf16.gmra.mrb[24].mxu0 %v6922_v29  ;;  %6279 = vmatmul.mubr.msk.bf16.gmra.mrb[28].mxu1 %vm2398_vm6, %v6926_v30  ;;  %v8802_v29 = vpop.permute.xlu0 %2899 }
 0x49c   : > { %2528 = vmatprep.mubr.bf16.mxu0 %v6923_v46  ;;  %2659 = vmatprep.mubr.bf16.mxu1 %v11000_v51 }
 0x49f   : > { %v2690_v18 = vpop.permute.xlu0 %2689 }
 0x4a3   : > { %2529 = vmatmul.mubr.bf16.gmra.mrb[28].mxu0 %v6925_v40 }
 0x536   : > { %v2581_v41 = vpop.f32.mrb[0].mxu1 }
 0x537   : > { %v2583_v42 = vpop.f32.mrb[1].mxu1 }
 0x538   : > { %v2585_v16 = vpop.f32.mrb[2].mxu1 }
 0x539   : > { %v2587_v32 = vpop.f32.mrb[3].mxu1 }
 0x53e   : > { %v2460_v25 = vpop.f32.mrb[0].mxu0  ;;  %v2591_v50 = vpop.f32.mrb[4].mxu1 }
 0x53f   : > { %v2582_v14 = vadd.f32 %v2581_v41, %v2460_v25  ;;  %v2462_v33 = vpop.f32.mrb[1].mxu0  ;;  %v2593_v27 = vpop.f32.mrb[5].mxu1 }
 0x540   : > { %v2584_v0 = vadd.f32 %v2583_v42, %v2462_v33  ;;  %v2464_v49 = vpop.f32.mrb[2].mxu0  ;;  %v2595_v55 = vpop.f32.mrb[6].mxu1 }
 0x541   : > { %v2586_v20 = vadd.f32 %v2585_v16, %v2464_v49  ;;  %v2466_v35 = vpop.f32.mrb[3].mxu0  ;;  %v2597_v39 = vpop.f32.mrb[7].mxu1 }
 0x542   : > { %v2588_v7 = vadd.f32 %v2587_v32, %v2466_v35  ;;  %v2685_v49 = vpop.permute.xlu1 %2684 }
 0x543   : > { %v2704_v59 = vadd.f32 %v2690_v18, %v2586_v20 }
 0x544   : > { %v2705_v45 = vadd.f32 %v2690_v18, %v2588_v7 }
 0x546   : > { %v2470_v46 = vpop.f32.mrb[4].mxu0  ;;  %v2601_v51 = vpop.f32.mrb[8].mxu1 }
 0x547   : > { %v2592_v30 = vadd.f32 %v2591_v50, %v2470_v46  ;;  %v2472_v40 = vpop.f32.mrb[5].mxu0  ;;  %v2603_v25 = vpop.f32.mrb[9].mxu1 }
 0x548   : > { %v2594_v37 = vadd.f32 %v2593_v27, %v2472_v40  ;;  %v2474_v41 = vpop.f32.mrb[6].mxu0  ;;  %v2605_v33 = vpop.f32.mrb[10].mxu1 }
 0x549   : > { %v2596_v24 = vadd.f32 %v2595_v55, %v2474_v41  ;;  %v2476_v42 = vpop.f32.mrb[7].mxu0  ;;  %v2607_v16 = vpop.f32.mrb[11].mxu1 }
 0x54a   : > { %v2598_v11 = vadd.f32 %v2597_v39, %v2476_v42  ;;  %v2725_v13 = vpop.permute.xlu1 %2724  ;;  %v2730_v55 = vpop.permute.xlu0 %2729 }
 0x54e   : > { %v2480_v32 = vpop.f32.mrb[8].mxu0  ;;  %v2611_v22 = vpop.f32.mrb[12].mxu1 }
 0x54f   : > { %v2602_v35 = vadd.f32 %v2601_v51, %v2480_v32  ;;  %v2482_v36 = vpop.f32.mrb[9].mxu0  ;;  %v2613_v57 = vpop.f32.mrb[13].mxu1 }
 0x550   : > { %v2604_v6 = vadd.f32 %v2603_v25, %v2482_v36  ;;  %v2484_v61 = vpop.f32.mrb[10].mxu0  ;;  %v2615_v1 = vpop.f32.mrb[14].mxu1 }
 0x551   : > { %v2606_v50 = vadd.f32 %v2605_v33, %v2484_v61  ;;  %v2486_v46 = vpop.f32.mrb[11].mxu0  ;;  %v2617_v40 = vpop.f32.mrb[15].mxu1  ;;  %v2702_v61 = vadd.f32 %v2685_v49, %v2582_v14 }
 0x552   : > { %v2608_v27 = vadd.f32 %v2607_v16, %v2486_v46  ;;  %v2703_v46 = vadd.f32 %v2685_v49, %v2584_v0  ;;  %v2695_v17 = vpop.permute.xlu1 %2694 }
 0x553   : > { %7001 = vtanh.f32 %v2702_v61 }
 0x554   : > { %7003 = vtanh.f32 %v2703_v46 }
 0x555   : > { %7005 = vtanh.f32 %v2704_v59 }
 0x556   : > { %v2490_v41 = vpop.f32.mrb[12].mxu0  ;;  %v2621_v42 = vpop.f32.mrb[16].mxu1  ;;  %7007 = vtanh.f32 %v2705_v45 }
 0x557   : > { %v8804_v8 = vadd.f32 %v2611_v22, %v2490_v41  ;;  %v2492_v39 = vpop.f32.mrb[13].mxu0  ;;  %v2623_v32 = vpop.f32.mrb[17].mxu1  ;;  %v2706_v41 = vadd.f32 %v2695_v17, %v2592_v30  ;;  %v2742_v30 = vadd.f32 %v2725_v13, %v2602_v35 }
 0x558   : > { %v8806_v63 = vadd.f32 %v2613_v57, %v2492_v39  ;;  %v2494_v51 = vpop.f32.mrb[14].mxu0  ;;  %v2625_v25 = vpop.f32.mrb[18].mxu1  ;;  %v2707_v57 = vadd.f32 %v2695_v17, %v2594_v37  ;;  %v2743_v37 = vadd.f32 %v2725_v13, %v2604_v6 }
 0x559   : > { %v8808_v12 = vadd.f32 %v2615_v1, %v2494_v51  ;;  %v2496_v36 = vpop.f32.mrb[15].mxu0  ;;  %v2627_v16 = vpop.f32.mrb[19].mxu1  ;;  %7009 = vtanh.f32 %v2706_v41 }
 0x55a   : > { %v8810_v33 = vadd.f32 %v2617_v40, %v2496_v36  ;;  %v2700_v22 = vpop.permute.xlu0 %2699  ;;  %7011 = vtanh.f32 %v2707_v57  ;;  %v8816_v61 = vpop.permute.xlu1 %2734  ;;  %v6282_v35 = vmul.f32 -1.442695, %v2743_v37 }
 0x55b   : > { %v2708_v51 = vadd.f32 %v2700_v22, %v2596_v24  ;;  %v2709_v36 = vadd.f32 %v2700_v22, %v2598_v11  ;;  %v2744_v24 = vadd.f32 %v2730_v55, %v2606_v50 }
 0x55d   : > { %7013 = vtanh.f32 %v2708_v51  ;;  %v8818_v46 = vpop.eup %7001  ;;  %v6283_v50 = vmul.f32 -1.442695, %v2744_v24 }
 0x55e   : > { %v2500_v52 = vpop.f32.mrb[16].mxu0  ;;  %v2631_v1 = vpop.f32.mrb[20].mxu1  ;;  %7015 = vtanh.f32 %v2709_v36 }
 0x55f   : > { %v2622_v39 = vadd.f32 %v2621_v42, %v2500_v52  ;;  %v2502_v10 = vpop.f32.mrb[17].mxu0  ;;  %v2633_v40 = vpop.f32.mrb[21].mxu1  ;;  %v2745_v42 = vadd.f32 %v2730_v55, %v2608_v27 }
 0x560   : > { %v2624_v23 = vadd.f32 %v2623_v32, %v2502_v10  ;;  %v2504_v14 = vpop.f32.mrb[18].mxu0  ;;  %v2635_v7 = vpop.f32.mrb[22].mxu1 }
 0x561   : > { %v2822_v0 = vadd.f32 %v8790_v60, %v2622_v39  ;;  %v2626_v20 = vadd.f32 %v2625_v25, %v2504_v14  ;;  %v2506_v18 = vpop.f32.mrb[19].mxu0  ;;  %v2637_v52 = vpop.f32.mrb[23].mxu1  ;;  %v6281_v25 = vmul.f32 -1.442695, %v2742_v30  ;;  %v6284_v55 = vmul.f32 -1.442695, %v2745_v42 }
 0x562   : > { %v2823_v49 = vadd.f32 %v8790_v60, %v2624_v23  ;;  %v2628_v17 = vadd.f32 %v2627_v16, %v2506_v18  ;;  %v8820_v27 = vpop.eup %7003 }
 0x563   : > { %v6289_v59 = vmul.f32 -1.442695, %v2822_v0  ;;  %v2824_v10 = vadd.f32 %v8788_v19, %v2626_v20  ;;  %v8823_v36 = vpop.eup %7005 }
 0x564   : > { %v6290_v45 = vmul.f32 -1.442695, %v2823_v49  ;;  %v2825_v11 = vadd.f32 %v8788_v19, %v2628_v17  ;;  %v8828_v18 = vpop.eup %7007 }
 0x565   : > { %v6291_v32 = vmul.f32 -1.442695, %v2824_v10  ;;  %7017 = vpow2.f32 %v6289_v59  ;;  %v8831_v17 = vpop.eup %7009 }
 0x566   : > { %v6292_v23 = vmul.f32 -1.442695, %v2825_v11  ;;  %v2510_v60 = vpop.f32.mrb[20].mxu0  ;;  %7019 = vpow2.f32 %v6290_v45  ;;  %v2641_v16 = vpop.f32.mrb[24].mxu1 }
 0x567   : > { %v2632_v13 = vadd.f32 %v2631_v1, %v2510_v60  ;;  %v2512_v6 = vpop.f32.mrb[21].mxu0  ;;  %7021 = vpow2.f32 %v6291_v32  ;;  %v2643_v41 = vpop.f32.mrb[25].mxu1  ;;  %v2746_v1 = vadd.f32 %v8816_v61, %v8804_v8 }
 0x568   : > { %v2634_v22 = vadd.f32 %v2633_v40, %v2512_v6  ;;  %v2514_v19 = vpop.f32.mrb[22].mxu0  ;;  %7023 = vpow2.f32 %v6292_v23  ;;  %v2645_v14 = vpop.f32.mrb[26].mxu1 }
 0x569   : > { %v2826_v57 = vadd.f32 %v8796_v26, %v2632_v13  ;;  %v2636_v39 = vadd.f32 %v2635_v7, %v2514_v19  ;;  %v2516_v51 = vpop.f32.mrb[23].mxu0  ;;  %7025 = vpow2.f32 %v6281_v25  ;;  %v2647_v20 = vpop.f32.mrb[27].mxu1 }
 0x56a   : > { %v2827_v0 = vadd.f32 %v8796_v26, %v2634_v22  ;;  %v2638_v40 = vadd.f32 %v2637_v52, %v2516_v51  ;;  %7027 = vpow2.f32 %v6282_v35  ;;  %v8834_v59 = vpop.eup %7011  ;;  %v6285_v26 = vmul.f32 -1.442695, %v2746_v1 }
 0x56b   : > { %v6293_v30 = vmul.f32 -1.442695, %v2826_v57  ;;  %v2828_v49 = vadd.f32 %v8798_v62, %v2636_v39  ;;  %7029 = vpow2.f32 %v6283_v50  ;;  %v8836_v10 = vpop.eup %7013 }
 0x56c   : > { %v6294_v7 = vmul.f32 -1.442695, %v2827_v0  ;;  %v2829_v37 = vadd.f32 %v8798_v62, %v2638_v40  ;;  %7031 = vpow2.f32 %v6284_v55  ;;  %v8838_v45 = vpop.eup %7015 }
 0x56d   : > { %v6295_v8 = vmul.f32 -1.442695, %v2828_v49  ;;  %7033 = vpow2.f32 %v6293_v30 }
 0x56e   : > { %v6296_v52 = vmul.f32 -1.442695, %v2829_v37  ;;  %v2520_v24 = vpop.f32.mrb[24].mxu0  ;;  %7035 = vpow2.f32 %v6294_v7  ;;  %v2651_v32 = vpop.f32.mrb[28].mxu1 }
 0x56f   : > { %v2642_v11 = vadd.f32 %v2641_v16, %v2520_v24  ;;  %v2522_v42 = vpop.f32.mrb[25].mxu0  ;;  %v7018_v25 = vpop.eup %7017  ;;  %7037 = vpow2.f32 %v6295_v8 }
 0x570   : > { %v2644_v23 = vadd.f32 %v2643_v41, %v2522_v42  ;;  %v2524_v62 = vpop.f32.mrb[26].mxu0  ;;  %v2653_v60 = vpop.f32.mrb[29].mxu1  ;;  %v2854_v13 = vadd.f32 1.0, %v7018_v25  ;;  %7039 = vpow2.f32 %v6296_v52  ;;  %v2747_v25 = vadd.f32 %v8816_v61, %v8806_v63 }
 0x571   : > { %v7020_v35 = vpop.eup %7019  ;;  %v2902_v6 = vadd.f32 %v8792_v48, %v2642_v11  ;;  %v2646_v50 = vadd.f32 %v2645_v14, %v2524_v62  ;;  %v2526_v22 = vpop.f32.mrb[27].mxu0  ;;  %7041 = vpow2.f32 %v6285_v26 }
 0x572   : > { %v2655_v19 = vpop.f32.mrb[30].mxu1  ;;  %v7022_v55 = vpop.eup %7021  ;;  %v2855_v57 = vadd.f32 1.0, %v7020_v35  ;;  %v2903_v16 = vadd.f32 %v8792_v48, %v2644_v23  ;;  %v2648_v39 = vadd.f32 %v2647_v20, %v2526_v22  ;;  %7043 = vrcp.f32 %v2854_v13 }
 0x573   : > { %v2657_v51 = vpop.f32.mrb[31].mxu1  ;;  %v7024_v1 = vpop.eup %7023  ;;  %v2856_v41 = vadd.f32 1.0, %v7022_v55  ;;  %v6297_v0 = vmul.f32 -1.442695, %v2902_v6  ;;  %v2904_v40 = vadd.f32 %v8794_v58, %v2646_v50 }
 0x574   : > { %v8843_v30 = vpop.eup %7025  ;;  %7045 = vrcp.f32 %v2855_v57  ;;  %v2857_v49 = vadd.f32 1.0, %v7024_v1  ;;  %v6298_v14 = vmul.f32 -1.442695, %v2903_v16  ;;  %v2905_v7 = vadd.f32 %v8794_v58, %v2648_v39 }
 0x575   : > { %v8846_v37 = vpop.eup %7027  ;;  %7047 = vrcp.f32 %v2856_v41  ;;  %v6299_v8 = vmul.f32 -1.442695, %v2904_v40  ;;  %v2740_v40 = vpop.permute.xlu0 %2739 }
 0x576   : > { %v8848_v48 = vpop.eup %7029  ;;  %7049 = vrcp.f32 %v2857_v49  ;;  %v6300_v20 = vmul.f32 -1.442695, %v2905_v7  ;;  %v2530_v26 = vpop.f32.mrb[28].mxu0 }
 0x577   : > { %v8850_v52 = vpop.eup %7031  ;;  %7051 = vpow2.f32 %v6297_v0  ;;  %v2652_v24 = vadd.f32 %v2651_v32, %v2530_v26  ;;  %v2532_v11 = vpop.f32.mrb[29].mxu0 }
 0x578   : > { %v7034_v42 = vpop.eup %7033  ;;  %7053 = vpow2.f32 %v6298_v14  ;;  %v2654_v58 = vadd.f32 %v2653_v60, %v2532_v11  ;;  %v2534_v23 = vpop.f32.mrb[30].mxu0 }
 0x579   : > { %v7036_v62 = vpop.eup %7035  ;;  %v2858_v35 = vadd.f32 1.0, %v7034_v42  ;;  %7055 = vpow2.f32 %v6299_v8  ;;  %v2906_v13 = vadd.f32 %v8800_v47, %v2652_v24  ;;  %v2656_v6 = vadd.f32 %v2655_v19, %v2534_v23  ;;  %v2536_v50 = vpop.f32.mrb[31].mxu0 }
 0x57a   : > { %v7038_v22 = vpop.eup %7037  ;;  %v2859_v55 = vadd.f32 1.0, %v7036_v62  ;;  %7057 = vpow2.f32 %v6300_v20  ;;  %v2907_v32 = vadd.f32 %v8800_v47, %v2654_v58  ;;  %v2658_v57 = vadd.f32 %v2657_v51, %v2536_v50 }
 0x57b   : > { %v7040_v16 = vpop.eup %7039  ;;  %7059 = vrcp.f32 %v2858_v35  ;;  %v2860_v39 = vadd.f32 1.0, %v7038_v22  ;;  %v6301_v63 = vmul.f32 -1.442695, %v2906_v13  ;;  %v2908_v61 = vadd.f32 %v8802_v29, %v2656_v6 }
 0x57c   : > { %v8857_v60 = vpop.eup %7041  ;;  %7061 = vrcp.f32 %v2859_v55  ;;  %v2861_v1 = vadd.f32 1.0, %v7040_v16  ;;  %v6302_v41 = vmul.f32 -1.442695, %v2907_v32  ;;  %v2909_v19 = vadd.f32 %v8802_v29, %v2658_v57 }
 0x57d   : > { %v7044_v0 = vpop.eup %7043  ;;  %7063 = vrcp.f32 %v2860_v39  ;;  %v6303_v49 = vmul.f32 -1.442695, %v2908_v61  ;;  %v6286_v8 = vmul.f32 -1.442695, %v2747_v25  ;;  %v2748_v24 = vadd.f32 %v2740_v40, %v8808_v12 }
 0x57e   : > { %v7046_v14 = vpop.eup %7045  ;;  %v8861_v47 = vmul.f32 %v7044_v0, %v8818_v46  ;;  %7065 = vrcp.f32 %v2861_v1  ;;  %v6304_v51 = vmul.f32 -1.442695, %v2909_v19  ;;  %v2749_v42 = vadd.f32 %v2740_v40, %v8810_v33  ;;  %v2959_v40 = vld [vmem:[#allocation2 + $0x8] sm:$0xff] }
 0x57f   : > { %v7048_v7 = vpop.eup %7047  ;;  %v8864_v20 = vmul.f32 %v7046_v14, %v8820_v27  ;;  %7067 = vpow2.f32 %v6301_v63  ;;  %v6287_v35 = vmul.f32 -1.442695, %v2748_v24  ;;  %v2774_v22 = vadd.f32 1.0, %v8843_v30 }
 0x580   : > { %v7050_v26 = vpop.eup %7049  ;;  %v8868_v29 = vmul.f32 %v7048_v7, %v8823_v36  ;;  %7069 = vpow2.f32 %v6302_v41  ;;  %v6288_v13 = vmul.f32 -1.442695, %v2749_v42  ;;  %v2958_v41 = vld [vmem:[#allocation2] sm:$0xff] }
 0x581   : > { %v7052_v11 = vpop.eup %7051  ;;  %v8872_v46 = vmul.f32 %v7050_v26, %v8828_v18  ;;  %7071 = vpow2.f32 %v6303_v49  ;;  %v2961_v26 = vld [vmem:[#allocation2 + $0x18] sm:$0xff] }
 0x582   : > { %v7054_v58 = vpop.eup %7053  ;;  %v2934_v25 = vadd.f32 1.0, %v7052_v11  ;;  %7073 = vpow2.f32 %v6304_v51  ;;  %v2960_v51 = vld [vmem:[#allocation2 + $0x10] sm:$0xff] }
 0x583   : > { %v7056_v27 = vpop.eup %7055  ;;  %7075 = vpow2.f32 %v6286_v8  ;;  %v2935_v23 = vadd.f32 1.0, %v7054_v58 }
 0x584   : > { %v7058_v62 = vpop.eup %7057  ;;  %7077 = vrcp.f32 %v2934_v25  ;;  %v2936_v12 = vadd.f32 1.0, %v7056_v27 }
 0x585   : > { %v7060_v36 = vpop.eup %7059  ;;  %7079 = vrcp.f32 %v2935_v23  ;;  %v2937_v6 = vadd.f32 1.0, %v7058_v62  ;;  %v2778_v23 = vadd.f32 1.0, %v8857_v60  ;;  %v2964_v60 = vld [vmem:[#allocation2 + $0x30] sm:$0xff] }
 0x586   : > { %v7062_v50 = vpop.eup %7061  ;;  %v8875_v33 = vmul.f32 %v7060_v36, %v8831_v17  ;;  %7081 = vrcp.f32 %v2936_v12  ;;  %v2962_v36 = vld [vmem:[#allocation2 + $0x20] sm:$0xff] }
 0x587   : > { %v7064_v18 = vpop.eup %7063  ;;  %v8879_v55 = vmul.f32 %v7062_v50, %v8834_v59  ;;  %7083 = vrcp.f32 %v2937_v6  ;;  %v2775_v59 = vadd.f32 1.0, %v8846_v37  ;;  %v2963_v6 = vld [vmem:[#allocation2 + $0x28] sm:$0xff] }
 0x588   : > { %v7066_v32 = vpop.eup %7065  ;;  %7085 = vpow2.f32 %v6287_v35  ;;  %v8882_v57 = vmul.f32 %v7064_v18, %v8836_v10  ;;  %v2776_v10 = vadd.f32 1.0, %v8848_v48 }
 0x589   : > { %v7068_v16 = vpop.eup %7067  ;;  %7087 = vpow2.f32 %v6288_v13  ;;  %v8885_v39 = vmul.f32 %v7066_v32, %v8838_v45  ;;  %v2777_v45 = vadd.f32 1.0, %v8850_v52 }
 0x58a   : > { %v7070_v17 = vpop.eup %7069  ;;  %v2938_v63 = vadd.f32 1.0, %v7068_v16  ;;  %7089 = vrcp.f32 %v2774_v22 }
 0x58b   : > { %v7072_v61 = vpop.eup %7071  ;;  %v2939_v1 = vadd.f32 1.0, %v7070_v17 }
 0x58c   : > { %v7074_v30 = vpop.eup %7073  ;;  %7091 = vrcp.f32 %v2938_v63  ;;  %v2940_v19 = vadd.f32 1.0, %v7072_v61 }
 0x58d   : > { %v7076_v0 = vpop.eup %7075  ;;  %7093 = vrcp.f32 %v2939_v1  ;;  %v2941_v49 = vadd.f32 1.0, %v7074_v30 }
 0x58e   : > { %v7078_v14 = vpop.eup %7077  ;;  %7095 = vrcp.f32 %v2940_v19  ;;  %v2779_v35 = vadd.f32 1.0, %v7076_v0 }
 0x58f   : > { %v7080_v7 = vpop.eup %7079  ;;  %v2966_v8 = vmul.f32 %v7078_v14, %v2958_v41  ;;  %7097 = vrcp.f32 %v2941_v49 }
 0x590   : > { %v7082_v24 = vpop.eup %7081  ;;  %7099 = vrcp.f32 %v2775_v59  ;;  %v2967_v37 = vmul.f32 %v7080_v7, %v2959_v40 }
 0x591   : > { %v7084_v11 = vpop.eup %7083  ;;  %7101 = vrcp.f32 %v2776_v10  ;;  %v2982_v42 = vadd.f32 %v8861_v47, %v2966_v8  ;;  %v2968_v48 = vmul.f32 %v7082_v24, %v2960_v51 }
 0x592   : > { %v7086_v58 = vpop.eup %7085  ;;  %7103 = vrcp.f32 %v2777_v45  ;;  %v2983_v25 = vadd.f32 %v8864_v20, %v2967_v37  ;;  %v2969_v27 = vmul.f32 %v7084_v11, %v2961_v26 }
 0x593   : > { %v7088_v52 = vpop.eup %7087  ;;  %2990 = vst [vmem:[#allocation2] sm:$0xff] %v2982_v42  ;;  %7105 = vtanh.f32 %v2982_v42  ;;  %v2984_v62 = vadd.f32 %v8868_v29, %v2968_v48  ;;  %v2780_v13 = vadd.f32 1.0, %v7086_v58  ;;  %v2965_v29 = vld [vmem:[#allocation2 + $0x38] sm:$0xff] }
 0x594   : > { %2991 = vst [vmem:[#allocation2 + $0x8] sm:$0xff] %v2983_v25  ;;  %7107 = vtanh.f32 %v2983_v25  ;;  %v2985_v12 = vadd.f32 %v8872_v46, %v2969_v27  ;;  %v7090_v47 = vpop.eup %7089  ;;  %v2781_v50 = vadd.f32 1.0, %v7088_v52  ;;  %v6927_v27 = vld [vmem:[%s10956_s3 + $0xc8] ss:$0 sps:$4 sm:$0xff]   ;;  %v2228_v52 = vld [vmem:[%s10956_s3 + $0xc0] sm:$0xff] }
 0x595   : > { %2992 = vst [vmem:[#allocation2 + $0x10] sm:$0xff] %v2984_v62  ;;  %7109 = vtanh.f32 %v2984_v62  ;;  %6280 = vmatmul.mubr.msk.bf16.gmra.mrb[32].mxu1 %vm2398_vm6, %v6927_v27  ;;  %v9022_v62 = vcombine.low %v2228_v52, %v2228_v52 }
 0x596   : > { %v7092_v20 = vpop.eup %7091  ;;  %2993 = vst [vmem:[#allocation2 + $0x18] sm:$0xff] %v2985_v12  ;;  %7111 = vtanh.f32 %v2985_v12  ;;  %v6305_v12 = vld [vmem:[%s7542_s14 + $0x4] sm:$0x3] }
 0x597   : > { %v7094_v18 = vpop.eup %7093  ;;  %7113 = vrcp.f32 %v2778_v23  ;;  %v2970_v22 = vmul.f32 %v7092_v20, %v2962_v36  ;;  %v9017_v23 = vcombine.high %v2228_v52, %v2228_v52  ;;  %v9043_v36 = vrot.slane %v6305_v12, %v7537_v2  ;;  %v7385_v52 = vld [vmem:[%s10957_s4 + $0x40] sm:$0xff] }
 0x598   : > { %v7096_v32 = vpop.eup %7095  ;;  %7115 = vrcp.f32 %v2779_v35  ;;  %v2971_v16 = vmul.f32 %v7094_v18, %v2963_v6  ;;  %v6932_v35 = vld [vmem:[%s10956_s3 + $0x4] ss:$12 sps:$4 sm:$0xff]  }
 0x599   : > { %v7098_v17 = vpop.eup %7097  ;;  %7117 = vrcp.f32 %v2780_v13  ;;  %v2986_v46 = vadd.f32 %v8875_v33, %v2970_v22  ;;  %v2972_v63 = vmul.f32 %v7096_v32, %v2964_v60  ;;  %2538 = vmatprep.mubr.bf16.mxu0 %v9017_v23  ;;  %3736 = vmatprep.mubr.bf16.mxu1 %v6932_v35 }
 0x59a   : > { %v7100_v61 = vpop.eup %7099  ;;  %7119 = vrcp.f32 %v2781_v50  ;;  %v2987_v1 = vadd.f32 %v8879_v55, %v2971_v16  ;;  %v2973_v30 = vmul.f32 %v7098_v17, %v2965_v29  ;;  %2539 = vmatmul.mubr.bf16.gmra.mrb[32].mxu0 %v9022_v62 }
 0x59b   : > { %v7102_v59 = vpop.eup %7101  ;;  %2994 = vst [vmem:[#allocation2 + $0x20] sm:$0xff] %v2986_v46  ;;  %7121 = vtanh.f32 %v2986_v46  ;;  %v2988_v41 = vadd.f32 %v8882_v57, %v2972_v63 }
 0x59c   : > { %v7104_v19 = vpop.eup %7103  ;;  %2995 = vst [vmem:[#allocation2 + $0x28] sm:$0xff] %v2987_v1  ;;  %7123 = vtanh.f32 %v2987_v1  ;;  %v2989_v0 = vadd.f32 %v8885_v39, %v2973_v30 }
 0x59d   : > { %v7106_v10 = vpop.eup %7105  ;;  %2996 = vst [vmem:[#allocation2 + $0x30] sm:$0xff] %v2988_v41  ;;  %7125 = vtanh.f32 %v2988_v41 }
 0x59e   : > { %v7108_v33 = vpop.eup %7107  ;;  %v8899_v40 = vmul.f32 %v7106_v10, %v7090_v47  ;;  %2997 = vst [vmem:[#allocation2 + $0x38] sm:$0xff] %v2989_v0  ;;  %7127 = vtanh.f32 %v2989_v0  ;;  %v9048_v47 = vrot.slane %v6305_v12, %v7545_v3 }
 0x59f   : > { %v7110_v55 = vpop.eup %7109  ;;  %v8901_v49 = vmul.f32 %v7108_v33, %v7100_v61 }
 0x5a0   : > { %v7112_v14 = vpop.eup %7111  ;;  %v8903_v45 = vmul.f32 %v7110_v55, %v7102_v59  ;;  %3014 = vrot.lane.b32.xlu1 %v8899_v40, %s7450_s21 }
 0x5a1   : > { %v7114_v57 = vpop.eup %7113  ;;  %v8907_v51 = vmul.f32 %v7112_v14, %v7104_v19 }
 0x5a2   : > { %v7116_v39 = vpop.eup %7115  ;;  %3016 = vrot.lane.b32.xlu0 %v8903_v45, %s7450_s21 }
 0x5a3   : > { %v7118_v7 = vpop.eup %7117 }
 0x5a4   : > { %v7120_v8 = vpop.eup %7119  ;;  %3054 = vrot.lane.b32.xlu1 %v8899_v40, %s7449_s20 }
 0x5a5   : > { %v7122_v26 = vpop.eup %7121 }
 0x5a6   : > { %v7124_v24 = vpop.eup %7123  ;;  %v8913_v37 = vmul.f32 %v7122_v26, %v7114_v57  ;;  %3056 = vrot.lane.b32.xlu0 %v8903_v45, %s7449_s20 }
 0x5a7   : > { %v7126_v11 = vpop.eup %7125  ;;  %v8917_v42 = vmul.f32 %v7124_v24, %v7116_v39 }
 0x5a8   : > { %v7128_v48 = vpop.eup %7127  ;;  %v8919_v58 = vmul.f32 %v7126_v11, %v7118_v7  ;;  %3094 = vrot.lane.b32.xlu1 %v8899_v40, %s7448_s19 }
 0x5a9   : > { %v8923_v25 = vmul.f32 %v7128_v48, %v7120_v8 }
 0x5aa   : > { %3096 = vrot.lane.b32.xlu0 %v8903_v45, %s7448_s19 }
 0x5ac   : > { %3134 = vrot.lane.b32.xlu1 %v8899_v40, %s7451_s22 }
 0x5ae   : > { %3136 = vrot.lane.b32.xlu0 %v8903_v45, %s7451_s22 }
 0x5b0   : > { %3182 = vrot.lane.b32.xlu1 %v8899_v40, %s7452_s23 }
 0x5b2   : > { %3184 = vrot.lane.b32.xlu0 %v8903_v45, %s7452_s23 }
 0x5b4   : > { %3022 = vrot.lane.b32.xlu1 %v8901_v49, %s7450_s21 }
 0x5b6   : > { %3024 = vrot.lane.b32.xlu0 %v8907_v51, %s7450_s21 }
 0x5b8   : > { %3062 = vrot.lane.b32.xlu1 %v8901_v49, %s7449_s20 }
 0x5ba   : > { %3064 = vrot.lane.b32.xlu0 %v8907_v51, %s7449_s20 }
 0x5bc   : > { %3102 = vrot.lane.b32.xlu1 %v8901_v49, %s7448_s19 }
 0x5be   : > { %3104 = vrot.lane.b32.xlu0 %v8907_v51, %s7448_s19 }
 0x5c0   : > { %3142 = vrot.lane.b32.xlu1 %v8901_v49, %s7451_s22 }
 0x5c2   : > { %3144 = vrot.lane.b32.xlu0 %v8907_v51, %s7451_s22 }
 0x5c4   : > { %3018 = vrot.lane.b32.xlu1 %v8913_v37, %s7450_s21 }
 0x5c6   : > { %3020 = vrot.lane.b32.xlu0 %v8919_v58, %s7450_s21 }
 0x5c8   : > { %3058 = vrot.lane.b32.xlu1 %v8913_v37, %s7449_s20 }
 0x5ca   : > { %3060 = vrot.lane.b32.xlu0 %v8919_v58, %s7449_s20 }
 0x5cc   : > { %3098 = vrot.lane.b32.xlu1 %v8913_v37, %s7448_s19 }
 0x5ce   : > { %3100 = vrot.lane.b32.xlu0 %v8919_v58, %s7448_s19 }
 0x5d0   : > { %3138 = vrot.lane.b32.xlu1 %v8913_v37, %s7451_s22 }
 0x5d2   : > { %3140 = vrot.lane.b32.xlu0 %v8919_v58, %s7451_s22 }
 0x5d4   : > { %3026 = vrot.lane.b32.xlu1 %v8917_v42, %s7450_s21 }
 0x5d6   : > { %3028 = vrot.lane.b32.xlu0 %v8923_v25, %s7450_s21 }
 0x5d8   : > { %3190 = vrot.lane.b32.xlu1 %v8901_v49, %s7452_s23 }
 0x5da   : > { %3192 = vrot.lane.b32.xlu0 %v8907_v51, %s7452_s23 }
 0x5dc   : > { %3066 = vrot.lane.b32.xlu1 %v8917_v42, %s7449_s20 }
 0x5de   : > { %3068 = vrot.lane.b32.xlu0 %v8923_v25, %s7449_s20 }
 0x5e0   : > { %3106 = vrot.lane.b32.xlu1 %v8917_v42, %s7448_s19 }
 0x5e2   : > { %3188 = vrot.lane.b32.xlu0 %v8919_v58, %s7452_s23 }
 0x5e4   : > { %3146 = vrot.lane.b32.xlu1 %v8917_v42, %s7451_s22 }
 0x5e6   : > { %3108 = vrot.lane.b32.xlu0 %v8923_v25, %s7448_s19 }
 0x5e8   : > { %3186 = vrot.lane.b32.xlu1 %v8913_v37, %s7452_s23 }
 0x5ea   : > { %3224 = vrot.lane.b32.xlu0 %v8903_v45, %s11034_s12 }
 0x5ec   : > { %3194 = vrot.lane.b32.xlu1 %v8917_v42, %s7452_s23 }
 0x5ee   : > { %3148 = vrot.lane.b32.xlu0 %v8923_v25, %s7451_s22 }
 0x5f0   : > { %3222 = vrot.lane.b32.xlu1 %v8899_v40, %s11034_s12 }
 0x5f2   : > { %3232 = vrot.lane.b32.xlu0 %v8907_v51, %s11034_s12 }
 0x5f4   : > { %3230 = vrot.lane.b32.xlu1 %v8901_v49, %s11034_s12 }
 0x5f6   : > { %3228 = vrot.lane.b32.xlu0 %v8919_v58, %s11034_s12 }
 0x5f8   : > { %3226 = vrot.lane.b32.xlu1 %v8913_v37, %s11034_s12 }
 0x5fa   : > { %3264 = vrot.lane.b32.xlu0 %v8903_v45, %s11036_s25 }
 0x5fc   : > { %3234 = vrot.lane.b32.xlu1 %v8917_v42, %s11034_s12 }
 0x5fe   : > { %3196 = vrot.lane.b32.xlu0 %v8923_v25, %s7452_s23 }
 0x600   : > { %3262 = vrot.lane.b32.xlu1 %v8899_v40, %s11036_s25 }
 0x602   : > { %3272 = vrot.lane.b32.xlu0 %v8907_v51, %s11036_s25 }
 0x604   : > { %3270 = vrot.lane.b32.xlu1 %v8901_v49, %s11036_s25 }
 0x606   : > { %3236 = vrot.lane.b32.xlu0 %v8923_v25, %s11034_s12 }
 0x608   : > { %3266 = vrot.lane.b32.xlu1 %v8913_v37, %s11036_s25 }
 0x60a   : > { %3268 = vrot.lane.b32.xlu0 %v8919_v58, %s11036_s25 }
 0x60c   : > { %3274 = vrot.lane.b32.xlu1 %v8917_v42, %s11036_s25 }
 0x60e   : > { %3276 = vrot.lane.b32.xlu0 %v8923_v25, %s11036_s25 }
 0x610   : > { %3363 = vrot.lane.b32.xlu1 %v9043_v36, %s7449_s20 }
 0x612   : > { %v3015_v13 = vpop.permute.xlu1 %3014  ;;  %3365 = vrot.lane.b32.xlu0 %v9048_v47, %s7449_s20 }
 0x614   : > { %v3017_v6 = vpop.permute.xlu0 %3016  ;;  %3302 = vrot.lane.b32.xlu1 %v8899_v40, %s11035_s13 }
 0x616   : > { %v9056_v20 = vpop.permute.xlu1 %3054  ;;  %3304 = vrot.lane.b32.xlu0 %v8903_v45, %s11035_s13 }
 0x618   : > { %v9060_v50 = vpop.permute.xlu0 %3056  ;;  %3310 = vrot.lane.b32.xlu1 %v8901_v49, %s11035_s13 }
 0x61a   : > { %v9064_v60 = vpop.permute.xlu1 %3094  ;;  %3312 = vrot.lane.b32.xlu0 %v8907_v51, %s11035_s13 }
 0x61c   : > { %v9068_v18 = vpop.permute.xlu0 %3096  ;;  %3371 = vrot.lane.b32.xlu1 %v9043_v36, %s7448_s19 }
 0x61e   : > { %v9072_v22 = vpop.permute.xlu1 %3134  ;;  %3373 = vrot.lane.b32.xlu0 %v9048_v47, %s7448_s19 }
 0x620   : > { %v9076_v29 = vpop.permute.xlu0 %3136  ;;  %3355 = vrot.lane.b32.xlu1 %v9043_v36, %s7450_s21 }
 0x622   : > { %v9080_v32 = vpop.permute.xlu1 %3182  ;;  %3357 = vrot.lane.b32.xlu0 %v9048_v47, %s7450_s21 }
 0x624   : > { %v9084_v16 = vpop.permute.xlu0 %3184  ;;  %3379 = vrot.lane.b32.xlu1 %v9043_v36, %s7451_s22 }
 0x626   : > { %v3023_v17 = vpop.permute.xlu1 %3022  ;;  %3381 = vrot.lane.b32.xlu0 %v9048_v47, %s7451_s22 }
 0x627   : > { %v3030_v46 = vsel %vm343_vm1, %v3015_v13, %v3023_v17  ;;  %v3034_v63 = vsel %vm343_vm1, %v3023_v17, %v3015_v13  ;;  %v7386_v13 = vld [vmem:[%s10957_s4 + $0x48] sm:$0xff] }
 0x628   : > { %v3025_v61 = vpop.permute.xlu0 %3024  ;;  %3387 = vrot.lane.b32.xlu1 %v9043_v36, %s7452_s23  ;;  %v3038_v59 = vmul.f32 %v3034_v63, %v8267_v4  ;;  %v3039_v41 = vmul.f32 %v3030_v46, %v8271_v31  ;;  %v7388_v63 = vld [vmem:[%s10957_s4 + $0x68] sm:$0xff] }
 0x629   : > { %v3031_v1 = vsel %vm343_vm1, %v3017_v6, %v3025_v61  ;;  %v3035_v30 = vsel %vm343_vm1, %v3025_v61, %v3017_v6  ;;  %v7387_v6 = vld [vmem:[%s10957_s4 + $0x60] sm:$0xff] }
 0x62a   : > { %v3040_v19 = vmul.f32 %v3035_v30, %v8267_v4  ;;  %v3041_v0 = vmul.f32 %v3031_v1, %v8271_v31  ;;  %v3063_v10 = vpop.permute.xlu1 %3062  ;;  %3389 = vrot.lane.b32.xlu0 %v9048_v47, %s7452_s23  ;;  %v4080_v30 = vld [vmem:[%s10957_s4 + $0x58] sm:$0xff] }
 0x62c   : > { %v3046_v33 = vpack.c.bf16 %v3040_v19, %v3038_v59  ;;  %v3047_v55 = vpack.c.bf16 %v3041_v0, %v3039_v41  ;;  %v3065_v14 = vpop.permute.xlu0 %3064  ;;  %3306 = vrot.lane.b32.xlu1 %v8913_v37, %s11035_s13  ;;  %v7389_v41 = vld [vmem:[%s10957_s4 + $0x50] sm:$0xff]  ;;  %v3070_v0 = vsel %vm352_vm0, %v9056_v20, %v3063_v10 }
 0x62d   : > { %v3071_v59 = vsel %vm352_vm0, %v9060_v50, %v3065_v14 }
 0x62e   : > { %v9108_v57 = vpop.permute.xlu1 %3102  ;;  %3308 = vrot.lane.b32.xlu0 %v8919_v58, %s11035_s13  ;;  %3704 = vmatprep.subr.bf16.mxu1 %v3047_v55 }
 0x62f   : > { %3705 = vmatpush1.bf16.msra.mxu1 %v3046_v33  ;;  %v3075_v33 = vsel %vm352_vm0, %v3065_v14, %v9060_v50  ;;  %v3074_v50 = vsel %vm352_vm0, %v3063_v10, %v9056_v20  ;;  %v3081_v14 = vmul.f32 %v3071_v59, %v8321_v43 }
 0x630   : > { %v9112_v39 = vpop.permute.xlu0 %3104  ;;  %3314 = vrot.lane.b32.xlu1 %v8917_v42, %s11035_s13  ;;  %v3078_v20 = vmul.f32 %v3074_v50, %v8317_v21 }
 0x631   : > { %v3111_v10 = vsel %vm367_vm3, %v9068_v18, %v9112_v39  ;;  %v3115_v50 = vsel %vm367_vm3, %v9112_v39, %v9068_v18 }
 0x632   : > { %v9116_v7 = vpop.permute.xlu1 %3142  ;;  %3397 = vrot.lane.b32.xlu0 %v9048_v47, %s11034_s12 }
 0x634   : > { %v9120_v8 = vpop.permute.xlu0 %3144  ;;  %3395 = vrot.lane.b32.xlu1 %v9043_v36, %s11034_s12 }
 0x636   : > { %v3019_v26 = vpop.permute.xlu1 %3018  ;;  %3405 = vrot.lane.b32.xlu0 %v9048_v47, %s11036_s25 }
 0x638   : > { %3403 = vrot.lane.b32.xlu1 %v9043_v36, %s11036_s25  ;;  %v3021_v24 = vpop.permute.xlu0 %3020 }
 0x63a   : > { %v3059_v11 = vpop.permute.xlu1 %3058  ;;  %3316 = vrot.lane.b32.xlu0 %v8923_v25, %s11035_s13 }
 0x63c   : > { %3411 = vrot.lane.b32.xlu1 %v9043_v36, %s11035_s13  ;;  %v3061_v48 = vpop.permute.xlu0 %3060 }
 0x63e   : > { %v9132_v27 = vpop.permute.xlu1 %3098  ;;  %3413 = vrot.lane.b32.xlu0 %v9048_v47, %s11035_s13 }
 0x640   : > { %4083 = vperm.xlu1 %6894, %v7385_v52   ;;  %v9139_v35 = vpop.permute.xlu0 %3100  ;;  %v4159_v52 = vld [vmem:[%s10957_s4 + $0x70] sm:$0xff] }
 0x642   : > { %v9141_v12 = vpop.permute.xlu1 %3138  ;;  %4088 = vperm.xlu0 %6893, %v7386_v13  }
 0x644   : > { %4163 = vperm.xlu1 %6894, %v7387_v6   ;;  %v9149_v17 = vpop.permute.xlu0 %3140 }
 0x646   : > { %v3027_v46 = vpop.permute.xlu1 %3026  ;;  %4168 = vperm.xlu0 %6893, %v7388_v63  }
 0x647   : > { %v3032_v61 = vsel %vm343_vm1, %v3019_v26, %v3027_v46  ;;  %v3036_v1 = vsel %vm343_vm1, %v3027_v46, %v3019_v26 }
 0x648   : > { %4093 = vperm.xlu1 %6894, %v7389_v41   ;;  %v3029_v19 = vpop.permute.xlu0 %3028  ;;  %v3042_v13 = vmul.f32 %v3036_v1, %v8267_v4  ;;  %v3043_v6 = vmul.f32 %v3032_v61, %v8271_v31  ;;  %v3080_v1 = vmul.f32 %v3075_v33, %v8317_v21 }
 0x649   : > { %v3033_v55 = vsel %vm343_vm1, %v3021_v24, %v3029_v19  ;;  %v3037_v26 = vsel %vm343_vm1, %v3029_v19, %v3021_v24  ;;  %v4160_v24 = vld [vmem:[%s10957_s4 + $0x78] sm:$0xff] }
 0x64a   : > { %v3044_v46 = vmul.f32 %v3037_v26, %v8267_v4  ;;  %v3045_v63 = vmul.f32 %v3033_v55, %v8271_v31  ;;  %v9184_v41 = vpop.permute.xlu1 %3190  ;;  %4098 = vperm.xlu0 %6893, %v4080_v30   ;;  %v3079_v55 = vmul.f32 %v3070_v0, %v8321_v43  ;;  %v3957_v30 = vld [vmem:[%s10957_s4] sm:$0xff] }
 0x64c   : > { %v3048_v61 = vpack.c.bf16 %v3044_v46, %v3042_v13  ;;  %v3049_v19 = vpack.c.bf16 %v3045_v63, %v3043_v6  ;;  %4173 = vperm.xlu1 %6894, %v4159_v52   ;;  %v9194_v26 = vpop.permute.xlu0 %3192  ;;  %v3087_v33 = vpack.c.bf16 %v3081_v14, %v3079_v55  ;;  %v3958_v13 = vld [vmem:[%s10957_s4 + $0x8] sm:$0xff]  ;;  %v3086_v6 = vpack.c.bf16 %v3080_v1, %v3078_v20  ;;  %v3997_v1 = vld [vmem:[%s10957_s4 + $0x20] sm:$0xff] }
 0x64d   : > { %v3110_v46 = vsel %vm367_vm3, %v9064_v60, %v9108_v57 }
 0x64e   : > { %v3067_v59 = vpop.permute.xlu1 %3066  ;;  %4178 = vperm.xlu0 %6893, %v4160_v24   ;;  %3706 = vmatprep.subr.bf16.mxu1 %v3049_v19  ;;  %v3119_v20 = vmul.f32 %v3110_v46, %v8368_v15 }
 0x64f   : > { %v3072_v52 = vsel %vm352_vm0, %v3059_v11, %v3067_v59  ;;  %v3076_v0 = vsel %vm352_vm0, %v3067_v59, %v3059_v11  ;;  %3707 = vmatpush1.bf16.msra.mxu1 %v3048_v61  ;;  %v3121_v11 = vmul.f32 %v3111_v10, %v8368_v15  ;;  %v3120_v10 = vmul.f32 %v3115_v50, %v8365_v38  ;;  %v3960_v50 = vld [vmem:[%s10957_s4 + $0x18] sm:$0xff] }
 0x650   : > { %3963 = vperm.xlu1 %6894, %v3957_v30   ;;  %v3069_v63 = vpop.permute.xlu0 %3068  ;;  %3708 = vmatprep.subr.bf16.mxu1 %v3087_v33  ;;  %v3082_v61 = vmul.f32 %v3076_v0, %v8317_v21  ;;  %v3083_v19 = vmul.f32 %v3072_v52, %v8321_v43  ;;  %v3998_v30 = vld [vmem:[%s10957_s4 + $0x28] sm:$0xff]  ;;  %v3959_v0 = vld [vmem:[%s10957_s4 + $0x10] sm:$0xff] }
 0x651   : > { %v3073_v14 = vsel %vm352_vm0, %v3061_v48, %v3069_v63  ;;  %v3077_v24 = vsel %vm352_vm0, %v3069_v63, %v3061_v48  ;;  %v3114_v48 = vsel %vm367_vm3, %v9108_v57, %v9064_v60  ;;  %v3127_v57 = vpack.c.bf16 %v3121_v11, %v3119_v20 }
 0x652   : > { %v3084_v55 = vmul.f32 %v3077_v24, %v8317_v21  ;;  %v3085_v18 = vmul.f32 %v3073_v14, %v8321_v43  ;;  %v3107_v39 = vpop.permute.xlu1 %3106  ;;  %3968 = vperm.xlu0 %6893, %v3958_v13   ;;  %v3118_v60 = vmul.f32 %v3114_v48, %v8365_v38  ;;  %v3151_v13 = vsel %vm380_vm2, %v9076_v29, %v9120_v8 }
 0x653   : > { %3709 = vmatpush1.bf16.msra.mxu1 %v3086_v6  ;;  %v3112_v46 = vsel %vm367_vm3, %v9132_v27, %v3107_v39  ;;  %v3116_v63 = vsel %vm367_vm3, %v3107_v39, %v9132_v27  ;;  %v3150_v14 = vsel %vm380_vm2, %v9072_v22, %v9116_v7  ;;  %v3161_v27 = vmul.f32 %v3151_v13, %v8415_v28 }
 0x654   : > { %v3088_v59 = vpack.c.bf16 %v3084_v55, %v3082_v61  ;;  %v3089_v33 = vpack.c.bf16 %v3085_v18, %v3083_v19  ;;  %4003 = vperm.xlu1 %6894, %v3997_v1   ;;  %v9241_v52 = vpop.permute.xlu0 %3188  ;;  %v3126_v11 = vpack.c.bf16 %v3120_v10, %v3118_v60  ;;  %v3155_v1 = vsel %vm380_vm2, %v9120_v8, %v9076_v29  ;;  %v3999_v55 = vld [vmem:[%s10957_s4 + $0x30] sm:$0xff] }
 0x655   : > { %v3122_v18 = vmul.f32 %v3116_v63, %v8365_v38  ;;  %v3123_v39 = vmul.f32 %v3112_v46, %v8368_v15  ;;  %v3159_v20 = vmul.f32 %v3150_v14, %v8415_v28 }
 0x656   : > { %v3147_v6 = vpop.permute.xlu1 %3146  ;;  %4008 = vperm.xlu0 %6893, %v3998_v30   ;;  %3710 = vmatprep.subr.bf16.mxu1 %v3089_v33  ;;  %v4000_v30 = vld [vmem:[%s10957_s4 + $0x38] sm:$0xff] }
 0x657   : > { %3711 = vmatpush1.bf16.msra.mxu1 %v3088_v59  ;;  %v3167_v60 = vpack.c.bf16 %v3161_v27, %v3159_v20  ;;  %v3152_v46 = vsel %vm380_vm2, %v9141_v12, %v3147_v6  ;;  %v3198_v20 = vsel %vm393_vm7, %v9080_v32, %v9184_v41 }
 0x658   : > { %3973 = vperm.xlu1 %6894, %v3959_v0   ;;  %v3109_v24 = vpop.permute.xlu0 %3108  ;;  %3712 = vmatprep.subr.bf16.mxu1 %v3127_v57  ;;  %v3160_v0 = vmul.f32 %v3155_v1, %v8412_v54 }
 0x659   : > { %v3113_v61 = vsel %vm367_vm3, %v9139_v35, %v3109_v24  ;;  %v3117_v19 = vsel %vm367_vm3, %v3109_v24, %v9139_v35  ;;  %v3154_v35 = vsel %vm380_vm2, %v9116_v7, %v9072_v22  ;;  %v3156_v22 = vsel %vm380_vm2, %v3147_v6, %v9141_v12 }
 0x65a   : > { %v3124_v29 = vmul.f32 %v3117_v19, %v8365_v38  ;;  %v3125_v8 = vmul.f32 %v3113_v61, %v8368_v15  ;;  %v3187_v48 = vpop.permute.xlu1 %3186  ;;  %3978 = vperm.xlu0 %6893, %v3960_v50   ;;  %v3158_v13 = vmul.f32 %v3154_v35, %v8412_v54  ;;  %v3162_v14 = vmul.f32 %v3156_v22, %v8412_v54 }
 0x65b   : > { %3713 = vmatpush1.bf16.msra.mxu1 %v3126_v11  ;;  %v3163_v24 = vmul.f32 %v3152_v46, %v8415_v28  ;;  %v3177_v35 = vpack.c.bf16 %v8923_v25, %v8917_v42  ;;  %v3206_v42 = vmul.f32 %v3198_v20, %v8450_v56 }
 0x65c   : > { %v3128_v10 = vpack.c.bf16 %v3124_v29, %v3122_v18  ;;  %v3129_v59 = vpack.c.bf16 %v3125_v8, %v3123_v39  ;;  %4013 = vperm.xlu1 %6894, %v3999_v55   ;;  %v9290_v33 = vpop.permute.xlu0 %3224  ;;  %v3166_v63 = vpack.c.bf16 %v3160_v0, %v3158_v13  ;;  %v3175_v18 = vpack.c.bf16 %v8907_v51, %v8901_v49 }
 0x65d   : > { %v3202_v29 = vsel %vm393_vm7, %v9184_v41, %v9080_v32  ;;  %v3199_v8 = vsel %vm393_vm7, %v9084_v16, %v9194_v26  ;;  %v3174_v49 = vpack.c.bf16 %v8903_v45, %v8899_v40  ;;  %v3176_v45 = vpack.c.bf16 %v8919_v58, %v8913_v37 }
 0x65e   : > { %v3195_v57 = vpop.permute.xlu1 %3194  ;;  %4018 = vperm.xlu0 %6893, %v4000_v30   ;;  %3714 = vmatprep.subr.bf16.mxu1 %v3129_v59  ;;  %v3208_v59 = vmul.f32 %v3199_v8, %v8450_v56 }
 0x65f   : > { %3715 = vmatpush1.bf16.msra.mxu1 %v3128_v10  ;;  %v3207_v10 = vmul.f32 %v3202_v29, %v8445_v44  ;;  %v3200_v40 = vsel %vm393_vm7, %v3187_v48, %v3195_v57  ;;  %v3204_v32 = vsel %vm393_vm7, %v3195_v57, %v3187_v48 }
 0x660   : > { %v3149_v7 = vpop.permute.xlu0 %3148  ;;  %3716 = vmatprep.subr.bf16.mxu1 %v3167_v60  ;;  %v3214_v0 = vpack.c.bf16 %v3208_v59, %v3206_v42  ;;  %v3210_v60 = vmul.f32 %v3200_v40, %v8450_v56  ;;  %v3211_v46 = vmul.f32 %v3204_v32, %v8445_v44 }
 0x661   : > { %v3153_v50 = vsel %vm380_vm2, %v9149_v17, %v3149_v7  ;;  %v3157_v11 = vsel %vm380_vm2, %v3149_v7, %v9149_v17  ;;  %v3203_v17 = vsel %vm393_vm7, %v9194_v26, %v9084_v16 }
 0x662   : > { %v3164_v1 = vmul.f32 %v3157_v11, %v8412_v54  ;;  %v3165_v12 = vmul.f32 %v3153_v50, %v8415_v28  ;;  %v3223_v6 = vpop.permute.xlu1 %3222  ;;  %v3209_v51 = vmul.f32 %v3203_v17, %v8445_v44 }
 0x663   : > { %3717 = vmatpush1.bf16.msra.mxu1 %v3166_v63 }
 0x664   : > { %v3168_v27 = vpack.c.bf16 %v3164_v1, %v3162_v14  ;;  %v3169_v61 = vpack.c.bf16 %v3165_v12, %v3163_v24  ;;  %v3233_v19 = vpop.permute.xlu0 %3232  ;;  %v3215_v25 = vpack.c.bf16 %v3209_v51, %v3207_v10 }
 0x665   : > { %v3243_v37 = vsel %vm406_vm8, %v3233_v19, %v9290_v33  ;;  %v3239_v11 = vsel %vm406_vm8, %v9290_v33, %v3233_v19 }
 0x666   : > { %v3231_v55 = vpop.permute.xlu1 %3230  ;;  %3718 = vmatprep.subr.bf16.mxu1 %v3169_v61  ;;  %v3249_v14 = vmul.f32 %v3243_v37, %v8485_v34 }
 0x667   : > { %3719 = vmatpush1.bf16.msra.mxu1 %v3168_v27  ;;  %v3242_v41 = vsel %vm406_vm8, %v3231_v55, %v3223_v6  ;;  %v3238_v58 = vsel %vm406_vm8, %v3223_v6, %v3231_v55  ;;  %v3248_v27 = vmul.f32 %v3239_v11, %v8482_v53 }
 0x668   : > { %v3229_v39 = vpop.permute.xlu0 %3228  ;;  %3720 = vmatprep.subr.bf16.mxu1 %v3175_v18  ;;  %v3247_v22 = vmul.f32 %v3242_v41, %v8485_v34  ;;  %v3246_v24 = vmul.f32 %v3238_v58, %v8482_v53 }
 0x66a   : > { %v3227_v30 = vpop.permute.xlu1 %3226  ;;  %v3255_v61 = vpack.c.bf16 %v3249_v14, %v3247_v22  ;;  %v3254_v19 = vpack.c.bf16 %v3248_v27, %v3246_v24 }
 0x66b   : > { %3721 = vmatpush1.bf16.msra.mxu1 %v3174_v49 }
 0x66c   : > { %v3265_v16 = vpop.permute.xlu0 %3264  ;;  %3722 = vmatprep.subr.bf16.mxu1 %v3177_v35 }
 0x66e   : > { %v3235_v26 = vpop.permute.xlu1 %3234 }
 0x66f   : > { %3723 = vmatpush1.bf16.msra.mxu1 %v3176_v45  ;;  %v3240_v6 = vsel %vm406_vm8, %v3227_v30, %v3235_v26  ;;  %v3244_v55 = vsel %vm406_vm8, %v3235_v26, %v3227_v30 }
 0x670   : > { %v3197_v13 = vpop.permute.xlu0 %3196  ;;  %3724 = vmatprep.subr.bf16.mxu1 %v3215_v25  ;;  %v3250_v17 = vmul.f32 %v3240_v6, %v8482_v53  ;;  %v3251_v8 = vmul.f32 %v3244_v55, %v8485_v34  ;;  %v6933_v6 = vld [vmem:[%s10956_s3 + $0x1c] ss:$12 sps:$4 sm:$0xff]  }
 0x671   : > { %v3201_v48 = vsel %vm393_vm7, %v9241_v52, %v3197_v13  ;;  %v3205_v57 = vsel %vm393_vm7, %v3197_v13, %v9241_v52 }
 0x672   : > { %v3212_v7 = vmul.f32 %v3201_v48, %v8450_v56  ;;  %v3213_v63 = vmul.f32 %v3205_v57, %v8445_v44  ;;  %v3263_v50 = vpop.permute.xlu1 %3262 }
 0x673   : > { %3725 = vmatpush1.bf16.msra.mxu1 %v3214_v0 }
 0x674   : > { %v3216_v1 = vpack.c.bf16 %v3212_v7, %v3210_v60  ;;  %v3217_v52 = vpack.c.bf16 %v3213_v63, %v3211_v46  ;;  %v3273_v12 = vpop.permute.xlu0 %3272 }
 0x675   : > { %v3283_v49 = vsel %vm419_vm9, %v3273_v12, %v3265_v16  ;;  %v3279_v45 = vsel %vm419_vm9, %v3265_v16, %v3273_v12  ;;  %v6930_v12 = vld [vmem:[%s10956_s3] ss:$12 sps:$4 sm:$0xff]  }
 0x676   : > { %v3271_v18 = vpop.permute.xlu1 %3270  ;;  %3726 = vmatprep.subr.bf16.mxu1 %v3217_v52  ;;  %v3289_v42 = vmul.f32 %v3283_v49, %v8588_v5  ;;  %v11063_v49 = vld [vmem:[#allocation22_spill] sm:$0xff] }
 0x677   : > { %v3282_v33 = vsel %vm419_vm9, %v3271_v18, %v3263_v50  ;;  %3727 = vmatpush1.bf16.msra.mxu1 %v3216_v1  ;;  %v3278_v35 = vsel %vm419_vm9, %v3263_v50, %v3271_v18 }
 0x678   : > { %v3237_v29 = vpop.permute.xlu0 %3236  ;;  %3728 = vmatprep.subr.bf16.mxu1 %v3255_v61  ;;  %v3287_v20 = vmul.f32 %v3282_v33, %v8588_v5 }
 0x679   : > { %v3241_v51 = vsel %vm406_vm8, %v3229_v39, %v3237_v29  ;;  %v3245_v30 = vsel %vm406_vm8, %v3237_v29, %v3229_v39  ;;  %v11061_v39 = vld [vmem:[#allocation23_spill] sm:$0xff]  ;;  %v11062_v29 = vld [vmem:[#allocation21_spill] sm:$0xff] }
 0x67a   : > { %v3252_v10 = vmul.f32 %v3241_v51, %v8482_v53  ;;  %v3253_v59 = vmul.f32 %v3245_v30, %v8485_v34  ;;  %v3267_v40 = vpop.permute.xlu1 %3266  ;;  %v3286_v41 = vmul.f32 %v3278_v35, %v11061_v39  ;;  %v3295_v0 = vpack.c.bf16 %v3289_v42, %v3287_v20 }
 0x67b   : > { %3729 = vmatpush1.bf16.msra.mxu1 %v3254_v19  ;;  %v3288_v13 = vmul.f32 %v3279_v45, %v11061_v39 }
 0x67c   : > { %v3256_v25 = vpack.c.bf16 %v3252_v10, %v3250_v17  ;;  %v3257_v26 = vpack.c.bf16 %v3253_v59, %v3251_v8  ;;  %v3269_v32 = vpop.permute.xlu0 %3268  ;;  %v6935_v10 = vld [vmem:[%s10956_s3 + $0x18] ss:$12 sps:$4 sm:$0xff]   ;;  %v6936_v59 = vld [vmem:[%s10956_s3 + $0x34] ss:$12 sps:$4 sm:$0xff]  }
 0x67d   : > { %v3294_v48 = vpack.c.bf16 %v3288_v13, %v3286_v41  ;;  %v6938_v41 = vld [vmem:[%s10956_s3 + $0x30] ss:$12 sps:$4 sm:$0xff]  }
 0x67e   : > { %v3275_v60 = vpop.permute.xlu1 %3274  ;;  %3730 = vmatprep.subr.bf16.mxu1 %v3257_v26 }
 0x67f   : > { %v3280_v37 = vsel %vm419_vm9, %v3267_v40, %v3275_v60  ;;  %v3284_v58 = vsel %vm419_vm9, %v3275_v60, %v3267_v40  ;;  %3731 = vmatpush1.bf16.msra.mxu1 %v3256_v25 }
 0x680   : > { %v3277_v16 = vpop.permute.xlu0 %3276  ;;  %3732 = vmatprep.subr.bf16.mxu1 %v3295_v0  ;;  %v3290_v22 = vmul.f32 %v3280_v37, %v11061_v39  ;;  %v3291_v7 = vmul.f32 %v3284_v58, %v8588_v5  ;;  %v6939_v0 = vld [vmem:[%s10956_s3 + $0x4c] ss:$12 sps:$4 sm:$0xff]  }
 0x681   : > { %v3281_v57 = vsel %vm419_vm9, %v3269_v32, %v3277_v16  ;;  %v3285_v46 = vsel %vm419_vm9, %v3277_v16, %v3269_v32  ;;  %v11064_v16 = vld [vmem:[#allocation7_spill] sm:$0xff] }
 0x682   : > { %v3292_v63 = vmul.f32 %v3281_v57, %v11061_v39  ;;  %v3293_v50 = vmul.f32 %v3285_v46, %v8588_v5  ;;  %v3364_v11 = vpop.permute.xlu1 %3363 }
 0x683   : > { %3733 = vmatpush1.bf16.msra.mxu1 %v3294_v48 }
 0x684   : > { %v3296_v14 = vpack.c.bf16 %v3292_v63, %v3290_v22  ;;  %v3297_v24 = vpack.c.bf16 %v3293_v50, %v3291_v7  ;;  %v3366_v1 = vpop.permute.xlu0 %3365  ;;  %v11065_v7 = vld [vmem:[#allocation8_spill] sm:$0xff] }
 0x685   : > { %v3368_v60 = vsel %vm352_vm0, %v3366_v1, %v3364_v11  ;;  %v3367_v58 = vsel %vm352_vm0, %v3364_v11, %v3366_v1 }
 0x686   : > { %v3303_v52 = vpop.permute.xlu1 %3302  ;;  %3734 = vmatprep.subr.bf16.mxu1 %v3297_v24  ;;  %v3369_v48 = vmul.f32 %v3368_v60, %v11064_v16  ;;  %v3370_v63 = vmul.f32 %v3367_v58, %v11065_v7 }
 0x687   : > { %3735 = vmatpush1.bf16.msra.mxu1 %v3296_v14  ;;  %v11066_v14 = vld [vmem:[#allocation9_spill] sm:$0xff] }
 0x688   : > { %v3305_v27 = vpop.permute.xlu0 %3304 }
 0x68a   : > { %v3311_v61 = vpop.permute.xlu1 %3310  ;;  %3737 = vmatmul.mubr.bf16.vlgmr.msra.gmra.mrb[36].mxu1 %v6930_v12  ;;  %v3421_v12 = vrot.slane %v3369_v48, 7  ;;  %v6944_v48 = vld [vmem:[%s10956_s3 + $0x60] ss:$12 sps:$4 sm:$0xff]  }
 0x68b   : > { %v3318_v55 = vsel %vm432_vm12, %v3303_v52, %v3311_v61  ;;  %v3322_v18 = vsel %vm432_vm12, %v3311_v61, %v3303_v52  ;;  %3746 = vmatprep.mubr.bf16.mxu1 %v6933_v6  ;;  %v6941_v52 = vld [vmem:[%s10956_s3 + $0x48] ss:$12 sps:$4 sm:$0xff]  }
 0x68c   : > { %v3313_v33 = vpop.permute.xlu0 %3312  ;;  %v3326_v8 = vmul.f32 %v3318_v55, %v11062_v29  ;;  %v3327_v51 = vmul.f32 %v3322_v18, %v11063_v49  ;;  %v6942_v55 = vld [vmem:[%s10956_s3 + $0x64] ss:$12 sps:$4 sm:$0xff]  }
 0x68d   : > { %v3319_v19 = vsel %vm432_vm12, %v3305_v27, %v3313_v33  ;;  %v3323_v17 = vsel %vm432_vm12, %v3313_v33, %v3305_v27  ;;  %v11067_v27 = vld [vmem:[#allocation5_spill] sm:$0xff]  ;;  %v11068_v33 = vld [vmem:[#allocation10_spill] sm:$0xff] }
 0x68e   : > { %v3328_v30 = vmul.f32 %v3319_v19, %v11062_v29  ;;  %v3329_v35 = vmul.f32 %v3323_v17, %v11063_v49  ;;  %v3372_v20 = vpop.permute.xlu1 %3371 }
 0x690   : > { %v3334_v40 = vpack.c.bf16 %v3328_v30, %v3326_v8  ;;  %v3335_v45 = vpack.c.bf16 %v3329_v35, %v3327_v51  ;;  %v3374_v42 = vpop.permute.xlu0 %3373  ;;  %v11069_v8 = vld [vmem:[#allocation11_spill] sm:$0xff]  ;;  %v3422_v30 = vrot.slane %v3370_v63, 7 }
 0x691   : > { %v3376_v57 = vsel %vm367_vm3, %v3374_v42, %v3372_v20  ;;  %v3375_v50 = vsel %vm367_vm3, %v3372_v20, %v3374_v42  ;;  %v11070_v20 = vld [vmem:[#allocation6_spill] sm:$0xff] }
 0x692   : > { %v3356_v25 = vpop.permute.xlu1 %3355  ;;  %3747 = vmatmul.mubr.bf16.gmra.mrb[40].mxu1 %v6935_v10  ;;  %3825 = vmatprep.subr.bf16.mxu1 %v3335_v45  ;;  %v3377_v24 = vmul.f32 %v3376_v57, %v11066_v14  ;;  %v3378_v19 = vmul.f32 %v3375_v50, %v11068_v33  ;;  %v11071_v45 = vld [vmem:[#allocation12_spill] sm:$0xff] }
 0x693   : > { %3826 = vmatpush1.bf16.msra.mxu1 %v3334_v40  ;;  %3756 = vmatprep.mubr.bf16.mxu1 %v6936_v59  ;;  %v6945_v57 = vld [vmem:[%s10956_s3 + $0x7c] ss:$12 sps:$4 sm:$0xff]  }
 0x694   : > { %v3358_v26 = vpop.permute.xlu0 %3357  ;;  %v3427_v35 = vrot.slane %v3377_v24, 6 }
 0x695   : > { %v3360_v46 = vsel %vm343_vm1, %v3358_v26, %v3356_v25  ;;  %v3359_v6 = vsel %vm343_vm1, %v3356_v25, %v3358_v26  ;;  %v3428_v26 = vrot.slane %v3378_v19, 6 }
 0x696   : > { %v3380_v32 = vpop.permute.xlu1 %3379  ;;  %v3361_v61 = vmul.f32 %v3360_v46, %v11067_v27  ;;  %v3362_v10 = vmul.f32 %v3359_v6, %v11070_v20 }
 0x698   : > { %v3382_v13 = vpop.permute.xlu0 %3381  ;;  %v3455_v40 = vsel %vm473_vm4, %v3361_v61, %v3421_v12  ;;  %v11076_v12 = vld [vmem:[#allocation14_spill] sm:$0xff] }
 0x699   : > { %v3384_v11 = vsel %vm380_vm2, %v3382_v13, %v3380_v32  ;;  %v3383_v17 = vsel %vm380_vm2, %v3380_v32, %v3382_v13  ;;  %v3457_v32 = vsel %vm11072_vm10, %v3455_v40, %v3427_v35  ;;  %vm11080_vm10 = vcmask 1043456  }
 0x69a   : > { %v3388_v37 = vpop.permute.xlu1 %3387  ;;  %3757 = vmatmul.mubr.bf16.gmra.mrb[44].mxu1 %v6938_v41  ;;  %v3385_v51 = vmul.f32 %v3384_v11, %v11069_v8  ;;  %v3386_v42 = vmul.f32 %v3383_v17, %v11071_v45  ;;  %v11077_v17 = vld [vmem:[#allocation15_spill] sm:$0xff] }
 0x69b   : > { %3766 = vmatprep.mubr.bf16.mxu1 %v6939_v0  ;;  %v3456_v0 = vsel %vm473_vm4, %v3362_v10, %v3422_v30  ;;  %v11078_v30 = vld [vmem:[#allocation16_spill] sm:$0xff] }
 0x69c   : > { %v3390_v22 = vpop.permute.xlu0 %3389  ;;  %v3433_v41 = vrot.slane %v3385_v51, 5  ;;  %v3434_v46 = vrot.slane %v3386_v42, 5  ;;  %v3458_v11 = vsel %vm11073_vm14, %v3456_v0, %v3428_v26  ;;  %v11081_v26 = vld [vmem:[#allocation17_spill] sm:$0xff]  ;;  %vm11083_vm14 = vmmov %vm11080_vm10 }
 0x69d   : > { %v3391_v60 = vsel %vm393_vm7, %v3388_v37, %v3390_v22  ;;  %v3392_v13 = vsel %vm393_vm7, %v3390_v22, %v3388_v37  ;;  %v11075_v22 = vld [vmem:[#allocation13_spill] sm:$0xff] }
 0x69e   : > { %v3307_v1 = vpop.permute.xlu1 %3306  ;;  %v3459_v37 = vsel %vm11074_vm15, %v3457_v32, %v3433_v41  ;;  %v3394_v6 = vmul.f32 %v3392_v13, %v11076_v12  ;;  %v3460_v42 = vsel %vm11079_vm13, %v3458_v11, %v3434_v46  ;;  %vm11086_vm15 = vcmask 1045504  }
 0x69f   : > { %vm11087_vm13 = vmmov %vm11086_vm15 }
 0x6a0   : > { %v3309_v18 = vpop.permute.xlu0 %3308 }
 0x6a2   : > { %v3315_v59 = vpop.permute.xlu1 %3314  ;;  %3767 = vmatmul.mubr.bf16.gmra.mrb[48].mxu1 %v6941_v52  ;;  %v3393_v52 = vmul.f32 %v3391_v60, %v11075_v22  ;;  %v3440_v60 = vrot.slane %v3394_v6, 3 }
 0x6a3   : > { %3776 = vmatprep.mubr.bf16.mxu1 %v6942_v55  ;;  %v3320_v61 = vsel %vm432_vm12, %v3307_v1, %v3315_v59  ;;  %v3324_v55 = vsel %vm432_vm12, %v3315_v59, %v3307_v1  ;;  %v11082_v59 = vld [vmem:[#allocation18_spill] sm:$0xff] }
 0x6a4   : > { %v3398_v25 = vpop.permute.xlu0 %3397  ;;  %v3439_v32 = vrot.slane %v3393_v52, 3 }
 0x6a6   : > { %v3396_v58 = vpop.permute.xlu1 %3395 }
 0x6a7   : > { %v3399_v63 = vsel %vm406_vm8, %v3396_v58, %v3398_v25  ;;  %v3400_v50 = vsel %vm406_vm8, %v3398_v25, %v3396_v58  ;;  %v3461_v25 = vsel %vm11080_vm10, %v3459_v37, %v9043_v36  ;;  %vm11088_vm10 = vcmask 1046528  }
 0x6a8   : > { %v3406_v24 = vpop.permute.xlu0 %3405  ;;  %v3401_v51 = vmul.f32 %v3399_v63, %v11077_v17  ;;  %v3402_v35 = vmul.f32 %v3400_v50, %v11078_v30  ;;  %v6947_v50 = vld [vmem:[%s10956_s3 + $0x78] ss:$12 sps:$4 sm:$0xff]  }
 0x6aa   : > { %v3404_v19 = vpop.permute.xlu1 %3403  ;;  %3777 = vmatmul.mubr.bf16.gmra.mrb[52].mxu1 %v6944_v48  ;;  %v3330_v48 = vmul.f32 %v3320_v61, %v11062_v29  ;;  %v3445_v11 = vrot.slane %v3401_v51, 2  ;;  %v3446_v37 = vrot.slane %v3402_v35, 2  ;;  %v11084_v51 = vld [vmem:[#allocation19_spill] sm:$0xff] }
 0x6ab   : > { %v3407_v10 = vsel %vm419_vm9, %v3404_v19, %v3406_v24  ;;  %v3408_v40 = vsel %vm419_vm9, %v3406_v24, %v3404_v19  ;;  %3786 = vmatprep.mubr.bf16.mxu1 %v6945_v57  ;;  %v3331_v57 = vmul.f32 %v3324_v55, %v11063_v49  ;;  %v3462_v24 = vsel %vm11083_vm14, %v3460_v42, %v9048_v47  ;;  %v11085_v42 = vld [vmem:[#allocation20_spill] sm:$0xff]  ;;  %vm11089_vm14 = vmmov %vm11088_vm10 }
 0x6ac   : > { %v3409_v1 = vmul.f32 %v3407_v10, %v11081_v26  ;;  %v3410_v41 = vmul.f32 %v3408_v40, %v11082_v59  ;;  %v3317_v0 = vpop.permute.xlu0 %3316  ;;  %v3463_v10 = vsel %vm485_vm11, %v3461_v25, %v3439_v32  ;;  %v3464_v47 = vsel %vm485_vm11, %v3462_v24, %v3440_v60  ;;  %v6950_v60 = vld [vmem:[%s10956_s3 + $0x90] ss:$12 sps:$4 sm:$0xff]   ;;  %v2661_v24 = vpop.f32.mrb[32].mxu1 }
 0x6ad   : > { %v3321_v13 = vsel %vm432_vm12, %v3309_v18, %v3317_v0  ;;  %v3325_v58 = vsel %vm432_vm12, %v3317_v0, %v3309_v18  ;;  %v6948_v18 = vld [vmem:[%s10956_s3 + $0x94] ss:$12 sps:$4 sm:$0xff]  }
 0x6ae   : > { %v3332_v46 = vmul.f32 %v3321_v13, %v11062_v29  ;;  %v3333_v36 = vmul.f32 %v3325_v58, %v11063_v49  ;;  %v3412_v63 = vpop.permute.xlu1 %3411  ;;  %v3451_v52 = vrot.slane %v3409_v1, 1  ;;  %v3452_v6 = vrot.slane %v3410_v41, 1 }
 0x6af   : > { %v3465_v1 = vsel %vm11086_vm15, %v3463_v10, %v3445_v11  ;;  %v3466_v41 = vsel %vm11087_vm13, %v3464_v47, %v3446_v37  ;;  %v2663_v11 = vpop.f32.mrb[33].mxu1  ;;  %v2540_v37 = vpop.f32.mrb[32].mxu0  ;;  %v6956_v10 = vld [vmem:[%s10956_s3 + $0x38] ss:$12 sps:$4 sm:$0xff]   ;;  %v6959_v47 = vld [vmem:[%s10956_s3 + $0x80] ss:$12 sps:$4 sm:$0xff]  }
 0x6b0   : > { %v3336_v61 = vpack.c.bf16 %v3332_v46, %v3330_v48  ;;  %v3337_v55 = vpack.c.bf16 %v3333_v36, %v3331_v57  ;;  %v3414_v19 = vpop.permute.xlu0 %3413  ;;  %v3467_v25 = vsel %vm11088_vm10, %v3465_v1, %v3451_v52  ;;  %v3468_v32 = vsel %vm11089_vm14, %v3466_v41, %v3452_v6  ;;  %v6951_v57 = vld [vmem:[%s10956_s3 + $0xac] ss:$12 sps:$4 sm:$0xff]   ;;  %v6953_v36 = vld [vmem:[%s10956_s3 + $0xa8] ss:$12 sps:$4 sm:$0xff]   ;;  %v2542_v52 = vpop.f32.mrb[33].mxu0 }
 0x6b1   : > { %v3415_v40 = vsel %vm432_vm12, %v3412_v63, %v3414_v19  ;;  %v3416_v0 = vsel %vm432_vm12, %v3414_v19, %v3412_v63  ;;  %v11091_v63 = vmov 0   ;;  %v9552_v6 = vadd.f32 %v2663_v11, %v2542_v52  ;;  %v6962_v1 = vld [vmem:[%s10956_s3 + $0xc8] ss:$0 sps:$4 sm:$0xff]  }
 0x6b2   : > { %v3417_v35 = vmul.f32 %v3415_v40, %v11084_v51  ;;  %v3418_v13 = vmul.f32 %v3416_v0, %v11085_v42  ;;  %3787 = vmatmul.mubr.bf16.gmra.mrb[56].mxu1 %v6947_v50  ;;  %3827 = vmatprep.subr.bf16.mxu1 %v3337_v55  ;;  %v6954_v50 = vld [vmem:[%s10956_s3 + $0x8] ss:$12 sps:$4 sm:$0xff]   ;;  %v2544_v55 = vpop.f32.mrb[34].mxu0  ;;  %v6957_v40 = vld [vmem:[%s10956_s3 + $0x50] ss:$12 sps:$4 sm:$0xff]   ;;  %vm11103_vm15 = vcmask 1041408  }
 0x6b3   : > { %3828 = vmatpush1.bf16.msra.mxu1 %v3336_v61  ;;  %3796 = vmatprep.mubr.bf16.mxu1 %v6948_v18  ;;  %v6955_v18 = vld [vmem:[%s10956_s3 + $0x20] ss:$12 sps:$4 sm:$0xff]   ;;  %11093 = vst [vmem:[#allocation21_spill] sm:$0xff] %v9552_v6  ;;  %v2545_v19 = vpop.f32.mrb[35].mxu0  ;;  %v6958_v0 = vld [vmem:[%s10956_s3 + $0x68] ss:$12 sps:$4 sm:$0xff]   ;;  %vm11104_vm13 = vmmov %vm11103_vm15 }
 0x6b4   : > { %v7397_v58 = vpack.c.bf16 %v3418_v13, %v3468_v32  ;;  %v7400_v46 = vpack.c.bf16 %v3417_v35, %v3467_v25  ;;  %v6960_v35 = vld [vmem:[%s10956_s3 + $0x98] ss:$12 sps:$4 sm:$0xff]   ;;  %v6961_v13 = vld [vmem:[%s10956_s3 + $0xb0] ss:$12 sps:$4 sm:$0xff]   ;;  %vm11105_vm10 = vcmask 1042432  }
 0x6b5   : > { %vm11110_vm14 = vmmov %vm11105_vm10 }
 0x6b6   : > { %7398 = vmatprep.subr.msk.bf16.mxu1 %vm8683_vm5, %v7397_v58 }
 0x6b7   : > { %7401 = vmatpush1.bf16.msk.msra.mxu1 %vm8683_vm5, %v7400_v46 }
 0x6ba   : > { %3797 = vmatmul.mubr.bf16.gmra.mrb[60].mxu1 %v6950_v60 }
 0x6bb   : > { %3806 = vmatprep.mubr.bf16.mxu1 %v6951_v57 }
 0x6bf   : > { %v4084_v25 = vpop.permute.xlu1 %4083 }
 0x6c1   : > { %v4089_v58 = vpop.permute.xlu0 %4088 }
 0x6c2   : > { %3807 = vmatmul.mubr.bf16.gmra.mrb[64].mxu1 %v6953_v36 }
 0x6c3   : > { %3816 = vmatprep.mubr.bf16.mxu1 %v9017_v23  ;;  %v9550_v23 = vadd.f32 %v2661_v24, %v2540_v37  ;;  %v9594_v46 = vpop.permute.xlu1 %4163 }
 0x6c5   : > { %11092 = vst [vmem:[#allocation23_spill] sm:$0xff] %v9550_v23 }
 0x6ca   : > { %3817 = vmatmul.mubr.bf16.gmra.mrb[68].mxu1 %v9022_v62  ;;  %v2665_v62 = vpop.f32.mrb[34].mxu1 }
 0x6cb   : > { %3857 = vmatprep.mubr.bf16.mxu1 %v11091_v63  ;;  %v2666_v61 = vpop.f32.mrb[35].mxu1 }
 0x6d2   : > { %6333 = vmatmul.mubr.msk.bf16.vlgmr.msra.gmra.mrb[36].mxu1 %vm2398_vm6, %v6954_v50  ;;  %v9596_v50 = vpop.permute.xlu0 %4168 }
 0x6d3   : > { %3867 = vmatprep.mubr.bf16.mxu1 %v11091_v63 }
 0x6d6   : > { %v9600_v62 = vpop.permute.xlu0 %4098 }
 0x6da   : > { %6334 = vmatmul.mubr.msk.bf16.gmra.mrb[40].mxu1 %vm2398_vm6, %v6955_v18  ;;  %v9598_v18 = vpop.permute.xlu1 %4093 }
 0x6db   : > { %3877 = vmatprep.mubr.bf16.mxu1 %v11091_v63 }
 0x6de   : > { %v9602_v19 = vpop.permute.xlu1 %4173 }
 0x6e2   : > { %6335 = vmatmul.mubr.msk.bf16.gmra.mrb[44].mxu1 %vm2398_vm6, %v6956_v10 }
 0x6e3   : > { %3887 = vmatprep.mubr.bf16.mxu1 %v11091_v63 }
 0x6ea   : > { %6336 = vmatmul.mubr.msk.bf16.gmra.mrb[48].mxu1 %vm2398_vm6, %v6957_v40  ;;  %v9604_v40 = vpop.permute.xlu0 %4178 }
 0x6eb   : > { %3897 = vmatprep.mubr.bf16.mxu1 %v11091_v63 }
 0x6f2   : > { %6337 = vmatmul.mubr.msk.bf16.gmra.mrb[52].mxu1 %vm2398_vm6, %v6958_v0 }
 0x6f3   : > { %3907 = vmatprep.mubr.bf16.mxu1 %v11091_v63 }
 0x6fa   : > { %6338 = vmatmul.mubr.msk.bf16.gmra.mrb[56].mxu1 %vm2398_vm6, %v6959_v47  ;;  %v3964_v47 = vpop.permute.xlu1 %3963 }
 0x6fb   : > { %3917 = vmatprep.mubr.bf16.mxu1 %v11091_v63 }
 0x702   : > { %6339 = vmatmul.mubr.msk.bf16.gmra.mrb[60].mxu1 %vm2398_vm6, %v6960_v35 }
 0x703   : > { %3927 = vmatprep.mubr.bf16.mxu1 %v11091_v63 }
 0x70a   : > { %6340 = vmatmul.mubr.msk.bf16.gmra.mrb[64].mxu1 %vm2398_vm6, %v6961_v13 }
 0x70b   : > { %3937 = vmatprep.mubr.bf16.mxu1 %v11091_v63 }
 0x712   : > { %6341 = vmatmul.mubr.msk.bf16.gmra.mrb[72].mxu1 %vm2398_vm6, %v6962_v1  ;;  %v3969_v1 = vpop.permute.xlu0 %3968 }
 0x716   : > { %v4009_v23 = vpop.permute.xlu0 %4008 }
 0x71a   : > { %v3979_v22 = vpop.permute.xlu0 %3978 }
 0x79d   : > { %v9590_v41 = vpop.f32.mrb[68].mxu1 }
 0x79e   : > { %v9592_v32 = vpop.f32.mrb[69].mxu1 }
 0x79f   : > { %v3822_v60 = vpop.f32.mrb[70].mxu1 }
 0x7a0   : > { %v3823_v57 = vpop.f32.mrb[71].mxu1 }
 0x7a1   : > { %v4004_v57 = vpop.permute.xlu1 %4003 }
 0x7a5   : > { %v3859_v36 = vpop.f32.mrb[36].mxu1  ;;  %v3974_v30 = vpop.permute.xlu1 %3973 }
 0x7a6   : > { %v3861_v24 = vpop.f32.mrb[37].mxu1  ;;  %v3981_v48 = vadd.f32 %v3964_v47, %v3859_v36 }
 0x7a7   : > { %v3863_v11 = vpop.f32.mrb[38].mxu1  ;;  %v3982_v51 = vadd.f32 %v3964_v47, %v3861_v24 }
 0x7a8   : > { %v3865_v37 = vpop.f32.mrb[39].mxu1  ;;  %v3983_v26 = vadd.f32 %v3969_v1, %v3863_v11  ;;  %7129 = vtanh.f32 %v3981_v48 }
 0x7a9   : > { %v3984_v17 = vadd.f32 %v3969_v1, %v3865_v37  ;;  %7131 = vtanh.f32 %v3982_v51 }
 0x7aa   : > { %7133 = vtanh.f32 %v3983_v26 }
 0x7ab   : > { %7135 = vtanh.f32 %v3984_v17 }
 0x7ad   : > { %v3869_v52 = vpop.f32.mrb[40].mxu1 }
 0x7ae   : > { %v3871_v61 = vpop.f32.mrb[41].mxu1  ;;  %v3985_v12 = vadd.f32 %v3974_v30, %v3869_v52 }
 0x7af   : > { %v3873_v55 = vpop.f32.mrb[42].mxu1  ;;  %v3986_v45 = vadd.f32 %v3974_v30, %v3871_v61 }
 0x7b0   : > { %v3875_v10 = vpop.f32.mrb[43].mxu1  ;;  %v3987_v20 = vadd.f32 %v3979_v22, %v3873_v55  ;;  %7137 = vtanh.f32 %v3985_v12  ;;  %v9616_v55 = vpop.permute.xlu1 %4013 }
 0x7b1   : > { %v3988_v33 = vadd.f32 %v3979_v22, %v3875_v10  ;;  %7139 = vtanh.f32 %v3986_v45 }
 0x7b2   : > { %7141 = vtanh.f32 %v3987_v20  ;;  %v9612_v12 = vpop.eup %7129 }
 0x7b3   : > { %7143 = vtanh.f32 %v3988_v33 }
 0x7b5   : > { %v3879_v0 = vpop.f32.mrb[44].mxu1 }
 0x7b6   : > { %v3881_v35 = vpop.f32.mrb[45].mxu1  ;;  %v4021_v14 = vadd.f32 %v4004_v57, %v3879_v0 }
 0x7b7   : > { %v3883_v13 = vpop.f32.mrb[46].mxu1  ;;  %v4022_v11 = vadd.f32 %v4004_v57, %v3881_v35 }
 0x7b8   : > { %v3885_v60 = vpop.f32.mrb[47].mxu1  ;;  %v4023_v52 = vadd.f32 %v4009_v23, %v3883_v13  ;;  %v6344_v17 = vmul.f32 -1.442695, %v4021_v14 }
 0x7b9   : > { %v4024_v26 = vadd.f32 %v4009_v23, %v3885_v60  ;;  %v6345_v22 = vmul.f32 -1.442695, %v4022_v11 }
 0x7bb   : > { %v6347_v20 = vmul.f32 -1.442695, %v4024_v26 }
 0x7bd   : > { %v3889_v6 = vpop.f32.mrb[48].mxu1 }
 0x7be   : > { %v9606_v63 = vpop.f32.mrb[49].mxu1 }
 0x7bf   : > { %v9608_v42 = vpop.f32.mrb[50].mxu1 }
 0x7c0   : > { %v9610_v59 = vpop.f32.mrb[51].mxu1 }
 0x7c5   : > { %v3899_v8 = vpop.f32.mrb[52].mxu1 }
 0x7c6   : > { %v4101_v27 = vadd.f32 %v4084_v25, %v3899_v8  ;;  %v3901_v36 = vpop.f32.mrb[53].mxu1 }
 0x7c7   : > { %v4102_v24 = vadd.f32 %v4084_v25, %v3901_v36  ;;  %v3903_v47 = vpop.f32.mrb[54].mxu1  ;;  %v6346_v25 = vmul.f32 -1.442695, %v4023_v52 }
 0x7c8   : > { %v6352_v7 = vmul.f32 -1.442695, %v4101_v27  ;;  %v4103_v37 = vadd.f32 %v4089_v58, %v3903_v47  ;;  %v3905_v48 = vpop.f32.mrb[55].mxu1  ;;  %v9614_v27 = vpop.eup %7131 }
 0x7c9   : > { %v6353_v51 = vmul.f32 -1.442695, %v4102_v24  ;;  %v4104_v30 = vadd.f32 %v4089_v58, %v3905_v48  ;;  %v9619_v58 = vpop.eup %7133 }
 0x7ca   : > { %v6354_v61 = vmul.f32 -1.442695, %v4103_v37  ;;  %7145 = vpow2.f32 %v6352_v7  ;;  %v4025_v7 = vadd.f32 %v9616_v55, %v3889_v6  ;;  %v9623_v0 = vpop.eup %7135 }
 0x7cb   : > { %v6355_v8 = vmul.f32 -1.442695, %v4104_v30  ;;  %7147 = vpow2.f32 %v6353_v51  ;;  %v9626_v60 = vpop.eup %7137 }
 0x7cc   : > { %7149 = vpow2.f32 %v6354_v61  ;;  %v9629_v24 = vpop.eup %7139 }
 0x7cd   : > { %v3909_v45 = vpop.f32.mrb[56].mxu1  ;;  %7151 = vpow2.f32 %v6355_v8  ;;  %v9631_v47 = vpop.eup %7141 }
 0x7ce   : > { %v4105_v33 = vadd.f32 %v9598_v18, %v3909_v45  ;;  %v3911_v23 = vpop.f32.mrb[57].mxu1  ;;  %7153 = vpow2.f32 %v6344_v17  ;;  %v9633_v37 = vpop.eup %7143 }
 0x7cf   : > { %v4106_v14 = vadd.f32 %v9598_v18, %v3911_v23  ;;  %v3913_v10 = vpop.f32.mrb[58].mxu1  ;;  %7155 = vpow2.f32 %v6345_v22  ;;  %v6348_v18 = vmul.f32 -1.442695, %v4025_v7 }
 0x7d0   : > { %v6356_v35 = vmul.f32 -1.442695, %v4105_v33  ;;  %v4107_v13 = vadd.f32 %v9600_v62, %v3913_v10  ;;  %v3915_v1 = vpop.f32.mrb[59].mxu1  ;;  %7157 = vpow2.f32 %v6346_v25 }
 0x7d1   : > { %v6357_v57 = vmul.f32 -1.442695, %v4106_v14  ;;  %v4108_v36 = vadd.f32 %v9600_v62, %v3915_v1  ;;  %7159 = vpow2.f32 %v6347_v20 }
 0x7d2   : > { %v6358_v6 = vmul.f32 -1.442695, %v4107_v13  ;;  %7161 = vpow2.f32 %v6356_v35 }
 0x7d3   : > { %v6359_v11 = vmul.f32 -1.442695, %v4108_v36  ;;  %7163 = vpow2.f32 %v6357_v57 }
 0x7d4   : > { %v7146_v48 = vpop.eup %7145  ;;  %7165 = vpow2.f32 %v6358_v6 }
 0x7d5   : > { %v3919_v52 = vpop.f32.mrb[60].mxu1  ;;  %v7148_v51 = vpop.eup %7147  ;;  %v4133_v30 = vadd.f32 1.0, %v7146_v48  ;;  %7167 = vpow2.f32 %v6359_v11 }
 0x7d6   : > { %v4181_v62 = vadd.f32 %v9594_v46, %v3919_v52  ;;  %v3921_v26 = vpop.f32.mrb[61].mxu1  ;;  %v7150_v61 = vpop.eup %7149  ;;  %7169 = vpow2.f32 %v6348_v18  ;;  %v4134_v17 = vadd.f32 1.0, %v7148_v51 }
 0x7d7   : > { %v4182_v8 = vadd.f32 %v9594_v46, %v3921_v26  ;;  %v3923_v22 = vpop.f32.mrb[62].mxu1  ;;  %v7152_v25 = vpop.eup %7151  ;;  %7171 = vrcp.f32 %v4133_v30  ;;  %v4135_v45 = vadd.f32 1.0, %v7150_v61  ;;  %v4026_v30 = vadd.f32 %v9616_v55, %v9606_v63 }
 0x7d8   : > { %v6360_v20 = vmul.f32 -1.442695, %v4181_v62  ;;  %v4183_v33 = vadd.f32 %v9596_v50, %v3923_v22  ;;  %v3925_v23 = vpop.f32.mrb[63].mxu1  ;;  %v9638_v7 = vpop.eup %7153  ;;  %7173 = vrcp.f32 %v4134_v17  ;;  %v4136_v14 = vadd.f32 1.0, %v7152_v25 }
 0x7d9   : > { %v6361_v10 = vmul.f32 -1.442695, %v4182_v8  ;;  %v4184_v35 = vadd.f32 %v9596_v50, %v3925_v23  ;;  %v9641_v13 = vpop.eup %7155  ;;  %7175 = vrcp.f32 %v4135_v45 }
 0x7da   : > { %v6362_v1 = vmul.f32 -1.442695, %v4183_v33  ;;  %v9643_v46 = vpop.eup %7157  ;;  %7177 = vrcp.f32 %v4136_v14 }
 0x7db   : > { %v6363_v57 = vmul.f32 -1.442695, %v4184_v35  ;;  %v9645_v36 = vpop.eup %7159  ;;  %7179 = vpow2.f32 %v6360_v20 }
 0x7dc   : > { %v7162_v6 = vpop.eup %7161  ;;  %7181 = vpow2.f32 %v6361_v10 }
 0x7dd   : > { %v3929_v18 = vpop.f32.mrb[64].mxu1  ;;  %v7164_v11 = vpop.eup %7163  ;;  %v4137_v48 = vadd.f32 1.0, %v7162_v6  ;;  %7183 = vpow2.f32 %v6362_v1  ;;  %v6349_v6 = vmul.f32 -1.442695, %v4026_v30 }
 0x7de   : > { %v4185_v52 = vadd.f32 %v9602_v19, %v3929_v18  ;;  %v3931_v50 = vpop.f32.mrb[65].mxu1  ;;  %v7166_v51 = vpop.eup %7165  ;;  %v4138_v62 = vadd.f32 1.0, %v7164_v11  ;;  %7185 = vpow2.f32 %v6363_v57 }
 0x7df   : > { %v4186_v26 = vadd.f32 %v9602_v19, %v3931_v50  ;;  %v3933_v61 = vpop.f32.mrb[66].mxu1  ;;  %v7168_v17 = vpop.eup %7167  ;;  %7187 = vrcp.f32 %v4137_v48  ;;  %v4139_v8 = vadd.f32 1.0, %v7166_v51 }
 0x7e0   : > { %v6364_v22 = vmul.f32 -1.442695, %v4185_v52  ;;  %v4187_v25 = vadd.f32 %v9604_v40, %v3933_v61  ;;  %v3935_v45 = vpop.f32.mrb[67].mxu1  ;;  %v9652_v20 = vpop.eup %7169  ;;  %7189 = vrcp.f32 %v4138_v62  ;;  %v4140_v33 = vadd.f32 1.0, %v7168_v17 }
 0x7e1   : > { %v6365_v23 = vmul.f32 -1.442695, %v4186_v26  ;;  %v4188_v14 = vadd.f32 %v9604_v40, %v3935_v45  ;;  %v7172_v63 = vpop.eup %7171  ;;  %7191 = vrcp.f32 %v4139_v8  ;;  %v4019_v57 = vpop.permute.xlu0 %4018 }
 0x7e2   : > { %v6366_v55 = vmul.f32 -1.442695, %v4187_v25  ;;  %v7174_v10 = vpop.eup %7173  ;;  %v9656_v19 = vmul.f32 %v7172_v63, %v9612_v12  ;;  %7193 = vrcp.f32 %v4140_v33  ;;  %v4027_v48 = vadd.f32 %v4019_v57, %v9608_v42 }
 0x7e3   : > { %v6367_v35 = vmul.f32 -1.442695, %v4188_v14  ;;  %v7176_v1 = vpop.eup %7175  ;;  %v9659_v18 = vmul.f32 %v7174_v10, %v9614_v27  ;;  %7195 = vpow2.f32 %v6364_v22  ;;  %v4028_v12 = vadd.f32 %v4019_v57, %v9610_v59 }
 0x7e4   : > { %v7178_v11 = vpop.eup %7177  ;;  %v9663_v40 = vmul.f32 %v7176_v1, %v9619_v58  ;;  %7197 = vpow2.f32 %v6365_v23  ;;  %v6350_v22 = vmul.f32 -1.442695, %v4027_v48  ;;  %v4053_v14 = vadd.f32 1.0, %v9638_v7 }
 0x7e5   : > { %v3939_v52 = vpop.f32.mrb[72].mxu1  ;;  %v7180_v50 = vpop.eup %7179  ;;  %v9667_v51 = vmul.f32 %v7178_v11, %v9623_v0  ;;  %7199 = vpow2.f32 %v6366_v55  ;;  %v6351_v45 = vmul.f32 -1.442695, %v4028_v12 }
 0x7e6   : > { %v9670_v30 = vadd.f32 %v3939_v52, %v9590_v41  ;;  %v3941_v27 = vpop.f32.mrb[73].mxu1  ;;  %v7182_v62 = vpop.eup %7181  ;;  %v4213_v26 = vadd.f32 1.0, %v7180_v50  ;;  %7201 = vpow2.f32 %v6367_v35  ;;  %v4055_v50 = vadd.f32 1.0, %v9643_v46 }
 0x7e7   : > { %v9673_v42 = vadd.f32 %v3941_v27, %v9592_v32  ;;  %v3943_v58 = vpop.f32.mrb[74].mxu1  ;;  %v7184_v61 = vpop.eup %7183  ;;  %7203 = vpow2.f32 %v6349_v6  ;;  %v4214_v17 = vadd.f32 1.0, %v7182_v62  ;;  %v4056_v27 = vadd.f32 1.0, %v9645_v36 }
 0x7e8   : > { %11094 = vst [vmem:[#allocation22_spill] sm:$0xff] %v9670_v30  ;;  %v3944_v8 = vpop.f32.mrb[75].mxu1  ;;  %v7186_v59 = vpop.eup %7185  ;;  %7205 = vrcp.f32 %v4213_v26  ;;  %v4215_v0 = vadd.f32 1.0, %v7184_v61  ;;  %v4238_v58 = vld [vmem:[#allocation2 + $0x8] sm:$0xff] }
 0x7e9   : > { %11095 = vst [vmem:[#allocation7_spill] sm:$0xff] %v9673_v42  ;;  %v7188_v25 = vpop.eup %7187  ;;  %7207 = vrcp.f32 %v4214_v17  ;;  %v4216_v41 = vadd.f32 1.0, %v7186_v59 }
 0x7ea   : > { %v7190_v33 = vpop.eup %7189  ;;  %v9676_v23 = vmul.f32 %v7188_v25, %v9626_v60  ;;  %7209 = vrcp.f32 %v4215_v0 }
 0x7eb   : > { %v7192_v32 = vpop.eup %7191  ;;  %v9680_v63 = vmul.f32 %v7190_v33, %v9629_v24  ;;  %7211 = vrcp.f32 %v4216_v41  ;;  %v4054_v24 = vadd.f32 1.0, %v9641_v13  ;;  %v4239_v13 = vld [vmem:[#allocation2 + $0x10] sm:$0xff]  ;;  %v4057_v41 = vadd.f32 1.0, %v9652_v20 }
 0x7ec   : > { %v7194_v55 = vpop.eup %7193  ;;  %7213 = vpow2.f32 %v6350_v22  ;;  %v9683_v10 = vmul.f32 %v7192_v32, %v9631_v47  ;;  %v4240_v22 = vld [vmem:[#allocation2 + $0x18] sm:$0xff] }
 0x7ed   : > { %v7196_v35 = vpop.eup %7195  ;;  %7215 = vpow2.f32 %v6351_v45  ;;  %v9686_v1 = vmul.f32 %v7194_v55, %v9633_v37  ;;  %v4237_v37 = vld [vmem:[#allocation2] sm:$0xff] }
 0x7ee   : > { %v7198_v60 = vpop.eup %7197  ;;  %v4217_v57 = vadd.f32 1.0, %v7196_v35  ;;  %7217 = vrcp.f32 %v4053_v14 }
 0x7ef   : > { %v7200_v6 = vpop.eup %7199  ;;  %v4218_v11 = vadd.f32 1.0, %v7198_v60 }
 0x7f0   : > { %v7202_v7 = vpop.eup %7201  ;;  %7219 = vrcp.f32 %v4217_v57  ;;  %v4219_v48 = vadd.f32 1.0, %v7200_v6  ;;  %v4242_v6 = vld [vmem:[#allocation2 + $0x28] sm:$0xff] }
 0x7f1   : > { %v7204_v52 = vpop.eup %7203  ;;  %7221 = vrcp.f32 %v4218_v11  ;;  %v4220_v47 = vadd.f32 1.0, %v7202_v7  ;;  %v4243_v7 = vld [vmem:[#allocation2 + $0x30] sm:$0xff] }
 0x7f2   : > { %v7206_v12 = vpop.eup %7205  ;;  %7223 = vrcp.f32 %v4219_v48  ;;  %v4058_v32 = vadd.f32 1.0, %v7204_v52  ;;  %v4244_v52 = vld [vmem:[#allocation2 + $0x38] sm:$0xff] }
 0x7f3   : > { %v7208_v62 = vpop.eup %7207  ;;  %v4245_v26 = vmul.f32 %v7206_v12, %v4237_v37  ;;  %7225 = vrcp.f32 %v4220_v47 }
 0x7f4   : > { %v7210_v61 = vpop.eup %7209  ;;  %7227 = vrcp.f32 %v4054_v24  ;;  %v4246_v17 = vmul.f32 %v7208_v62, %v4238_v58 }
 0x7f5   : > { %v7212_v8 = vpop.eup %7211  ;;  %7229 = vrcp.f32 %v4055_v50  ;;  %v4261_v59 = vadd.f32 %v9656_v19, %v4245_v26  ;;  %v4247_v46 = vmul.f32 %v7210_v61, %v4239_v13 }
 0x7f6   : > { %v7214_v0 = vpop.eup %7213  ;;  %7231 = vrcp.f32 %v4056_v27  ;;  %v4262_v36 = vadd.f32 %v9659_v18, %v4246_v17  ;;  %v4248_v25 = vmul.f32 %v7212_v8, %v4240_v22  ;;  %v4241_v18 = vld [vmem:[#allocation2 + $0x20] sm:$0xff] }
 0x7f7   : > { %v7216_v45 = vpop.eup %7215  ;;  %4269 = vst [vmem:[#allocation2] sm:$0xff] %v4261_v59  ;;  %7233 = vtanh.f32 %v4261_v59  ;;  %v4263_v33 = vadd.f32 %v9663_v40, %v4247_v46  ;;  %v4059_v55 = vadd.f32 1.0, %v7214_v0 }
 0x7f8   : > { %4270 = vst [vmem:[#allocation2 + $0x8] sm:$0xff] %v4262_v36  ;;  %7235 = vtanh.f32 %v4262_v36  ;;  %v4264_v14 = vadd.f32 %v9667_v51, %v4248_v25  ;;  %v7218_v19 = vpop.eup %7217  ;;  %v4060_v60 = vadd.f32 1.0, %v7216_v45 }
 0x7f9   : > { %4271 = vst [vmem:[#allocation2 + $0x10] sm:$0xff] %v4263_v33  ;;  %7237 = vtanh.f32 %v4263_v33 }
 0x7fa   : > { %v7220_v35 = vpop.eup %7219  ;;  %4272 = vst [vmem:[#allocation2 + $0x18] sm:$0xff] %v4264_v14  ;;  %7239 = vtanh.f32 %v4264_v14 }
 0x7fb   : > { %v7222_v57 = vpop.eup %7221  ;;  %7241 = vrcp.f32 %v4057_v41  ;;  %v4249_v20 = vmul.f32 %v7220_v35, %v4241_v18 }
 0x7fc   : > { %v7224_v11 = vpop.eup %7223  ;;  %7243 = vrcp.f32 %v4058_v32  ;;  %v4250_v40 = vmul.f32 %v7222_v57, %v4242_v6 }
 0x7fd   : > { %v7226_v24 = vpop.eup %7225  ;;  %7245 = vrcp.f32 %v4059_v55  ;;  %v4265_v51 = vadd.f32 %v9676_v23, %v4249_v20  ;;  %v4251_v48 = vmul.f32 %v7224_v11, %v4243_v7  ;;  %v6368_v55 = vld [vmem:[%s7542_s14 + $0x6] sm:$0x3] }
 0x7fe   : > { %v7228_v50 = vpop.eup %7227  ;;  %7247 = vrcp.f32 %v4060_v60  ;;  %v4266_v47 = vadd.f32 %v9680_v63, %v4250_v40  ;;  %v4252_v12 = vmul.f32 %v7226_v24, %v4244_v52  ;;  %v9831_v35 = vrot.slane %v6368_v55, %v7537_v2 }
 0x7ff   : > { %v7230_v27 = vpop.eup %7229  ;;  %4273 = vst [vmem:[#allocation2 + $0x20] sm:$0xff] %v4265_v51  ;;  %7249 = vtanh.f32 %v4265_v51  ;;  %v4267_v37 = vadd.f32 %v9683_v10, %v4251_v48  ;;  %v9836_v60 = vrot.slane %v6368_v55, %v7545_v3 }
 0x800   : > { %v7232_v62 = vpop.eup %7231  ;;  %4274 = vst [vmem:[#allocation2 + $0x28] sm:$0xff] %v4266_v47  ;;  %7251 = vtanh.f32 %v4266_v47  ;;  %v4268_v26 = vadd.f32 %v9686_v1, %v4252_v12 }
 0x801   : > { %v7234_v58 = vpop.eup %7233  ;;  %4275 = vst [vmem:[#allocation2 + $0x30] sm:$0xff] %v4267_v37  ;;  %7253 = vtanh.f32 %v4267_v37 }
 0x802   : > { %v7236_v23 = vpop.eup %7235  ;;  %v9700_v61 = vmul.f32 %v7234_v58, %v7218_v19  ;;  %4276 = vst [vmem:[#allocation2 + $0x38] sm:$0xff] %v4268_v26  ;;  %7255 = vtanh.f32 %v4268_v26  ;;  %v6965_v19 = vld [vmem:[%s10956_s3 + $0x4] ss:$12 sps:$4 sm:$0xff]  }
 0x803   : > { %v7238_v63 = vpop.eup %7237  ;;  %v9702_v17 = vmul.f32 %v7236_v23, %v7228_v50  ;;  %5015 = vmatprep.mubr.bf16.mxu0 %v6965_v19  ;;  %v5356_v19 = vld [vmem:[%s10957_s4 + $0x40] sm:$0xff] }
 0x804   : > { %v7240_v13 = vpop.eup %7239  ;;  %v9704_v8 = vmul.f32 %v7238_v63, %v7230_v27  ;;  %4293 = vrot.lane.b32.xlu1 %v9700_v61, %s7450_s21 }
 0x805   : > { %v7242_v10 = vpop.eup %7241  ;;  %v9708_v59 = vmul.f32 %v7240_v13, %v7232_v62 }
 0x806   : > { %v7244_v1 = vpop.eup %7243  ;;  %4295 = vrot.lane.b32.xlu0 %v9704_v8, %s7450_s21 }
 0x807   : > { %v7246_v46 = vpop.eup %7245 }
 0x808   : > { %v7248_v22 = vpop.eup %7247  ;;  %4333 = vrot.lane.b32.xlu1 %v9700_v61, %s7449_s20 }
 0x809   : > { %v7250_v0 = vpop.eup %7249 }
 0x80a   : > { %v7252_v36 = vpop.eup %7251  ;;  %v9714_v25 = vmul.f32 %v7250_v0, %v7242_v10  ;;  %4335 = vrot.lane.b32.xlu0 %v9704_v8, %s7449_s20 }
 0x80b   : > { %v7254_v45 = vpop.eup %7253  ;;  %v9718_v41 = vmul.f32 %v7252_v36, %v7244_v1 }
 0x80c   : > { %v7256_v33 = vpop.eup %7255  ;;  %v9720_v32 = vmul.f32 %v7254_v45, %v7246_v46  ;;  %4373 = vrot.lane.b32.xlu1 %v9700_v61, %s7448_s19 }
 0x80d   : > { %v9724_v14 = vmul.f32 %v7256_v33, %v7248_v22 }
 0x80e   : > { %4375 = vrot.lane.b32.xlu0 %v9704_v8, %s7448_s19 }
 0x810   : > { %4413 = vrot.lane.b32.xlu1 %v9700_v61, %s7451_s22 }
 0x812   : > { %4415 = vrot.lane.b32.xlu0 %v9704_v8, %s7451_s22 }
 0x814   : > { %4461 = vrot.lane.b32.xlu1 %v9700_v61, %s7452_s23 }
 0x816   : > { %4463 = vrot.lane.b32.xlu0 %v9704_v8, %s7452_s23 }
 0x818   : > { %4301 = vrot.lane.b32.xlu1 %v9702_v17, %s7450_s21 }
 0x81a   : > { %4303 = vrot.lane.b32.xlu0 %v9708_v59, %s7450_s21 }
 0x81c   : > { %4341 = vrot.lane.b32.xlu1 %v9702_v17, %s7449_s20 }
 0x81e   : > { %4343 = vrot.lane.b32.xlu0 %v9708_v59, %s7449_s20 }
 0x820   : > { %4381 = vrot.lane.b32.xlu1 %v9702_v17, %s7448_s19 }
 0x822   : > { %4383 = vrot.lane.b32.xlu0 %v9708_v59, %s7448_s19 }
 0x824   : > { %4421 = vrot.lane.b32.xlu1 %v9702_v17, %s7451_s22 }
 0x826   : > { %4423 = vrot.lane.b32.xlu0 %v9708_v59, %s7451_s22 }
 0x828   : > { %4297 = vrot.lane.b32.xlu1 %v9714_v25, %s7450_s21 }
 0x82a   : > { %4299 = vrot.lane.b32.xlu0 %v9720_v32, %s7450_s21 }
 0x82c   : > { %4337 = vrot.lane.b32.xlu1 %v9714_v25, %s7449_s20 }
 0x82e   : > { %4339 = vrot.lane.b32.xlu0 %v9720_v32, %s7449_s20 }
 0x830   : > { %4377 = vrot.lane.b32.xlu1 %v9714_v25, %s7448_s19 }
 0x832   : > { %4379 = vrot.lane.b32.xlu0 %v9720_v32, %s7448_s19 }
 0x834   : > { %4417 = vrot.lane.b32.xlu1 %v9714_v25, %s7451_s22 }
 0x836   : > { %4419 = vrot.lane.b32.xlu0 %v9720_v32, %s7451_s22 }
 0x838   : > { %4305 = vrot.lane.b32.xlu1 %v9718_v41, %s7450_s21 }
 0x83a   : > { %4307 = vrot.lane.b32.xlu0 %v9724_v14, %s7450_s21 }
 0x83c   : > { %4469 = vrot.lane.b32.xlu1 %v9702_v17, %s7452_s23 }
 0x83e   : > { %4471 = vrot.lane.b32.xlu0 %v9708_v59, %s7452_s23 }
 0x840   : > { %4345 = vrot.lane.b32.xlu1 %v9718_v41, %s7449_s20 }
 0x842   : > { %4347 = vrot.lane.b32.xlu0 %v9724_v14, %s7449_s20 }
 0x844   : > { %4385 = vrot.lane.b32.xlu1 %v9718_v41, %s7448_s19 }
 0x846   : > { %4467 = vrot.lane.b32.xlu0 %v9720_v32, %s7452_s23 }
 0x848   : > { %4425 = vrot.lane.b32.xlu1 %v9718_v41, %s7451_s22 }
 0x84a   : > { %4387 = vrot.lane.b32.xlu0 %v9724_v14, %s7448_s19 }
 0x84c   : > { %4465 = vrot.lane.b32.xlu1 %v9714_v25, %s7452_s23 }
 0x84e   : > { %4503 = vrot.lane.b32.xlu0 %v9704_v8, %s11034_s12 }
 0x850   : > { %4473 = vrot.lane.b32.xlu1 %v9718_v41, %s7452_s23 }
 0x852   : > { %4427 = vrot.lane.b32.xlu0 %v9724_v14, %s7451_s22 }
 0x854   : > { %4501 = vrot.lane.b32.xlu1 %v9700_v61, %s11034_s12 }
 0x856   : > { %4511 = vrot.lane.b32.xlu0 %v9708_v59, %s11034_s12 }
 0x858   : > { %4509 = vrot.lane.b32.xlu1 %v9702_v17, %s11034_s12 }
 0x85a   : > { %4507 = vrot.lane.b32.xlu0 %v9720_v32, %s11034_s12 }
 0x85c   : > { %4505 = vrot.lane.b32.xlu1 %v9714_v25, %s11034_s12 }
 0x85e   : > { %4543 = vrot.lane.b32.xlu0 %v9704_v8, %s11036_s25 }
 0x860   : > { %4513 = vrot.lane.b32.xlu1 %v9718_v41, %s11034_s12 }
 0x862   : > { %4475 = vrot.lane.b32.xlu0 %v9724_v14, %s7452_s23 }
 0x864   : > { %4541 = vrot.lane.b32.xlu1 %v9700_v61, %s11036_s25 }
 0x866   : > { %4551 = vrot.lane.b32.xlu0 %v9708_v59, %s11036_s25 }
 0x868   : > { %4549 = vrot.lane.b32.xlu1 %v9702_v17, %s11036_s25 }
 0x86a   : > { %4515 = vrot.lane.b32.xlu0 %v9724_v14, %s11034_s12 }
 0x86c   : > { %4545 = vrot.lane.b32.xlu1 %v9714_v25, %s11036_s25 }
 0x86e   : > { %4547 = vrot.lane.b32.xlu0 %v9720_v32, %s11036_s25 }
 0x870   : > { %4553 = vrot.lane.b32.xlu1 %v9718_v41, %s11036_s25 }
 0x872   : > { %4555 = vrot.lane.b32.xlu0 %v9724_v14, %s11036_s25 }
 0x874   : > { %4642 = vrot.lane.b32.xlu1 %v9831_v35, %s7449_s20 }
 0x876   : > { %v4294_v18 = vpop.permute.xlu1 %4293  ;;  %4644 = vrot.lane.b32.xlu0 %v9836_v60, %s7449_s20 }
 0x878   : > { %v4296_v57 = vpop.permute.xlu0 %4295  ;;  %4581 = vrot.lane.b32.xlu1 %v9700_v61, %s11035_s13 }
 0x87a   : > { %v9844_v20 = vpop.permute.xlu1 %4333  ;;  %4583 = vrot.lane.b32.xlu0 %v9704_v8, %s11035_s13 }
 0x87c   : > { %v9848_v2 = vpop.permute.xlu0 %4335  ;;  %4589 = vrot.lane.b32.xlu1 %v9702_v17, %s11035_s13 }
 0x87e   : > { %v9852_v3 = vpop.permute.xlu1 %4373  ;;  %4591 = vrot.lane.b32.xlu0 %v9708_v59, %s11035_s13 }
 0x880   : > { %v9856_v6 = vpop.permute.xlu0 %4375  ;;  %4650 = vrot.lane.b32.xlu1 %v9831_v35, %s7448_s19 }
 0x882   : > { %v9860_v11 = vpop.permute.xlu1 %4413  ;;  %4652 = vrot.lane.b32.xlu0 %v9836_v60, %s7448_s19 }
 0x884   : > { %v9864_v40 = vpop.permute.xlu0 %4415  ;;  %4634 = vrot.lane.b32.xlu1 %v9831_v35, %s7450_s21 }
 0x886   : > { %v9868_v7 = vpop.permute.xlu1 %4461  ;;  %4636 = vrot.lane.b32.xlu0 %v9836_v60, %s7450_s21 }
 0x888   : > { %v9872_v24 = vpop.permute.xlu0 %4463  ;;  %4658 = vrot.lane.b32.xlu1 %v9831_v35, %s7451_s22 }
 0x88a   : > { %v4302_v51 = vpop.permute.xlu1 %4301  ;;  %4660 = vrot.lane.b32.xlu0 %v9836_v60, %s7451_s22 }
 0x88b   : > { %v4309_v48 = vsel %vm343_vm1, %v4294_v18, %v4302_v51  ;;  %v4313_v52 = vsel %vm343_vm1, %v4302_v51, %v4294_v18  ;;  %v5357_v18 = vld [vmem:[%s10957_s4 + $0x48] sm:$0xff]  ;;  %v5436_v51 = vld [vmem:[%s10957_s4 + $0x60] sm:$0xff] }
 0x88c   : > { %v4304_v50 = vpop.permute.xlu0 %4303  ;;  %4666 = vrot.lane.b32.xlu1 %v9831_v35, %s7452_s23  ;;  %v4317_v27 = vmul.f32 %v4313_v52, %v8267_v4  ;;  %v4318_v37 = vmul.f32 %v4309_v48, %v8271_v31  ;;  %v5437_v52 = vld [vmem:[%s10957_s4 + $0x68] sm:$0xff] }
 0x88d   : > { %v4310_v47 = vsel %vm343_vm1, %v4296_v57, %v4304_v50  ;;  %v4314_v12 = vsel %vm343_vm1, %v4304_v50, %v4296_v57 }
 0x88e   : > { %v4319_v62 = vmul.f32 %v4314_v12, %v8267_v4  ;;  %v4320_v26 = vmul.f32 %v4310_v47, %v8271_v31  ;;  %v4342_v58 = vpop.permute.xlu1 %4341  ;;  %4668 = vrot.lane.b32.xlu0 %v9836_v60, %s7452_s23  ;;  %v5358_v47 = vld [vmem:[%s10957_s4 + $0x50] sm:$0xff] }
 0x890   : > { %v4325_v23 = vpack.c.bf16 %v4319_v62, %v4317_v27  ;;  %v4326_v63 = vpack.c.bf16 %v4320_v26, %v4318_v37  ;;  %v4344_v13 = vpop.permute.xlu0 %4343  ;;  %4585 = vrot.lane.b32.xlu1 %v9714_v25, %s11035_s13  ;;  %v5359_v62 = vld [vmem:[%s10957_s4 + $0x58] sm:$0xff] }
 0x891   : > { %v4350_v26 = vsel %vm352_vm0, %v9848_v2, %v4344_v13 }
 0x892   : > { %v9896_v10 = vpop.permute.xlu1 %4381  ;;  %4587 = vrot.lane.b32.xlu0 %v9720_v32, %s11035_s13  ;;  %4983 = vmatprep.subr.bf16.mxu0 %v4326_v63  ;;  %v4349_v63 = vsel %vm352_vm0, %v9844_v20, %v4342_v58 }
 0x893   : > { %4984 = vmatpush1.bf16.msra.mxu0 %v4325_v23 }
 0x894   : > { %v9900_v1 = vpop.permute.xlu0 %4383  ;;  %4593 = vrot.lane.b32.xlu1 %v9718_v41, %s11035_s13 }
 0x896   : > { %v9904_v46 = vpop.permute.xlu1 %4421  ;;  %4676 = vrot.lane.b32.xlu0 %v9836_v60, %s11034_s12 }
 0x898   : > { %v9908_v22 = vpop.permute.xlu0 %4423  ;;  %4674 = vrot.lane.b32.xlu1 %v9831_v35, %s11034_s12 }
 0x89a   : > { %v4298_v0 = vpop.permute.xlu1 %4297  ;;  %4684 = vrot.lane.b32.xlu0 %v9836_v60, %s11036_s25 }
 0x89c   : > { %4682 = vrot.lane.b32.xlu1 %v9831_v35, %s11036_s25  ;;  %v4300_v36 = vpop.permute.xlu0 %4299 }
 0x89e   : > { %v4338_v45 = vpop.permute.xlu1 %4337  ;;  %4595 = vrot.lane.b32.xlu0 %v9724_v14, %s11035_s13 }
 0x8a0   : > { %4690 = vrot.lane.b32.xlu1 %v9831_v35, %s11035_s13  ;;  %v4340_v33 = vpop.permute.xlu0 %4339 }
 0x8a2   : > { %v9923_v55 = vpop.permute.xlu1 %4377  ;;  %4692 = vrot.lane.b32.xlu0 %v9836_v60, %s11035_s13 }
 0x8a4   : > { %5362 = vperm.xlu1 %6894, %v5356_v19   ;;  %v9930_v57 = vpop.permute.xlu0 %4379  ;;  %v4354_v19 = vsel %vm352_vm0, %v4344_v13, %v9848_v2  ;;  %v4353_v2 = vsel %vm352_vm0, %v4342_v58, %v9844_v20  ;;  %v4360_v13 = vmul.f32 %v4350_v26, %v8321_v43  ;;  %v4390_v58 = vsel %vm367_vm3, %v9856_v6, %v9900_v1 }
 0x8a5   : > { %v4357_v20 = vmul.f32 %v4353_v2, %v8317_v21  ;;  %v4394_v2 = vsel %vm367_vm3, %v9900_v1, %v9856_v6 }
 0x8a6   : > { %v9935_v48 = vpop.permute.xlu1 %4417  ;;  %5367 = vperm.xlu0 %6893, %v5357_v18  }
 0x8a8   : > { %5442 = vperm.xlu1 %6894, %v5436_v51   ;;  %v9940_v50 = vpop.permute.xlu0 %4419  ;;  %v5438_v51 = vld [vmem:[%s10957_s4 + $0x70] sm:$0xff] }
 0x8aa   : > { %v4306_v12 = vpop.permute.xlu1 %4305  ;;  %5447 = vperm.xlu0 %6893, %v5437_v52  }
 0x8ab   : > { %v4311_v27 = vsel %vm343_vm1, %v4298_v0, %v4306_v12  ;;  %v4315_v37 = vsel %vm343_vm1, %v4306_v12, %v4298_v0 }
 0x8ac   : > { %5372 = vperm.xlu1 %6894, %v5358_v47   ;;  %v4308_v23 = vpop.permute.xlu0 %4307  ;;  %v4321_v52 = vmul.f32 %v4315_v37, %v8267_v4  ;;  %v4322_v47 = vmul.f32 %v4311_v27, %v8271_v31  ;;  %v4359_v37 = vmul.f32 %v4354_v19, %v8317_v21 }
 0x8ad   : > { %v4312_v0 = vsel %vm343_vm1, %v4300_v36, %v4308_v23  ;;  %v4316_v18 = vsel %vm343_vm1, %v4308_v23, %v4300_v36  ;;  %v5439_v36 = vld [vmem:[%s10957_s4 + $0x78] sm:$0xff] }
 0x8ae   : > { %v4323_v12 = vmul.f32 %v4316_v18, %v8267_v4  ;;  %v4324_v42 = vmul.f32 %v4312_v0, %v8271_v31  ;;  %v9972_v30 = vpop.permute.xlu1 %4469  ;;  %5377 = vperm.xlu0 %6893, %v5359_v62   ;;  %v4358_v0 = vmul.f32 %v4349_v63, %v8321_v43  ;;  %v5236_v62 = vld [vmem:[%s10957_s4] sm:$0xff] }
 0x8b0   : > { %v4327_v27 = vpack.c.bf16 %v4323_v12, %v4321_v52  ;;  %v4328_v23 = vpack.c.bf16 %v4324_v42, %v4322_v47  ;;  %5452 = vperm.xlu1 %6894, %v5438_v51   ;;  %v9982_v18 = vpop.permute.xlu0 %4471  ;;  %v4366_v42 = vpack.c.bf16 %v4360_v13, %v4358_v0  ;;  %v5237_v51 = vld [vmem:[%s10957_s4 + $0x8] sm:$0xff]  ;;  %v4365_v52 = vpack.c.bf16 %v4359_v37, %v4357_v20  ;;  %v5276_v37 = vld [vmem:[%s10957_s4 + $0x20] sm:$0xff] }
 0x8b1   : > { %v4389_v47 = vsel %vm367_vm3, %v9852_v3, %v9896_v10 }
 0x8b2   : > { %v4346_v26 = vpop.permute.xlu1 %4345  ;;  %5457 = vperm.xlu0 %6893, %v5439_v36   ;;  %4985 = vmatprep.subr.bf16.mxu0 %v4328_v23  ;;  %v4398_v20 = vmul.f32 %v4389_v47, %v8368_v15 }
 0x8b3   : > { %v4351_v19 = vsel %vm352_vm0, %v4338_v45, %v4346_v26  ;;  %v4355_v63 = vsel %vm352_vm0, %v4346_v26, %v4338_v45  ;;  %4986 = vmatpush1.bf16.msra.mxu0 %v4327_v27  ;;  %v4400_v45 = vmul.f32 %v4390_v58, %v8368_v15  ;;  %v4399_v58 = vmul.f32 %v4394_v2, %v8365_v38  ;;  %v5239_v2 = vld [vmem:[%s10957_s4 + $0x18] sm:$0xff] }
 0x8b4   : > { %5242 = vperm.xlu1 %6894, %v5236_v62   ;;  %v4348_v12 = vpop.permute.xlu0 %4347  ;;  %4987 = vmatprep.subr.bf16.mxu0 %v4366_v42  ;;  %v4361_v27 = vmul.f32 %v4355_v63, %v8317_v21  ;;  %v4362_v23 = vmul.f32 %v4351_v19, %v8321_v43  ;;  %v5277_v62 = vld [vmem:[%s10957_s4 + $0x28] sm:$0xff]  ;;  %v5238_v63 = vld [vmem:[%s10957_s4 + $0x10] sm:$0xff] }
 0x8b5   : > { %v4352_v13 = vsel %vm352_vm0, %v4340_v33, %v4348_v12  ;;  %v4356_v36 = vsel %vm352_vm0, %v4348_v12, %v4340_v33  ;;  %v4393_v33 = vsel %vm367_vm3, %v9896_v10, %v9852_v3  ;;  %v4406_v10 = vpack.c.bf16 %v4400_v45, %v4398_v20 }
 0x8b6   : > { %v4363_v0 = vmul.f32 %v4356_v36, %v8317_v21  ;;  %v4364_v6 = vmul.f32 %v4352_v13, %v8321_v43  ;;  %v4386_v1 = vpop.permute.xlu1 %4385  ;;  %5247 = vperm.xlu0 %6893, %v5237_v51   ;;  %v4397_v3 = vmul.f32 %v4393_v33, %v8365_v38  ;;  %v4430_v51 = vsel %vm380_vm2, %v9864_v40, %v9908_v22 }
 0x8b7   : > { %4988 = vmatpush1.bf16.msra.mxu0 %v4365_v52  ;;  %v4391_v47 = vsel %vm367_vm3, %v9923_v55, %v4386_v1  ;;  %v4395_v12 = vsel %vm367_vm3, %v4386_v1, %v9923_v55  ;;  %v4429_v13 = vsel %vm380_vm2, %v9860_v11, %v9904_v46  ;;  %v4440_v55 = vmul.f32 %v4430_v51, %v8415_v28 }
 0x8b8   : > { %v4367_v26 = vpack.c.bf16 %v4363_v0, %v4361_v27  ;;  %v4368_v42 = vpack.c.bf16 %v4364_v6, %v4362_v23  ;;  %5282 = vperm.xlu1 %6894, %v5276_v37   ;;  %v10029_v19 = vpop.permute.xlu0 %4467  ;;  %v4405_v45 = vpack.c.bf16 %v4399_v58, %v4397_v3  ;;  %v4434_v37 = vsel %vm380_vm2, %v9908_v22, %v9864_v40  ;;  %v5278_v0 = vld [vmem:[%s10957_s4 + $0x30] sm:$0xff] }
 0x8b9   : > { %v4401_v6 = vmul.f32 %v4395_v12, %v8365_v38  ;;  %v4402_v1 = vmul.f32 %v4391_v47, %v8368_v15  ;;  %v4438_v20 = vmul.f32 %v4429_v13, %v8415_v28 }
 0x8ba   : > { %v4426_v52 = vpop.permute.xlu1 %4425  ;;  %5287 = vperm.xlu0 %6893, %v5277_v62   ;;  %4989 = vmatprep.subr.bf16.mxu0 %v4368_v42  ;;  %v5279_v62 = vld [vmem:[%s10957_s4 + $0x38] sm:$0xff] }
 0x8bb   : > { %4990 = vmatpush1.bf16.msra.mxu0 %v4367_v26  ;;  %v4446_v3 = vpack.c.bf16 %v4440_v55, %v4438_v20  ;;  %v4431_v47 = vsel %vm380_vm2, %v9935_v48, %v4426_v52  ;;  %v4477_v20 = vsel %vm393_vm7, %v9868_v7, %v9972_v30 }
 0x8bc   : > { %5252 = vperm.xlu1 %6894, %v5238_v63   ;;  %v4388_v36 = vpop.permute.xlu0 %4387  ;;  %4991 = vmatprep.subr.bf16.mxu0 %v4406_v10  ;;  %v4439_v63 = vmul.f32 %v4434_v37, %v8412_v54 }
 0x8bd   : > { %v4392_v27 = vsel %vm367_vm3, %v9930_v57, %v4388_v36  ;;  %v4396_v23 = vsel %vm367_vm3, %v4388_v36, %v9930_v57  ;;  %v4433_v57 = vsel %vm380_vm2, %v9904_v46, %v9860_v11  ;;  %v4435_v11 = vsel %vm380_vm2, %v4426_v52, %v9935_v48 }
 0x8be   : > { %v4403_v40 = vmul.f32 %v4396_v23, %v8365_v38  ;;  %v4404_v22 = vmul.f32 %v4392_v27, %v8368_v15  ;;  %v4466_v33 = vpop.permute.xlu1 %4465  ;;  %5257 = vperm.xlu0 %6893, %v5239_v2   ;;  %v4437_v51 = vmul.f32 %v4433_v57, %v8412_v54  ;;  %v4441_v13 = vmul.f32 %v4435_v11, %v8412_v54 }
 0x8bf   : > { %4992 = vmatpush1.bf16.msra.mxu0 %v4405_v45  ;;  %v4442_v36 = vmul.f32 %v4431_v47, %v8415_v28  ;;  %v4456_v57 = vpack.c.bf16 %v9724_v14, %v9718_v41  ;;  %v4485_v41 = vmul.f32 %v4477_v20, %v8450_v56 }
 0x8c0   : > { %v4407_v58 = vpack.c.bf16 %v4403_v40, %v4401_v6  ;;  %v4408_v26 = vpack.c.bf16 %v4404_v22, %v4402_v1  ;;  %5292 = vperm.xlu1 %6894, %v5278_v0   ;;  %v10078_v42 = vpop.permute.xlu0 %4503  ;;  %v4445_v12 = vpack.c.bf16 %v4439_v63, %v4437_v51  ;;  %v4454_v6 = vpack.c.bf16 %v9708_v59, %v9702_v17 }
 0x8c1   : > { %v4481_v40 = vsel %vm393_vm7, %v9972_v30, %v9868_v7  ;;  %v4478_v22 = vsel %vm393_vm7, %v9872_v24, %v9982_v18  ;;  %v4453_v17 = vpack.c.bf16 %v9704_v8, %v9700_v61  ;;  %v4455_v8 = vpack.c.bf16 %v9720_v32, %v9714_v25 }
 0x8c2   : > { %v4474_v10 = vpop.permute.xlu1 %4473  ;;  %5297 = vperm.xlu0 %6893, %v5279_v62   ;;  %4993 = vmatprep.subr.bf16.mxu0 %v4408_v26  ;;  %v4487_v26 = vmul.f32 %v4478_v22, %v8450_v56 }
 0x8c3   : > { %4994 = vmatpush1.bf16.msra.mxu0 %v4407_v58  ;;  %v4486_v58 = vmul.f32 %v4481_v40, %v8445_v44  ;;  %v4479_v61 = vsel %vm393_vm7, %v4466_v33, %v4474_v10  ;;  %v4483_v30 = vsel %vm393_vm7, %v4474_v10, %v4466_v33 }
 0x8c4   : > { %v4428_v46 = vpop.permute.xlu0 %4427  ;;  %4995 = vmatprep.subr.bf16.mxu0 %v4446_v3  ;;  %v4493_v63 = vpack.c.bf16 %v4487_v26, %v4485_v41  ;;  %v4489_v3 = vmul.f32 %v4479_v61, %v8450_v56  ;;  %v4490_v47 = vmul.f32 %v4483_v30, %v8445_v44 }
 0x8c5   : > { %v4432_v2 = vsel %vm380_vm2, %v9940_v50, %v4428_v46  ;;  %v4436_v45 = vsel %vm380_vm2, %v4428_v46, %v9940_v50  ;;  %v4482_v50 = vsel %vm393_vm7, %v9982_v18, %v9872_v24 }
 0x8c6   : > { %v4443_v37 = vmul.f32 %v4436_v45, %v8412_v54  ;;  %v4444_v48 = vmul.f32 %v4432_v2, %v8415_v28  ;;  %v4502_v52 = vpop.permute.xlu1 %4501  ;;  %v4488_v59 = vmul.f32 %v4482_v50, %v8445_v44 }
 0x8c7   : > { %4996 = vmatpush1.bf16.msra.mxu0 %v4445_v12 }
 0x8c8   : > { %v4447_v55 = vpack.c.bf16 %v4443_v37, %v4441_v13  ;;  %v4448_v27 = vpack.c.bf16 %v4444_v48, %v4442_v36  ;;  %v4512_v23 = vpop.permute.xlu0 %4511  ;;  %v4494_v14 = vpack.c.bf16 %v4488_v59, %v4486_v58 }
 0x8c9   : > { %v4522_v25 = vsel %vm406_vm8, %v4512_v23, %v10078_v42  ;;  %v4518_v45 = vsel %vm406_vm8, %v10078_v42, %v4512_v23 }
 0x8ca   : > { %v4510_v0 = vpop.permute.xlu1 %4509  ;;  %4997 = vmatprep.subr.bf16.mxu0 %v4448_v27  ;;  %v4528_v13 = vmul.f32 %v4522_v25, %v8485_v34 }
 0x8cb   : > { %4998 = vmatpush1.bf16.msra.mxu0 %v4447_v55  ;;  %v4521_v7 = vsel %vm406_vm8, %v4510_v0, %v4502_v52  ;;  %v4517_v32 = vsel %vm406_vm8, %v4502_v52, %v4510_v0  ;;  %v4527_v55 = vmul.f32 %v4518_v45, %v8482_v53 }
 0x8cc   : > { %v4508_v1 = vpop.permute.xlu0 %4507  ;;  %4999 = vmatprep.subr.bf16.mxu0 %v4454_v6  ;;  %v4526_v11 = vmul.f32 %v4521_v7, %v8485_v34  ;;  %v4525_v36 = vmul.f32 %v4517_v32, %v8482_v53 }
 0x8ce   : > { %v4506_v62 = vpop.permute.xlu1 %4505  ;;  %v4534_v27 = vpack.c.bf16 %v4528_v13, %v4526_v11  ;;  %v4533_v23 = vpack.c.bf16 %v4527_v55, %v4525_v36 }
 0x8cf   : > { %5000 = vmatpush1.bf16.msra.mxu0 %v4453_v17 }
 0x8d0   : > { %v4544_v24 = vpop.permute.xlu0 %4543  ;;  %5001 = vmatprep.subr.bf16.mxu0 %v4456_v57 }
 0x8d2   : > { %v4514_v18 = vpop.permute.xlu1 %4513 }
 0x8d3   : > { %5002 = vmatpush1.bf16.msra.mxu0 %v4455_v8  ;;  %v4519_v52 = vsel %vm406_vm8, %v4506_v62, %v4514_v18  ;;  %v4523_v0 = vsel %vm406_vm8, %v4514_v18, %v4506_v62 }
 0x8d4   : > { %v4476_v51 = vpop.permute.xlu0 %4475  ;;  %5003 = vmatprep.subr.bf16.mxu0 %v4494_v14  ;;  %v4529_v50 = vmul.f32 %v4519_v52, %v8482_v53  ;;  %v4530_v22 = vmul.f32 %v4523_v0, %v8485_v34 }
 0x8d5   : > { %v4480_v33 = vsel %vm393_vm7, %v10029_v19, %v4476_v51  ;;  %v4484_v10 = vsel %vm393_vm7, %v4476_v51, %v10029_v19 }
 0x8d6   : > { %v4491_v46 = vmul.f32 %v4480_v33, %v8450_v56  ;;  %v4492_v12 = vmul.f32 %v4484_v10, %v8445_v44  ;;  %v4542_v2 = vpop.permute.xlu1 %4541 }
 0x8d7   : > { %5004 = vmatpush1.bf16.msra.mxu0 %v4493_v63 }
 0x8d8   : > { %v4495_v37 = vpack.c.bf16 %v4491_v46, %v4489_v3  ;;  %v4496_v19 = vpack.c.bf16 %v4492_v12, %v4490_v47  ;;  %v4552_v48 = vpop.permute.xlu0 %4551 }
 0x8d9   : > { %v4562_v17 = vsel %vm419_vm9, %v4552_v48, %v4544_v24  ;;  %v4558_v8 = vsel %vm419_vm9, %v4544_v24, %v4552_v48  ;;  %v6966_v48 = vld [vmem:[%s10956_s3 + $0x1c] ss:$12 sps:$4 sm:$0xff]  }
 0x8da   : > { %v4550_v6 = vpop.permute.xlu1 %4549  ;;  %5005 = vmatprep.subr.bf16.mxu0 %v4496_v19  ;;  %v4568_v41 = vmul.f32 %v4562_v17, %v8588_v5  ;;  %v4567_v3 = vmul.f32 %v4558_v8, %v11061_v39  ;;  %v6963_v19 = vld [vmem:[%s10956_s3] ss:$12 sps:$4 sm:$0xff]  }
 0x8db   : > { %v4561_v42 = vsel %vm419_vm9, %v4550_v6, %v4542_v2  ;;  %5006 = vmatpush1.bf16.msra.mxu0 %v4495_v37  ;;  %v4557_v57 = vsel %vm419_vm9, %v4542_v2, %v4550_v6 }
 0x8dc   : > { %v4516_v40 = vpop.permute.xlu0 %4515  ;;  %5007 = vmatprep.subr.bf16.mxu0 %v4534_v27  ;;  %v4566_v20 = vmul.f32 %v4561_v42, %v8588_v5 }
 0x8dd   : > { %v4520_v59 = vsel %vm406_vm8, %v4508_v1, %v4516_v40  ;;  %v4524_v62 = vsel %vm406_vm8, %v4516_v40, %v4508_v1  ;;  %v4565_v1 = vmul.f32 %v4557_v57, %v11061_v39  ;;  %v6969_v57 = vld [vmem:[%s10956_s3 + $0x34] ss:$12 sps:$4 sm:$0xff]  }
 0x8de   : > { %v4531_v58 = vmul.f32 %v4520_v59, %v8482_v53  ;;  %v4532_v26 = vmul.f32 %v4524_v62, %v8485_v34  ;;  %v4546_v61 = vpop.permute.xlu1 %4545  ;;  %v4574_v7 = vpack.c.bf16 %v4568_v41, %v4566_v20  ;;  %v6968_v62 = vld [vmem:[%s10956_s3 + $0x18] ss:$12 sps:$4 sm:$0xff]  }
 0x8df   : > { %5008 = vmatpush1.bf16.msra.mxu0 %v4533_v23  ;;  %v4573_v32 = vpack.c.bf16 %v4567_v3, %v4565_v1 }
 0x8e0   : > { %v4535_v14 = vpack.c.bf16 %v4531_v58, %v4529_v50  ;;  %v4536_v18 = vpack.c.bf16 %v4532_v26, %v4530_v22  ;;  %v4548_v30 = vpop.permute.xlu0 %4547 }
 0x8e2   : > { %v4554_v63 = vpop.permute.xlu1 %4553  ;;  %5009 = vmatprep.subr.bf16.mxu0 %v4536_v18  ;;  %v6972_v18 = vld [vmem:[%s10956_s3 + $0x4c] ss:$12 sps:$4 sm:$0xff]  }
 0x8e3   : > { %v4559_v51 = vsel %vm419_vm9, %v4546_v61, %v4554_v63  ;;  %v4563_v25 = vsel %vm419_vm9, %v4554_v63, %v4546_v61  ;;  %5010 = vmatpush1.bf16.msra.mxu0 %v4535_v14  ;;  %v6971_v14 = vld [vmem:[%s10956_s3 + $0x30] ss:$12 sps:$4 sm:$0xff]  }
 0x8e4   : > { %v4556_v24 = vpop.permute.xlu0 %4555  ;;  %5011 = vmatprep.subr.bf16.mxu0 %v4574_v7  ;;  %v4569_v47 = vmul.f32 %v4559_v51, %v11061_v39  ;;  %v4570_v11 = vmul.f32 %v4563_v25, %v8588_v5 }
 0x8e5   : > { %v4560_v33 = vsel %vm419_vm9, %v4548_v30, %v4556_v24  ;;  %v4564_v10 = vsel %vm419_vm9, %v4556_v24, %v4548_v30 }
 0x8e6   : > { %v4571_v46 = vmul.f32 %v4560_v33, %v11061_v39  ;;  %v4572_v12 = vmul.f32 %v4564_v10, %v8588_v5  ;;  %v4643_v2 = vpop.permute.xlu1 %4642 }
 0x8e7   : > { %5012 = vmatpush1.bf16.msra.mxu0 %v4573_v32  ;;  %v11096_v32 = vld [vmem:[#allocation8_spill] sm:$0xff] }
 0x8e8   : > { %v4575_v45 = vpack.c.bf16 %v4571_v46, %v4569_v47  ;;  %v4576_v13 = vpack.c.bf16 %v4572_v12, %v4570_v11  ;;  %v4645_v36 = vpop.permute.xlu0 %4644  ;;  %v11097_v47 = vld [vmem:[#allocation9_spill] sm:$0xff] }
 0x8e9   : > { %v4647_v30 = vsel %vm352_vm0, %v4645_v36, %v4643_v2  ;;  %v4646_v63 = vsel %vm352_vm0, %v4643_v2, %v4645_v36 }
 0x8ea   : > { %v4582_v37 = vpop.permute.xlu1 %4581  ;;  %5013 = vmatprep.subr.bf16.mxu0 %v4576_v13  ;;  %v4648_v3 = vmul.f32 %v4647_v30, %v11064_v16  ;;  %v4649_v33 = vmul.f32 %v4646_v63, %v11096_v32  ;;  %v6974_v16 = vld [vmem:[%s10956_s3 + $0x48] ss:$12 sps:$4 sm:$0xff]   ;;  %v11107_v32 = vld [vmem:[#allocation14_spill] sm:$0xff] }
 0x8eb   : > { %5014 = vmatpush1.bf16.msra.mxu0 %v4575_v45  ;;  %v11098_v13 = vld [vmem:[#allocation5_spill] sm:$0xff] }
 0x8ec   : > { %v4584_v52 = vpop.permute.xlu0 %4583  ;;  %v4700_v2 = vrot.slane %v4648_v3, 7 }
 0x8ee   : > { %v4590_v55 = vpop.permute.xlu1 %4589  ;;  %5016 = vmatmul.mubr.bf16.vlgmr.msra.gmra.mrb[36].mxu0 %v6963_v19 }
 0x8ef   : > { %v4597_v27 = vsel %vm432_vm12, %v4582_v37, %v4590_v55  ;;  %v4601_v0 = vsel %vm432_vm12, %v4590_v55, %v4582_v37  ;;  %5025 = vmatprep.mubr.bf16.mxu0 %v6966_v48  ;;  %v6975_v37 = vld [vmem:[%s10956_s3 + $0x64] ss:$12 sps:$4 sm:$0xff]   ;;  %v11099_v48 = vld [vmem:[#allocation10_spill] sm:$0xff] }
 0x8f0   : > { %v4592_v6 = vpop.permute.xlu0 %4591  ;;  %v4605_v50 = vmul.f32 %v4597_v27, %v11062_v29  ;;  %v4606_v40 = vmul.f32 %v4601_v0, %v11063_v49  ;;  %v11100_v27 = vld [vmem:[#allocation11_spill] sm:$0xff] }
 0x8f1   : > { %v4598_v42 = vsel %vm432_vm12, %v4584_v52, %v4592_v6  ;;  %v4602_v23 = vsel %vm432_vm12, %v4592_v6, %v4584_v52  ;;  %v4701_v6 = vrot.slane %v4649_v33, 7 }
 0x8f2   : > { %v4607_v22 = vmul.f32 %v4598_v42, %v11062_v29  ;;  %v4608_v17 = vmul.f32 %v4602_v23, %v11063_v49  ;;  %v4651_v59 = vpop.permute.xlu1 %4650  ;;  %v11101_v23 = vld [vmem:[#allocation6_spill] sm:$0xff] }
 0x8f4   : > { %v4613_v20 = vpack.c.bf16 %v4607_v22, %v4605_v50  ;;  %v4614_v58 = vpack.c.bf16 %v4608_v17, %v4606_v40  ;;  %v4653_v26 = vpop.permute.xlu0 %4652  ;;  %v11102_v17 = vld [vmem:[#allocation12_spill] sm:$0xff] }
 0x8f5   : > { %v4655_v51 = vsel %vm367_vm3, %v4653_v26, %v4651_v59  ;;  %v4654_v10 = vsel %vm367_vm3, %v4651_v59, %v4653_v26 }
 0x8f6   : > { %v4635_v61 = vpop.permute.xlu1 %4634  ;;  %5026 = vmatmul.mubr.bf16.gmra.mrb[40].mxu0 %v6968_v62  ;;  %5104 = vmatprep.subr.bf16.mxu0 %v4614_v58  ;;  %v4656_v11 = vmul.f32 %v4655_v51, %v11097_v47  ;;  %v4657_v52 = vmul.f32 %v4654_v10, %v11099_v48 }
 0x8f7   : > { %5105 = vmatpush1.bf16.msra.mxu0 %v4613_v20  ;;  %5035 = vmatprep.mubr.bf16.mxu0 %v6969_v57 }
 0x8f8   : > { %v4637_v8 = vpop.permute.xlu0 %4636  ;;  %v4706_v42 = vrot.slane %v4656_v11, 6  ;;  %v4707_v57 = vrot.slane %v4657_v52, 6  ;;  %v11112_v52 = vld [vmem:[#allocation17_spill] sm:$0xff] }
 0x8f9   : > { %v4639_v25 = vsel %vm343_vm1, %v4637_v8, %v4635_v61  ;;  %v4638_v45 = vsel %vm343_vm1, %v4635_v61, %v4637_v8 }
 0x8fa   : > { %v4659_v41 = vpop.permute.xlu1 %4658  ;;  %v4640_v36 = vmul.f32 %v4639_v25, %v11098_v13  ;;  %v4641_v50 = vmul.f32 %v4638_v45, %v11101_v23  ;;  %v11106_v25 = vld [vmem:[#allocation13_spill] sm:$0xff] }
 0x8fc   : > { %v4661_v1 = vpop.permute.xlu0 %4660  ;;  %v4734_v22 = vsel %vm473_vm4, %v4640_v36, %v4700_v2  ;;  %v4735_v58 = vsel %vm473_vm4, %v4641_v50, %v4701_v6  ;;  %v11109_v2 = vld [vmem:[#allocation16_spill] sm:$0xff] }
 0x8fd   : > { %v4663_v46 = vsel %vm380_vm2, %v4661_v1, %v4659_v41  ;;  %v4662_v55 = vsel %vm380_vm2, %v4659_v41, %v4661_v1  ;;  %v4736_v26 = vsel %vm11103_vm15, %v4734_v22, %v4706_v42  ;;  %v4737_v51 = vsel %vm11104_vm13, %v4735_v58, %v4707_v57 }
 0x8fe   : > { %v4667_v7 = vpop.permute.xlu1 %4666  ;;  %5036 = vmatmul.mubr.bf16.gmra.mrb[44].mxu0 %v6971_v14  ;;  %v4664_v0 = vmul.f32 %v4663_v46, %v11100_v27  ;;  %v4665_v59 = vmul.f32 %v4662_v55, %v11102_v17  ;;  %v6977_v14 = vld [vmem:[%s10956_s3 + $0x60] ss:$12 sps:$4 sm:$0xff]   ;;  %vm11111_vm15 = vcmask 1043456   ;;  %v11113_v55 = vld [vmem:[#allocation18_spill] sm:$0xff] }
 0x8ff   : > { %5045 = vmatprep.mubr.bf16.mxu0 %v6972_v18  ;;  %v6978_v18 = vld [vmem:[%s10956_s3 + $0x7c] ss:$12 sps:$4 sm:$0xff]   ;;  %v11108_v46 = vld [vmem:[#allocation15_spill] sm:$0xff]  ;;  %vm11114_vm13 = vmmov %vm11111_vm15 }
 0x900   : > { %v4669_v24 = vpop.permute.xlu0 %4668  ;;  %v4712_v20 = vrot.slane %v4664_v0, 5  ;;  %v4713_v30 = vrot.slane %v4665_v59, 5 }
 0x901   : > { %v4670_v61 = vsel %vm393_vm7, %v4667_v7, %v4669_v24  ;;  %v4671_v8 = vsel %vm393_vm7, %v4669_v24, %v4667_v7 }
 0x902   : > { %v4586_v12 = vpop.permute.xlu1 %4585  ;;  %v4738_v7 = vsel %vm11105_vm10, %v4736_v26, %v4712_v20  ;;  %v4672_v24 = vmul.f32 %v4670_v61, %v11106_v25  ;;  %v4673_v33 = vmul.f32 %v4671_v8, %v11107_v32  ;;  %vm11117_vm10 = vcmask 1045504  }
 0x903   : > { %v4740_v48 = vsel %vm11111_vm15, %v4738_v7, %v9831_v35  ;;  %vm11119_vm15 = vcmask 1046528  }
 0x904   : > { %v4588_v19 = vpop.permute.xlu0 %4587  ;;  %v4718_v6 = vrot.slane %v4672_v24, 3  ;;  %v4719_v42 = vrot.slane %v4673_v33, 3 }
 0x906   : > { %v4594_v40 = vpop.permute.xlu1 %4593  ;;  %5046 = vmatmul.mubr.bf16.gmra.mrb[48].mxu0 %v6974_v16 }
 0x907   : > { %5055 = vmatprep.mubr.bf16.mxu0 %v6975_v37  ;;  %v4599_v10 = vsel %vm432_vm12, %v4586_v12, %v4594_v40  ;;  %v4603_v47 = vsel %vm432_vm12, %v4594_v40, %v4586_v12  ;;  %v4739_v37 = vsel %vm11110_vm14, %v4737_v51, %v4713_v30  ;;  %v11116_v51 = vld [vmem:[#allocation20_spill] sm:$0xff]  ;;  %vm11118_vm14 = vmmov %vm11117_vm10 }
 0x908   : > { %v4677_v62 = vpop.permute.xlu0 %4676  ;;  %v4609_v40 = vmul.f32 %v4599_v10, %v11062_v29  ;;  %v4610_v22 = vmul.f32 %v4603_v47, %v11063_v49  ;;  %v4741_v57 = vsel %vm11114_vm13, %v4739_v37, %v9836_v60  ;;  %vm11120_vm13 = vmmov %vm11119_vm15  ;;  %v4786_v37 = vld [vmem:[%s10956_s3 + $0xc0] sm:$0xff] }
 0x909   : > { %v4743_v60 = vsel %vm485_vm11, %v4741_v57, %v4719_v42  ;;  %v6992_v42 = vld [vmem:[%s10956_s3 + $0x50] ss:$12 sps:$4 sm:$0xff]  }
 0x90a   : > { %v4675_v41 = vpop.permute.xlu1 %4674 }
 0x90b   : > { %v4678_v1 = vsel %vm406_vm8, %v4675_v41, %v4677_v62  ;;  %v4679_v63 = vsel %vm406_vm8, %v4677_v62, %v4675_v41  ;;  %v6980_v62 = vld [vmem:[%s10956_s3 + $0x78] ss:$12 sps:$4 sm:$0xff]  }
 0x90c   : > { %v4685_v3 = vpop.permute.xlu0 %4684  ;;  %v4680_v16 = vmul.f32 %v4678_v1, %v11108_v46  ;;  %v4681_v45 = vmul.f32 %v4679_v63, %v11109_v2  ;;  %v11115_v63 = vld [vmem:[#allocation19_spill] sm:$0xff] }
 0x90e   : > { %v4683_v11 = vpop.permute.xlu1 %4682  ;;  %5056 = vmatmul.mubr.bf16.gmra.mrb[52].mxu0 %v6977_v14  ;;  %v4724_v20 = vrot.slane %v4680_v16, 2  ;;  %v4725_v58 = vrot.slane %v4681_v45, 2  ;;  %v6983_v16 = vld [vmem:[%s10956_s3 + $0x90] ss:$12 sps:$4 sm:$0xff]  }
 0x90f   : > { %v4686_v13 = vsel %vm419_vm9, %v4683_v11, %v4685_v3  ;;  %v4687_v36 = vsel %vm419_vm9, %v4685_v3, %v4683_v11  ;;  %5065 = vmatprep.mubr.bf16.mxu0 %v6978_v18  ;;  %v4742_v18 = vsel %vm485_vm11, %v4740_v48, %v4718_v6  ;;  %v6986_v48 = vld [vmem:[%s10956_s3 + $0xa8] ss:$12 sps:$4 sm:$0xff]   ;;  %v6991_v6 = vld [vmem:[%s10956_s3 + $0x38] ss:$12 sps:$4 sm:$0xff]  }
 0x910   : > { %v4688_v12 = vmul.f32 %v4686_v13, %v11112_v52  ;;  %v4689_v27 = vmul.f32 %v4687_v36, %v11113_v55  ;;  %v4596_v0 = vpop.permute.xlu0 %4595  ;;  %v4744_v25 = vsel %vm11117_vm10, %v4742_v18, %v4724_v20  ;;  %v4745_v24 = vsel %vm11118_vm14, %v4743_v60, %v4725_v58  ;;  %v6984_v13 = vld [vmem:[%s10956_s3 + $0xac] ss:$12 sps:$4 sm:$0xff]  }
 0x911   : > { %v4600_v23 = vsel %vm432_vm12, %v4588_v19, %v4596_v0  ;;  %v4604_v50 = vsel %vm432_vm12, %v4596_v0, %v4588_v19  ;;  %v6981_v19 = vld [vmem:[%s10956_s3 + $0x94] ss:$12 sps:$4 sm:$0xff]   ;;  %v6394_v52 = vcombine.high %v4786_v37, %v4786_v37  ;;  %v11122_v55 = vmov 0  }
 0x912   : > { %v4611_v17 = vmul.f32 %v4600_v23, %v11062_v29  ;;  %v4612_v35 = vmul.f32 %v4604_v50, %v11063_v49  ;;  %v4691_v59 = vpop.permute.xlu1 %4690  ;;  %v4730_v26 = vrot.slane %v4688_v12, 1  ;;  %v4731_v61 = vrot.slane %v4689_v27, 1  ;;  %v6989_v27 = vld [vmem:[%s10956_s3 + $0x8] ss:$12 sps:$4 sm:$0xff]   ;;  %v6990_v0 = vld [vmem:[%s10956_s3 + $0x20] ss:$12 sps:$4 sm:$0xff]  }
 0x913   : > { %v6393_v12 = vcombine.low %v4786_v37, %v4786_v37  ;;  %v6993_v23 = vld [vmem:[%s10956_s3 + $0x68] ss:$12 sps:$4 sm:$0xff]   ;;  %v6994_v50 = vld [vmem:[%s10956_s3 + $0x80] ss:$12 sps:$4 sm:$0xff]  }
 0x914   : > { %v4615_v8 = vpack.c.bf16 %v4611_v17, %v4609_v40  ;;  %v4616_v41 = vpack.c.bf16 %v4612_v35, %v4610_v22  ;;  %v4693_v14 = vpop.permute.xlu0 %4692  ;;  %v4746_v32 = vsel %vm11119_vm15, %v4744_v25, %v4730_v26  ;;  %v4747_v33 = vsel %vm11120_vm13, %v4745_v24, %v4731_v61  ;;  %v6995_v40 = vld [vmem:[%s10956_s3 + $0x98] ss:$12 sps:$4 sm:$0xff]   ;;  %v6996_v22 = vld [vmem:[%s10956_s3 + $0xb0] ss:$12 sps:$4 sm:$0xff]   ;;  %v6997_v17 = vld [vmem:[%s10956_s3 + $0xc8] ss:$0 sps:$4 sm:$0xff]  }
 0x915   : > { %v4694_v30 = vsel %vm432_vm12, %v4691_v59, %v4693_v14  ;;  %v4695_v1 = vsel %vm432_vm12, %v4693_v14, %v4691_v59 }
 0x916   : > { %v4696_v3 = vmul.f32 %v4694_v30, %v11115_v63  ;;  %v4697_v7 = vmul.f32 %v4695_v1, %v11116_v51  ;;  %5066 = vmatmul.mubr.bf16.gmra.mrb[56].mxu0 %v6980_v62  ;;  %5106 = vmatprep.subr.bf16.mxu0 %v4616_v41 }
 0x917   : > { %5107 = vmatpush1.bf16.msra.mxu0 %v4615_v8  ;;  %5075 = vmatprep.mubr.bf16.mxu0 %v6981_v19 }
 0x918   : > { %v4748_v10 = vsel %vm473_vm4, %v4696_v3, 0.0  ;;  %v4749_v47 = vsel %vm473_vm4, %v4697_v7, 0.0  ;;  %v7403_v2 = vpack.c.bf16 %v4697_v7, %v4747_v33  ;;  %v7406_v36 = vpack.c.bf16 %v4696_v3, %v4746_v32 }
 0x919   : > { %v4750_v11 = vpack.c.bf16 %v4748_v10, %v4746_v32  ;;  %v4751_v46 = vpack.c.bf16 %v4749_v47, %v4747_v33 }
 0x91a   : > { %7404 = vmatprep.subr.msk.bf16.mxu0 %vm8683_vm5, %v7403_v2 }
 0x91b   : > { %4752 = vst [vmem:[#allocation4 + $0x120] sm:$0xff] %v4750_v11  ;;  %4753 = vst [vmem:[#allocation4 + $0x128] sm:$0xff] %v4751_v46  ;;  %7407 = vmatpush1.bf16.msk.msra.mxu0 %vm8683_vm5, %v7406_v36 }
 0x91e   : > { %5076 = vmatmul.mubr.bf16.gmra.mrb[60].mxu0 %v6983_v16 }
 0x91f   : > { %5085 = vmatprep.mubr.bf16.mxu0 %v6984_v13 }
 0x922   : > { %v5939_v9 = vld [vmem:[#allocation4 + $0x128] sm:$0xff] }
 0x923   : > { %v5363_v59 = vpop.permute.xlu1 %5362 }
 0x925   : > { %v5368_v20 = vpop.permute.xlu0 %5367 }
 0x926   : > { %5086 = vmatmul.mubr.bf16.gmra.mrb[64].mxu0 %v6986_v48 }
 0x927   : > { %5095 = vmatprep.mubr.bf16.mxu0 %v6394_v52  ;;  %v10381_v19 = vpop.permute.xlu1 %5442 }
 0x929   : > { %v10383_v61 = vpop.permute.xlu0 %5447 }
 0x92b   : > { %v10385_v18 = vpop.permute.xlu1 %5372 }
 0x92d   : > { %v10387_v30 = vpop.permute.xlu0 %5377 }
 0x92e   : > { %5096 = vmatmul.mubr.bf16.gmra.mrb[68].mxu0 %v6393_v12 }
 0x92f   : > { %5136 = vmatprep.mubr.bf16.mxu0 %v11122_v55  ;;  %v10389_v3 = vpop.permute.xlu1 %5452 }
 0x931   : > { %v10391_v7 = vpop.permute.xlu0 %5457 }
 0x933   : > { %v5243_v24 = vpop.permute.xlu1 %5242 }
 0x935   : > { %v5248_v10 = vpop.permute.xlu0 %5247 }
 0x936   : > { %6396 = vmatmul.mubr.msk.bf16.vlgmr.msra.gmra.mrb[36].mxu0 %vm2398_vm6, %v6989_v27 }
 0x937   : > { %5146 = vmatprep.mubr.bf16.mxu0 %v11122_v55  ;;  %v5283_v11 = vpop.permute.xlu1 %5282 }
 0x939   : > { %v5288_v16 = vpop.permute.xlu0 %5287 }
 0x93b   : > { %v5253_v52 = vpop.permute.xlu1 %5252 }
 0x93e   : > { %6397 = vmatmul.mubr.msk.bf16.gmra.mrb[40].mxu0 %vm2398_vm6, %v6990_v0  ;;  %v5258_v0 = vpop.permute.xlu0 %5257 }
 0x93f   : > { %5156 = vmatprep.mubr.bf16.mxu0 %v11122_v55 }
 0x946   : > { %6398 = vmatmul.mubr.msk.bf16.gmra.mrb[44].mxu0 %vm2398_vm6, %v6991_v6 }
 0x947   : > { %5166 = vmatprep.mubr.bf16.mxu0 %v11122_v55 }
 0x94e   : > { %6399 = vmatmul.mubr.msk.bf16.gmra.mrb[48].mxu0 %vm2398_vm6, %v6992_v42 }
 0x94f   : > { %5176 = vmatprep.mubr.bf16.mxu0 %v11122_v55 }
 0x956   : > { %6400 = vmatmul.mubr.msk.bf16.gmra.mrb[52].mxu0 %vm2398_vm6, %v6993_v23 }
 0x957   : > { %5186 = vmatprep.mubr.bf16.mxu0 %v11122_v55 }
 0x95e   : > { %6401 = vmatmul.mubr.msk.bf16.gmra.mrb[56].mxu0 %vm2398_vm6, %v6994_v50 }
 0x95f   : > { %5196 = vmatprep.mubr.bf16.mxu0 %v11122_v55 }
 0x966   : > { %6402 = vmatmul.mubr.msk.bf16.gmra.mrb[60].mxu0 %vm2398_vm6, %v6995_v40 }
 0x967   : > { %5206 = vmatprep.mubr.bf16.mxu0 %v11122_v55 }
 0x96e   : > { %6403 = vmatmul.mubr.msk.bf16.gmra.mrb[64].mxu0 %vm2398_vm6, %v6996_v22 }
 0x96f   : > { %5216 = vmatprep.mubr.bf16.mxu0 %v11122_v55 }
 0x976   : > { %6404 = vmatmul.mubr.msk.bf16.gmra.mrb[72].mxu0 %vm2398_vm6, %v6997_v17 }
 0xa01   : > { %v10377_v35 = vpop.f32.mrb[68].mxu0 }
 0xa02   : > { %v10379_v62 = vpop.f32.mrb[69].mxu0 }
 0xa03   : > { %v5101_v57 = vpop.f32.mrb[70].mxu0 }
 0xa04   : > { %v5102_v58 = vpop.f32.mrb[71].mxu0 }
 0xa09   : > { %v5138_v26 = vpop.f32.mrb[36].mxu0 }
 0xa0a   : > { %v5140_v8 = vpop.f32.mrb[37].mxu0  ;;  %v5260_v45 = vadd.f32 %v5243_v24, %v5138_v26 }
 0xa0b   : > { %v5142_v41 = vpop.f32.mrb[38].mxu0  ;;  %v5261_v36 = vadd.f32 %v5243_v24, %v5140_v8 }
 0xa0c   : > { %v5144_v14 = vpop.f32.mrb[39].mxu0  ;;  %v5262_v48 = vadd.f32 %v5248_v10, %v5142_v41  ;;  %7257 = vtanh.f32 %v5260_v45 }
 0xa0d   : > { %v5263_v12 = vadd.f32 %v5248_v10, %v5144_v14  ;;  %7259 = vtanh.f32 %v5261_v36 }
 0xa0e   : > { %7261 = vtanh.f32 %v5262_v48  ;;  %v10403_v48 = vpop.permute.xlu1 %5292 }
 0xa0f   : > { %7263 = vtanh.f32 %v5263_v12 }
 0xa11   : > { %v5148_v1 = vpop.f32.mrb[40].mxu0 }
 0xa12   : > { %v5150_v60 = vpop.f32.mrb[41].mxu0  ;;  %v5264_v27 = vadd.f32 %v5253_v52, %v5148_v1 }
 0xa13   : > { %v5152_v63 = vpop.f32.mrb[42].mxu0  ;;  %v5265_v6 = vadd.f32 %v5253_v52, %v5150_v60 }
 0xa14   : > { %v5154_v51 = vpop.f32.mrb[43].mxu0  ;;  %v5266_v42 = vadd.f32 %v5258_v0, %v5152_v63  ;;  %7265 = vtanh.f32 %v5264_v27 }
 0xa15   : > { %v5267_v50 = vadd.f32 %v5258_v0, %v5154_v51  ;;  %7267 = vtanh.f32 %v5265_v6 }
 0xa16   : > { %7269 = vtanh.f32 %v5266_v42 }
 0xa17   : > { %7271 = vtanh.f32 %v5267_v50 }
 0xa19   : > { %v5158_v25 = vpop.f32.mrb[44].mxu0 }
 0xa1a   : > { %v5160_v32 = vpop.f32.mrb[45].mxu0  ;;  %v5300_v17 = vadd.f32 %v5283_v11, %v5158_v25  ;;  %v10399_v25 = vpop.eup %7257 }
 0xa1b   : > { %v5162_v33 = vpop.f32.mrb[46].mxu0  ;;  %v5301_v26 = vadd.f32 %v5283_v11, %v5160_v32  ;;  %v10401_v11 = vpop.eup %7259 }
 0xa1c   : > { %v5164_v47 = vpop.f32.mrb[47].mxu0  ;;  %v5302_v1 = vadd.f32 %v5288_v16, %v5162_v33  ;;  %v6407_v45 = vmul.f32 -1.442695, %v5300_v17 }
 0xa1d   : > { %v5303_v63 = vadd.f32 %v5288_v16, %v5164_v47  ;;  %v6408_v36 = vmul.f32 -1.442695, %v5301_v26  ;;  %v10406_v16 = vpop.eup %7261 }
 0xa1e   : > { %v10410_v0 = vpop.eup %7263 }
 0xa1f   : > { %v6410_v33 = vmul.f32 -1.442695, %v5303_v63  ;;  %v10413_v50 = vpop.eup %7265 }
 0xa20   : > { %v10416_v17 = vpop.eup %7267 }
 0xa21   : > { %v5168_v46 = vpop.f32.mrb[48].mxu0 }
 0xa22   : > { %v10393_v2 = vpop.f32.mrb[49].mxu0  ;;  %v5304_v52 = vadd.f32 %v10403_v48, %v5168_v46 }
 0xa23   : > { %v10395_v13 = vpop.f32.mrb[50].mxu0 }
 0xa24   : > { %v10397_v37 = vpop.f32.mrb[51].mxu0 }
 0xa29   : > { %v5178_v23 = vpop.f32.mrb[52].mxu0 }
 0xa2a   : > { %v5380_v40 = vadd.f32 %v5363_v59, %v5178_v23  ;;  %v5180_v22 = vpop.f32.mrb[53].mxu0 }
 0xa2b   : > { %v5381_v57 = vadd.f32 %v5363_v59, %v5180_v22  ;;  %v5182_v58 = vpop.f32.mrb[54].mxu0  ;;  %v6409_v59 = vmul.f32 -1.442695, %v5302_v1 }
 0xa2c   : > { %v6415_v8 = vmul.f32 -1.442695, %v5380_v40  ;;  %v5382_v41 = vadd.f32 %v5368_v20, %v5182_v58  ;;  %v5184_v14 = vpop.f32.mrb[55].mxu0 }
 0xa2d   : > { %v6416_v24 = vmul.f32 -1.442695, %v5381_v57  ;;  %v5383_v60 = vadd.f32 %v5368_v20, %v5184_v14  ;;  %v10418_v57 = vpop.eup %7269 }
 0xa2e   : > { %v6417_v10 = vmul.f32 -1.442695, %v5382_v41  ;;  %7273 = vpow2.f32 %v6415_v8  ;;  %v10420_v26 = vpop.eup %7271 }
 0xa2f   : > { %v6418_v51 = vmul.f32 -1.442695, %v5383_v60  ;;  %7275 = vpow2.f32 %v6416_v24 }
 0xa30   : > { %7277 = vpow2.f32 %v6417_v10 }
 0xa31   : > { %v5188_v32 = vpop.f32.mrb[56].mxu0  ;;  %7279 = vpow2.f32 %v6418_v51 }
 0xa32   : > { %v5384_v20 = vadd.f32 %v10385_v18, %v5188_v32  ;;  %v5190_v47 = vpop.f32.mrb[57].mxu0  ;;  %7281 = vpow2.f32 %v6407_v45 }
 0xa33   : > { %v5385_v12 = vadd.f32 %v10385_v18, %v5190_v47  ;;  %v5192_v27 = vpop.f32.mrb[58].mxu0  ;;  %7283 = vpow2.f32 %v6408_v36  ;;  %v6411_v18 = vmul.f32 -1.442695, %v5304_v52 }
 0xa34   : > { %v6419_v6 = vmul.f32 -1.442695, %v5384_v20  ;;  %v5386_v42 = vadd.f32 %v10387_v30, %v5192_v27  ;;  %v5194_v23 = vpop.f32.mrb[59].mxu0  ;;  %7285 = vpow2.f32 %v6409_v59 }
 0xa35   : > { %v6420_v40 = vmul.f32 -1.442695, %v5385_v12  ;;  %v5387_v22 = vadd.f32 %v10387_v30, %v5194_v23  ;;  %7287 = vpow2.f32 %v6410_v33 }
 0xa36   : > { %v6421_v46 = vmul.f32 -1.442695, %v5386_v42  ;;  %7289 = vpow2.f32 %v6419_v6 }
 0xa37   : > { %v6422_v58 = vmul.f32 -1.442695, %v5387_v22  ;;  %7291 = vpow2.f32 %v6420_v40 }
 0xa38   : > { %v7274_v8 = vpop.eup %7273  ;;  %7293 = vpow2.f32 %v6421_v46 }
 0xa39   : > { %v5198_v41 = vpop.f32.mrb[60].mxu0  ;;  %v7276_v14 = vpop.eup %7275  ;;  %v5412_v1 = vadd.f32 1.0, %v7274_v8  ;;  %7295 = vpow2.f32 %v6422_v58 }
 0xa3a   : > { %v5460_v30 = vadd.f32 %v10381_v19, %v5198_v41  ;;  %v5200_v24 = vpop.f32.mrb[61].mxu0  ;;  %v7278_v60 = vpop.eup %7277  ;;  %7297 = vpow2.f32 %v6411_v18  ;;  %v5413_v63 = vadd.f32 1.0, %v7276_v14  ;;  %v5305_v41 = vadd.f32 %v10403_v48, %v10393_v2 }
 0xa3b   : > { %v5461_v10 = vadd.f32 %v10381_v19, %v5200_v24  ;;  %v5202_v45 = vpop.f32.mrb[62].mxu0  ;;  %v7280_v51 = vpop.eup %7279  ;;  %7299 = vrcp.f32 %v5412_v1  ;;  %v5414_v36 = vadd.f32 1.0, %v7278_v60 }
 0xa3c   : > { %v6423_v59 = vmul.f32 -1.442695, %v5460_v30  ;;  %v5462_v32 = vadd.f32 %v10383_v61, %v5202_v45  ;;  %v5204_v33 = vpop.f32.mrb[63].mxu0  ;;  %v10425_v20 = vpop.eup %7281  ;;  %7301 = vrcp.f32 %v5413_v63  ;;  %v5415_v47 = vadd.f32 1.0, %v7280_v51 }
 0xa3d   : > { %v6424_v52 = vmul.f32 -1.442695, %v5461_v10  ;;  %v5463_v12 = vadd.f32 %v10383_v61, %v5204_v33  ;;  %v10428_v27 = vpop.eup %7283  ;;  %7303 = vrcp.f32 %v5414_v36 }
 0xa3e   : > { %v6425_v6 = vmul.f32 -1.442695, %v5462_v32  ;;  %v10430_v19 = vpop.eup %7285  ;;  %7305 = vrcp.f32 %v5415_v47 }
 0xa3f   : > { %v6426_v42 = vmul.f32 -1.442695, %v5463_v12  ;;  %v10432_v23 = vpop.eup %7287  ;;  %7307 = vpow2.f32 %v6423_v59  ;;  %v5298_v12 = vpop.permute.xlu0 %5297 }
 0xa40   : > { %v7290_v40 = vpop.eup %7289  ;;  %7309 = vpow2.f32 %v6424_v52 }
 0xa41   : > { %v5208_v22 = vpop.f32.mrb[64].mxu0  ;;  %v7292_v46 = vpop.eup %7291  ;;  %v5416_v18 = vadd.f32 1.0, %v7290_v40  ;;  %7311 = vpow2.f32 %v6425_v6  ;;  %v6412_v6 = vmul.f32 -1.442695, %v5305_v41 }
 0xa42   : > { %v5464_v58 = vadd.f32 %v10389_v3, %v5208_v22  ;;  %v5210_v61 = vpop.f32.mrb[65].mxu0  ;;  %v7294_v8 = vpop.eup %7293  ;;  %v5417_v14 = vadd.f32 1.0, %v7292_v46  ;;  %7313 = vpow2.f32 %v6426_v42  ;;  %v5306_v22 = vadd.f32 %v5298_v12, %v10395_v13 }
 0xa43   : > { %v5465_v1 = vadd.f32 %v10389_v3, %v5210_v61  ;;  %v5212_v30 = vpop.f32.mrb[66].mxu0  ;;  %v7296_v24 = vpop.eup %7295  ;;  %7315 = vrcp.f32 %v5416_v18  ;;  %v5418_v60 = vadd.f32 1.0, %v7294_v8 }
 0xa44   : > { %v6427_v63 = vmul.f32 -1.442695, %v5464_v58  ;;  %v5466_v10 = vadd.f32 %v10391_v7, %v5212_v30  ;;  %v5214_v45 = vpop.f32.mrb[67].mxu0  ;;  %v10439_v51 = vpop.eup %7297  ;;  %7317 = vrcp.f32 %v5417_v14  ;;  %v5419_v36 = vadd.f32 1.0, %v7296_v24 }
 0xa45   : > { %v6428_v59 = vmul.f32 -1.442695, %v5465_v1  ;;  %v5467_v32 = vadd.f32 %v10391_v7, %v5214_v45  ;;  %v7300_v2 = vpop.eup %7299  ;;  %7319 = vrcp.f32 %v5418_v60  ;;  %v6413_v24 = vmul.f32 -1.442695, %v5306_v22 }
 0xa46   : > { %v6429_v48 = vmul.f32 -1.442695, %v5466_v10  ;;  %v7302_v33 = vpop.eup %7301  ;;  %v10443_v3 = vmul.f32 %v7300_v2, %v10399_v25  ;;  %7321 = vrcp.f32 %v5419_v36  ;;  %v5307_v25 = vadd.f32 %v5298_v12, %v10397_v37 }
 0xa47   : > { %v6430_v47 = vmul.f32 -1.442695, %v5467_v32  ;;  %v7304_v52 = vpop.eup %7303  ;;  %v10446_v42 = vmul.f32 %v7302_v33, %v10401_v11  ;;  %7323 = vpow2.f32 %v6427_v63  ;;  %v5332_v36 = vadd.f32 1.0, %v10425_v20 }
 0xa48   : > { %v7306_v40 = vpop.eup %7305  ;;  %v10450_v7 = vmul.f32 %v7304_v52, %v10406_v16  ;;  %7325 = vpow2.f32 %v6428_v59  ;;  %v6414_v63 = vmul.f32 -1.442695, %v5307_v25  ;;  %v5334_v22 = vadd.f32 1.0, %v10430_v19 }
 0xa49   : > { %v5218_v46 = vpop.f32.mrb[72].mxu0  ;;  %v7308_v18 = vpop.eup %7307  ;;  %v10454_v58 = vmul.f32 %v7306_v40, %v10410_v0  ;;  %7327 = vpow2.f32 %v6429_v48 }
 0xa4a   : > { %v10457_v61 = vadd.f32 %v5218_v46, %v10377_v35  ;;  %v5220_v11 = vpop.f32.mrb[73].mxu0  ;;  %v7310_v8 = vpop.eup %7309  ;;  %v5492_v41 = vadd.f32 1.0, %v7308_v18  ;;  %7329 = vpow2.f32 %v6430_v47  ;;  %v5335_v18 = vadd.f32 1.0, %v10432_v23 }
 0xa4b   : > { %v10460_v13 = vadd.f32 %v5220_v11, %v10379_v62  ;;  %v5222_v16 = vpop.f32.mrb[74].mxu0  ;;  %v7312_v14 = vpop.eup %7311  ;;  %7331 = vpow2.f32 %v6412_v6  ;;  %v5493_v1 = vadd.f32 1.0, %v7310_v8  ;;  %v5517_v8 = vld [vmem:[#allocation2 + $0x8] sm:$0xff] }
 0xa4c   : > { %v5223_v30 = vpop.f32.mrb[75].mxu0  ;;  %v7314_v37 = vpop.eup %7313  ;;  %7333 = vrcp.f32 %v5492_v41  ;;  %v5494_v0 = vadd.f32 1.0, %v7312_v14 }
 0xa4d   : > { %v7316_v60 = vpop.eup %7315  ;;  %7335 = vrcp.f32 %v5493_v1  ;;  %v5495_v35 = vadd.f32 1.0, %v7314_v37  ;;  %v5519_v30 = vld [vmem:[#allocation2 + $0x18] sm:$0xff] }
 0xa4e   : > { %v7318_v10 = vpop.eup %7317  ;;  %v10463_v45 = vmul.f32 %v7316_v60, %v10413_v50  ;;  %7337 = vrcp.f32 %v5494_v0  ;;  %v5336_v60 = vadd.f32 1.0, %v10439_v51 }
 0xa4f   : > { %v7320_v62 = vpop.eup %7319  ;;  %v10467_v59 = vmul.f32 %v7318_v10, %v10416_v17  ;;  %7339 = vrcp.f32 %v5495_v35  ;;  %v5333_v17 = vadd.f32 1.0, %v10428_v27  ;;  %v5518_v27 = vld [vmem:[#allocation2 + $0x10] sm:$0xff] }
 0xa50   : > { %v7322_v32 = vpop.eup %7321  ;;  %7341 = vpow2.f32 %v6413_v24  ;;  %v10470_v2 = vmul.f32 %v7320_v62, %v10418_v57 }
 0xa51   : > { %v7324_v48 = vpop.eup %7323  ;;  %7343 = vpow2.f32 %v6414_v63  ;;  %v10473_v33 = vmul.f32 %v7322_v32, %v10420_v26  ;;  %v5516_v26 = vld [vmem:[#allocation2] sm:$0xff] }
 0xa52   : > { %v7326_v50 = vpop.eup %7325  ;;  %v5496_v47 = vadd.f32 1.0, %v7324_v48  ;;  %7345 = vrcp.f32 %v5332_v36 }
 0xa53   : > { %v7328_v52 = vpop.eup %7327  ;;  %v5497_v12 = vadd.f32 1.0, %v7326_v50  ;;  %v5521_v50 = vld [vmem:[#allocation2 + $0x28] sm:$0xff] }
 0xa54   : > { %v7330_v20 = vpop.eup %7329  ;;  %7347 = vrcp.f32 %v5496_v47  ;;  %v5498_v6 = vadd.f32 1.0, %v7328_v52  ;;  %v5522_v52 = vld [vmem:[#allocation2 + $0x30] sm:$0xff] }
 0xa55   : > { %v7332_v40 = vpop.eup %7331  ;;  %7349 = vrcp.f32 %v5497_v12  ;;  %v5499_v57 = vadd.f32 1.0, %v7330_v20 }
 0xa56   : > { %v7334_v46 = vpop.eup %7333  ;;  %7351 = vrcp.f32 %v5498_v6  ;;  %v5337_v35 = vadd.f32 1.0, %v7332_v40 }
 0xa57   : > { %v7336_v25 = vpop.eup %7335  ;;  %v5524_v11 = vmul.f32 %v7334_v46, %v5516_v26  ;;  %7353 = vrcp.f32 %v5499_v57 }
 0xa58   : > { %v7338_v41 = vpop.eup %7337  ;;  %7355 = vrcp.f32 %v5333_v17  ;;  %v5525_v16 = vmul.f32 %v7336_v25, %v5517_v8  ;;  %v5523_v17 = vld [vmem:[#allocation2 + $0x38] sm:$0xff] }
 0xa59   : > { %v7340_v14 = vpop.eup %7339  ;;  %7357 = vrcp.f32 %v5334_v22  ;;  %v5540_v1 = vadd.f32 %v10443_v3, %v5524_v11  ;;  %v5526_v19 = vmul.f32 %v7338_v41, %v5518_v27 }
 0xa5a   : > { %v7342_v37 = vpop.eup %7341  ;;  %7359 = vrcp.f32 %v5335_v18  ;;  %v5541_v23 = vadd.f32 %v10446_v42, %v5525_v16  ;;  %v5527_v24 = vmul.f32 %v7340_v14, %v5519_v30  ;;  %v5520_v42 = vld [vmem:[#allocation2 + $0x20] sm:$0xff] }
 0xa5b   : > { %v7344_v0 = vpop.eup %7343  ;;  %5548 = vst [vmem:[#allocation2] sm:$0xff] %v5540_v1  ;;  %7361 = vtanh.f32 %v5540_v1  ;;  %v5542_v63 = vadd.f32 %v10450_v7, %v5526_v19  ;;  %v5338_v62 = vadd.f32 1.0, %v7342_v37 }
 0xa5c   : > { %5549 = vst [vmem:[#allocation2 + $0x8] sm:$0xff] %v5541_v23  ;;  %7363 = vtanh.f32 %v5541_v23  ;;  %v5543_v10 = vadd.f32 %v10454_v58, %v5527_v24  ;;  %v7346_v3 = vpop.eup %7345  ;;  %v5339_v32 = vadd.f32 1.0, %v7344_v0 }
 0xa5d   : > { %5550 = vst [vmem:[#allocation2 + $0x10] sm:$0xff] %v5542_v63  ;;  %7365 = vtanh.f32 %v5542_v63 }
 0xa5e   : > { %v7348_v36 = vpop.eup %7347  ;;  %5551 = vst [vmem:[#allocation2 + $0x18] sm:$0xff] %v5543_v10  ;;  %7367 = vtanh.f32 %v5543_v10 }
 0xa5f   : > { %v7350_v48 = vpop.eup %7349  ;;  %7369 = vrcp.f32 %v5336_v60  ;;  %v5528_v51 = vmul.f32 %v7348_v36, %v5520_v42  ;;  %v10638_v36 = vld [vmem:[%s10956_s3 + $0xc0] sm:$0xff] }
 0xa60   : > { %v7352_v47 = vpop.eup %7351  ;;  %7371 = vrcp.f32 %v5337_v35  ;;  %v5529_v7 = vmul.f32 %v7350_v48, %v5521_v50 }
 0xa61   : > { %v7354_v12 = vpop.eup %7353  ;;  %7373 = vrcp.f32 %v5338_v62  ;;  %v5544_v58 = vadd.f32 %v10463_v45, %v5528_v51  ;;  %v5530_v20 = vmul.f32 %v7352_v47, %v5522_v52  ;;  %v2668_v52 = vld [vmem:[%s10958_s5] sm:$0xff] }
 0xa62   : > { %v7356_v6 = vpop.eup %7355  ;;  %7375 = vrcp.f32 %v5339_v32  ;;  %v5545_v40 = vadd.f32 %v10467_v59, %v5529_v7  ;;  %v5531_v22 = vmul.f32 %v7354_v12, %v5523_v17  ;;  %v6432_v32 = vcombine.high %v10638_v36, %v10638_v36 }
 0xa63   : > { %v7358_v57 = vpop.eup %7357  ;;  %5552 = vst [vmem:[#allocation2 + $0x20] sm:$0xff] %v5544_v58  ;;  %7377 = vtanh.f32 %v5544_v58  ;;  %v5546_v46 = vadd.f32 %v10470_v2, %v5530_v20 }
 0xa64   : > { %v7360_v18 = vpop.eup %7359  ;;  %5553 = vst [vmem:[#allocation2 + $0x28] sm:$0xff] %v5545_v40  ;;  %7379 = vtanh.f32 %v5545_v40  ;;  %v5547_v26 = vadd.f32 %v10473_v33, %v5531_v22  ;;  %5991 = vmatprep.mubr.bf16.mxu1 %v6432_v32 }
 0xa65   : > { %v7362_v25 = vpop.eup %7361  ;;  %5554 = vst [vmem:[#allocation2 + $0x30] sm:$0xff] %v5546_v46  ;;  %7381 = vtanh.f32 %v5546_v46 }
 0xa66   : > { %v7364_v45 = vpop.eup %7363  ;;  %v10487_v11 = vmul.f32 %v7362_v25, %v7346_v3  ;;  %5555 = vst [vmem:[#allocation2 + $0x38] sm:$0xff] %v5547_v26  ;;  %7383 = vtanh.f32 %v5547_v26 }
 0xa67   : > { %v7366_v59 = vpop.eup %7365  ;;  %v10489_v8 = vmul.f32 %v7364_v45, %v7356_v6 }
 0xa68   : > { %v7368_v41 = vpop.eup %7367  ;;  %v10491_v16 = vmul.f32 %v7366_v59, %v7358_v57  ;;  %5572 = vrot.lane.b32.xlu1 %v10487_v11, %s7450_s21 }
 0xa69   : > { %v7370_v2 = vpop.eup %7369  ;;  %v10495_v27 = vmul.f32 %v7368_v41, %v7360_v18 }
 0xa6a   : > { %v7372_v33 = vpop.eup %7371  ;;  %5574 = vrot.lane.b32.xlu0 %v10491_v16, %s7450_s21  ;;  %v10501_v14 = vpack.c.bf16 %v10491_v16, %v10487_v11 }
 0xa6b   : > { %v7374_v1 = vpop.eup %7373  ;;  %v10505_v19 = vpack.c.bf16 %v10495_v27, %v10489_v8 }
 0xa6c   : > { %v7376_v30 = vpop.eup %7375  ;;  %5612 = vrot.lane.b32.xlu1 %v10487_v11, %s7449_s20  ;;  %5736 = vst [vmem:[#allocation4 + $0x80] sm:$0xff] %v10501_v14 }
 0xa6d   : > { %v7378_v37 = vpop.eup %7377  ;;  %5737 = vst [vmem:[#allocation4 + $0x88] sm:$0xff] %v10505_v19 }
 0xa6e   : > { %v7380_v23 = vpop.eup %7379  ;;  %v10511_v24 = vmul.f32 %v7378_v37, %v7370_v2  ;;  %5614 = vrot.lane.b32.xlu0 %v10491_v16, %s7449_s20 }
 0xa6f   : > { %v7382_v0 = vpop.eup %7381  ;;  %v10515_v60 = vmul.f32 %v7380_v23, %v7372_v33 }
 0xa70   : > { %v7384_v63 = vpop.eup %7383  ;;  %v10517_v35 = vmul.f32 %v7382_v0, %v7374_v1  ;;  %5652 = vrot.lane.b32.xlu1 %v10487_v11, %s7448_s19 }
 0xa71   : > { %v10521_v10 = vmul.f32 %v7384_v63, %v7376_v30 }
 0xa72   : > { %5654 = vrot.lane.b32.xlu0 %v10491_v16, %s7448_s19  ;;  %v10527_v3 = vpack.c.bf16 %v10517_v35, %v10511_v24 }
 0xa73   : > { %v10531_v62 = vpack.c.bf16 %v10521_v10, %v10515_v60 }
 0xa74   : > { %5692 = vrot.lane.b32.xlu1 %v10487_v11, %s7451_s22  ;;  %5738 = vst [vmem:[#allocation4 + $0x90] sm:$0xff] %v10527_v3 }
 0xa75   : > { %5739 = vst [vmem:[#allocation4 + $0x98] sm:$0xff] %v10531_v62 }
 0xa76   : > { %5694 = vrot.lane.b32.xlu0 %v10491_v16, %s7451_s22 }
 0xa78   : > { %5740 = vrot.lane.b32.xlu1 %v10487_v11, %s7452_s23 }
 0xa7a   : > { %5742 = vrot.lane.b32.xlu0 %v10491_v16, %s7452_s23 }
 0xa7c   : > { %5580 = vrot.lane.b32.xlu1 %v10489_v8, %s7450_s21 }
 0xa7e   : > { %5582 = vrot.lane.b32.xlu0 %v10495_v27, %s7450_s21 }
 0xa80   : > { %5620 = vrot.lane.b32.xlu1 %v10489_v8, %s7449_s20 }
 0xa82   : > { %5622 = vrot.lane.b32.xlu0 %v10495_v27, %s7449_s20 }
 0xa84   : > { %5660 = vrot.lane.b32.xlu1 %v10489_v8, %s7448_s19 }
 0xa86   : > { %5662 = vrot.lane.b32.xlu0 %v10495_v27, %s7448_s19 }
 0xa88   : > { %5700 = vrot.lane.b32.xlu1 %v10489_v8, %s7451_s22 }
 0xa8a   : > { %5702 = vrot.lane.b32.xlu0 %v10495_v27, %s7451_s22 }
 0xa8c   : > { %5748 = vrot.lane.b32.xlu1 %v10489_v8, %s7452_s23 }
 0xa8e   : > { %5750 = vrot.lane.b32.xlu0 %v10495_v27, %s7452_s23 }
 0xa90   : > { %5576 = vrot.lane.b32.xlu1 %v10511_v24, %s7450_s21 }
 0xa92   : > { %5578 = vrot.lane.b32.xlu0 %v10517_v35, %s7450_s21 }
 0xa94   : > { %5616 = vrot.lane.b32.xlu1 %v10511_v24, %s7449_s20 }
 0xa96   : > { %5618 = vrot.lane.b32.xlu0 %v10517_v35, %s7449_s20 }
 0xa98   : > { %5656 = vrot.lane.b32.xlu1 %v10511_v24, %s7448_s19 }
 0xa9a   : > { %5658 = vrot.lane.b32.xlu0 %v10517_v35, %s7448_s19 }
 0xa9c   : > { %5696 = vrot.lane.b32.xlu1 %v10511_v24, %s7451_s22 }
 0xa9e   : > { %5698 = vrot.lane.b32.xlu0 %v10517_v35, %s7451_s22 }
 0xaa0   : > { %5744 = vrot.lane.b32.xlu1 %v10511_v24, %s7452_s23 }
 0xaa2   : > { %5746 = vrot.lane.b32.xlu0 %v10517_v35, %s7452_s23 }
 0xaa4   : > { %5584 = vrot.lane.b32.xlu1 %v10515_v60, %s7450_s21 }
 0xaa6   : > { %5586 = vrot.lane.b32.xlu0 %v10521_v10, %s7450_s21 }
 0xaa8   : > { %5780 = vrot.lane.b32.xlu1 %v10487_v11, %s11034_s12 }
 0xaaa   : > { %5782 = vrot.lane.b32.xlu0 %v10491_v16, %s11034_s12 }
 0xaac   : > { %5624 = vrot.lane.b32.xlu1 %v10515_v60, %s7449_s20 }
 0xaae   : > { %5626 = vrot.lane.b32.xlu0 %v10521_v10, %s7449_s20 }
 0xab0   : > { %5664 = vrot.lane.b32.xlu1 %v10515_v60, %s7448_s19 }
 0xab2   : > { %5790 = vrot.lane.b32.xlu0 %v10495_v27, %s11034_s12 }
 0xab4   : > { %5704 = vrot.lane.b32.xlu1 %v10515_v60, %s7451_s22 }
 0xab6   : > { %5666 = vrot.lane.b32.xlu0 %v10521_v10, %s7448_s19 }
 0xab8   : > { %5752 = vrot.lane.b32.xlu1 %v10515_v60, %s7452_s23 }
 0xaba   : > { %5786 = vrot.lane.b32.xlu0 %v10517_v35, %s11034_s12 }
 0xabc   : > { %5788 = vrot.lane.b32.xlu1 %v10489_v8, %s11034_s12 }
 0xabe   : > { %5706 = vrot.lane.b32.xlu0 %v10521_v10, %s7451_s22 }
 0xac0   : > { %5784 = vrot.lane.b32.xlu1 %v10511_v24, %s11034_s12 }
 0xac2   : > { %5822 = vrot.lane.b32.xlu0 %v10491_v16, %s11036_s25 }
 0xac4   : > { %5792 = vrot.lane.b32.xlu1 %v10515_v60, %s11034_s12 }
 0xac6   : > { %5830 = vrot.lane.b32.xlu0 %v10495_v27, %s11036_s25 }
 0xac8   : > { %5820 = vrot.lane.b32.xlu1 %v10487_v11, %s11036_s25 }
 0xaca   : > { %5826 = vrot.lane.b32.xlu0 %v10517_v35, %s11036_s25 }
 0xacc   : > { %5828 = vrot.lane.b32.xlu1 %v10489_v8, %s11036_s25 }
 0xace   : > { %5754 = vrot.lane.b32.xlu0 %v10521_v10, %s7452_s23 }
 0xad0   : > { %5824 = vrot.lane.b32.xlu1 %v10511_v24, %s11036_s25 }
 0xad2   : > { %5862 = vrot.lane.b32.xlu0 %v10491_v16, %s11035_s13 }
 0xad4   : > { %5832 = vrot.lane.b32.xlu1 %v10515_v60, %s11036_s25 }
 0xad6   : > { %5794 = vrot.lane.b32.xlu0 %v10521_v10, %s11034_s12 }
 0xad8   : > { %5860 = vrot.lane.b32.xlu1 %v10487_v11, %s11035_s13 }
 0xada   : > { %v5573_v42 = vpop.permute.xlu1 %5572  ;;  %5870 = vrot.lane.b32.xlu0 %v10495_v27, %s11035_s13 }
 0xadc   : > { %v5575_v48 = vpop.permute.xlu0 %5574  ;;  %5868 = vrot.lane.b32.xlu1 %v10489_v8, %s11035_s13 }
 0xade   : > { %v5613_v51 = vpop.permute.xlu1 %5612  ;;  %5834 = vrot.lane.b32.xlu0 %v10521_v10, %s11036_s25 }
 0xae0   : > { %v5615_v50 = vpop.permute.xlu0 %5614  ;;  %5864 = vrot.lane.b32.xlu1 %v10511_v24, %s11035_s13 }
 0xae2   : > { %v5653_v47 = vpop.permute.xlu1 %5652  ;;  %5866 = vrot.lane.b32.xlu0 %v10517_v35, %s11035_s13 }
 0xae4   : > { %v5655_v7 = vpop.permute.xlu0 %5654  ;;  %5872 = vrot.lane.b32.xlu1 %v10515_v60, %s11035_s13 }
 0xae6   : > { %v5693_v12 = vpop.permute.xlu1 %5692  ;;  %5874 = vrot.lane.b32.xlu0 %v10521_v10, %s11035_s13 }
 0xae8   : > { %v5695_v58 = vpop.permute.xlu0 %5694  ;;  %2671 = vperm.xlu1 %6894, %v2668_v52  }
 0xaea   : > { %v5741_v20 = vpop.permute.xlu1 %5740  ;;  %3949 = vperm.xlu0 %6893, %v2668_v52  }
 0xaec   : > { %v10661_v17 = vpop.permute.xlu0 %5742  ;;  %5228 = vperm.xlu1 %6894, %v2668_v52  }
 0xaee   : > { %v5581_v6 = vpop.permute.xlu1 %5580  ;;  %5943 = vperm.xlu0 %6893, %v2668_v52  }
 0xaef   : > { %v5588_v40 = vsel %vm343_vm1, %v5573_v42, %v5581_v6  ;;  %v5592_v22 = vsel %vm343_vm1, %v5581_v6, %v5573_v42 }
 0xaf0   : > { %v5583_v57 = vpop.permute.xlu0 %5582  ;;  %v5596_v26 = vmul.f32 %v5592_v22, %v8267_v4  ;;  %v5597_v25 = vmul.f32 %v5588_v40, %v8271_v31 }
 0xaf1   : > { %v5589_v46 = vsel %vm343_vm1, %v5575_v48, %v5583_v57  ;;  %v5593_v18 = vsel %vm343_vm1, %v5583_v57, %v5575_v48 }
 0xaf2   : > { %v5598_v45 = vmul.f32 %v5593_v18, %v8267_v4  ;;  %v5599_v11 = vmul.f32 %v5589_v46, %v8271_v31  ;;  %v5621_v59 = vpop.permute.xlu1 %5620 }
 0xaf3   : > { %v5628_v8 = vsel %vm352_vm0, %v5613_v51, %v5621_v59  ;;  %v5632_v41 = vsel %vm352_vm0, %v5621_v59, %v5613_v51 }
 0xaf4   : > { %v5604_v16 = vpack.c.bf16 %v5598_v45, %v5596_v26  ;;  %v5605_v2 = vpack.c.bf16 %v5599_v11, %v5597_v25  ;;  %v5623_v27 = vpop.permute.xlu0 %5622  ;;  %v5636_v30 = vmul.f32 %v5632_v41, %v8317_v21  ;;  %v5637_v37 = vmul.f32 %v5628_v8, %v8321_v43 }
 0xaf5   : > { %v5629_v33 = vsel %vm352_vm0, %v5615_v50, %v5623_v27  ;;  %v5633_v1 = vsel %vm352_vm0, %v5623_v27, %v5615_v50 }
 0xaf6   : > { %5608 = vst [vmem:[#allocation4] sm:$0xff] %v5604_v16  ;;  %5609 = vst [vmem:[#allocation4 + $0x8] sm:$0xff] %v5605_v2  ;;  %v5638_v23 = vmul.f32 %v5633_v1, %v8317_v21  ;;  %v5639_v24 = vmul.f32 %v5629_v33, %v8321_v43  ;;  %v5661_v0 = vpop.permute.xlu1 %5660  ;;  %5959 = vmatprep.subr.bf16.mxu1 %v5605_v2 }
 0xaf7   : > { %v5668_v60 = vsel %vm367_vm3, %v5653_v47, %v5661_v0  ;;  %v5672_v63 = vsel %vm367_vm3, %v5661_v0, %v5653_v47  ;;  %5960 = vmatpush1.bf16.msra.mxu1 %v5604_v16 }
 0xaf8   : > { %v10691_v35 = vpack.c.bf16 %v5638_v23, %v5636_v30  ;;  %v10693_v10 = vpack.c.bf16 %v5639_v24, %v5637_v37  ;;  %v5663_v32 = vpop.permute.xlu0 %5662  ;;  %v5676_v51 = vmul.f32 %v5672_v63, %v8365_v38  ;;  %v5677_v50 = vmul.f32 %v5668_v60, %v8368_v15 }
 0xaf9   : > { %v5669_v42 = vsel %vm367_vm3, %v5655_v7, %v5663_v32  ;;  %v5673_v48 = vsel %vm367_vm3, %v5663_v32, %v5655_v7 }
 0xafa   : > { %5648 = vst [vmem:[#allocation4 + $0x20] sm:$0xff] %v10691_v35  ;;  %5649 = vst [vmem:[#allocation4 + $0x28] sm:$0xff] %v10693_v10  ;;  %v5678_v47 = vmul.f32 %v5673_v48, %v8365_v38  ;;  %v5679_v52 = vmul.f32 %v5669_v42, %v8368_v15  ;;  %v5701_v6 = vpop.permute.xlu1 %5700 }
 0xafb   : > { %v5708_v40 = vsel %vm380_vm2, %v5693_v12, %v5701_v6  ;;  %v5712_v22 = vsel %vm380_vm2, %v5701_v6, %v5693_v12 }
 0xafc   : > { %v10709_v7 = vpack.c.bf16 %v5678_v47, %v5676_v51  ;;  %v10711_v57 = vpack.c.bf16 %v5679_v52, %v5677_v50  ;;  %v5703_v46 = vpop.permute.xlu0 %5702  ;;  %v5716_v25 = vmul.f32 %v5712_v22, %v8412_v54  ;;  %v5717_v45 = vmul.f32 %v5708_v40, %v8415_v28 }
 0xafd   : > { %v5709_v18 = vsel %vm380_vm2, %v5695_v58, %v5703_v46  ;;  %v5713_v26 = vsel %vm380_vm2, %v5703_v46, %v5695_v58 }
 0xafe   : > { %5688 = vst [vmem:[#allocation4 + $0x40] sm:$0xff] %v10709_v7  ;;  %5689 = vst [vmem:[#allocation4 + $0x48] sm:$0xff] %v10711_v57  ;;  %v5718_v12 = vmul.f32 %v5713_v26, %v8412_v54  ;;  %v5719_v11 = vmul.f32 %v5709_v18, %v8415_v28  ;;  %v5749_v59 = vpop.permute.xlu1 %5748 }
 0xaff   : > { %v5756_v8 = vsel %vm393_vm7, %v5741_v20, %v5749_v59  ;;  %v5760_v41 = vsel %vm393_vm7, %v5749_v59, %v5741_v20 }
 0xb00   : > { %v10727_v58 = vpack.c.bf16 %v5718_v12, %v5716_v25  ;;  %v10729_v16 = vpack.c.bf16 %v5719_v11, %v5717_v45  ;;  %v5751_v2 = vpop.permute.xlu0 %5750  ;;  %v5764_v1 = vmul.f32 %v5756_v8, %v8450_v56  ;;  %v5765_v20 = vmul.f32 %v5760_v41, %v8445_v44 }
 0xb01   : > { %v5757_v27 = vsel %vm393_vm7, %v10661_v17, %v5751_v2  ;;  %v5761_v33 = vsel %vm393_vm7, %v5751_v2, %v10661_v17 }
 0xb02   : > { %5728 = vst [vmem:[#allocation4 + $0x60] sm:$0xff] %v10727_v58  ;;  %5729 = vst [vmem:[#allocation4 + $0x68] sm:$0xff] %v10729_v16  ;;  %v5766_v30 = vmul.f32 %v5757_v27, %v8450_v56  ;;  %v5767_v37 = vmul.f32 %v5761_v33, %v8445_v44  ;;  %v5577_v23 = vpop.permute.xlu1 %5576 }
 0xb04   : > { %v10743_v24 = vpack.c.bf16 %v5766_v30, %v5764_v1  ;;  %v10745_v0 = vpack.c.bf16 %v5767_v37, %v5765_v20  ;;  %v5579_v60 = vpop.permute.xlu0 %5578 }
 0xb06   : > { %5776 = vst [vmem:[#allocation4 + $0xa0] sm:$0xff] %v10743_v24  ;;  %5777 = vst [vmem:[#allocation4 + $0xa8] sm:$0xff] %v10745_v0  ;;  %v5617_v17 = vpop.permute.xlu1 %5616 }
 0xb08   : > { %v5619_v63 = vpop.permute.xlu0 %5618 }
 0xb0a   : > { %v5657_v32 = vpop.permute.xlu1 %5656 }
 0xb0c   : > { %v5659_v42 = vpop.permute.xlu0 %5658 }
 0xb0e   : > { %v5697_v48 = vpop.permute.xlu1 %5696 }
 0xb10   : > { %v10749_v51 = vpop.permute.xlu0 %5698 }
 0xb12   : > { %v10751_v50 = vpop.permute.xlu1 %5744 }
 0xb14   : > { %v10753_v47 = vpop.permute.xlu0 %5746 }
 0xb16   : > { %v5585_v52 = vpop.permute.xlu1 %5584 }
 0xb17   : > { %v5590_v6 = vsel %vm343_vm1, %v5577_v23, %v5585_v52  ;;  %v5594_v40 = vsel %vm343_vm1, %v5585_v52, %v5577_v23 }
 0xb18   : > { %v5587_v22 = vpop.permute.xlu0 %5586  ;;  %v5600_v26 = vmul.f32 %v5594_v40, %v8267_v4  ;;  %v5601_v25 = vmul.f32 %v5590_v6, %v8271_v31 }
 0xb19   : > { %v5591_v46 = vsel %vm343_vm1, %v5579_v60, %v5587_v22  ;;  %v5595_v18 = vsel %vm343_vm1, %v5587_v22, %v5579_v60 }
 0xb1a   : > { %v5602_v45 = vmul.f32 %v5595_v18, %v8267_v4  ;;  %v5603_v12 = vmul.f32 %v5591_v46, %v8271_v31  ;;  %v5781_v11 = vpop.permute.xlu1 %5780 }
 0xb1c   : > { %v5606_v59 = vpack.c.bf16 %v5602_v45, %v5600_v26  ;;  %v5607_v8 = vpack.c.bf16 %v5603_v12, %v5601_v25  ;;  %v5783_v41 = vpop.permute.xlu0 %5782 }
 0xb1e   : > { %5610 = vst [vmem:[#allocation4 + $0x10] sm:$0xff] %v5606_v59  ;;  %5611 = vst [vmem:[#allocation4 + $0x18] sm:$0xff] %v5607_v8  ;;  %v5625_v2 = vpop.permute.xlu1 %5624  ;;  %5961 = vmatprep.subr.bf16.mxu1 %v5607_v8 }
 0xb1f   : > { %v5630_v27 = vsel %vm352_vm0, %v5617_v17, %v5625_v2  ;;  %v5634_v33 = vsel %vm352_vm0, %v5625_v2, %v5617_v17  ;;  %5962 = vmatpush1.bf16.msra.mxu1 %v5606_v59 }
 0xb20   : > { %v5627_v1 = vpop.permute.xlu0 %5626  ;;  %5963 = vmatprep.subr.bf16.mxu1 %v10693_v10  ;;  %v5640_v20 = vmul.f32 %v5634_v33, %v8317_v21  ;;  %v5641_v30 = vmul.f32 %v5630_v27, %v8321_v43 }
 0xb21   : > { %v5631_v4 = vsel %vm352_vm0, %v5619_v63, %v5627_v1  ;;  %v5635_v31 = vsel %vm352_vm0, %v5627_v1, %v5619_v63 }
 0xb22   : > { %v5642_v37 = vmul.f32 %v5635_v31, %v8317_v21  ;;  %v5643_v23 = vmul.f32 %v5631_v4, %v8321_v43  ;;  %v5665_v60 = vpop.permute.xlu1 %5664 }
 0xb23   : > { %5964 = vmatpush1.bf16.msra.mxu1 %v10691_v35  ;;  %v5670_v63 = vsel %vm367_vm3, %v5657_v32, %v5665_v60  ;;  %v5674_v40 = vsel %vm367_vm3, %v5665_v60, %v5657_v32 }
 0xb24   : > { %v5646_v17 = vpack.c.bf16 %v5642_v37, %v5640_v20  ;;  %v5647_v52 = vpack.c.bf16 %v5643_v23, %v5641_v30  ;;  %v5791_v10 = vpop.permute.xlu0 %5790  ;;  %v5680_v22 = vmul.f32 %v5674_v40, %v8365_v38  ;;  %v5681_v46 = vmul.f32 %v5670_v63, %v8368_v15 }
 0xb25   : > { %v5797_v12 = vsel %vm406_vm8, %v5783_v41, %v5791_v10 }
 0xb26   : > { %5650 = vst [vmem:[#allocation4 + $0x30] sm:$0xff] %v5646_v17  ;;  %5651 = vst [vmem:[#allocation4 + $0x38] sm:$0xff] %v5647_v52  ;;  %v5705_v6 = vpop.permute.xlu1 %5704  ;;  %5965 = vmatprep.subr.bf16.mxu1 %v5647_v52  ;;  %v5806_v2 = vmul.f32 %v5797_v12, %v8482_v53 }
 0xb27   : > { %5966 = vmatpush1.bf16.msra.mxu1 %v5646_v17  ;;  %v5710_v59 = vsel %vm380_vm2, %v5697_v48, %v5705_v6 }
 0xb28   : > { %v5667_v21 = vpop.permute.xlu0 %5666  ;;  %5967 = vmatprep.subr.bf16.mxu1 %v10711_v57  ;;  %v5721_v4 = vmul.f32 %v5710_v59, %v8415_v28 }
 0xb29   : > { %v5671_v43 = vsel %vm367_vm3, %v5659_v42, %v5667_v21  ;;  %v5675_v35 = vsel %vm367_vm3, %v5667_v21, %v5659_v42  ;;  %v5801_v42 = vsel %vm406_vm8, %v5791_v10, %v5783_v41 }
 0xb2a   : > { %v5682_v18 = vmul.f32 %v5675_v35, %v8365_v38  ;;  %v5683_v26 = vmul.f32 %v5671_v43, %v8368_v15  ;;  %v5753_v25 = vpop.permute.xlu1 %5752  ;;  %v5714_v38 = vsel %vm380_vm2, %v5705_v6, %v5697_v48  ;;  %v5807_v41 = vmul.f32 %v5801_v42, %v8485_v34 }
 0xb2b   : > { %5968 = vmatpush1.bf16.msra.mxu1 %v10709_v7  ;;  %v5720_v1 = vmul.f32 %v5714_v38, %v8412_v54  ;;  %v5758_v63 = vsel %vm393_vm7, %v10751_v50, %v5753_v25 }
 0xb2c   : > { %v5686_v32 = vpack.c.bf16 %v5682_v18, %v5680_v22  ;;  %v5687_v45 = vpack.c.bf16 %v5683_v26, %v5681_v46  ;;  %v10795_v57 = vpop.permute.xlu0 %5786 }
 0xb2e   : > { %5690 = vst [vmem:[#allocation4 + $0x50] sm:$0xff] %v5686_v32  ;;  %5691 = vst [vmem:[#allocation4 + $0x58] sm:$0xff] %v5687_v45  ;;  %v5789_v15 = vpop.permute.xlu1 %5788  ;;  %5969 = vmatprep.subr.bf16.mxu1 %v5687_v45 }
 0xb2f   : > { %v5796_v7 = vsel %vm406_vm8, %v5781_v11, %v5789_v15  ;;  %v5800_v8 = vsel %vm406_vm8, %v5789_v15, %v5781_v11  ;;  %5970 = vmatpush1.bf16.msra.mxu1 %v5686_v32 }
 0xb30   : > { %v5804_v27 = vmul.f32 %v5796_v7, %v8482_v53  ;;  %v5805_v33 = vmul.f32 %v5800_v8, %v8485_v34  ;;  %v5707_v48 = vpop.permute.xlu0 %5706  ;;  %5971 = vmatprep.subr.bf16.mxu1 %v10729_v16 }
 0xb31   : > { %v5711_v11 = vsel %vm380_vm2, %v10749_v51, %v5707_v48  ;;  %v5715_v31 = vsel %vm380_vm2, %v5707_v48, %v10749_v51 }
 0xb32   : > { %v10822_v20 = vpack.c.bf16 %v5806_v2, %v5804_v27  ;;  %v5813_v30 = vpack.c.bf16 %v5807_v41, %v5805_v33  ;;  %v5722_v37 = vmul.f32 %v5715_v31, %v8412_v54  ;;  %v5723_v23 = vmul.f32 %v5711_v11, %v8415_v28  ;;  %v5785_v16 = vpop.permute.xlu1 %5784 }
 0xb33   : > { %5972 = vmatpush1.bf16.msra.mxu1 %v10727_v58 }
 0xb34   : > { %5816 = vst [vmem:[#allocation4 + $0xc0] sm:$0xff] %v10822_v20  ;;  %5817 = vst [vmem:[#allocation4 + $0xc8] sm:$0xff] %v5813_v30  ;;  %v5726_v60 = vpack.c.bf16 %v5722_v37, %v5720_v1  ;;  %v5727_v17 = vpack.c.bf16 %v5723_v23, %v5721_v4  ;;  %v5823_v52 = vpop.permute.xlu0 %5822 }
 0xb36   : > { %5730 = vst [vmem:[#allocation4 + $0x70] sm:$0xff] %v5726_v60  ;;  %5731 = vst [vmem:[#allocation4 + $0x78] sm:$0xff] %v5727_v17  ;;  %v5793_v10 = vpop.permute.xlu1 %5792  ;;  %5973 = vmatprep.subr.bf16.mxu1 %v5727_v17 }
 0xb37   : > { %5974 = vmatpush1.bf16.msra.mxu1 %v5726_v60 }
 0xb38   : > { %v5831_v51 = vpop.permute.xlu0 %5830  ;;  %5975 = vmatprep.subr.bf16.mxu1 %v10505_v19  ;;  %v5762_v19 = vsel %vm393_vm7, %v5753_v25, %v10751_v50  ;;  %v5768_v50 = vmul.f32 %v5758_v63, %v8450_v56 }
 0xb39   : > { %v5837_v58 = vsel %vm419_vm9, %v5823_v52, %v5831_v51  ;;  %v5841_v6 = vsel %vm419_vm9, %v5831_v51, %v5823_v52  ;;  %v5769_v18 = vmul.f32 %v5762_v19, %v8445_v44 }
 0xb3a   : > { %v5821_v54 = vpop.permute.xlu1 %5820  ;;  %v5846_v21 = vmul.f32 %v5837_v58, %v11061_v39  ;;  %v5847_v43 = vmul.f32 %v5841_v6, %v8588_v5 }
 0xb3b   : > { %5976 = vmatpush1.bf16.msra.mxu1 %v10501_v14 }
 0xb3c   : > { %v10830_v28 = vpop.permute.xlu0 %5826  ;;  %5977 = vmatprep.subr.bf16.mxu1 %v10531_v62 }
 0xb3e   : > { %v5829_v40 = vpop.permute.xlu1 %5828 }
 0xb3f   : > { %v5836_v14 = vsel %vm419_vm9, %v5821_v54, %v5829_v40  ;;  %v5840_v62 = vsel %vm419_vm9, %v5829_v40, %v5821_v54  ;;  %5978 = vmatpush1.bf16.msra.mxu1 %v10527_v3 }
 0xb40   : > { %v5844_v35 = vmul.f32 %v5836_v14, %v11061_v39  ;;  %v5845_v22 = vmul.f32 %v5840_v62, %v8588_v5  ;;  %v5755_v46 = vpop.permute.xlu0 %5754  ;;  %5979 = vmatprep.subr.bf16.mxu1 %v10745_v0 }
 0xb41   : > { %v5759_v26 = vsel %vm393_vm7, %v10753_v47, %v5755_v46  ;;  %v5763_v3 = vsel %vm393_vm7, %v5755_v46, %v10753_v47  ;;  %v5798_v47 = vsel %vm406_vm8, %v5785_v16, %v5793_v10 }
 0xb42   : > { %v5852_v25 = vpack.c.bf16 %v5846_v21, %v5844_v35  ;;  %v5853_v32 = vpack.c.bf16 %v5847_v43, %v5845_v22  ;;  %v5770_v45 = vmul.f32 %v5759_v26, %v8450_v56  ;;  %v5771_v12 = vmul.f32 %v5763_v3, %v8445_v44  ;;  %v5825_v42 = vpop.permute.xlu1 %5824 }
 0xb43   : > { %5980 = vmatpush1.bf16.msra.mxu1 %v10743_v24  ;;  %v5802_v56 = vsel %vm406_vm8, %v5793_v10, %v5785_v16  ;;  %v5808_v8 = vmul.f32 %v5798_v47, %v8482_v53 }
 0xb44   : > { %5856 = vst [vmem:[#allocation4 + $0xe0] sm:$0xff] %v5852_v25  ;;  %5857 = vst [vmem:[#allocation4 + $0xe8] sm:$0xff] %v5853_v32  ;;  %v5774_v0 = vpack.c.bf16 %v5770_v45, %v5768_v50  ;;  %v5775_v59 = vpack.c.bf16 %v5771_v12, %v5769_v18  ;;  %v5863_v38 = vpop.permute.xlu0 %5862  ;;  %v5809_v2 = vmul.f32 %v5802_v56, %v8485_v34  ;;  %v11124_v12 = vld [vmem:[#allocation21_spill] sm:$0xff] }
 0xb46   : > { %5778 = vst [vmem:[#allocation4 + $0xb0] sm:$0xff] %v5774_v0  ;;  %5779 = vst [vmem:[#allocation4 + $0xb8] sm:$0xff] %v5775_v59  ;;  %v5833_v15 = vpop.permute.xlu1 %5832  ;;  %5981 = vmatprep.subr.bf16.mxu1 %v5775_v59  ;;  %v11125_v59 = vld [vmem:[#allocation22_spill] sm:$0xff] }
 0xb47   : > { %5982 = vmatpush1.bf16.msra.mxu1 %v5774_v0  ;;  %v5838_v31 = vsel %vm419_vm9, %v5825_v42, %v5833_v15 }
 0xb48   : > { %v5795_v44 = vpop.permute.xlu0 %5794  ;;  %5983 = vmatprep.subr.bf16.mxu1 %v5813_v30  ;;  %v5848_v52 = vmul.f32 %v5838_v31, %v11061_v39 }
 0xb49   : > { %v5799_v24 = vsel %vm406_vm8, %v10795_v57, %v5795_v44  ;;  %v5803_v7 = vsel %vm406_vm8, %v5795_v44, %v10795_v57 }
 0xb4a   : > { %v5810_v41 = vmul.f32 %v5799_v24, %v8482_v53  ;;  %v5811_v27 = vmul.f32 %v5803_v7, %v8485_v34  ;;  %v5861_v33 = vpop.permute.xlu1 %5860  ;;  %v5842_v53 = vsel %vm419_vm9, %v5833_v15, %v5825_v42  ;;  %v11126_v15 = vld [vmem:[#allocation7_spill] sm:$0xff] }
 0xb4b   : > { %5984 = vmatpush1.bf16.msra.mxu1 %v10822_v20  ;;  %v5849_v10 = vmul.f32 %v5842_v53, %v8588_v5 }
 0xb4c   : > { %v5814_v48 = vpack.c.bf16 %v5810_v41, %v5808_v8  ;;  %v5815_v1 = vpack.c.bf16 %v5811_v27, %v5809_v2  ;;  %v5871_v4 = vpop.permute.xlu0 %5870 }
 0xb4d   : > { %v5877_v11 = vsel %vm432_vm12, %v5863_v38, %v5871_v4  ;;  %v5881_v57 = vsel %vm432_vm12, %v5871_v4, %v5863_v38 }
 0xb4e   : > { %5818 = vst [vmem:[#allocation4 + $0xd0] sm:$0xff] %v5814_v48  ;;  %5819 = vst [vmem:[#allocation4 + $0xd8] sm:$0xff] %v5815_v1  ;;  %v5869_v34 = vpop.permute.xlu1 %5868  ;;  %5985 = vmatprep.subr.bf16.mxu1 %v5815_v1  ;;  %v5886_v37 = vmul.f32 %v5877_v11, %v11062_v29  ;;  %v5887_v23 = vmul.f32 %v5881_v57, %v11063_v49 }
 0xb4f   : > { %v5876_v20 = vsel %vm432_vm12, %v5861_v33, %v5869_v34  ;;  %v5880_v30 = vsel %vm432_vm12, %v5869_v34, %v5861_v33  ;;  %5986 = vmatpush1.bf16.msra.mxu1 %v5814_v48 }
 0xb50   : > { %v5884_v16 = vmul.f32 %v5876_v20, %v11062_v29  ;;  %v5885_v60 = vmul.f32 %v5880_v30, %v11063_v49  ;;  %v5835_v17 = vpop.permute.xlu0 %5834  ;;  %5987 = vmatprep.subr.bf16.mxu1 %v5853_v32  ;;  %v5938_v32 = vld [vmem:[#allocation4 + $0x120] sm:$0xff] }
 0xb51   : > { %v5839_v51 = vsel %vm419_vm9, %v10830_v28, %v5835_v17  ;;  %v5843_v54 = vsel %vm419_vm9, %v5835_v17, %v10830_v28  ;;  %v6431_v28 = vcombine.low %v10638_v36, %v10638_v36 }
 0xb52   : > { %v5892_v58 = vpack.c.bf16 %v5886_v37, %v5884_v16  ;;  %v5893_v6 = vpack.c.bf16 %v5887_v23, %v5885_v60  ;;  %v5850_v63 = vmul.f32 %v5839_v51, %v11061_v39  ;;  %v5851_v19 = vmul.f32 %v5843_v54, %v8588_v5  ;;  %v5865_v40 = vpop.permute.xlu1 %5864 }
 0xb53   : > { %5988 = vmatpush1.bf16.msra.mxu1 %v5852_v25 }
 0xb54   : > { %5896 = vst [vmem:[#allocation4 + $0x100] sm:$0xff] %v5892_v58  ;;  %5897 = vst [vmem:[#allocation4 + $0x108] sm:$0xff] %v5893_v6  ;;  %v5854_v14 = vpack.c.bf16 %v5850_v63, %v5848_v52  ;;  %v5855_v62 = vpack.c.bf16 %v5851_v19, %v5849_v10  ;;  %v5867_v21 = vpop.permute.xlu0 %5866 }
 0xb56   : > { %5858 = vst [vmem:[#allocation4 + $0xf0] sm:$0xff] %v5854_v14  ;;  %5859 = vst [vmem:[#allocation4 + $0xf8] sm:$0xff] %v5855_v62  ;;  %v5873_v43 = vpop.permute.xlu1 %5872  ;;  %5989 = vmatprep.subr.bf16.mxu1 %v5855_v62 }
 0xb57   : > { %v5878_v35 = vsel %vm432_vm12, %v5865_v40, %v5873_v43  ;;  %v5882_v5 = vsel %vm432_vm12, %v5873_v43, %v5865_v40  ;;  %5990 = vmatpush1.bf16.msra.mxu1 %v5854_v14 }
 0xb58   : > { %v5875_v39 = vpop.permute.xlu0 %5874  ;;  %6000 = vmatprep.subr.bf16.mxu1 %v5893_v6  ;;  %v5888_v50 = vmul.f32 %v5878_v35, %v11062_v29  ;;  %v5889_v18 = vmul.f32 %v5882_v5, %v11063_v49 }
 0xb59   : > { %v5879_v22 = vsel %vm432_vm12, %v5867_v21, %v5875_v39  ;;  %v5883_v46 = vsel %vm432_vm12, %v5875_v39, %v5867_v21 }
 0xb5a   : > { %v5890_v36 = vmul.f32 %v5879_v22, %v11062_v29  ;;  %v5891_v26 = vmul.f32 %v5883_v46, %v11063_v49  ;;  %5992 = vmatmul.mubr.bf16.vlgmr.msra.gmra.mrb[76].mxu1 %v6431_v28  ;;  %v7000_v29 = vld [vmem:[%s10956_s3 + $0xc8] ss:$0 sps:$4 sm:$0xff]  }
 0xb5b   : > { %6001 = vmatpush1.bf16.msra.mxu1 %v5892_v58  ;;  %6032 = vmatprep.mubr.bf16.mxu1 %v11122_v55  ;;  %v11123_v55 = vld [vmem:[#allocation23_spill] sm:$0xff] }
 0xb5c   : > { %v5894_v3 = vpack.c.bf16 %v5890_v36, %v5888_v50  ;;  %v5895_v25 = vpack.c.bf16 %v5891_v26, %v5889_v18 }
 0xb5e   : > { %5898 = vst [vmem:[#allocation4 + $0x110] sm:$0xff] %v5894_v3  ;;  %5899 = vst [vmem:[#allocation4 + $0x118] sm:$0xff] %v5895_v25  ;;  %6002 = vmatprep.subr.bf16.mxu1 %v5895_v25 }
 0xb5f   : > { %6003 = vmatpush1.bf16.msra.mxu1 %v5894_v3 }
 0xb60   : > { %6004 = vmatprep.subr.bf16.mxu1 %v5939_v9 }
 0xb63   : > { %6005 = vmatpush1.bf16.msra.mxu1 %v5938_v32 }
 0xb66   : > { %6434 = vmatmul.mubr.msk.bf16.vlgmr.msra.gmra.mrb[76].mxu1 %vm2398_vm6, %v7000_v29 }
 0xb67   : > { %v2672_v49 = vpop.permute.xlu1 %2671 }
 0xb68   : > { %v2674_v45 = vadd.f32 %v2672_v49, %v11123_v55  ;;  %v2675_v42 = vadd.f32 %v2672_v49, %v11124_v12 }
 0xb69   : > { %v3950_v0 = vpop.permute.xlu0 %3949 }
 0xb6a   : > { %2676 = vst [vmem:[%s7550_s18] sm:$0xff] %v2674_v45  ;;  %2677 = vst [vmem:[%s7550_s18 + $0x8] sm:$0xff] %v2675_v42  ;;  %v3952_v38 = vadd.f32 %v3950_v0, %v11125_v59  ;;  %v3953_v47 = vadd.f32 %v3950_v0, %v11126_v15 }
 0xb6b   : > { %v5229_v56 = vpop.permute.xlu1 %5228 }
 0xb6c   : > { %6342 = vst [vmem:[%s7550_s18 + $0x10] sm:$0xff] %v3952_v38  ;;  %6343 = vst [vmem:[%s7550_s18 + $0x18] sm:$0xff] %v3953_v47  ;;  %v5231_v44 = vadd.f32 %v5229_v56, %v10457_v61  ;;  %v5232_v24 = vadd.f32 %v5229_v56, %v10460_v13 }
 0xb6d   : > { %v5944_v7 = vpop.permute.xlu0 %5943 }
 0xb6e   : > { %6405 = vst [vmem:[%s7550_s18 + $0x20] sm:$0xff] %v5231_v44  ;;  %6406 = vst [vmem:[%s7550_s18 + $0x28] sm:$0xff] %v5232_v24 }
 0xc39   : > { %v6034_v8 = vpop.f32.mrb[76].mxu1 }
 0xc3a   : > { %v6505_v2 = vadd.f32 %v6034_v8, %v5944_v7  ;;  %v6036_v41 = vpop.f32.mrb[77].mxu1 }
 0xc3b   : > { %v6506_v27 = vadd.f32 %v6036_v41, %v5944_v7  ;;  %v6038_v33 = vpop.f32.mrb[78].mxu1 }
 0xc3c   : > { %6435 = vst [vmem:[%s7550_s18 + $0x30] sm:$0xff] %v6505_v2  ;;  %v6039_v48 = vpop.f32.mrb[79].mxu1 }
 0xc3d   : > { %6436 = vst [vmem:[%s7550_s18 + $0x38] sm:$0xff] %v6506_v27 }
 0xc3e PF: > { %s17_s28 = sadd.s32 1, %s7446_s28   ;;  %s11127_s24 = smov %s7438_s26 }
 0xc3f   : > { %p14_p9 = scmp.ge.s32.totalorder %s17_s28, 6   ;;  %s11128_s25 = smov %s7442_s27 }
 0xc40   : > { %s11129_s26 = smov %s11132_s29  ;;  %s11130_s27 = smov %s11136_s30 }
 0xc41   :  { %16 = sbr.rel (!%p14_p9) target bundleno = 3 (0x3), region = 92 }

</bundles_post_ra>
